<compile_context>
chip_gen: v7x
topology: tpu7x:2x2x1
jax: 0.10.0
libtpu: 0.0.40
codegen_flags: <defaults>
</compile_context>

<pallas_src>
import functools
import math

import jax
import jax.numpy as jnp
from jax.experimental import pallas as pl
from jax.experimental.pallas import tpu as pltpu

_EPS = 1e-8
_VMEM_LIMIT = 32 * 1024 * 1024   # explicit scoped-VMEM budget (safe on v5e/v6e/v7x)


# ----------------------------------------------------------------------------
# In-kernel building blocks.  Scalars: (n, c).  Vectors: (3, n, c) xyz-leading.
# ----------------------------------------------------------------------------
def _mm(a, w):
    """2-D matmul on the MXU with bf16 inputs / f32 accumulation.
    K == 1 takes the VPU broadcast (outer-product) path."""
    if a.shape[-1] == 1:
        return a.astype(jnp.float32) * w.astype(jnp.float32)
    return jnp.dot(a.astype(jnp.bfloat16), w, preferred_element_type=jnp.float32)


def _vmm(v3, w):
    """(3, n, c) @ (c, h) -> (3, n, h): xyz folded into matmul rows (one MXU pass)."""
    x, n, c = v3.shape
    if c == 1:
        return v3.astype(jnp.float32) * w.astype(jnp.float32)
    out = jnp.dot(v3.reshape(x * n, c).astype(jnpp := jnp.bfloat16), w,
                  preferred_element_type=jnp.float32)
    return out.reshape(x, n, w.shape[-1])


def _vnorm2(v3):
    """Per-channel squared xyz norm with GVP eps clamp: (3, n, c) -> (n, c)."""
    return jnp.maximum(jnp.sum(v3 * v3, axis=0), _EPS)


def _vnorm(v3):
    return jnp.sqrt(_vnorm2(v3))


def _gvp_core(vh3, s_lin, ws_v, b, wv, scalar_act, vector_act):
    """Shared GVP tail given vh3 = V_in @ Wh (3,n,h) and s_lin = S_in @ Ws_s."""
    vn = _vnorm(vh3)                                           # (n, h)
    s = s_lin + _mm(vn, ws_v) + b.astype(jnp.float32)          # (n, so)
    if scalar_act:                                             # ReLU
        s = jnp.maximum(s, 0.0)
    v_out = None
    if wv is not None:
        v_out = _vmm(vh3, wv)                                  # (3, n, vo)
        if vector_act:                                         # sigmoid-norm gate
            gate = jax.nn.sigmoid(_vnorm(v_out))               # (n, vo)
            v_out = v_out * gate[None]                         # single broadcast mul
    return s, v_out


def _gvp(s, v3, wh, ws_s, ws_v, b, wv, scalar_act, vector_act):
    return _gvp_core(_vmm(v3, wh), _mm(s, ws_s), ws_v, b, wv,
                     scalar_act, vector_act)


def _tuple_layernorm(s, v3, g, b):
    """GVP tuple LayerNorm: nn.LayerNorm on scalars, RMS-over-channels on vectors."""
    mu = jnp.mean(s, axis=-1, keepdims=True)
    xc = s - mu
    var = jnp.mean(xc * xc, axis=-1, keepdims=True)
    s_out = xc * jax.lax.rsqrt(var + 1e-5) * g + b
    inv = jax.lax.rsqrt(jnp.mean(_vnorm2(v3), axis=-1, keepdims=True))  # (n, 1)
    v_out = v3 * inv[None]
    return s_out, v_out


# ----------------------------------------------------------------------------
# Fused Pallas kernels (row refs first, then broadcast weight refs, then outputs)
# ----------------------------------------------------------------------------
def embed_kernel(s_ref, v_ref,
                 g_ref, b_ref, wh_ref, wss_ref, wsv_ref, bias_ref, wv_ref,
                 s_out_ref, v_out_ref):
    """W_v / W_e : LayerNorm + GVP(activations=(None, None)), per row tile."""
    s, v = _tuple_layernorm(s_ref[...], v_ref[...], g_ref[...], b_ref[...])
    s_o, v_o = _gvp(s, v, wh_ref[...], wss_ref[...], wsv_ref[...],
                    bias_ref[...], wv_ref[...], scalar_act=False, vector_act=False)
    s_out_ref[...] = s_o
    v_out_ref[...] = v_o


def msg_kernel(scat_ref, vn_ref, ev_ref,
               whn0_ref, whe0_ref, wss0_ref, wsv0_ref, b0_ref, wv0_ref,
               wh1_ref, wss1_ref, wsv1_ref, b1_ref, wv1_ref,
               wh2_ref, wss2_ref, wsv2_ref, b2_ref, wv2_ref,
               ms_ref, mv_ref):
    """GVPConv 3-GVP message chain on an edge tile.

    scat = [s_j | edge_s | s_i] (te, 2ns+se);  vn = [v_j | v_i] (3, te, 2nv);
    ev (3, te, 1) is applied on the VPU K=1 path (no ragged K=129 contraction)."""
    vh0 = _vmm(vn_ref[...], whn0_ref[...]) + _vmm(ev_ref[...], whe0_ref[...])
    sl0 = _mm(scat_ref[...], wss0_ref[...])
    s, v = _gvp_core(vh0, sl0, wsv0_ref[...], b0_ref[...], wv0_ref[...], True, True)
    s, v = _gvp(s, v, wh1_ref[...], wss1_ref[...], wsv1_ref[...],
                b1_ref[...], wv1_ref[...], True, True)
    s, v = _gvp(s, v, wh2_ref[...], wss2_ref[...], wsv2_ref[...],
                b2_ref[...], wv2_ref[...], False, False)
    ms_ref[...] = s
    mv_ref[...] = v


def update_kernel(s_ref, v_ref, aggs_ref, aggv_ref, invdeg_ref,
                  g0_ref, bn0_ref,
                  whA_ref, wssA_ref, wsvA_ref, bA_ref, wvA_ref,
                  whB_ref, wssB_ref, wsvB_ref, bB_ref, wvB_ref,
                  g1_ref, bn1_ref,
                  s_out_ref, v_out_ref):
    """Conv tail (mean residual + LN) fused with the feed-forward block
    (2 GVPs + residual + LN); Dropout == identity in eval mode."""
    inv = invdeg_ref[...]                                     # (tn, 1)
    s = s_ref[...] + aggs_ref[...] * inv
    v = v_ref[...] + aggv_ref[...] * inv[None]
    s, v = _tuple_layernorm(s, v, g0_ref[...], bn0_ref[...])
    fs, fv = _gvp(s, v, whA_ref[...], wssA_ref[...], wsvA_ref[...],
                  bA_ref[...], wvA_ref[...], True, True)
    fs, fv = _gvp(fs, fv, whB_ref[...], wssB_ref[...], wsvB_ref[...],
                  bB_ref[...], wvB_ref[...], False, False)
    s2, v2 = _tuple_layernorm(s + fs, v + fv, g1_ref[...], bn1_ref[...])
    s_out_ref[...] = s2
    v_out_ref[...] = v2


def out_kernel(s_ref, v_ref,
               g_ref, b_ref, wh_ref, wss_ref, wsv_ref, bias_ref,
               s_out_ref):
    """W_out : LayerNorm + GVP(vo=0, ReLU scalar act) per node tile."""
    s, v = _tuple_layernorm(s_ref[...], v_ref[...], g_ref[...], b_ref[...])
    s_o, _ = _gvp(s, v, wh_ref[...], wss_ref[...], wsv_ref[...],
                  bias_ref[...], None, True, False)
    s_out_ref[...] = s_o


# ----------------------------------------------------------------------------
# Row-tiled pallas_call wrapper
# ----------------------------------------------------------------------------
def _row_in_spec(arr, tile):
    if arr.ndim == 2:
        return pl.BlockSpec((tile, arr.shape[1]), lambda i: (i, 0))
    assert arr.ndim == 3
    return pl.BlockSpec((arr.shape[0], tile, arr.shape[2]), lambda i: (0, i, 0))


def _row_out_spec(shape, tile):
    if len(shape) == 2:
        return pl.BlockSpec((tile, shape[1]), lambda i: (i, 0))
    return pl.BlockSpec((shape[0], tile, shape[2]), lambda i: (0, i, 0))


def _bcast_spec(arr):
    nd = arr.ndim
    return pl.BlockSpec(arr.shape, lambda i, nd=nd: (0,) * nd)


def _pallas_rows(kernel, row_args, weight_args, out_shapes, tile):
    rows = row_args[0].shape[0] if row_args[0].ndim == 2 else row_args[0].shape[1]
    assert rows % tile == 0 and tile % 8 == 0
    return pl.pallas_call(
        kernel,
        grid=(rows // tile,),
        in_specs=[_row_in_spec(a, tile) for a in row_args]
                 + [_bcast_spec(w) for w in weight_args],
        out_specs=tuple(_row_out_spec(s, tile) for s in out_shapes),
        out_shape=tuple(jax.ShapeDtypeStruct(s, jnp.float32) for s in out_shapes),
        compiler_params=pltpu.CompilerParams(
            dimension_semantics=("parallel",),
            vmem_limit_bytes=_VMEM_LIMIT),
    )(*row_args, *weight_args)


def run_embed(p, s, v, tile):
    n = s.shape[0]
    so = p['b'].shape[1]
    vo = p['wv'].shape[1]
    s_o, v_o = _pallas_rows(
        embed_kernel, [s, v],
        [p['ln_g'], p['ln_b'], p['wh'], p['ws_s'], p['ws_v'], p['b'], p['wv']],
        [(n, so), (3, n, vo)], tile)
    return s_o, v_o


def run_msg(layer, s_cat, v_nodes, ev, tile):
    e = s_cat.shape[0]
    m0, m1, m2 = layer['msg0'], layer['msg1'], layer['msg2']
    ns = m0['b'].shape[1]
    nv = m0['wv'].shape[1]
    weights = [m0['wh_n'], m0['wh_e'], m0['ws_s'], m0['ws_v'], m0['b'], m0['wv'],
               m1['wh'], m1['ws_s'], m1['ws_v'], m1['b'], m1['wv'],
               m2['wh'], m2['ws_s'], m2['ws_v'], m2['b'], m2['wv']]
    ms, mv = _pallas_rows(msg_kernel, [s_cat, v_nodes, ev], weights,
                          [(e, ns), (3, e, nv)], tile)
    return ms, mv


def run_update(layer, s, v, agg_s, agg_v, inv_deg, tile):
    n, ns = s.shape
    nv = v.shape[2]
    fA, fB = layer['ff0'], layer['ff1']
    n0, n1 = layer['norm0'], layer['norm1']
    weights = [n0['g'], n0['b'],
               fA['wh'], fA['ws_s'], fA['ws_v'], fA['b'], fA['wv'],
               fB['wh'], fB['ws_s'], fB['ws_v'], fB['b'], fB['wv'],
               n1['g'], n1['b']]
    s_o, v_o = _pallas_rows(update_kernel, [s, v, agg_s, agg_v, inv_deg], weights,
                            [(n, ns), (3, n, nv)], tile)
    return s_o, v_o


def run_out(p, s, v, tile):
    n = s.shape[0]
    so = p['b'].shape[1]
    (s_o,) = _pallas_rows(
        out_kernel, [s, v],
        [p['ln_g'], p['ln_b'], p['wh'], p['ws_s'], p['ws_v'], p['b']],
        [(n, so)], tile)
    return s_o


# ----------------------------------------------------------------------------
# Deterministic parameter initialization (shapes from DrugGVPModel.__init__)
# ----------------------------------------------------------------------------
def _uniform(key, shape, fan_in):
    bound = 1.0 / math.sqrt(fan_in)
    return jax.random.uniform(key, shape, jnp.float32, -bound, bound)


def _bf16(x):
    return x.astype(jnp.bfloat16)


def init_ln(dim):
    return {'g': jnp.ones((1, dim), jnp.float32),
            'b': jnp.zeros((1, dim), jnp.float32)}


def init_gvp(key, si, vi, so, vo):
    h = max(vi, vo)
    k = jax.random.split(key, 4)
    ws = _uniform(k[1], (si + h, so), si + h)    # Linear on cat([s, ||vh||])
    p = {'wh': _bf16(_uniform(k[0], (vi, h), vi)),
         'ws_s': _bf16(ws[:si]),
         'ws_v': _bf16(ws[si:]),
         'b': _uniform(k[2], (1, so), si + h)}
    if vo > 0:
        p['wv'] = _bf16(_uniform(k[3], (h, vo), h))
    return p


def init_msg0(key, ns, nv, se, ve, h_pad=256):
    """Message GVP #0 acting on the concatenation [node_j | edge | node_i].

    Weights are stored pre-split: wh_n takes the lane-concatenated [v_j|v_i]
    (K = 2*nv = 128), wh_e the 1-wide edge vector (VPU path), and the hidden
    dim (max(2*nv+ve, nv) = 129) is zero-padded to h_pad — exact because the
    padded ws_v / wv rows are zero."""
    si, vi, so, vo = 2 * ns + se, 2 * nv + ve, ns, nv
    h = max(vi, vo)
    assert h_pad >= h
    pad = h_pad - h
    k = jax.random.split(key, 4)
    wh = _uniform(k[0], (vi, h), vi)
    ws = _uniform(k[1], (si + h, so), si + h)
    wv = _uniform(k[3], (h, vo), h)
    wh_nodes = jnp.concatenate([wh[:nv], wh[nv + ve:]], axis=0)   # [j rows; i rows]
    return {'wh_n': _bf16(jnp.pad(wh_nodes, ((0, 0), (0, pad)))),
            'wh_e': _bf16(jnp.pad(wh[nv:nv + ve], ((0, 0), (0, pad)))),
            'ws_s': _bf16(ws[:si]),                               # rows: [s_j|es|s_i]
            'ws_v': _bf16(jnp.pad(ws[si:], ((0, pad), (0, 0)))),
            'b': _uniform(k[2], (1, so), si + h),
            'wv': _bf16(jnp.pad(wv, ((0, pad), (0, 0))))}


def init_drug_gvp_params(key, node_in=(66, 1), node_h=(128, 64),
                         edge_in=(16, 1), edge_h=(32, 1), num_layers=3):
    ns, nv = node_h
    se, ve = edge_h
    keys = iter(jax.random.split(key, 3 + 5 * num_layers))
    ln_v, ln_e, ln_o = init_ln(node_in[0]), init_ln(edge_in[0]), init_ln(ns)
    params = {
        'W_v': {'ln_g': ln_v['g'], 'ln_b': ln_v['b'],
                **init_gvp(next(keys), node_in[0], node_in[1], ns, nv)},
        'W_e': {'ln_g': ln_e['g'], 'ln_b': ln_e['b'],
                **init_gvp(next(keys), edge_in[0], edge_in[1], se, ve)},
        'layers': [],
    }
    for _ in range(num_layers):
        params['layers'].append({
            'msg0': init_msg0(next(keys), ns, nv, se, ve),
            'msg1': init_gvp(next(keys), ns, nv, ns, nv),
            'msg2': init_gvp(next(keys), ns, nv, ns, nv),
            'ff0': init_gvp(next(keys), ns, nv, 4 * ns, 2 * nv),
            'ff1': init_gvp(next(keys), 4 * ns, 2 * nv, ns, nv),
            'norm0': init_ln(ns),
            'norm1': init_ln(ns),
        })
    params['W_out'] = {'ln_g': ln_o['g'], 'ln_b': ln_o['b'],
                       **init_gvp(next(keys), ns, nv, ns, 0)}
    return params


# ----------------------------------------------------------------------------
# Forward pass (mirrors DrugGVPModel.forward, eval mode)
# ----------------------------------------------------------------------------
def _pick_tile(n, target):
    """Largest multiple of 8 that divides n and is <= target (else full n)."""
    t = min(target, n)
    t -= t % 8
    while t >= 8:
        if n % t == 0:
            return t
        t -= 8
    return n


@functools.partial(jax.jit, static_argnames=("num_graphs", "node_tile", "edge_tile"))
def drug_gvp_forward(params, node_s, node_v, edge_s, edge_v, edge_index, batch,
                     num_graphs, node_tile=128, edge_tile=256):
    n = node_s.shape[0]
    e = edge_s.shape[0]
    assert n % 8 == 0 and e % 8 == 0, "pad node/edge counts to multiples of 8"
    tn = _pick_tile(n, node_tile)
    te = _pick_tile(e, edge_tile)

    # torch layout (R, C, 3) -> xyz-leading (3, R, C)
    v = jnp.transpose(node_v, (2, 0, 1))
    ev = jnp.transpose(edge_v, (2, 0, 1))
    s, es = node_s, edge_s

    # W_v / W_e : fused LayerNorm + GVP(activations=(None, None))
    s, v = run_embed(params['W_v'], s, v, tn)
    es, ev = run_embed(params['W_e'], es, ev, te)

    # Graph bookkeeping once per forward: O(E) degree via segment_sum.
    src, dst = edge_index[0], edge_index[1]
    deg = jax.ops.segment_sum(jnp.ones((e,), jnp.float32), dst, num_segments=n)
    inv_deg = (1.0 / jnp.maximum(deg, 1.0))[:, None]                 # (N, 1)

    for layer in params['layers']:
        # Node -> edge gather (XLA indexed gather; O(E*C), no one-hot).
        # TODO(synk): fold gather+scatter into the kernels via scalar-prefetch DMA
        #             gather so all layers run as one layer-stacked pallas_call.
        s_cat = jnp.concatenate([s[src], es, s[dst]], axis=-1)       # (E, 2ns+se)
        v_nodes = jnp.concatenate([v[:, src, :], v[:, dst, :]], -1)  # (3, E, 2nv)
        ms, mv = run_msg(layer, s_cat, v_nodes, ev, te)
        # scatter-mean over destination nodes (mean factor applied in-kernel).
        agg_s = jax.ops.segment_sum(ms, dst, num_segments=n)         # (N, ns)
        agg_v = jax.vmap(
            lambda m: jax.ops.segment_sum(m, dst, num_segments=n))(mv)  # (3, N, nv)
        s, v = run_update(layer, s, v, agg_s, agg_v, inv_deg, tn)

    # W_out + global_add_pool
    s_out = run_out(params['W_out'], s, v, tn)                       # (N, ns)
    return jax.ops.segment_sum(s_out, batch, num_segments=num_graphs)


# ----------------------------------------------------------------------------
if __name__ == "__main__":
    key = jax.random.PRNGKey(0)
    kp, k1, k2, k3, k4 = jax.random.split(key, 5)

    params = init_drug_gvp_params(kp)

    # Small synthetic drug-graph batch: 4 molecules x 16 atoms, ring topology.
    num_graphs = 4
    nodes_per_graph = 16
    N = num_graphs * nodes_per_graph                       # 64
    node_s = jax.random.normal(k1, (N, 66), jnp.float32)   # (N, si=66)
    node_v = jax.random.normal(k2, (N, 1, 3), jnp.float32)

    srcs, dsts = [], []
    for g in range(num_graphs):
        base = g * nodes_per_graph
        for i in range(nodes_per_graph):
            a = base + i
            b = base + (i + 1) % nodes_per_graph
            srcs += [a, b]
            dsts += [b, a]
    edge_index = jnp.array([srcs, dsts], dtype=jnp.int32)  # (2, E=128)
    E = edge_index.shape[1]
    edge_s = jax.random.normal(k3, (E, 16), jnp.float32)
    edge_v = jax.random.normal(k4, (E, 1, 3), jnp.float32)
    batch = jnp.repeat(jnp.arange(num_graphs, dtype=jnp.int32), nodes_per_graph)

    # Small tiles so the row-tiled grids (grid > 1) are exercised in the demo.
    out = drug_gvp_forward(params, node_s, node_v, edge_s, edge_v,
                           edge_index, batch, num_graphs,
                           node_tile=32, edge_tile=64)
    out = jax.block_until_ready(out)
    assert out.shape == (num_graphs, 128), out.shape
    assert bool(jnp.all(jnp.isfinite(out)))
    print("KERNEL_OK")
</pallas_src>

<mosaic_0001>
module attributes {stable_mosaic.version = 11 : i64} {
  func.func private @main(%arg0: i32) attributes {dimension_semantics = [#tpu.dimension_semantics<core_parallel>], iteration_bounds = array<i64: 2>, tpu.core_type = #tpu.core_type<sc_scalar_subcore>, window_params = []} {
    return
  }
}

module attributes {stable_mosaic.version = 11 : i64} {
  func.func private @main(%arg0: i32) attributes {dimension_semantics = [#tpu.dimension_semantics<core_parallel>], iteration_bounds = array<i64: 2>, tpu.core_type = #tpu.core_type<sc_scalar_subcore>, window_params = []} {
    return
  }
}

module attributes {stable_mosaic.version = 11 : i64} {
  func.func @embed_kernel(%arg0: i32, %arg1: memref<32x66xf32, #tpu.memory_space<vmem>>, %arg2: memref<3x32x1xf32, #tpu.memory_space<vmem>>, %arg3: memref<1x66xf32, #tpu.memory_space<vmem>>, %arg4: memref<1x66xf32, #tpu.memory_space<vmem>>, %arg5: memref<1x64xbf16, #tpu.memory_space<vmem>>, %arg6: memref<66x128xbf16, #tpu.memory_space<vmem>>, %arg7: memref<64x128xbf16, #tpu.memory_space<vmem>>, %arg8: memref<1x128xf32, #tpu.memory_space<vmem>>, %arg9: memref<64x64xbf16, #tpu.memory_space<vmem>>, %arg10: memref<32x128xf32, #tpu.memory_space<vmem>>, %arg11: memref<3x32x64xf32, #tpu.memory_space<vmem>>) attributes {dimension_semantics = [#tpu.dimension_semantics<parallel>], iteration_bounds = array<i64: 2>, scalar_prefetch = 0 : i64, scratch_operands = 0 : i64, tpu.core_type = #tpu.core_type<tc>, window_params = [{transform_indices = @transform_0, window_bounds = array<i64: 32, 66>}, {transform_indices = @transform_1, window_bounds = array<i64: 3, 32, 1>}, {pipeline_mode = #tpu.pipeline_mode<synchronous>, transform_indices = @transform_2, window_bounds = array<i64: 1, 66>}, {pipeline_mode = #tpu.pipeline_mode<synchronous>, transform_indices = @transform_3, window_bounds = array<i64: 1, 66>}, {pipeline_mode = #tpu.pipeline_mode<synchronous>, transform_indices = @transform_4, window_bounds = array<i64: 1, 64>}, {pipeline_mode = #tpu.pipeline_mode<synchronous>, transform_indices = @transform_5, window_bounds = array<i64: 66, 128>}, {pipeline_mode = #tpu.pipeline_mode<synchronous>, transform_indices = @transform_6, window_bounds = array<i64: 64, 128>}, {pipeline_mode = #tpu.pipeline_mode<synchronous>, transform_indices = @transform_7, window_bounds = array<i64: 1, 128>}, {pipeline_mode = #tpu.pipeline_mode<synchronous>, transform_indices = @transform_8, window_bounds = array<i64: 64, 64>}, {transform_indices = @transform_9, window_bounds = array<i64: 32, 128>}, {transform_indices = @transform_10, window_bounds = array<i64: 3, 32, 64>}]} {
    %c0 = arith.constant 0 : index
    %c0_0 = arith.constant 0 : index
    %0 = vector.load %arg1[%c0, %c0_0] : memref<32x66xf32, #tpu.memory_space<vmem>>, vector<32x66xf32>
    %c0_1 = arith.constant 0 : index
    %c0_2 = arith.constant 0 : index
    %c0_3 = arith.constant 0 : index
    %1 = vector.load %arg2[%c0_1, %c0_2, %c0_3] : memref<3x32x1xf32, #tpu.memory_space<vmem>>, vector<3x32x1xf32>
    %c0_4 = arith.constant 0 : index
    %c0_5 = arith.constant 0 : index
    %2 = vector.load %arg3[%c0_4, %c0_5] : memref<1x66xf32, #tpu.memory_space<vmem>>, vector<1x66xf32>
    %c0_6 = arith.constant 0 : index
    %c0_7 = arith.constant 0 : index
    %3 = vector.load %arg4[%c0_6, %c0_7] : memref<1x66xf32, #tpu.memory_space<vmem>>, vector<1x66xf32>
    %cst = arith.constant dense<0.000000e+00> : vector<32xf32>
    %4 = vector.multi_reduction <add>, %0, %cst [1] : vector<32x66xf32> to vector<32xf32>
    %5 = vector.shape_cast %4 : vector<32xf32> to vector<32x1xf32>
    %cst_8 = arith.constant 6.600000e+01 : f32
    %6 = vector.broadcast %cst_8 : f32 to vector<32x1xf32>
    %7 = arith.divf %5, %6 : vector<32x1xf32>
    %8 = vector.broadcast %7 : vector<32x1xf32> to vector<32x66xf32>
    %9 = arith.subf %0, %8 : vector<32x66xf32>
    %10 = arith.mulf %9, %9 : vector<32x66xf32>
    %cst_9 = arith.constant dense<0.000000e+00> : vector<32xf32>
    %11 = vector.multi_reduction <add>, %10, %cst_9 [1] : vector<32x66xf32> to vector<32xf32>
    %12 = vector.shape_cast %11 : vector<32xf32> to vector<32x1xf32>
    %cst_10 = arith.constant 6.600000e+01 : f32
    %13 = vector.broadcast %cst_10 : f32 to vector<32x1xf32>
    %14 = arith.divf %12, %13 : vector<32x1xf32>
    %cst_11 = arith.constant 9.99999974E-6 : f32
    %15 = vector.broadcast %cst_11 : f32 to vector<32x1xf32>
    %16 = arith.addf %14, %15 : vector<32x1xf32>
    %17 = math.rsqrt %16 : vector<32x1xf32>
    %18 = vector.broadcast %17 : vector<32x1xf32> to vector<32x66xf32>
    %19 = arith.mulf %9, %18 : vector<32x66xf32>
    %20 = vector.broadcast %2 : vector<1x66xf32> to vector<32x66xf32>
    %21 = arith.mulf %19, %20 : vector<32x66xf32>
    %22 = vector.broadcast %3 : vector<1x66xf32> to vector<32x66xf32>
    %23 = arith.addf %21, %22 : vector<32x66xf32>
    %24 = arith.mulf %1, %1 : vector<3x32x1xf32>
    %cst_12 = arith.constant dense<0.000000e+00> : vector<32x1xf32>
    %25 = vector.multi_reduction <add>, %24, %cst_12 [0] : vector<3x32x1xf32> to vector<32x1xf32>
    %cst_13 = arith.constant 9.99999993E-9 : f32
    %26 = vector.broadcast %cst_13 : f32 to vector<32x1xf32>
    %27 = arith.maximumf %25, %26 : vector<32x1xf32>
    %cst_14 = arith.constant dense<0.000000e+00> : vector<32xf32>
    %28 = vector.multi_reduction <add>, %27, %cst_14 [1] : vector<32x1xf32> to vector<32xf32>
    %29 = vector.shape_cast %28 : vector<32xf32> to vector<32x1xf32>
    %cst_15 = arith.constant 1.000000e+00 : f32
    %30 = vector.broadcast %cst_15 : f32 to vector<32x1xf32>
    %31 = arith.divf %29, %30 : vector<32x1xf32>
    %32 = math.rsqrt %31 : vector<32x1xf32>
    %33 = vector.shape_cast %32 : vector<32x1xf32> to vector<1x32x1xf32>
    %34 = vector.broadcast %33 : vector<1x32x1xf32> to vector<3x32x1xf32>
    %35 = arith.mulf %1, %34 : vector<3x32x1xf32>
    %c0_16 = arith.constant 0 : index
    %c0_17 = arith.constant 0 : index
    %36 = vector.load %arg5[%c0_16, %c0_17] : memref<1x64xbf16, #tpu.memory_space<vmem>>, vector<1x64xbf16>
    %c0_18 = arith.constant 0 : index
    %c0_19 = arith.constant 0 : index
    %37 = vector.load %arg6[%c0_18, %c0_19] : memref<66x128xbf16, #tpu.memory_space<vmem>>, vector<66x128xbf16>
    %c0_20 = arith.constant 0 : index
    %c0_21 = arith.constant 0 : index
    %38 = vector.load %arg7[%c0_20, %c0_21] : memref<64x128xbf16, #tpu.memory_space<vmem>>, vector<64x128xbf16>
    %c0_22 = arith.constant 0 : index
    %c0_23 = arith.constant 0 : index
    %39 = vector.load %arg8[%c0_22, %c0_23] : memref<1x128xf32, #tpu.memory_space<vmem>>, vector<1x128xf32>
    %c0_24 = arith.constant 0 : index
    %c0_25 = arith.constant 0 : index
    %40 = vector.load %arg9[%c0_24, %c0_25] : memref<64x64xbf16, #tpu.memory_space<vmem>>, vector<64x64xbf16>
    %41 = arith.extf %36 : vector<1x64xbf16> to vector<1x64xf32>
    %42 = vector.shape_cast %41 : vector<1x64xf32> to vector<1x1x64xf32>
    %43 = vector.broadcast %35 : vector<3x32x1xf32> to vector<3x32x64xf32>
    %44 = vector.broadcast %42 : vector<1x1x64xf32> to vector<3x32x64xf32>
    %45 = arith.mulf %43, %44 : vector<3x32x64xf32>
    %46 = arith.truncf %23 : vector<32x66xf32> to vector<32x66xbf16>
    %cst_26 = arith.constant dense<0.000000e+00> : vector<32x128xf32>
    %47 = tpu.matmul %46, %37, %cst_26 {dimension_numbers = #tpu.dot_dimension_numbers<[1], [0], [0], [1], [0, 0, 1, 1], [], []>} : vector<32x66xbf16>, vector<66x128xbf16>, vector<32x128xf32> -> vector<32x128xf32>
    %48 = arith.mulf %45, %45 : vector<3x32x64xf32>
    %cst_27 = arith.constant dense<0.000000e+00> : vector<32x64xf32>
    %49 = vector.multi_reduction <add>, %48, %cst_27 [0] : vector<3x32x64xf32> to vector<32x64xf32>
    %cst_28 = arith.constant 9.99999993E-9 : f32
    %50 = vector.broadcast %cst_28 : f32 to vector<32x64xf32>
    %51 = arith.maximumf %49, %50 : vector<32x64xf32>
    %52 = math.sqrt %51 : vector<32x64xf32>
    %53 = arith.truncf %52 : vector<32x64xf32> to vector<32x64xbf16>
    %cst_29 = arith.constant dense<0.000000e+00> : vector<32x128xf32>
    %54 = tpu.matmul %53, %38, %cst_29 {dimension_numbers = #tpu.dot_dimension_numbers<[1], [0], [0], [1], [0, 0, 1, 1], [], []>} : vector<32x64xbf16>, vector<64x128xbf16>, vector<32x128xf32> -> vector<32x128xf32>
    %55 = arith.addf %47, %54 : vector<32x128xf32>
    %56 = vector.broadcast %39 : vector<1x128xf32> to vector<32x128xf32>
    %57 = arith.addf %55, %56 : vector<32x128xf32>
    %58 = vector.shape_cast %45 : vector<3x32x64xf32> to vector<96x64xf32>
    %59 = arith.truncf %58 : vector<96x64xf32> to vector<96x64xbf16>
    %cst_30 = arith.constant dense<0.000000e+00> : vector<96x64xf32>
    %60 = tpu.matmul %59, %40, %cst_30 {dimension_numbers = #tpu.dot_dimension_numbers<[1], [0], [0], [1], [0, 0, 1, 1], [], []>} : vector<96x64xbf16>, vector<64x64xbf16>, vector<96x64xf32> -> vector<96x64xf32>
    %61 = vector.shape_cast %60 : vector<96x64xf32> to vector<3x32x64xf32>
    %c0_31 = arith.constant 0 : index
    %c0_32 = arith.constant 0 : index
    %62 = vector.load %arg10[%c0_31, %c0_32] : memref<32x128xf32, #tpu.memory_space<vmem>>, vector<32x128xf32>
    tpu.vector_store %arg10[%c0_31, %c0_32], %57 {strides = array<i32>} : memref<32x128xf32, #tpu.memory_space<vmem>>, vector<32x128xf32>,
    %c0_33 = arith.constant 0 : index
    %c0_34 = arith.constant 0 : index
    %c0_35 = arith.constant 0 : index
    %63 = vector.load %arg11[%c0_33, %c0_34, %c0_35] : memref<3x32x64xf32, #tpu.memory_space<vmem>>, vector<3x32x64xf32>
    tpu.vector_store %arg11[%c0_33, %c0_34, %c0_35], %61 {strides = array<i32>} : memref<3x32x64xf32, #tpu.memory_space<vmem>>, vector<3x32x64xf32>,
    return
  }
  func.func @transform_0(%arg0: i32) -> (i32, i32) {
    %c0_i32 = arith.constant 0 : i32
    %c0_i32_0 = arith.constant 0 : i32
    return %arg0, %c0_i32 : i32, i32
  }
  func.func @transform_1(%arg0: i32) -> (i32, i32, i32) {
    %c0_i32 = arith.constant 0 : i32
    %c0_i32_0 = arith.constant 0 : i32
    %c0_i32_1 = arith.constant 0 : i32
    return %c0_i32, %arg0, %c0_i32_0 : i32, i32, i32
  }
  func.func @transform_2(%arg0: i32) -> (i32, i32) {
    %c0_i32 = arith.constant 0 : i32
    %c0_i32_0 = arith.constant 0 : i32
    %c0_i32_1 = arith.constant 0 : i32
    return %c0_i32, %c0_i32_0 : i32, i32
  }
  func.func @transform_3(%arg0: i32) -> (i32, i32) {
    %c0_i32 = arith.constant 0 : i32
    %c0_i32_0 = arith.constant 0 : i32
    %c0_i32_1 = arith.constant 0 : i32
    return %c0_i32, %c0_i32_0 : i32, i32
  }
  func.func @transform_4(%arg0: i32) -> (i32, i32) {
    %c0_i32 = arith.constant 0 : i32
    %c0_i32_0 = arith.constant 0 : i32
    %c0_i32_1 = arith.constant 0 : i32
    return %c0_i32, %c0_i32_0 : i32, i32
  }
  func.func @transform_5(%arg0: i32) -> (i32, i32) {
    %c0_i32 = arith.constant 0 : i32
    %c0_i32_0 = arith.constant 0 : i32
    %c0_i32_1 = arith.constant 0 : i32
    return %c0_i32, %c0_i32_0 : i32, i32
  }
  func.func @transform_6(%arg0: i32) -> (i32, i32) {
    %c0_i32 = arith.constant 0 : i32
    %c0_i32_0 = arith.constant 0 : i32
    %c0_i32_1 = arith.constant 0 : i32
    return %c0_i32, %c0_i32_0 : i32, i32
  }
  func.func @transform_7(%arg0: i32) -> (i32, i32) {
    %c0_i32 = arith.constant 0 : i32
    %c0_i32_0 = arith.constant 0 : i32
    %c0_i32_1 = arith.constant 0 : i32
    return %c0_i32, %c0_i32_0 : i32, i32
  }
  func.func @transform_8(%arg0: i32) -> (i32, i32) {
    %c0_i32 = arith.constant 0 : i32
    %c0_i32_0 = arith.constant 0 : i32
    %c0_i32_1 = arith.constant 0 : i32
    return %c0_i32, %c0_i32_0 : i32, i32
  }
  func.func @transform_9(%arg0: i32) -> (i32, i32) {
    %c0_i32 = arith.constant 0 : i32
    %c0_i32_0 = arith.constant 0 : i32
    return %arg0, %c0_i32 : i32, i32
  }
  func.func @transform_10(%arg0: i32) -> (i32, i32, i32) {
    %c0_i32 = arith.constant 0 : i32
    %c0_i32_0 = arith.constant 0 : i32
    %c0_i32_1 = arith.constant 0 : i32
    return %c0_i32, %arg0, %c0_i32_0 : i32, i32, i32
  }
}

module attributes {stable_mosaic.version = 11 : i64} {
  func.func @embed_kernel(%arg0: i32, %arg1: memref<64x16xf32, #tpu.memory_space<vmem>>, %arg2: memref<3x64x1xf32, #tpu.memory_space<vmem>>, %arg3: memref<1x16xf32, #tpu.memory_space<vmem>>, %arg4: memref<1x16xf32, #tpu.memory_space<vmem>>, %arg5: memref<1x1xbf16, #tpu.memory_space<vmem>>, %arg6: memref<16x32xbf16, #tpu.memory_space<vmem>>, %arg7: memref<1x32xbf16, #tpu.memory_space<vmem>>, %arg8: memref<1x32xf32, #tpu.memory_space<vmem>>, %arg9: memref<1x1xbf16, #tpu.memory_space<vmem>>, %arg10: memref<64x32xf32, #tpu.memory_space<vmem>>, %arg11: memref<3x64x1xf32, #tpu.memory_space<vmem>>) attributes {dimension_semantics = [#tpu.dimension_semantics<parallel>], iteration_bounds = array<i64: 2>, scalar_prefetch = 0 : i64, scratch_operands = 0 : i64, tpu.core_type = #tpu.core_type<tc>, window_params = [{transform_indices = @transform_0, window_bounds = array<i64: 64, 16>}, {transform_indices = @transform_1, window_bounds = array<i64: 3, 64, 1>}, {pipeline_mode = #tpu.pipeline_mode<synchronous>, transform_indices = @transform_2, window_bounds = array<i64: 1, 16>}, {pipeline_mode = #tpu.pipeline_mode<synchronous>, transform_indices = @transform_3, window_bounds = array<i64: 1, 16>}, {pipeline_mode = #tpu.pipeline_mode<synchronous>, transform_indices = @transform_4, window_bounds = array<i64: 1, 1>}, {pipeline_mode = #tpu.pipeline_mode<synchronous>, transform_indices = @transform_5, window_bounds = array<i64: 16, 32>}, {pipeline_mode = #tpu.pipeline_mode<synchronous>, transform_indices = @transform_6, window_bounds = array<i64: 1, 32>}, {pipeline_mode = #tpu.pipeline_mode<synchronous>, transform_indices = @transform_7, window_bounds = array<i64: 1, 32>}, {pipeline_mode = #tpu.pipeline_mode<synchronous>, transform_indices = @transform_8, window_bounds = array<i64: 1, 1>}, {transform_indices = @transform_9, window_bounds = array<i64: 64, 32>}, {transform_indices = @transform_10, window_bounds = array<i64: 3, 64, 1>}]} {
    %c0 = arith.constant 0 : index
    %c0_0 = arith.constant 0 : index
    %0 = vector.load %arg1[%c0, %c0_0] : memref<64x16xf32, #tpu.memory_space<vmem>>, vector<64x16xf32>
    %c0_1 = arith.constant 0 : index
    %c0_2 = arith.constant 0 : index
    %c0_3 = arith.constant 0 : index
    %1 = vector.load %arg2[%c0_1, %c0_2, %c0_3] : memref<3x64x1xf32, #tpu.memory_space<vmem>>, vector<3x64x1xf32>
    %c0_4 = arith.constant 0 : index
    %c0_5 = arith.constant 0 : index
    %2 = vector.load %arg3[%c0_4, %c0_5] : memref<1x16xf32, #tpu.memory_space<vmem>>, vector<1x16xf32>
    %c0_6 = arith.constant 0 : index
    %c0_7 = arith.constant 0 : index
    %3 = vector.load %arg4[%c0_6, %c0_7] : memref<1x16xf32, #tpu.memory_space<vmem>>, vector<1x16xf32>
    %cst = arith.constant dense<0.000000e+00> : vector<64xf32>
    %4 = vector.multi_reduction <add>, %0, %cst [1] : vector<64x16xf32> to vector<64xf32>
    %5 = vector.shape_cast %4 : vector<64xf32> to vector<64x1xf32>
    %cst_8 = arith.constant 1.600000e+01 : f32
    %6 = vector.broadcast %cst_8 : f32 to vector<64x1xf32>
    %7 = arith.divf %5, %6 : vector<64x1xf32>
    %8 = vector.broadcast %7 : vector<64x1xf32> to vector<64x16xf32>
    %9 = arith.subf %0, %8 : vector<64x16xf32>
    %10 = arith.mulf %9, %9 : vector<64x16xf32>
    %cst_9 = arith.constant dense<0.000000e+00> : vector<64xf32>
    %11 = vector.multi_reduction <add>, %10, %cst_9 [1] : vector<64x16xf32> to vector<64xf32>
    %12 = vector.shape_cast %11 : vector<64xf32> to vector<64x1xf32>
    %cst_10 = arith.constant 1.600000e+01 : f32
    %13 = vector.broadcast %cst_10 : f32 to vector<64x1xf32>
    %14 = arith.divf %12, %13 : vector<64x1xf32>
    %cst_11 = arith.constant 9.99999974E-6 : f32
    %15 = vector.broadcast %cst_11 : f32 to vector<64x1xf32>
    %16 = arith.addf %14, %15 : vector<64x1xf32>
    %17 = math.rsqrt %16 : vector<64x1xf32>
    %18 = vector.broadcast %17 : vector<64x1xf32> to vector<64x16xf32>
    %19 = arith.mulf %9, %18 : vector<64x16xf32>
    %20 = vector.broadcast %2 : vector<1x16xf32> to vector<64x16xf32>
    %21 = arith.mulf %19, %20 : vector<64x16xf32>
    %22 = vector.broadcast %3 : vector<1x16xf32> to vector<64x16xf32>
    %23 = arith.addf %21, %22 : vector<64x16xf32>
    %24 = arith.mulf %1, %1 : vector<3x64x1xf32>
    %cst_12 = arith.constant dense<0.000000e+00> : vector<64x1xf32>
    %25 = vector.multi_reduction <add>, %24, %cst_12 [0] : vector<3x64x1xf32> to vector<64x1xf32>
    %cst_13 = arith.constant 9.99999993E-9 : f32
    %26 = vector.broadcast %cst_13 : f32 to vector<64x1xf32>
    %27 = arith.maximumf %25, %26 : vector<64x1xf32>
    %cst_14 = arith.constant dense<0.000000e+00> : vector<64xf32>
    %28 = vector.multi_reduction <add>, %27, %cst_14 [1] : vector<64x1xf32> to vector<64xf32>
    %29 = vector.shape_cast %28 : vector<64xf32> to vector<64x1xf32>
    %cst_15 = arith.constant 1.000000e+00 : f32
    %30 = vector.broadcast %cst_15 : f32 to vector<64x1xf32>
    %31 = arith.divf %29, %30 : vector<64x1xf32>
    %32 = math.rsqrt %31 : vector<64x1xf32>
    %33 = vector.shape_cast %32 : vector<64x1xf32> to vector<1x64x1xf32>
    %34 = vector.broadcast %33 : vector<1x64x1xf32> to vector<3x64x1xf32>
    %35 = arith.mulf %1, %34 : vector<3x64x1xf32>
    %c0_16 = arith.constant 0 : index
    %c0_17 = arith.constant 0 : index
    %36 = vector.load %arg5[%c0_16, %c0_17] : memref<1x1xbf16, #tpu.memory_space<vmem>>, vector<1x1xbf16>
    %c0_18 = arith.constant 0 : index
    %c0_19 = arith.constant 0 : index
    %37 = vector.load %arg6[%c0_18, %c0_19] : memref<16x32xbf16, #tpu.memory_space<vmem>>, vector<16x32xbf16>
    %c0_20 = arith.constant 0 : index
    %c0_21 = arith.constant 0 : index
    %38 = vector.load %arg7[%c0_20, %c0_21] : memref<1x32xbf16, #tpu.memory_space<vmem>>, vector<1x32xbf16>
    %c0_22 = arith.constant 0 : index
    %c0_23 = arith.constant 0 : index
    %39 = vector.load %arg8[%c0_22, %c0_23] : memref<1x32xf32, #tpu.memory_space<vmem>>, vector<1x32xf32>
    %c0_24 = arith.constant 0 : index
    %c0_25 = arith.constant 0 : index
    %40 = vector.load %arg9[%c0_24, %c0_25] : memref<1x1xbf16, #tpu.memory_space<vmem>>, vector<1x1xbf16>
    %41 = arith.extf %36 : vector<1x1xbf16> to vector<1x1xf32>
    %42 = vector.shape_cast %41 : vector<1x1xf32> to vector<1x1x1xf32>
    %43 = vector.broadcast %42 : vector<1x1x1xf32> to vector<3x64x1xf32>
    %44 = arith.mulf %35, %43 : vector<3x64x1xf32>
    %45 = arith.truncf %23 : vector<64x16xf32> to vector<64x16xbf16>
    %cst_26 = arith.constant dense<0.000000e+00> : vector<64x32xf32>
    %46 = tpu.matmul %45, %37, %cst_26 {dimension_numbers = #tpu.dot_dimension_numbers<[1], [0], [0], [1], [0, 0, 1, 1], [], []>} : vector<64x16xbf16>, vector<16x32xbf16>, vector<64x32xf32> -> vector<64x32xf32>
    %47 = arith.mulf %44, %44 : vector<3x64x1xf32>
    %cst_27 = arith.constant dense<0.000000e+00> : vector<64x1xf32>
    %48 = vector.multi_reduction <add>, %47, %cst_27 [0] : vector<3x64x1xf32> to vector<64x1xf32>
    %cst_28 = arith.constant 9.99999993E-9 : f32
    %49 = vector.broadcast %cst_28 : f32 to vector<64x1xf32>
    %50 = arith.maximumf %48, %49 : vector<64x1xf32>
    %51 = math.sqrt %50 : vector<64x1xf32>
    %52 = arith.extf %38 : vector<1x32xbf16> to vector<1x32xf32>
    %53 = vector.broadcast %51 : vector<64x1xf32> to vector<64x32xf32>
    %54 = vector.broadcast %52 : vector<1x32xf32> to vector<64x32xf32>
    %55 = arith.mulf %53, %54 : vector<64x32xf32>
    %56 = arith.addf %46, %55 : vector<64x32xf32>
    %57 = vector.broadcast %39 : vector<1x32xf32> to vector<64x32xf32>
    %58 = arith.addf %56, %57 : vector<64x32xf32>
    %59 = arith.extf %40 : vector<1x1xbf16> to vector<1x1xf32>
    %60 = vector.shape_cast %59 : vector<1x1xf32> to vector<1x1x1xf32>
    %61 = vector.broadcast %60 : vector<1x1x1xf32> to vector<3x64x1xf32>
    %62 = arith.mulf %44, %61 : vector<3x64x1xf32>
    %c0_29 = arith.constant 0 : index
    %c0_30 = arith.constant 0 : index
    %63 = vector.load %arg10[%c0_29, %c0_30] : memref<64x32xf32, #tpu.memory_space<vmem>>, vector<64x32xf32>
    tpu.vector_store %arg10[%c0_29, %c0_30], %58 {strides = array<i32>} : memref<64x32xf32, #tpu.memory_space<vmem>>, vector<64x32xf32>,
    %c0_31 = arith.constant 0 : index
    %c0_32 = arith.constant 0 : index
    %c0_33 = arith.constant 0 : index
    %64 = vector.load %arg11[%c0_31, %c0_32, %c0_33] : memref<3x64x1xf32, #tpu.memory_space<vmem>>, vector<3x64x1xf32>
    tpu.vector_store %arg11[%c0_31, %c0_32, %c0_33], %62 {strides = array<i32>} : memref<3x64x1xf32, #tpu.memory_space<vmem>>, vector<3x64x1xf32>,
    return
  }
  func.func @transform_0(%arg0: i32) -> (i32, i32) {
    %c0_i32 = arith.constant 0 : i32
    %c0_i32_0 = arith.constant 0 : i32
    return %arg0, %c0_i32 : i32, i32
  }
  func.func @transform_1(%arg0: i32) -> (i32, i32, i32) {
    %c0_i32 = arith.constant 0 : i32
    %c0_i32_0 = arith.constant 0 : i32
    %c0_i32_1 = arith.constant 0 : i32
    return %c0_i32, %arg0, %c0_i32_0 : i32, i32, i32
  }
  func.func @transform_2(%arg0: i32) -> (i32, i32) {
    %c0_i32 = arith.constant 0 : i32
    %c0_i32_0 = arith.constant 0 : i32
    %c0_i32_1 = arith.constant 0 : i32
    return %c0_i32, %c0_i32_0 : i32, i32
  }
  func.func @transform_3(%arg0: i32) -> (i32, i32) {
    %c0_i32 = arith.constant 0 : i32
    %c0_i32_0 = arith.constant 0 : i32
    %c0_i32_1 = arith.constant 0 : i32
    return %c0_i32, %c0_i32_0 : i32, i32
  }
  func.func @transform_4(%arg0: i32) -> (i32, i32) {
    %c0_i32 = arith.constant 0 : i32
    %c0_i32_0 = arith.constant 0 : i32
    %c0_i32_1 = arith.constant 0 : i32
    return %c0_i32, %c0_i32_0 : i32, i32
  }
  func.func @transform_5(%arg0: i32) -> (i32, i32) {
    %c0_i32 = arith.constant 0 : i32
    %c0_i32_0 = arith.constant 0 : i32
    %c0_i32_1 = arith.constant 0 : i32
    return %c0_i32, %c0_i32_0 : i32, i32
  }
  func.func @transform_6(%arg0: i32) -> (i32, i32) {
    %c0_i32 = arith.constant 0 : i32
    %c0_i32_0 = arith.constant 0 : i32
    %c0_i32_1 = arith.constant 0 : i32
    return %c0_i32, %c0_i32_0 : i32, i32
  }
  func.func @transform_7(%arg0: i32) -> (i32, i32) {
    %c0_i32 = arith.constant 0 : i32
    %c0_i32_0 = arith.constant 0 : i32
    %c0_i32_1 = arith.constant 0 : i32
    return %c0_i32, %c0_i32_0 : i32, i32
  }
  func.func @transform_8(%arg0: i32) -> (i32, i32) {
    %c0_i32 = arith.constant 0 : i32
    %c0_i32_0 = arith.constant 0 : i32
    %c0_i32_1 = arith.constant 0 : i32
    return %c0_i32, %c0_i32_0 : i32, i32
  }
  func.func @transform_9(%arg0: i32) -> (i32, i32) {
    %c0_i32 = arith.constant 0 : i32
    %c0_i32_0 = arith.constant 0 : i32
    return %arg0, %c0_i32 : i32, i32
  }
  func.func @transform_10(%arg0: i32) -> (i32, i32, i32) {
    %c0_i32 = arith.constant 0 : i32
    %c0_i32_0 = arith.constant 0 : i32
    %c0_i32_1 = arith.constant 0 : i32
    return %c0_i32, %arg0, %c0_i32_0 : i32, i32, i32
  }
}

module attributes {stable_mosaic.version = 11 : i64} {
  func.func @msg_kernel(%arg0: i32, %arg1: memref<64x288xf32, #tpu.memory_space<vmem>>, %arg2: memref<3x64x128xf32, #tpu.memory_space<vmem>>, %arg3: memref<3x64x1xf32, #tpu.memory_space<vmem>>, %arg4: memref<128x256xbf16, #tpu.memory_space<vmem>>, %arg5: memref<1x256xbf16, #tpu.memory_space<vmem>>, %arg6: memref<288x128xbf16, #tpu.memory_space<vmem>>, %arg7: memref<256x128xbf16, #tpu.memory_space<vmem>>, %arg8: memref<1x128xf32, #tpu.memory_space<vmem>>, %arg9: memref<256x64xbf16, #tpu.memory_space<vmem>>, %arg10: memref<64x64xbf16, #tpu.memory_space<vmem>>, %arg11: memref<128x128xbf16, #tpu.memory_space<vmem>>, %arg12: memref<64x128xbf16, #tpu.memory_space<vmem>>, %arg13: memref<1x128xf32, #tpu.memory_space<vmem>>, %arg14: memref<64x64xbf16, #tpu.memory_space<vmem>>, %arg15: memref<64x64xbf16, #tpu.memory_space<vmem>>, %arg16: memref<128x128xbf16, #tpu.memory_space<vmem>>, %arg17: memref<64x128xbf16, #tpu.memory_space<vmem>>, %arg18: memref<1x128xf32, #tpu.memory_space<vmem>>, %arg19: memref<64x64xbf16, #tpu.memory_space<vmem>>, %arg20: memref<64x128xf32, #tpu.memory_space<vmem>>, %arg21: memref<3x64x64xf32, #tpu.memory_space<vmem>>) attributes {dimension_semantics = [#tpu.dimension_semantics<parallel>], iteration_bounds = array<i64: 2>, scalar_prefetch = 0 : i64, scratch_operands = 0 : i64, tpu.core_type = #tpu.core_type<tc>, window_params = [{transform_indices = @transform_0, window_bounds = array<i64: 64, 288>}, {transform_indices = @transform_1, window_bounds = array<i64: 3, 64, 128>}, {transform_indices = @transform_2, window_bounds = array<i64: 3, 64, 1>}, {pipeline_mode = #tpu.pipeline_mode<synchronous>, transform_indices = @transform_3, window_bounds = array<i64: 128, 256>}, {pipeline_mode = #tpu.pipeline_mode<synchronous>, transform_indices = @transform_4, window_bounds = array<i64: 1, 256>}, {pipeline_mode = #tpu.pipeline_mode<synchronous>, transform_indices = @transform_5, window_bounds = array<i64: 288, 128>}, {pipeline_mode = #tpu.pipeline_mode<synchronous>, transform_indices = @transform_6, window_bounds = array<i64: 256, 128>}, {pipeline_mode = #tpu.pipeline_mode<synchronous>, transform_indices = @transform_7, window_bounds = array<i64: 1, 128>}, {pipeline_mode = #tpu.pipeline_mode<synchronous>, transform_indices = @transform_8, window_bounds = array<i64: 256, 64>}, {pipeline_mode = #tpu.pipeline_mode<synchronous>, transform_indices = @transform_9, window_bounds = array<i64: 64, 64>}, {pipeline_mode = #tpu.pipeline_mode<synchronous>, transform_indices = @transform_10, window_bounds = array<i64: 128, 128>}, {pipeline_mode = #tpu.pipeline_mode<synchronous>, transform_indices = @transform_11, window_bounds = array<i64: 64, 128>}, {pipeline_mode = #tpu.pipeline_mode<synchronous>, transform_indices = @transform_12, window_bounds = array<i64: 1, 128>}, {pipeline_mode = #tpu.pipeline_mode<synchronous>, transform_indices = @transform_13, window_bounds = array<i64: 64, 64>}, {pipeline_mode = #tpu.pipeline_mode<synchronous>, transform_indices = @transform_14, window_bounds = array<i64: 64, 64>}, {pipeline_mode = #tpu.pipeline_mode<synchronous>, transform_indices = @transform_15, window_bounds = array<i64: 128, 128>}, {pipeline_mode = #tpu.pipeline_mode<synchronous>, transform_indices = @transform_16, window_bounds = array<i64: 64, 128>}, {pipeline_mode = #tpu.pipeline_mode<synchronous>, transform_indices = @transform_17, window_bounds = array<i64: 1, 128>}, {pipeline_mode = #tpu.pipeline_mode<synchronous>, transform_indices = @transform_18, window_bounds = array<i64: 64, 64>}, {transform_indices = @transform_19, window_bounds = array<i64: 64, 128>}, {transform_indices = @transform_20, window_bounds = array<i64: 3, 64, 64>}]} {
    %c0 = arith.constant 0 : index
    %c0_0 = arith.constant 0 : index
    %c0_1 = arith.constant 0 : index
    %0 = vector.load %arg2[%c0, %c0_0, %c0_1] : memref<3x64x128xf32, #tpu.memory_space<vmem>>, vector<3x64x128xf32>
    %c0_2 = arith.constant 0 : index
    %c0_3 = arith.constant 0 : index
    %1 = vector.load %arg4[%c0_2, %c0_3] : memref<128x256xbf16, #tpu.memory_space<vmem>>, vector<128x256xbf16>
    %2 = vector.shape_cast %0 : vector<3x64x128xf32> to vector<192x128xf32>
    %3 = arith.truncf %2 : vector<192x128xf32> to vector<192x128xbf16>
    %cst = arith.constant dense<0.000000e+00> : vector<192x256xf32>
    %4 = tpu.matmul %3, %1, %cst {dimension_numbers = #tpu.dot_dimension_numbers<[1], [0], [0], [1], [0, 0, 1, 1], [], []>} : vector<192x128xbf16>, vector<128x256xbf16>, vector<192x256xf32> -> vector<192x256xf32>
    %5 = vector.shape_cast %4 : vector<192x256xf32> to vector<3x64x256xf32>
    %c0_4 = arith.constant 0 : index
    %c0_5 = arith.constant 0 : index
    %c0_6 = arith.constant 0 : index
    %6 = vector.load %arg3[%c0_4, %c0_5, %c0_6] : memref<3x64x1xf32, #tpu.memory_space<vmem>>, vector<3x64x1xf32>
    %c0_7 = arith.constant 0 : index
    %c0_8 = arith.constant 0 : index
    %7 = vector.load %arg5[%c0_7, %c0_8] : memref<1x256xbf16, #tpu.memory_space<vmem>>, vector<1x256xbf16>
    %8 = arith.extf %7 : vector<1x256xbf16> to vector<1x256xf32>
    %9 = vector.shape_cast %8 : vector<1x256xf32> to vector<1x1x256xf32>
    %10 = vector.broadcast %6 : vector<3x64x1xf32> to vector<3x64x256xf32>
    %11 = vector.broadcast %9 : vector<1x1x256xf32> to vector<3x64x256xf32>
    %12 = arith.mulf %10, %11 : vector<3x64x256xf32>
    %13 = arith.addf %5, %12 : vector<3x64x256xf32>
    %c0_9 = arith.constant 0 : index
    %c0_10 = arith.constant 0 : index
    %14 = vector.load %arg1[%c0_9, %c0_10] : memref<64x288xf32, #tpu.memory_space<vmem>>, vector<64x288xf32>
    %c0_11 = arith.constant 0 : index
    %c0_12 = arith.constant 0 : index
    %15 = vector.load %arg6[%c0_11, %c0_12] : memref<288x128xbf16, #tpu.memory_space<vmem>>, vector<288x128xbf16>
    %16 = arith.truncf %14 : vector<64x288xf32> to vector<64x288xbf16>
    %cst_13 = arith.constant dense<0.000000e+00> : vector<64x128xf32>
    %17 = tpu.matmul %16, %15, %cst_13 {dimension_numbers = #tpu.dot_dimension_numbers<[1], [0], [0], [1], [0, 0, 1, 1], [], []>} : vector<64x288xbf16>, vector<288x128xbf16>, vector<64x128xf32> -> vector<64x128xf32>
    %c0_14 = arith.constant 0 : index
    %c0_15 = arith.constant 0 : index
    %18 = vector.load %arg7[%c0_14, %c0_15] : memref<256x128xbf16, #tpu.memory_space<vmem>>, vector<256x128xbf16>
    %c0_16 = arith.constant 0 : index
    %c0_17 = arith.constant 0 : index
    %19 = vector.load %arg8[%c0_16, %c0_17] : memref<1x128xf32, #tpu.memory_space<vmem>>, vector<1x128xf32>
    %c0_18 = arith.constant 0 : index
    %c0_19 = arith.constant 0 : index
    %20 = vector.load %arg9[%c0_18, %c0_19] : memref<256x64xbf16, #tpu.memory_space<vmem>>, vector<256x64xbf16>
    %21 = arith.mulf %13, %13 : vector<3x64x256xf32>
    %cst_20 = arith.constant dense<0.000000e+00> : vector<64x256xf32>
    %22 = vector.multi_reduction <add>, %21, %cst_20 [0] : vector<3x64x256xf32> to vector<64x256xf32>
    %cst_21 = arith.constant 9.99999993E-9 : f32
    %23 = vector.broadcast %cst_21 : f32 to vector<64x256xf32>
    %24 = arith.maximumf %22, %23 : vector<64x256xf32>
    %25 = math.sqrt %24 : vector<64x256xf32>
    %26 = arith.truncf %25 : vector<64x256xf32> to vector<64x256xbf16>
    %cst_22 = arith.constant dense<0.000000e+00> : vector<64x128xf32>
    %27 = tpu.matmul %26, %18, %cst_22 {dimension_numbers = #tpu.dot_dimension_numbers<[1], [0], [0], [1], [0, 0, 1, 1], [], []>} : vector<64x256xbf16>, vector<256x128xbf16>, vector<64x128xf32> -> vector<64x128xf32>
    %28 = arith.addf %17, %27 : vector<64x128xf32>
    %29 = vector.broadcast %19 : vector<1x128xf32> to vector<64x128xf32>
    %30 = arith.addf %28, %29 : vector<64x128xf32>
    %cst_23 = arith.constant 0.000000e+00 : f32
    %31 = vector.broadcast %cst_23 : f32 to vector<64x128xf32>
    %32 = arith.maximumf %30, %31 : vector<64x128xf32>
    %33 = vector.shape_cast %13 : vector<3x64x256xf32> to vector<192x256xf32>
    %34 = arith.truncf %33 : vector<192x256xf32> to vector<192x256xbf16>
    %cst_24 = arith.constant dense<0.000000e+00> : vector<192x64xf32>
    %35 = tpu.matmul %34, %20, %cst_24 {dimension_numbers = #tpu.dot_dimension_numbers<[1], [0], [0], [1], [0, 0, 1, 1], [], []>} : vector<192x256xbf16>, vector<256x64xbf16>, vector<192x64xf32> -> vector<192x64xf32>
    %36 = vector.shape_cast %35 : vector<192x64xf32> to vector<3x64x64xf32>
    %37 = arith.mulf %36, %36 : vector<3x64x64xf32>
    %cst_25 = arith.constant dense<0.000000e+00> : vector<64x64xf32>
    %38 = vector.multi_reduction <add>, %37, %cst_25 [0] : vector<3x64x64xf32> to vector<64x64xf32>
    %cst_26 = arith.constant 9.99999993E-9 : f32
    %39 = vector.broadcast %cst_26 : f32 to vector<64x64xf32>
    %40 = arith.maximumf %38, %39 : vector<64x64xf32>
    %41 = math.sqrt %40 : vector<64x64xf32>
    %42 = arith.negf %41 : vector<64x64xf32>
    %43 = math.exp %42 : vector<64x64xf32>
    %cst_27 = arith.constant 1.000000e+00 : f32
    %44 = vector.broadcast %cst_27 : f32 to vector<64x64xf32>
    %45 = arith.addf %44, %43 : vector<64x64xf32>
    %46 = arith.divf %44, %45 : vector<64x64xf32>
    %47 = vector.shape_cast %46 : vector<64x64xf32> to vector<1x64x64xf32>
    %48 = vector.broadcast %47 : vector<1x64x64xf32> to vector<3x64x64xf32>
    %49 = arith.mulf %36, %48 : vector<3x64x64xf32>
    %c0_28 = arith.constant 0 : index
    %c0_29 = arith.constant 0 : index
    %50 = vector.load %arg10[%c0_28, %c0_29] : memref<64x64xbf16, #tpu.memory_space<vmem>>, vector<64x64xbf16>
    %c0_30 = arith.constant 0 : index
    %c0_31 = arith.constant 0 : index
    %51 = vector.load %arg11[%c0_30, %c0_31] : memref<128x128xbf16, #tpu.memory_space<vmem>>, vector<128x128xbf16>
    %c0_32 = arith.constant 0 : index
    %c0_33 = arith.constant 0 : index
    %52 = vector.load %arg12[%c0_32, %c0_33] : memref<64x128xbf16, #tpu.memory_space<vmem>>, vector<64x128xbf16>
    %c0_34 = arith.constant 0 : index
    %c0_35 = arith.constant 0 : index
    %53 = vector.load %arg13[%c0_34, %c0_35] : memref<1x128xf32, #tpu.memory_space<vmem>>, vector<1x128xf32>
    %c0_36 = arith.constant 0 : index
    %c0_37 = arith.constant 0 : index
    %54 = vector.load %arg14[%c0_36, %c0_37] : memref<64x64xbf16, #tpu.memory_space<vmem>>, vector<64x64xbf16>
    %55 = vector.shape_cast %49 : vector<3x64x64xf32> to vector<192x64xf32>
    %56 = arith.truncf %55 : vector<192x64xf32> to vector<192x64xbf16>
    %cst_38 = arith.constant dense<0.000000e+00> : vector<192x64xf32>
    %57 = tpu.matmul %56, %50, %cst_38 {dimension_numbers = #tpu.dot_dimension_numbers<[1], [0], [0], [1], [0, 0, 1, 1], [], []>} : vector<192x64xbf16>, vector<64x64xbf16>, vector<192x64xf32> -> vector<192x64xf32>
    %58 = vector.shape_cast %57 : vector<192x64xf32> to vector<3x64x64xf32>
    %59 = arith.truncf %32 : vector<64x128xf32> to vector<64x128xbf16>
    %cst_39 = arith.constant dense<0.000000e+00> : vector<64x128xf32>
    %60 = tpu.matmul %59, %51, %cst_39 {dimension_numbers = #tpu.dot_dimension_numbers<[1], [0], [0], [1], [0, 0, 1, 1], [], []>} : vector<64x128xbf16>, vector<128x128xbf16>, vector<64x128xf32> -> vector<64x128xf32>
    %61 = arith.mulf %58, %58 : vector<3x64x64xf32>
    %cst_40 = arith.constant dense<0.000000e+00> : vector<64x64xf32>
    %62 = vector.multi_reduction <add>, %61, %cst_40 [0] : vector<3x64x64xf32> to vector<64x64xf32>
    %cst_41 = arith.constant 9.99999993E-9 : f32
    %63 = vector.broadcast %cst_41 : f32 to vector<64x64xf32>
    %64 = arith.maximumf %62, %63 : vector<64x64xf32>
    %65 = math.sqrt %64 : vector<64x64xf32>
    %66 = arith.truncf %65 : vector<64x64xf32> to vector<64x64xbf16>
    %cst_42 = arith.constant dense<0.000000e+00> : vector<64x128xf32>
    %67 = tpu.matmul %66, %52, %cst_42 {dimension_numbers = #tpu.dot_dimension_numbers<[1], [0], [0], [1], [0, 0, 1, 1], [], []>} : vector<64x64xbf16>, vector<64x128xbf16>, vector<64x128xf32> -> vector<64x128xf32>
    %68 = arith.addf %60, %67 : vector<64x128xf32>
    %69 = vector.broadcast %53 : vector<1x128xf32> to vector<64x128xf32>
    %70 = arith.addf %68, %69 : vector<64x128xf32>
    %cst_43 = arith.constant 0.000000e+00 : f32
    %71 = vector.broadcast %cst_43 : f32 to vector<64x128xf32>
    %72 = arith.maximumf %70, %71 : vector<64x128xf32>
    %73 = vector.shape_cast %58 : vector<3x64x64xf32> to vector<192x64xf32>
    %74 = arith.truncf %73 : vector<192x64xf32> to vector<192x64xbf16>
    %cst_44 = arith.constant dense<0.000000e+00> : vector<192x64xf32>
    %75 = tpu.matmul %74, %54, %cst_44 {dimension_numbers = #tpu.dot_dimension_numbers<[1], [0], [0], [1], [0, 0, 1, 1], [], []>} : vector<192x64xbf16>, vector<64x64xbf16>, vector<192x64xf32> -> vector<192x64xf32>
    %76 = vector.shape_cast %75 : vector<192x64xf32> to vector<3x64x64xf32>
    %77 = arith.mulf %76, %76 : vector<3x64x64xf32>
    %cst_45 = arith.constant dense<0.000000e+00> : vector<64x64xf32>
    %78 = vector.multi_reduction <add>, %77, %cst_45 [0] : vector<3x64x64xf32> to vector<64x64xf32>
    %cst_46 = arith.constant 9.99999993E-9 : f32
    %79 = vector.broadcast %cst_46 : f32 to vector<64x64xf32>
    %80 = arith.maximumf %78, %79 : vector<64x64xf32>
    %81 = math.sqrt %80 : vector<64x64xf32>
    %82 = arith.negf %81 : vector<64x64xf32>
    %83 = math.exp %82 : vector<64x64xf32>
    %cst_47 = arith.constant 1.000000e+00 : f32
    %84 = vector.broadcast %cst_47 : f32 to vector<64x64xf32>
    %85 = arith.addf %84, %83 : vector<64x64xf32>
    %86 = arith.divf %84, %85 : vector<64x64xf32>
    %87 = vector.shape_cast %86 : vector<64x64xf32> to vector<1x64x64xf32>
    %88 = vector.broadcast %87 : vector<1x64x64xf32> to vector<3x64x64xf32>
    %89 = arith.mulf %76, %88 : vector<3x64x64xf32>
    %c0_48 = arith.constant 0 : index
    %c0_49 = arith.constant 0 : index
    %90 = vector.load %arg15[%c0_48, %c0_49] : memref<64x64xbf16, #tpu.memory_space<vmem>>, vector<64x64xbf16>
    %c0_50 = arith.constant 0 : index
    %c0_51 = arith.constant 0 : index
    %91 = vector.load %arg16[%c0_50, %c0_51] : memref<128x128xbf16, #tpu.memory_space<vmem>>, vector<128x128xbf16>
    %c0_52 = arith.constant 0 : index
    %c0_53 = arith.constant 0 : index
    %92 = vector.load %arg17[%c0_52, %c0_53] : memref<64x128xbf16, #tpu.memory_space<vmem>>, vector<64x128xbf16>
    %c0_54 = arith.constant 0 : index
    %c0_55 = arith.constant 0 : index
    %93 = vector.load %arg18[%c0_54, %c0_55] : memref<1x128xf32, #tpu.memory_space<vmem>>, vector<1x128xf32>
    %c0_56 = arith.constant 0 : index
    %c0_57 = arith.constant 0 : index
    %94 = vector.load %arg19[%c0_56, %c0_57] : memref<64x64xbf16, #tpu.memory_space<vmem>>, vector<64x64xbf16>
    %95 = vector.shape_cast %89 : vector<3x64x64xf32> to vector<192x64xf32>
    %96 = arith.truncf %95 : vector<192x64xf32> to vector<192x64xbf16>
    %cst_58 = arith.constant dense<0.000000e+00> : vector<192x64xf32>
    %97 = tpu.matmul %96, %90, %cst_58 {dimension_numbers = #tpu.dot_dimension_numbers<[1], [0], [0], [1], [0, 0, 1, 1], [], []>} : vector<192x64xbf16>, vector<64x64xbf16>, vector<192x64xf32> -> vector<192x64xf32>
    %98 = vector.shape_cast %97 : vector<192x64xf32> to vector<3x64x64xf32>
    %99 = arith.truncf %72 : vector<64x128xf32> to vector<64x128xbf16>
    %cst_59 = arith.constant dense<0.000000e+00> : vector<64x128xf32>
    %100 = tpu.matmul %99, %91, %cst_59 {dimension_numbers = #tpu.dot_dimension_numbers<[1], [0], [0], [1], [0, 0, 1, 1], [], []>} : vector<64x128xbf16>, vector<128x128xbf16>, vector<64x128xf32> -> vector<64x128xf32>
    %101 = arith.mulf %98, %98 : vector<3x64x64xf32>
    %cst_60 = arith.constant dense<0.000000e+00> : vector<64x64xf32>
    %102 = vector.multi_reduction <add>, %101, %cst_60 [0] : vector<3x64x64xf32> to vector<64x64xf32>
    %cst_61 = arith.constant 9.99999993E-9 : f32
    %103 = vector.broadcast %cst_61 : f32 to vector<64x64xf32>
    %104 = arith.maximumf %102, %103 : vector<64x64xf32>
    %105 = math.sqrt %104 : vector<64x64xf32>
    %106 = arith.truncf %105 : vector<64x64xf32> to vector<64x64xbf16>
    %cst_62 = arith.constant dense<0.000000e+00> : vector<64x128xf32>
    %107 = tpu.matmul %106, %92, %cst_62 {dimension_numbers = #tpu.dot_dimension_numbers<[1], [0], [0], [1], [0, 0, 1, 1], [], []>} : vector<64x64xbf16>, vector<64x128xbf16>, vector<64x128xf32> -> vector<64x128xf32>
    %108 = arith.addf %100, %107 : vector<64x128xf32>
    %109 = vector.broadcast %93 : vector<1x128xf32> to vector<64x128xf32>
    %110 = arith.addf %108, %109 : vector<64x128xf32>
    %111 = vector.shape_cast %98 : vector<3x64x64xf32> to vector<192x64xf32>
    %112 = arith.truncf %111 : vector<192x64xf32> to vector<192x64xbf16>
    %cst_63 = arith.constant dense<0.000000e+00> : vector<192x64xf32>
    %113 = tpu.matmul %112, %94, %cst_63 {dimension_numbers = #tpu.dot_dimension_numbers<[1], [0], [0], [1], [0, 0, 1, 1], [], []>} : vector<192x64xbf16>, vector<64x64xbf16>, vector<192x64xf32> -> vector<192x64xf32>
    %114 = vector.shape_cast %113 : vector<192x64xf32> to vector<3x64x64xf32>
    %c0_64 = arith.constant 0 : index
    %c0_65 = arith.constant 0 : index
    %115 = vector.load %arg20[%c0_64, %c0_65] : memref<64x128xf32, #tpu.memory_space<vmem>>, vector<64x128xf32>
    tpu.vector_store %arg20[%c0_64, %c0_65], %110 {strides = array<i32>} : memref<64x128xf32, #tpu.memory_space<vmem>>, vector<64x128xf32>,
    %c0_66 = arith.constant 0 : index
    %c0_67 = arith.constant 0 : index
    %c0_68 = arith.constant 0 : index
    %116 = vector.load %arg21[%c0_66, %c0_67, %c0_68] : memref<3x64x64xf32, #tpu.memory_space<vmem>>, vector<3x64x64xf32>
    tpu.vector_store %arg21[%c0_66, %c0_67, %c0_68], %114 {strides = array<i32>} : memref<3x64x64xf32, #tpu.memory_space<vmem>>, vector<3x64x64xf32>,
    return
  }
  func.func @transform_0(%arg0: i32) -> (i32, i32) {
    %c0_i32 = arith.constant 0 : i32
    %c0_i32_0 = arith.constant 0 : i32
    return %arg0, %c0_i32 : i32, i32
  }
  func.func @transform_1(%arg0: i32) -> (i32, i32, i32) {
    %c0_i32 = arith.constant 0 : i32
    %c0_i32_0 = arith.constant 0 : i32
    %c0_i32_1 = arith.constant 0 : i32
    return %c0_i32, %arg0, %c0_i32_0 : i32, i32, i32
  }
  func.func @transform_2(%arg0: i32) -> (i32, i32, i32) {
    %c0_i32 = arith.constant 0 : i32
    %c0_i32_0 = arith.constant 0 : i32
    %c0_i32_1 = arith.constant 0 : i32
    return %c0_i32, %arg0, %c0_i32_0 : i32, i32, i32
  }
  func.func @transform_3(%arg0: i32) -> (i32, i32) {
    %c0_i32 = arith.constant 0 : i32
    %c0_i32_0 = arith.constant 0 : i32
    %c0_i32_1 = arith.constant 0 : i32
    return %c0_i32, %c0_i32_0 : i32, i32
  }
  func.func @transform_4(%arg0: i32) -> (i32, i32) {
    %c0_i32 = arith.constant 0 : i32
    %c0_i32_0 = arith.constant 0 : i32
    %c0_i32_1 = arith.constant 0 : i32
    return %c0_i32, %c0_i32_0 : i32, i32
  }
  func.func @transform_5(%arg0: i32) -> (i32, i32) {
    %c0_i32 = arith.constant 0 : i32
    %c0_i32_0 = arith.constant 0 : i32
    %c0_i32_1 = arith.constant 0 : i32
    return %c0_i32, %c0_i32_0 : i32, i32
  }
  func.func @transform_6(%arg0: i32) -> (i32, i32) {
    %c0_i32 = arith.constant 0 : i32
    %c0_i32_0 = arith.constant 0 : i32
    %c0_i32_1 = arith.constant 0 : i32
    return %c0_i32, %c0_i32_0 : i32, i32
  }
  func.func @transform_7(%arg0: i32) -> (i32, i32) {
    %c0_i32 = arith.constant 0 : i32
    %c0_i32_0 = arith.constant 0 : i32
    %c0_i32_1 = arith.constant 0 : i32
    return %c0_i32, %c0_i32_0 : i32, i32
  }
  func.func @transform_8(%arg0: i32) -> (i32, i32) {
    %c0_i32 = arith.constant 0 : i32
    %c0_i32_0 = arith.constant 0 : i32
    %c0_i32_1 = arith.constant 0 : i32
    return %c0_i32, %c0_i32_0 : i32, i32
  }
  func.func @transform_9(%arg0: i32) -> (i32, i32) {
    %c0_i32 = arith.constant 0 : i32
    %c0_i32_0 = arith.constant 0 : i32
    %c0_i32_1 = arith.constant 0 : i32
    return %c0_i32, %c0_i32_0 : i32, i32
  }
  func.func @transform_10(%arg0: i32) -> (i32, i32) {
    %c0_i32 = arith.constant 0 : i32
    %c0_i32_0 = arith.constant 0 : i32
    %c0_i32_1 = arith.constant 0 : i32
    return %c0_i32, %c0_i32_0 : i32, i32
  }
  func.func @transform_11(%arg0: i32) -> (i32, i32) {
    %c0_i32 = arith.constant 0 : i32
    %c0_i32_0 = arith.constant 0 : i32
    %c0_i32_1 = arith.constant 0 : i32
    return %c0_i32, %c0_i32_0 : i32, i32
  }
  func.func @transform_12(%arg0: i32) -> (i32, i32) {
    %c0_i32 = arith.constant 0 : i32
    %c0_i32_0 = arith.constant 0 : i32
    %c0_i32_1 = arith.constant 0 : i32
    return %c0_i32, %c0_i32_0 : i32, i32
  }
  func.func @transform_13(%arg0: i32) -> (i32, i32) {
    %c0_i32 = arith.constant 0 : i32
    %c0_i32_0 = arith.constant 0 : i32
    %c0_i32_1 = arith.constant 0 : i32
    return %c0_i32, %c0_i32_0 : i32, i32
  }
  func.func @transform_14(%arg0: i32) -> (i32, i32) {
    %c0_i32 = arith.constant 0 : i32
    %c0_i32_0 = arith.constant 0 : i32
    %c0_i32_1 = arith.constant 0 : i32
    return %c0_i32, %c0_i32_0 : i32, i32
  }
  func.func @transform_15(%arg0: i32) -> (i32, i32) {
    %c0_i32 = arith.constant 0 : i32
    %c0_i32_0 = arith.constant 0 : i32
    %c0_i32_1 = arith.constant 0 : i32
    return %c0_i32, %c0_i32_0 : i32, i32
  }
  func.func @transform_16(%arg0: i32) -> (i32, i32) {
    %c0_i32 = arith.constant 0 : i32
    %c0_i32_0 = arith.constant 0 : i32
    %c0_i32_1 = arith.constant 0 : i32
    return %c0_i32, %c0_i32_0 : i32, i32
  }
  func.func @transform_17(%arg0: i32) -> (i32, i32) {
    %c0_i32 = arith.constant 0 : i32
    %c0_i32_0 = arith.constant 0 : i32
    %c0_i32_1 = arith.constant 0 : i32
    return %c0_i32, %c0_i32_0 : i32, i32
  }
  func.func @transform_18(%arg0: i32) -> (i32, i32) {
    %c0_i32 = arith.constant 0 : i32
    %c0_i32_0 = arith.constant 0 : i32
    %c0_i32_1 = arith.constant 0 : i32
    return %c0_i32, %c0_i32_0 : i32, i32
  }
  func.func @transform_19(%arg0: i32) -> (i32, i32) {
    %c0_i32 = arith.constant 0 : i32
    %c0_i32_0 = arith.constant 0 : i32
    return %arg0, %c0_i32 : i32, i32
  }
  func.func @transform_20(%arg0: i32) -> (i32, i32, i32) {
    %c0_i32 = arith.constant 0 : i32
    %c0_i32_0 = arith.constant 0 : i32
    %c0_i32_1 = arith.constant 0 : i32
    return %c0_i32, %arg0, %c0_i32_0 : i32, i32, i32
  }
}

module attributes {stable_mosaic.version = 11 : i64} {
  func.func @out_kernel(%arg0: i32, %arg1: memref<32x128xf32, #tpu.memory_space<vmem>>, %arg2: memref<3x32x64xf32, #tpu.memory_space<vmem>>, %arg3: memref<1x128xf32, #tpu.memory_space<vmem>>, %arg4: memref<1x128xf32, #tpu.memory_space<vmem>>, %arg5: memref<64x64xbf16, #tpu.memory_space<vmem>>, %arg6: memref<128x128xbf16, #tpu.memory_space<vmem>>, %arg7: memref<64x128xbf16, #tpu.memory_space<vmem>>, %arg8: memref<1x128xf32, #tpu.memory_space<vmem>>, %arg9: memref<32x128xf32, #tpu.memory_space<vmem>>) attributes {dimension_semantics = [#tpu.dimension_semantics<parallel>], iteration_bounds = array<i64: 2>, scalar_prefetch = 0 : i64, scratch_operands = 0 : i64, tpu.core_type = #tpu.core_type<tc>, window_params = [{transform_indices = @transform_0, window_bounds = array<i64: 32, 128>}, {transform_indices = @transform_1, window_bounds = array<i64: 3, 32, 64>}, {pipeline_mode = #tpu.pipeline_mode<synchronous>, transform_indices = @transform_2, window_bounds = array<i64: 1, 128>}, {pipeline_mode = #tpu.pipeline_mode<synchronous>, transform_indices = @transform_3, window_bounds = array<i64: 1, 128>}, {pipeline_mode = #tpu.pipeline_mode<synchronous>, transform_indices = @transform_4, window_bounds = array<i64: 64, 64>}, {pipeline_mode = #tpu.pipeline_mode<synchronous>, transform_indices = @transform_5, window_bounds = array<i64: 128, 128>}, {pipeline_mode = #tpu.pipeline_mode<synchronous>, transform_indices = @transform_6, window_bounds = array<i64: 64, 128>}, {pipeline_mode = #tpu.pipeline_mode<synchronous>, transform_indices = @transform_7, window_bounds = array<i64: 1, 128>}, {transform_indices = @transform_8, window_bounds = array<i64: 32, 128>}]} {
    %c0 = arith.constant 0 : index
    %c0_0 = arith.constant 0 : index
    %0 = vector.load %arg1[%c0, %c0_0] : memref<32x128xf32, #tpu.memory_space<vmem>>, vector<32x128xf32>
    %c0_1 = arith.constant 0 : index
    %c0_2 = arith.constant 0 : index
    %c0_3 = arith.constant 0 : index
    %1 = vector.load %arg2[%c0_1, %c0_2, %c0_3] : memref<3x32x64xf32, #tpu.memory_space<vmem>>, vector<3x32x64xf32>
    %c0_4 = arith.constant 0 : index
    %c0_5 = arith.constant 0 : index
    %2 = vector.load %arg3[%c0_4, %c0_5] : memref<1x128xf32, #tpu.memory_space<vmem>>, vector<1x128xf32>
    %c0_6 = arith.constant 0 : index
    %c0_7 = arith.constant 0 : index
    %3 = vector.load %arg4[%c0_6, %c0_7] : memref<1x128xf32, #tpu.memory_space<vmem>>, vector<1x128xf32>
    %cst = arith.constant dense<0.000000e+00> : vector<32xf32>
    %4 = vector.multi_reduction <add>, %0, %cst [1] : vector<32x128xf32> to vector<32xf32>
    %5 = vector.shape_cast %4 : vector<32xf32> to vector<32x1xf32>
    %cst_8 = arith.constant 1.280000e+02 : f32
    %6 = vector.broadcast %cst_8 : f32 to vector<32x1xf32>
    %7 = arith.divf %5, %6 : vector<32x1xf32>
    %8 = vector.broadcast %7 : vector<32x1xf32> to vector<32x128xf32>
    %9 = arith.subf %0, %8 : vector<32x128xf32>
    %10 = arith.mulf %9, %9 : vector<32x128xf32>
    %cst_9 = arith.constant dense<0.000000e+00> : vector<32xf32>
    %11 = vector.multi_reduction <add>, %10, %cst_9 [1] : vector<32x128xf32> to vector<32xf32>
    %12 = vector.shape_cast %11 : vector<32xf32> to vector<32x1xf32>
    %cst_10 = arith.constant 1.280000e+02 : f32
    %13 = vector.broadcast %cst_10 : f32 to vector<32x1xf32>
    %14 = arith.divf %12, %13 : vector<32x1xf32>
    %cst_11 = arith.constant 9.99999974E-6 : f32
    %15 = vector.broadcast %cst_11 : f32 to vector<32x1xf32>
    %16 = arith.addf %14, %15 : vector<32x1xf32>
    %17 = math.rsqrt %16 : vector<32x1xf32>
    %18 = vector.broadcast %17 : vector<32x1xf32> to vector<32x128xf32>
    %19 = arith.mulf %9, %18 : vector<32x128xf32>
    %20 = vector.broadcast %2 : vector<1x128xf32> to vector<32x128xf32>
    %21 = arith.mulf %19, %20 : vector<32x128xf32>
    %22 = vector.broadcast %3 : vector<1x128xf32> to vector<32x128xf32>
    %23 = arith.addf %21, %22 : vector<32x128xf32>
    %24 = arith.mulf %1, %1 : vector<3x32x64xf32>
    %cst_12 = arith.constant dense<0.000000e+00> : vector<32x64xf32>
    %25 = vector.multi_reduction <add>, %24, %cst_12 [0] : vector<3x32x64xf32> to vector<32x64xf32>
    %cst_13 = arith.constant 9.99999993E-9 : f32
    %26 = vector.broadcast %cst_13 : f32 to vector<32x64xf32>
    %27 = arith.maximumf %25, %26 : vector<32x64xf32>
    %cst_14 = arith.constant dense<0.000000e+00> : vector<32xf32>
    %28 = vector.multi_reduction <add>, %27, %cst_14 [1] : vector<32x64xf32> to vector<32xf32>
    %29 = vector.shape_cast %28 : vector<32xf32> to vector<32x1xf32>
    %cst_15 = arith.constant 6.400000e+01 : f32
    %30 = vector.broadcast %cst_15 : f32 to vector<32x1xf32>
    %31 = arith.divf %29, %30 : vector<32x1xf32>
    %32 = math.rsqrt %31 : vector<32x1xf32>
    %33 = vector.shape_cast %32 : vector<32x1xf32> to vector<1x32x1xf32>
    %34 = vector.broadcast %33 : vector<1x32x1xf32> to vector<3x32x64xf32>
    %35 = arith.mulf %1, %34 : vector<3x32x64xf32>
    %c0_16 = arith.constant 0 : index
    %c0_17 = arith.constant 0 : index
    %36 = vector.load %arg5[%c0_16, %c0_17] : memref<64x64xbf16, #tpu.memory_space<vmem>>, vector<64x64xbf16>
    %c0_18 = arith.constant 0 : index
    %c0_19 = arith.constant 0 : index
    %37 = vector.load %arg6[%c0_18, %c0_19] : memref<128x128xbf16, #tpu.memory_space<vmem>>, vector<128x128xbf16>
    %c0_20 = arith.constant 0 : index
    %c0_21 = arith.constant 0 : index
    %38 = vector.load %arg7[%c0_20, %c0_21] : memref<64x128xbf16, #tpu.memory_space<vmem>>, vector<64x128xbf16>
    %c0_22 = arith.constant 0 : index
    %c0_23 = arith.constant 0 : index
    %39 = vector.load %arg8[%c0_22, %c0_23] : memref<1x128xf32, #tpu.memory_space<vmem>>, vector<1x128xf32>
    %40 = vector.shape_cast %35 : vector<3x32x64xf32> to vector<96x64xf32>
    %41 = arith.truncf %40 : vector<96x64xf32> to vector<96x64xbf16>
    %cst_24 = arith.constant dense<0.000000e+00> : vector<96x64xf32>
    %42 = tpu.matmul %41, %36, %cst_24 {dimension_numbers = #tpu.dot_dimension_numbers<[1], [0], [0], [1], [0, 0, 1, 1], [], []>} : vector<96x64xbf16>, vector<64x64xbf16>, vector<96x64xf32> -> vector<96x64xf32>
    %43 = vector.shape_cast %42 : vector<96x64xf32> to vector<3x32x64xf32>
    %44 = arith.truncf %23 : vector<32x128xf32> to vector<32x128xbf16>
    %cst_25 = arith.constant dense<0.000000e+00> : vector<32x128xf32>
    %45 = tpu.matmul %44, %37, %cst_25 {dimension_numbers = #tpu.dot_dimension_numbers<[1], [0], [0], [1], [0, 0, 1, 1], [], []>} : vector<32x128xbf16>, vector<128x128xbf16>, vector<32x128xf32> -> vector<32x128xf32>
    %46 = arith.mulf %43, %43 : vector<3x32x64xf32>
    %cst_26 = arith.constant dense<0.000000e+00> : vector<32x64xf32>
    %47 = vector.multi_reduction <add>, %46, %cst_26 [0] : vector<3x32x64xf32> to vector<32x64xf32>
    %cst_27 = arith.constant 9.99999993E-9 : f32
    %48 = vector.broadcast %cst_27 : f32 to vector<32x64xf32>
    %49 = arith.maximumf %47, %48 : vector<32x64xf32>
    %50 = math.sqrt %49 : vector<32x64xf32>
    %51 = arith.truncf %50 : vector<32x64xf32> to vector<32x64xbf16>
    %cst_28 = arith.constant dense<0.000000e+00> : vector<32x128xf32>
    %52 = tpu.matmul %51, %38, %cst_28 {dimension_numbers = #tpu.dot_dimension_numbers<[1], [0], [0], [1], [0, 0, 1, 1], [], []>} : vector<32x64xbf16>, vector<64x128xbf16>, vector<32x128xf32> -> vector<32x128xf32>
    %53 = arith.addf %45, %52 : vector<32x128xf32>
    %54 = vector.broadcast %39 : vector<1x128xf32> to vector<32x128xf32>
    %55 = arith.addf %53, %54 : vector<32x128xf32>
    %cst_29 = arith.constant 0.000000e+00 : f32
    %56 = vector.broadcast %cst_29 : f32 to vector<32x128xf32>
    %57 = arith.maximumf %55, %56 : vector<32x128xf32>
    %c0_30 = arith.constant 0 : index
    %c0_31 = arith.constant 0 : index
    %58 = vector.load %arg9[%c0_30, %c0_31] : memref<32x128xf32, #tpu.memory_space<vmem>>, vector<32x128xf32>
    tpu.vector_store %arg9[%c0_30, %c0_31], %57 {strides = array<i32>} : memref<32x128xf32, #tpu.memory_space<vmem>>, vector<32x128xf32>,
    return
  }
  func.func @transform_0(%arg0: i32) -> (i32, i32) {
    %c0_i32 = arith.constant 0 : i32
    %c0_i32_0 = arith.constant 0 : i32
    return %arg0, %c0_i32 : i32, i32
  }
  func.func @transform_1(%arg0: i32) -> (i32, i32, i32) {
    %c0_i32 = arith.constant 0 : i32
    %c0_i32_0 = arith.constant 0 : i32
    %c0_i32_1 = arith.constant 0 : i32
    return %c0_i32, %arg0, %c0_i32_0 : i32, i32, i32
  }
  func.func @transform_2(%arg0: i32) -> (i32, i32) {
    %c0_i32 = arith.constant 0 : i32
    %c0_i32_0 = arith.constant 0 : i32
    %c0_i32_1 = arith.constant 0 : i32
    return %c0_i32, %c0_i32_0 : i32, i32
  }
  func.func @transform_3(%arg0: i32) -> (i32, i32) {
    %c0_i32 = arith.constant 0 : i32
    %c0_i32_0 = arith.constant 0 : i32
    %c0_i32_1 = arith.constant 0 : i32
    return %c0_i32, %c0_i32_0 : i32, i32
  }
  func.func @transform_4(%arg0: i32) -> (i32, i32) {
    %c0_i32 = arith.constant 0 : i32
    %c0_i32_0 = arith.constant 0 : i32
    %c0_i32_1 = arith.constant 0 : i32
    return %c0_i32, %c0_i32_0 : i32, i32
  }
  func.func @transform_5(%arg0: i32) -> (i32, i32) {
    %c0_i32 = arith.constant 0 : i32
    %c0_i32_0 = arith.constant 0 : i32
    %c0_i32_1 = arith.constant 0 : i32
    return %c0_i32, %c0_i32_0 : i32, i32
  }
  func.func @transform_6(%arg0: i32) -> (i32, i32) {
    %c0_i32 = arith.constant 0 : i32
    %c0_i32_0 = arith.constant 0 : i32
    %c0_i32_1 = arith.constant 0 : i32
    return %c0_i32, %c0_i32_0 : i32, i32
  }
  func.func @transform_7(%arg0: i32) -> (i32, i32) {
    %c0_i32 = arith.constant 0 : i32
    %c0_i32_0 = arith.constant 0 : i32
    %c0_i32_1 = arith.constant 0 : i32
    return %c0_i32, %c0_i32_0 : i32, i32
  }
  func.func @transform_8(%arg0: i32) -> (i32, i32) {
    %c0_i32 = arith.constant 0 : i32
    %c0_i32_0 = arith.constant 0 : i32
    return %arg0, %c0_i32 : i32, i32
  }
}

module attributes {stable_mosaic.version = 11 : i64} {
  func.func @update_kernel(%arg0: i32, %arg1: memref<32x128xf32, #tpu.memory_space<vmem>>, %arg2: memref<3x32x64xf32, #tpu.memory_space<vmem>>, %arg3: memref<32x128xf32, #tpu.memory_space<vmem>>, %arg4: memref<3x32x64xf32, #tpu.memory_space<vmem>>, %arg5: memref<32x1xf32, #tpu.memory_space<vmem>>, %arg6: memref<1x128xf32, #tpu.memory_space<vmem>>, %arg7: memref<1x128xf32, #tpu.memory_space<vmem>>, %arg8: memref<64x128xbf16, #tpu.memory_space<vmem>>, %arg9: memref<128x512xbf16, #tpu.memory_space<vmem>>, %arg10: memref<128x512xbf16, #tpu.memory_space<vmem>>, %arg11: memref<1x512xf32, #tpu.memory_space<vmem>>, %arg12: memref<128x128xbf16, #tpu.memory_space<vmem>>, %arg13: memref<128x128xbf16, #tpu.memory_space<vmem>>, %arg14: memref<512x128xbf16, #tpu.memory_space<vmem>>, %arg15: memref<128x128xbf16, #tpu.memory_space<vmem>>, %arg16: memref<1x128xf32, #tpu.memory_space<vmem>>, %arg17: memref<128x64xbf16, #tpu.memory_space<vmem>>, %arg18: memref<1x128xf32, #tpu.memory_space<vmem>>, %arg19: memref<1x128xf32, #tpu.memory_space<vmem>>, %arg20: memref<32x128xf32, #tpu.memory_space<vmem>>, %arg21: memref<3x32x64xf32, #tpu.memory_space<vmem>>) attributes {dimension_semantics = [#tpu.dimension_semantics<parallel>], iteration_bounds = array<i64: 2>, scalar_prefetch = 0 : i64, scratch_operands = 0 : i64, tpu.core_type = #tpu.core_type<tc>, window_params = [{transform_indices = @transform_0, window_bounds = array<i64: 32, 128>}, {transform_indices = @transform_1, window_bounds = array<i64: 3, 32, 64>}, {transform_indices = @transform_2, window_bounds = array<i64: 32, 128>}, {transform_indices = @transform_3, window_bounds = array<i64: 3, 32, 64>}, {transform_indices = @transform_4, window_bounds = array<i64: 32, 1>}, {pipeline_mode = #tpu.pipeline_mode<synchronous>, transform_indices = @transform_5, window_bounds = array<i64: 1, 128>}, {pipeline_mode = #tpu.pipeline_mode<synchronous>, transform_indices = @transform_6, window_bounds = array<i64: 1, 128>}, {pipeline_mode = #tpu.pipeline_mode<synchronous>, transform_indices = @transform_7, window_bounds = array<i64: 64, 128>}, {pipeline_mode = #tpu.pipeline_mode<synchronous>, transform_indices = @transform_8, window_bounds = array<i64: 128, 512>}, {pipeline_mode = #tpu.pipeline_mode<synchronous>, transform_indices = @transform_9, window_bounds = array<i64: 128, 512>}, {pipeline_mode = #tpu.pipeline_mode<synchronous>, transform_indices = @transform_10, window_bounds = array<i64: 1, 512>}, {pipeline_mode = #tpu.pipeline_mode<synchronous>, transform_indices = @transform_11, window_bounds = array<i64: 128, 128>}, {pipeline_mode = #tpu.pipeline_mode<synchronous>, transform_indices = @transform_12, window_bounds = array<i64: 128, 128>}, {pipeline_mode = #tpu.pipeline_mode<synchronous>, transform_indices = @transform_13, window_bounds = array<i64: 512, 128>}, {pipeline_mode = #tpu.pipeline_mode<synchronous>, transform_indices = @transform_14, window_bounds = array<i64: 128, 128>}, {pipeline_mode = #tpu.pipeline_mode<synchronous>, transform_indices = @transform_15, window_bounds = array<i64: 1, 128>}, {pipeline_mode = #tpu.pipeline_mode<synchronous>, transform_indices = @transform_16, window_bounds = array<i64: 128, 64>}, {pipeline_mode = #tpu.pipeline_mode<synchronous>, transform_indices = @transform_17, window_bounds = array<i64: 1, 128>}, {pipeline_mode = #tpu.pipeline_mode<synchronous>, transform_indices = @transform_18, window_bounds = array<i64: 1, 128>}, {transform_indices = @transform_19, window_bounds = array<i64: 32, 128>}, {transform_indices = @transform_20, window_bounds = array<i64: 3, 32, 64>}]} {
    %c0 = arith.constant 0 : index
    %c0_0 = arith.constant 0 : index
    %0 = vector.load %arg5[%c0, %c0_0] : memref<32x1xf32, #tpu.memory_space<vmem>>, vector<32x1xf32>
    %c0_1 = arith.constant 0 : index
    %c0_2 = arith.constant 0 : index
    %1 = vector.load %arg1[%c0_1, %c0_2] : memref<32x128xf32, #tpu.memory_space<vmem>>, vector<32x128xf32>
    %c0_3 = arith.constant 0 : index
    %c0_4 = arith.constant 0 : index
    %2 = vector.load %arg3[%c0_3, %c0_4] : memref<32x128xf32, #tpu.memory_space<vmem>>, vector<32x128xf32>
    %3 = vector.broadcast %0 : vector<32x1xf32> to vector<32x128xf32>
    %4 = arith.mulf %2, %3 : vector<32x128xf32>
    %5 = arith.addf %1, %4 : vector<32x128xf32>
    %c0_5 = arith.constant 0 : index
    %c0_6 = arith.constant 0 : index
    %c0_7 = arith.constant 0 : index
    %6 = vector.load %arg2[%c0_5, %c0_6, %c0_7] : memref<3x32x64xf32, #tpu.memory_space<vmem>>, vector<3x32x64xf32>
    %c0_8 = arith.constant 0 : index
    %c0_9 = arith.constant 0 : index
    %c0_10 = arith.constant 0 : index
    %7 = vector.load %arg4[%c0_8, %c0_9, %c0_10] : memref<3x32x64xf32, #tpu.memory_space<vmem>>, vector<3x32x64xf32>
    %8 = vector.shape_cast %0 : vector<32x1xf32> to vector<1x32x1xf32>
    %9 = vector.broadcast %8 : vector<1x32x1xf32> to vector<3x32x64xf32>
    %10 = arith.mulf %7, %9 : vector<3x32x64xf32>
    %11 = arith.addf %6, %10 : vector<3x32x64xf32>
    %c0_11 = arith.constant 0 : index
    %c0_12 = arith.constant 0 : index
    %12 = vector.load %arg6[%c0_11, %c0_12] : memref<1x128xf32, #tpu.memory_space<vmem>>, vector<1x128xf32>
    %c0_13 = arith.constant 0 : index
    %c0_14 = arith.constant 0 : index
    %13 = vector.load %arg7[%c0_13, %c0_14] : memref<1x128xf32, #tpu.memory_space<vmem>>, vector<1x128xf32>
    %cst = arith.constant dense<0.000000e+00> : vector<32xf32>
    %14 = vector.multi_reduction <add>, %5, %cst [1] : vector<32x128xf32> to vector<32xf32>
    %15 = vector.shape_cast %14 : vector<32xf32> to vector<32x1xf32>
    %cst_15 = arith.constant 1.280000e+02 : f32
    %16 = vector.broadcast %cst_15 : f32 to vector<32x1xf32>
    %17 = arith.divf %15, %16 : vector<32x1xf32>
    %18 = vector.broadcast %17 : vector<32x1xf32> to vector<32x128xf32>
    %19 = arith.subf %5, %18 : vector<32x128xf32>
    %20 = arith.mulf %19, %19 : vector<32x128xf32>
    %cst_16 = arith.constant dense<0.000000e+00> : vector<32xf32>
    %21 = vector.multi_reduction <add>, %20, %cst_16 [1] : vector<32x128xf32> to vector<32xf32>
    %22 = vector.shape_cast %21 : vector<32xf32> to vector<32x1xf32>
    %cst_17 = arith.constant 1.280000e+02 : f32
    %23 = vector.broadcast %cst_17 : f32 to vector<32x1xf32>
    %24 = arith.divf %22, %23 : vector<32x1xf32>
    %cst_18 = arith.constant 9.99999974E-6 : f32
    %25 = vector.broadcast %cst_18 : f32 to vector<32x1xf32>
    %26 = arith.addf %24, %25 : vector<32x1xf32>
    %27 = math.rsqrt %26 : vector<32x1xf32>
    %28 = vector.broadcast %27 : vector<32x1xf32> to vector<32x128xf32>
    %29 = arith.mulf %19, %28 : vector<32x128xf32>
    %30 = vector.broadcast %12 : vector<1x128xf32> to vector<32x128xf32>
    %31 = arith.mulf %29, %30 : vector<32x128xf32>
    %32 = vector.broadcast %13 : vector<1x128xf32> to vector<32x128xf32>
    %33 = arith.addf %31, %32 : vector<32x128xf32>
    %34 = arith.mulf %11, %11 : vector<3x32x64xf32>
    %cst_19 = arith.constant dense<0.000000e+00> : vector<32x64xf32>
    %35 = vector.multi_reduction <add>, %34, %cst_19 [0] : vector<3x32x64xf32> to vector<32x64xf32>
    %cst_20 = arith.constant 9.99999993E-9 : f32
    %36 = vector.broadcast %cst_20 : f32 to vector<32x64xf32>
    %37 = arith.maximumf %35, %36 : vector<32x64xf32>
    %cst_21 = arith.constant dense<0.000000e+00> : vector<32xf32>
    %38 = vector.multi_reduction <add>, %37, %cst_21 [1] : vector<32x64xf32> to vector<32xf32>
    %39 = vector.shape_cast %38 : vector<32xf32> to vector<32x1xf32>
    %cst_22 = arith.constant 6.400000e+01 : f32
    %40 = vector.broadcast %cst_22 : f32 to vector<32x1xf32>
    %41 = arith.divf %39, %40 : vector<32x1xf32>
    %42 = math.rsqrt %41 : vector<32x1xf32>
    %43 = vector.shape_cast %42 : vector<32x1xf32> to vector<1x32x1xf32>
    %44 = vector.broadcast %43 : vector<1x32x1xf32> to vector<3x32x64xf32>
    %45 = arith.mulf %11, %44 : vector<3x32x64xf32>
    %c0_23 = arith.constant 0 : index
    %c0_24 = arith.constant 0 : index
    %46 = vector.load %arg8[%c0_23, %c0_24] : memref<64x128xbf16, #tpu.memory_space<vmem>>, vector<64x128xbf16>
    %c0_25 = arith.constant 0 : index
    %c0_26 = arith.constant 0 : index
    %47 = vector.load %arg9[%c0_25, %c0_26] : memref<128x512xbf16, #tpu.memory_space<vmem>>, vector<128x512xbf16>
    %c0_27 = arith.constant 0 : index
    %c0_28 = arith.constant 0 : index
    %48 = vector.load %arg10[%c0_27, %c0_28] : memref<128x512xbf16, #tpu.memory_space<vmem>>, vector<128x512xbf16>
    %c0_29 = arith.constant 0 : index
    %c0_30 = arith.constant 0 : index
    %49 = vector.load %arg11[%c0_29, %c0_30] : memref<1x512xf32, #tpu.memory_space<vmem>>, vector<1x512xf32>
    %c0_31 = arith.constant 0 : index
    %c0_32 = arith.constant 0 : index
    %50 = vector.load %arg12[%c0_31, %c0_32] : memref<128x128xbf16, #tpu.memory_space<vmem>>, vector<128x128xbf16>
    %51 = vector.shape_cast %45 : vector<3x32x64xf32> to vector<96x64xf32>
    %52 = arith.truncf %51 : vector<96x64xf32> to vector<96x64xbf16>
    %cst_33 = arith.constant dense<0.000000e+00> : vector<96x128xf32>
    %53 = tpu.matmul %52, %46, %cst_33 {dimension_numbers = #tpu.dot_dimension_numbers<[1], [0], [0], [1], [0, 0, 1, 1], [], []>} : vector<96x64xbf16>, vector<64x128xbf16>, vector<96x128xf32> -> vector<96x128xf32>
    %54 = vector.shape_cast %53 : vector<96x128xf32> to vector<3x32x128xf32>
    %55 = arith.truncf %33 : vector<32x128xf32> to vector<32x128xbf16>
    %cst_34 = arith.constant dense<0.000000e+00> : vector<32x512xf32>
    %56 = tpu.matmul %55, %47, %cst_34 {dimension_numbers = #tpu.dot_dimension_numbers<[1], [0], [0], [1], [0, 0, 1, 1], [], []>} : vector<32x128xbf16>, vector<128x512xbf16>, vector<32x512xf32> -> vector<32x512xf32>
    %57 = arith.mulf %54, %54 : vector<3x32x128xf32>
    %cst_35 = arith.constant dense<0.000000e+00> : vector<32x128xf32>
    %58 = vector.multi_reduction <add>, %57, %cst_35 [0] : vector<3x32x128xf32> to vector<32x128xf32>
    %cst_36 = arith.constant 9.99999993E-9 : f32
    %59 = vector.broadcast %cst_36 : f32 to vector<32x128xf32>
    %60 = arith.maximumf %58, %59 : vector<32x128xf32>
    %61 = math.sqrt %60 : vector<32x128xf32>
    %62 = arith.truncf %61 : vector<32x128xf32> to vector<32x128xbf16>
    %cst_37 = arith.constant dense<0.000000e+00> : vector<32x512xf32>
    %63 = tpu.matmul %62, %48, %cst_37 {dimension_numbers = #tpu.dot_dimension_numbers<[1], [0], [0], [1], [0, 0, 1, 1], [], []>} : vector<32x128xbf16>, vector<128x512xbf16>, vector<32x512xf32> -> vector<32x512xf32>
    %64 = arith.addf %56, %63 : vector<32x512xf32>
    %65 = vector.broadcast %49 : vector<1x512xf32> to vector<32x512xf32>
    %66 = arith.addf %64, %65 : vector<32x512xf32>
    %cst_38 = arith.constant 0.000000e+00 : f32
    %67 = vector.broadcast %cst_38 : f32 to vector<32x512xf32>
    %68 = arith.maximumf %66, %67 : vector<32x512xf32>
    %69 = vector.shape_cast %54 : vector<3x32x128xf32> to vector<96x128xf32>
    %70 = arith.truncf %69 : vector<96x128xf32> to vector<96x128xbf16>
    %cst_39 = arith.constant dense<0.000000e+00> : vector<96x128xf32>
    %71 = tpu.matmul %70, %50, %cst_39 {dimension_numbers = #tpu.dot_dimension_numbers<[1], [0], [0], [1], [0, 0, 1, 1], [], []>} : vector<96x128xbf16>, vector<128x128xbf16>, vector<96x128xf32> -> vector<96x128xf32>
    %72 = vector.shape_cast %71 : vector<96x128xf32> to vector<3x32x128xf32>
    %73 = arith.mulf %72, %72 : vector<3x32x128xf32>
    %cst_40 = arith.constant dense<0.000000e+00> : vector<32x128xf32>
    %74 = vector.multi_reduction <add>, %73, %cst_40 [0] : vector<3x32x128xf32> to vector<32x128xf32>
    %cst_41 = arith.constant 9.99999993E-9 : f32
    %75 = vector.broadcast %cst_41 : f32 to vector<32x128xf32>
    %76 = arith.maximumf %74, %75 : vector<32x128xf32>
    %77 = math.sqrt %76 : vector<32x128xf32>
    %78 = arith.negf %77 : vector<32x128xf32>
    %79 = math.exp %78 : vector<32x128xf32>
    %cst_42 = arith.constant 1.000000e+00 : f32
    %80 = vector.broadcast %cst_42 : f32 to vector<32x128xf32>
    %81 = arith.addf %80, %79 : vector<32x128xf32>
    %82 = arith.divf %80, %81 : vector<32x128xf32>
    %83 = vector.shape_cast %82 : vector<32x128xf32> to vector<1x32x128xf32>
    %84 = vector.broadcast %83 : vector<1x32x128xf32> to vector<3x32x128xf32>
    %85 = arith.mulf %72, %84 : vector<3x32x128xf32>
    %c0_43 = arith.constant 0 : index
    %c0_44 = arith.constant 0 : index
    %86 = vector.load %arg13[%c0_43, %c0_44] : memref<128x128xbf16, #tpu.memory_space<vmem>>, vector<128x128xbf16>
    %c0_45 = arith.constant 0 : index
    %c0_46 = arith.constant 0 : index
    %87 = vector.load %arg14[%c0_45, %c0_46] : memref<512x128xbf16, #tpu.memory_space<vmem>>, vector<512x128xbf16>
    %c0_47 = arith.constant 0 : index
    %c0_48 = arith.constant 0 : index
    %88 = vector.load %arg15[%c0_47, %c0_48] : memref<128x128xbf16, #tpu.memory_space<vmem>>, vector<128x128xbf16>
    %c0_49 = arith.constant 0 : index
    %c0_50 = arith.constant 0 : index
    %89 = vector.load %arg16[%c0_49, %c0_50] : memref<1x128xf32, #tpu.memory_space<vmem>>, vector<1x128xf32>
    %c0_51 = arith.constant 0 : index
    %c0_52 = arith.constant 0 : index
    %90 = vector.load %arg17[%c0_51, %c0_52] : memref<128x64xbf16, #tpu.memory_space<vmem>>, vector<128x64xbf16>
    %91 = vector.shape_cast %85 : vector<3x32x128xf32> to vector<96x128xf32>
    %92 = arith.truncf %91 : vector<96x128xf32> to vector<96x128xbf16>
    %cst_53 = arith.constant dense<0.000000e+00> : vector<96x128xf32>
    %93 = tpu.matmul %92, %86, %cst_53 {dimension_numbers = #tpu.dot_dimension_numbers<[1], [0], [0], [1], [0, 0, 1, 1], [], []>} : vector<96x128xbf16>, vector<128x128xbf16>, vector<96x128xf32> -> vector<96x128xf32>
    %94 = vector.shape_cast %93 : vector<96x128xf32> to vector<3x32x128xf32>
    %95 = arith.truncf %68 : vector<32x512xf32> to vector<32x512xbf16>
    %cst_54 = arith.constant dense<0.000000e+00> : vector<32x128xf32>
    %96 = tpu.matmul %95, %87, %cst_54 {dimension_numbers = #tpu.dot_dimension_numbers<[1], [0], [0], [1], [0, 0, 1, 1], [], []>} : vector<32x512xbf16>, vector<512x128xbf16>, vector<32x128xf32> -> vector<32x128xf32>
    %97 = arith.mulf %94, %94 : vector<3x32x128xf32>
    %cst_55 = arith.constant dense<0.000000e+00> : vector<32x128xf32>
    %98 = vector.multi_reduction <add>, %97, %cst_55 [0] : vector<3x32x128xf32> to vector<32x128xf32>
    %cst_56 = arith.constant 9.99999993E-9 : f32
    %99 = vector.broadcast %cst_56 : f32 to vector<32x128xf32>
    %100 = arith.maximumf %98, %99 : vector<32x128xf32>
    %101 = math.sqrt %100 : vector<32x128xf32>
    %102 = arith.truncf %101 : vector<32x128xf32> to vector<32x128xbf16>
    %cst_57 = arith.constant dense<0.000000e+00> : vector<32x128xf32>
    %103 = tpu.matmul %102, %88, %cst_57 {dimension_numbers = #tpu.dot_dimension_numbers<[1], [0], [0], [1], [0, 0, 1, 1], [], []>} : vector<32x128xbf16>, vector<128x128xbf16>, vector<32x128xf32> -> vector<32x128xf32>
    %104 = arith.addf %96, %103 : vector<32x128xf32>
    %105 = vector.broadcast %89 : vector<1x128xf32> to vector<32x128xf32>
    %106 = arith.addf %104, %105 : vector<32x128xf32>
    %107 = vector.shape_cast %94 : vector<3x32x128xf32> to vector<96x128xf32>
    %108 = arith.truncf %107 : vector<96x128xf32> to vector<96x128xbf16>
    %cst_58 = arith.constant dense<0.000000e+00> : vector<96x64xf32>
    %109 = tpu.matmul %108, %90, %cst_58 {dimension_numbers = #tpu.dot_dimension_numbers<[1], [0], [0], [1], [0, 0, 1, 1], [], []>} : vector<96x128xbf16>, vector<128x64xbf16>, vector<96x64xf32> -> vector<96x64xf32>
    %110 = vector.shape_cast %109 : vector<96x64xf32> to vector<3x32x64xf32>
    %111 = arith.addf %33, %106 : vector<32x128xf32>
    %112 = arith.addf %45, %110 : vector<3x32x64xf32>
    %c0_59 = arith.constant 0 : index
    %c0_60 = arith.constant 0 : index
    %113 = vector.load %arg18[%c0_59, %c0_60] : memref<1x128xf32, #tpu.memory_space<vmem>>, vector<1x128xf32>
    %c0_61 = arith.constant 0 : index
    %c0_62 = arith.constant 0 : index
    %114 = vector.load %arg19[%c0_61, %c0_62] : memref<1x128xf32, #tpu.memory_space<vmem>>, vector<1x128xf32>
    %cst_63 = arith.constant dense<0.000000e+00> : vector<32xf32>
    %115 = vector.multi_reduction <add>, %111, %cst_63 [1] : vector<32x128xf32> to vector<32xf32>
    %116 = vector.shape_cast %115 : vector<32xf32> to vector<32x1xf32>
    %cst_64 = arith.constant 1.280000e+02 : f32
    %117 = vector.broadcast %cst_64 : f32 to vector<32x1xf32>
    %118 = arith.divf %116, %117 : vector<32x1xf32>
    %119 = vector.broadcast %118 : vector<32x1xf32> to vector<32x128xf32>
    %120 = arith.subf %111, %119 : vector<32x128xf32>
    %121 = arith.mulf %120, %120 : vector<32x128xf32>
    %cst_65 = arith.constant dense<0.000000e+00> : vector<32xf32>
    %122 = vector.multi_reduction <add>, %121, %cst_65 [1] : vector<32x128xf32> to vector<32xf32>
    %123 = vector.shape_cast %122 : vector<32xf32> to vector<32x1xf32>
    %cst_66 = arith.constant 1.280000e+02 : f32
    %124 = vector.broadcast %cst_66 : f32 to vector<32x1xf32>
    %125 = arith.divf %123, %124 : vector<32x1xf32>
    %cst_67 = arith.constant 9.99999974E-6 : f32
    %126 = vector.broadcast %cst_67 : f32 to vector<32x1xf32>
    %127 = arith.addf %125, %126 : vector<32x1xf32>
    %128 = math.rsqrt %127 : vector<32x1xf32>
    %129 = vector.broadcast %128 : vector<32x1xf32> to vector<32x128xf32>
    %130 = arith.mulf %120, %129 : vector<32x128xf32>
    %131 = vector.broadcast %113 : vector<1x128xf32> to vector<32x128xf32>
    %132 = arith.mulf %130, %131 : vector<32x128xf32>
    %133 = vector.broadcast %114 : vector<1x128xf32> to vector<32x128xf32>
    %134 = arith.addf %132, %133 : vector<32x128xf32>
    %135 = arith.mulf %112, %112 : vector<3x32x64xf32>
    %cst_68 = arith.constant dense<0.000000e+00> : vector<32x64xf32>
    %136 = vector.multi_reduction <add>, %135, %cst_68 [0] : vector<3x32x64xf32> to vector<32x64xf32>
    %cst_69 = arith.constant 9.99999993E-9 : f32
    %137 = vector.broadcast %cst_69 : f32 to vector<32x64xf32>
    %138 = arith.maximumf %136, %137 : vector<32x64xf32>
    %cst_70 = arith.constant dense<0.000000e+00> : vector<32xf32>
    %139 = vector.multi_reduction <add>, %138, %cst_70 [1] : vector<32x64xf32> to vector<32xf32>
    %140 = vector.shape_cast %139 : vector<32xf32> to vector<32x1xf32>
    %cst_71 = arith.constant 6.400000e+01 : f32
    %141 = vector.broadcast %cst_71 : f32 to vector<32x1xf32>
    %142 = arith.divf %140, %141 : vector<32x1xf32>
    %143 = math.rsqrt %142 : vector<32x1xf32>
    %144 = vector.shape_cast %143 : vector<32x1xf32> to vector<1x32x1xf32>
    %145 = vector.broadcast %144 : vector<1x32x1xf32> to vector<3x32x64xf32>
    %146 = arith.mulf %112, %145 : vector<3x32x64xf32>
    %c0_72 = arith.constant 0 : index
    %c0_73 = arith.constant 0 : index
    %147 = vector.load %arg20[%c0_72, %c0_73] : memref<32x128xf32, #tpu.memory_space<vmem>>, vector<32x128xf32>
    tpu.vector_store %arg20[%c0_72, %c0_73], %134 {strides = array<i32>} : memref<32x128xf32, #tpu.memory_space<vmem>>, vector<32x128xf32>,
    %c0_74 = arith.constant 0 : index
    %c0_75 = arith.constant 0 : index
    %c0_76 = arith.constant 0 : index
    %148 = vector.load %arg21[%c0_74, %c0_75, %c0_76] : memref<3x32x64xf32, #tpu.memory_space<vmem>>, vector<3x32x64xf32>
    tpu.vector_store %arg21[%c0_74, %c0_75, %c0_76], %146 {strides = array<i32>} : memref<3x32x64xf32, #tpu.memory_space<vmem>>, vector<3x32x64xf32>,
    return
  }
  func.func @transform_0(%arg0: i32) -> (i32, i32) {
    %c0_i32 = arith.constant 0 : i32
    %c0_i32_0 = arith.constant 0 : i32
    return %arg0, %c0_i32 : i32, i32
  }
  func.func @transform_1(%arg0: i32) -> (i32, i32, i32) {
    %c0_i32 = arith.constant 0 : i32
    %c0_i32_0 = arith.constant 0 : i32
    %c0_i32_1 = arith.constant 0 : i32
    return %c0_i32, %arg0, %c0_i32_0 : i32, i32, i32
  }
  func.func @transform_2(%arg0: i32) -> (i32, i32) {
    %c0_i32 = arith.constant 0 : i32
    %c0_i32_0 = arith.constant 0 : i32
    return %arg0, %c0_i32 : i32, i32
  }
  func.func @transform_3(%arg0: i32) -> (i32, i32, i32) {
    %c0_i32 = arith.constant 0 : i32
    %c0_i32_0 = arith.constant 0 : i32
    %c0_i32_1 = arith.constant 0 : i32
    return %c0_i32, %arg0, %c0_i32_0 : i32, i32, i32
  }
  func.func @transform_4(%arg0: i32) -> (i32, i32) {
    %c0_i32 = arith.constant 0 : i32
    %c0_i32_0 = arith.constant 0 : i32
    return %arg0, %c0_i32 : i32, i32
  }
  func.func @transform_5(%arg0: i32) -> (i32, i32) {
    %c0_i32 = arith.constant 0 : i32
    %c0_i32_0 = arith.constant 0 : i32
    %c0_i32_1 = arith.constant 0 : i32
    return %c0_i32, %c0_i32_0 : i32, i32
  }
  func.func @transform_6(%arg0: i32) -> (i32, i32) {
    %c0_i32 = arith.constant 0 : i32
    %c0_i32_0 = arith.constant 0 : i32
    %c0_i32_1 = arith.constant 0 : i32
    return %c0_i32, %c0_i32_0 : i32, i32
  }
  func.func @transform_7(%arg0: i32) -> (i32, i32) {
    %c0_i32 = arith.constant 0 : i32
    %c0_i32_0 = arith.constant 0 : i32
    %c0_i32_1 = arith.constant 0 : i32
    return %c0_i32, %c0_i32_0 : i32, i32
  }
  func.func @transform_8(%arg0: i32) -> (i32, i32) {
    %c0_i32 = arith.constant 0 : i32
    %c0_i32_0 = arith.constant 0 : i32
    %c0_i32_1 = arith.constant 0 : i32
    return %c0_i32, %c0_i32_0 : i32, i32
  }
  func.func @transform_9(%arg0: i32) -> (i32, i32) {
    %c0_i32 = arith.constant 0 : i32
    %c0_i32_0 = arith.constant 0 : i32
    %c0_i32_1 = arith.constant 0 : i32
    return %c0_i32, %c0_i32_0 : i32, i32
  }
  func.func @transform_10(%arg0: i32) -> (i32, i32) {
    %c0_i32 = arith.constant 0 : i32
    %c0_i32_0 = arith.constant 0 : i32
    %c0_i32_1 = arith.constant 0 : i32
    return %c0_i32, %c0_i32_0 : i32, i32
  }
  func.func @transform_11(%arg0: i32) -> (i32, i32) {
    %c0_i32 = arith.constant 0 : i32
    %c0_i32_0 = arith.constant 0 : i32
    %c0_i32_1 = arith.constant 0 : i32
    return %c0_i32, %c0_i32_0 : i32, i32
  }
  func.func @transform_12(%arg0: i32) -> (i32, i32) {
    %c0_i32 = arith.constant 0 : i32
    %c0_i32_0 = arith.constant 0 : i32
    %c0_i32_1 = arith.constant 0 : i32
    return %c0_i32, %c0_i32_0 : i32, i32
  }
  func.func @transform_13(%arg0: i32) -> (i32, i32) {
    %c0_i32 = arith.constant 0 : i32
    %c0_i32_0 = arith.constant 0 : i32
    %c0_i32_1 = arith.constant 0 : i32
    return %c0_i32, %c0_i32_0 : i32, i32
  }
  func.func @transform_14(%arg0: i32) -> (i32, i32) {
    %c0_i32 = arith.constant 0 : i32
    %c0_i32_0 = arith.constant 0 : i32
    %c0_i32_1 = arith.constant 0 : i32
    return %c0_i32, %c0_i32_0 : i32, i32
  }
  func.func @transform_15(%arg0: i32) -> (i32, i32) {
    %c0_i32 = arith.constant 0 : i32
    %c0_i32_0 = arith.constant 0 : i32
    %c0_i32_1 = arith.constant 0 : i32
    return %c0_i32, %c0_i32_0 : i32, i32
  }
  func.func @transform_16(%arg0: i32) -> (i32, i32) {
    %c0_i32 = arith.constant 0 : i32
    %c0_i32_0 = arith.constant 0 : i32
    %c0_i32_1 = arith.constant 0 : i32
    return %c0_i32, %c0_i32_0 : i32, i32
  }
  func.func @transform_17(%arg0: i32) -> (i32, i32) {
    %c0_i32 = arith.constant 0 : i32
    %c0_i32_0 = arith.constant 0 : i32
    %c0_i32_1 = arith.constant 0 : i32
    return %c0_i32, %c0_i32_0 : i32, i32
  }
  func.func @transform_18(%arg0: i32) -> (i32, i32) {
    %c0_i32 = arith.constant 0 : i32
    %c0_i32_0 = arith.constant 0 : i32
    %c0_i32_1 = arith.constant 0 : i32
    return %c0_i32, %c0_i32_0 : i32, i32
  }
  func.func @transform_19(%arg0: i32) -> (i32, i32) {
    %c0_i32 = arith.constant 0 : i32
    %c0_i32_0 = arith.constant 0 : i32
    return %arg0, %c0_i32 : i32, i32
  }
  func.func @transform_20(%arg0: i32) -> (i32, i32, i32) {
    %c0_i32 = arith.constant 0 : i32
    %c0_i32_0 = arith.constant 0 : i32
    %c0_i32_1 = arith.constant 0 : i32
    return %c0_i32, %arg0, %c0_i32_0 : i32, i32, i32
  }
}

</mosaic_0001>

<bundles_post_ra>
// kernel: drug_gvp_forward.9
= control target key start
LH: loop header
LB: loop body
LE: loop exit
PB: predicated region body
PF: predicated region fallthrough
CT: control target
= control target key end

     0   :  { %s1565_s13 = smov 0   ;;  %s1567_s14 = smov 0   ;;  %s1872_s0 = inlined_call_operand.vmem [shape: f32[64,66], index: 0, kind: input, shape index: {}]   ;;  %s1873_s1 = inlined_call_operand.vmem [shape: f32[3,64,1], index: 1, kind: input, shape index: {}]   ;;  %s1874_s2 = inlined_call_operand.vmem [shape: f32[1,66], index: 2, kind: input, shape index: {}]   ;;  %s1875_s3 = inlined_call_operand.vmem [shape: f32[1,66], index: 3, kind: input, shape index: {}]   ;;  %s1876_s4 = inlined_call_operand.vmem [shape: bf16[1,64], index: 4, kind: input, shape index: {}]   ;;  %s1877_s5 = inlined_call_operand.vmem [shape: bf16[66,128], index: 5, kind: input, shape index: {}]   ;;  %s1878_s6 = inlined_call_operand.vmem [shape: bf16[64,128], index: 6, kind: input, shape index: {}]   ;;  %s1879_s7 = inlined_call_operand.vmem [shape: f32[1,128], index: 7, kind: input, shape index: {}]   ;;  %s1880_s8 = inlined_call_operand.vmem [shape: bf16[64,64], index: 8, kind: input, shape index: {}]   ;;  %s1881_s9 = inlined_call_operand.vmem [shape: f32[64,128], index: 9, kind: output, shape index: {0}]   ;;  %s1882_s10 = inlined_call_operand.vmem [shape: f32[3,64,64], index: 10, kind: output, shape index: {1}]  }
   0x1   :  { %s1569_s15 = smov 0  }
   0x2 LB: > { %s1581_s16 = sadd.s32 4294967295, %s1507_s15   ;;  %s1584_s17 = sadd.s32 1, %s1507_s15   ;;  %s1507_s15 = sphi %s1569_s15, %s1886_s15   ;;  %s1503_s14 = sphi %s1567_s14, %s1885_s14   ;;  %s1499_s13 = sphi %s1565_s13, %s1884_s13  }
   0x3   : > { %s51_s18 = ssub.s32 %s1507_s15, %s1584_s17  ;;  %s54_s19 = sadd.s32 1, %s1503_s14 }
   0x4   : > { %p52_p0 = scmp.eq.s32.totalorder %s51_s18, 0  ;;  %p61_p1 = scmp.ne.s32.totalorder %s1503_s14, %s1499_s13 }
   0x5   : > { %p62_p2 = scmp.eq.s32.totalorder %s1507_s15, 0  ;;  %p264_p3 = scmp.eq.s32.totalorder %s1581_s16, 1 }
   0x6   : > { %s1594_s20 = scalar_select %p52_p0, %s1503_s14, %s54_s19  }
   0x7   : > { %p63_p4 = por %p62_p2, %p61_p1  ;;  %p1596_p5 = por %p264_p3, %p61_p1 }
   0x8   : > { %p1305_p6 = scmp.ge.s32.totalorder %s1507_s15, 2 }
   0xa   : > { %307 = sbr.rel (%p1305_p6) target bundleno = 28 (0x1c), region = 44 }
  0x11   : > { %319 = sbr.rel (!%p63_p4) target bundleno = 28 (0x1c), region = 52  ;;  %s321_s22 = sand.u32 (%p63_p4), 1, %s1503_s14  }
  0x12   : > { %s1343_s23 = sshll.u32 (%p63_p4), %s1507_s15, 5  ;;  %s1419_s24 = smul.u32 (%p63_p4), 96, %s321_s22 }
  0x13   : > { %s326_s27 = scalar_lea.vmem (%p63_p4), %s1873_s1, %s1343_s23 }
  0x14   : > { %v376_v0 = vld [vmem:[%s326_s27] sm:$0xff] (%p63_p4)  ;;  %v378_v1 = vld [vmem:[%s326_s27 + $0x8] sm:$0xff] (%p63_p4)  ;;  %v380_v2 = vld [vmem:[%s326_s27 + $0x10] sm:$0xff] (%p63_p4)  ;;  %s323_s28 = scalar_lea.vmem (%p63_p4), [#allocation2], %s1419_s24 }
  0x15   : > { %v382_v3 = vld [vmem:[%s326_s27 + $0x18] sm:$0xff] (%p63_p4)  ;;  %v384_v4 = vld [vmem:[%s326_s27 + $0x40] sm:$0xff] (%p63_p4)  ;;  %v386_v5 = vld [vmem:[%s326_s27 + $0x48] sm:$0xff] (%p63_p4)  ;;  %377 = vst [vmem:[%s323_s28] sm:$0xff] (%p63_p4), %v376_v0 }
  0x16   : > { %379 = vst [vmem:[%s323_s28 + $0x8] sm:$0xff] (%p63_p4), %v378_v1  ;;  %381 = vst [vmem:[%s323_s28 + $0x10] sm:$0xff] (%p63_p4), %v380_v2  ;;  %v388_v6 = vld [vmem:[%s326_s27 + $0x50] sm:$0xff] (%p63_p4)  ;;  %v390_v7 = vld [vmem:[%s326_s27 + $0x58] sm:$0xff] (%p63_p4) }
  0x17   : > { %383 = vst [vmem:[%s323_s28 + $0x18] sm:$0xff] (%p63_p4), %v382_v3  ;;  %385 = vst [vmem:[%s323_s28 + $0x20] sm:$0xff] (%p63_p4), %v384_v4  ;;  %v392_v8 = vld [vmem:[%s326_s27 + $0x80] sm:$0xff] (%p63_p4)  ;;  %v394_v9 = vld [vmem:[%s326_s27 + $0x88] sm:$0xff] (%p63_p4) }
  0x18   : > { %387 = vst [vmem:[%s323_s28 + $0x28] sm:$0xff] %v386_v5  ;;  %389 = vst [vmem:[%s323_s28 + $0x30] sm:$0xff] %v388_v6  ;;  %v396_v10 = vld [vmem:[%s326_s27 + $0x90] sm:$0xff]  ;;  %v398_v11 = vld [vmem:[%s326_s27 + $0x98] sm:$0xff] }
  0x19   : > { %391 = vst [vmem:[%s323_s28 + $0x38] sm:$0xff] %v390_v7  ;;  %393 = vst [vmem:[%s323_s28 + $0x40] sm:$0xff] %v392_v8 }
  0x1a   : > { %395 = vst [vmem:[%s323_s28 + $0x48] sm:$0xff] %v394_v9  ;;  %397 = vst [vmem:[%s323_s28 + $0x50] sm:$0xff] %v396_v10 }
  0x1b   : > { %399 = vst [vmem:[%s323_s28 + $0x58] sm:$0xff] %v398_v11 }
  0x1c PF: > { %p1308_p7 = scmp.ge.s32.totalorder %s1507_s15, 1  ;;  %p404_p8 = scmp.lt.s32.totalorder %s1507_s15, 3 }
  0x1e   : > { %p405_p9 = pnand %p1308_p7, %p404_p8 }
  0x1f   : > { %s1309_s29 = sshll.u32 (!%p405_p9), %s1581_s16, 2  ;;  %s411_s30 = sand.u32 (!%p405_p9), 1, %s1499_s13   ;;  %v1509_v12 = vmov (!%p405_p9), 0   ;;  %vm490_vm0 = vcmask (!%p405_p9), 539648   ;;  %vm576_vm1 = vcmask (!%p405_p9), 7168   ;;  %vm739_vm2 = vcmask (!%p405_p9), 523264  }
  0x20   : > { %408 = sbr.rel (%p405_p9) target bundleno = 584 (0x248), region = 90  ;;  %p458_p10 = scmp.lt.s32.totalorder (!%p405_p9), %s1309_s29, 7  ;;  %1447 = vset.pattern.permute.xlu1 (!%p405_p9), %v1509_v12  ;;  %1446 = vset.pattern.permute.xlu0 (!%p405_p9), %v1509_v12  ;;  %vm906_vm11 = vcmask (!%p405_p9), 1040384  }
  0x21   : > { %s1610_s11 = smul.u32 (!%p405_p9), 96, %s411_s30 }
  0x23   : > { %s1616_s15 = scalar_lea.vmem (!%p405_p9), [#allocation2], %s1610_s11 }
  0x24   : > { %v1619_v13 = vld [vmem:[%s1616_s15 + $0x8] sm:$0xff] (!%p405_p9)  ;;  %v1639_v19 = vld [vmem:[%s1616_s15] sm:$0xff] (!%p405_p9)  ;;  %v478_v33 = vld [vmem:[%s1616_s15 + $0x10] sm:$0xff] (!%p405_p9) }
  0x25   : > { %v1622_v14 = vld [vmem:[%s1616_s15 + $0x28] sm:$0xff] (!%p405_p9)  ;;  %v565_v16 = vmul.f32 (!%p405_p9), %v1619_v13, %v1619_v13  ;;  %v480_v20 = vld [vmem:[%s1616_s15 + $0x20] sm:$0xff] (!%p405_p9)  ;;  %v564_v25 = vmul.f32 (!%p405_p9), %v1639_v19, %v1639_v19  ;;  %v482_v38 = vld [vmem:[%s1616_s15 + $0x30] sm:$0xff] (!%p405_p9)  ;;  %v566_v43 = vmul.f32 (!%p405_p9), %v478_v33, %v478_v33 }
  0x26   : > { %v1625_v15 = vld [vmem:[%s1616_s15 + $0x48] sm:$0xff] (!%p405_p9)  ;;  %v569_v17 = vmul.f32 (!%p405_p9), %v1622_v14, %v1622_v14  ;;  %v1643_v21 = vld [vmem:[%s1616_s15 + $0x40] sm:$0xff] (!%p405_p9)  ;;  %v568_v26 = vmul.f32 (!%p405_p9), %v480_v20, %v480_v20  ;;  %v1672_v39 = vld [vmem:[%s1616_s15 + $0x50] sm:$0xff] (!%p405_p9)  ;;  %v570_v48 = vmul.f32 (!%p405_p9), %v482_v38, %v482_v38 }
  0x27   : > { %s1888_s29 = smov (!%p458_p10, %s1309_s29), 7  ;;  %v573_v18 = vmul.f32 %v1625_v15, %v1625_v15  ;;  %v572_v27 = vmul.f32 %v1643_v21, %v1643_v21  ;;  %v582_v32 = vsel %vm576_vm1, %v565_v16, 0.0  ;;  %v577_v37 = vsel %vm576_vm1, %v564_v25, 0.0  ;;  %v479_v44 = vld [vmem:[%s1616_s15 + $0x18] sm:$0xff] }
  0x28   : > { %s1310_s12 = sshll.u32 %s1888_s29, 3  ;;  %v583_v35 = vsel %vm576_vm1, %v569_v17, 0.0  ;;  %v578_v41 = vsel %vm576_vm1, %v568_v26, 0.0  ;;  %v483_v45 = vld [vmem:[%s1616_s15 + $0x38] sm:$0xff]  ;;  %v574_v49 = vmul.f32 %v1672_v39, %v1672_v39  ;;  %v567_v50 = vmul.f32 %v479_v44, %v479_v44  ;;  %v1450_v26 = vld [vmem:[%s1880_s8 + $0x10] sm:$0xff]   ;;  %s1344_s29 = sshll.u32 (%p1596_p5), %s1581_s16, 5 }
  0x29   : > { %s461_s19 = scalar_lea.vmem %s1872_s0, %s1310_s12  ;;  %v585_v36 = vsel %vm576_vm1, %v573_v18, 0.0  ;;  %v584_v40 = vadd.f32 %v583_v35, %v582_v32  ;;  %v580_v42 = vsel %vm576_vm1, %v572_v27, 0.0  ;;  %v487_v46 = vld [vmem:[%s1616_s15 + $0x58] sm:$0xff]  ;;  %v579_v47 = vadd.f32 %v578_v41, %v577_v37  ;;  %v621_v35 = vld [vmem:[%s1876_s4] sm:$0x1]  ;;  %s1810_s15 = scalar_lea.vmem [#allocation3], %s1610_s11 }
  0x2a   : > { %v1645_v22 = vld [vmem:[%s461_s19 + $0x10] sm:$0xff]  ;;  %v1647_v23 = vld [vmem:[%s461_s19] sm:$0xff]  ;;  %v1649_v24 = vld [vmem:[%s461_s19 + $0x18] sm:$0xff]  ;;  %v587_v52 = vsel %vm576_vm1, %v566_v43, 0.0  ;;  %v571_v53 = vmul.f32 %v483_v45, %v483_v45  ;;  %v575_v54 = vmul.f32 %v487_v46, %v487_v46  ;;  %v588_v56 = vsel %vm576_vm1, %v570_v48, 0.0  ;;  %s468_s22 = scalar_lea.vmem %s1881_s9, %s1310_s12  ;;  %s1132_s24 = scalar_lea.vmem (%p1596_p5), %s1882_s10, %s1344_s29 }
  0x2b   : > { %v497_v28 = vsel %vm490_vm0, %v1645_v22, 0.0  ;;  %v491_v29 = vsel %vm490_vm0, %v1647_v23, 0.0  ;;  %v500_v30 = vsel %vm490_vm0, %v1649_v24, 0.0  ;;  %v1661_v31 = vld [vmem:[%s461_s19 + $0x8] sm:$0xff]  ;;  %v586_v51 = vadd.f32 %v585_v36, %v584_v40  ;;  %v1455_v32 = vld [vmem:[%s1878_s6 + $0x18] sm:$0xff]  }
  0x2c   : > { %498 = vadd.xlane.f32.xlu1 %v497_v28  ;;  %492 = vadd.xlane.f32.xlu0 %v491_v29  ;;  %v494_v34 = vsel %vm490_vm0, %v1661_v31, 0.0  ;;  %v581_v55 = vadd.f32 %v580_v42, %v579_v47  ;;  %v590_v57 = vsel %vm576_vm1, %v574_v49, 0.0  ;;  %v592_v58 = vsel %vm576_vm1, %v567_v50, 0.0  ;;  %v1451_v28 = vld [vmem:[%s1880_s8 + $0x18] sm:$0xff]   ;;  %v1453_v29 = vld [vmem:[%s1878_s6 + $0x8] sm:$0xff]  }
  0x2d   : > { %v598_v59 = vmax.f32 %v586_v51, 1e-08  ;;  %v589_v60 = vadd.f32 %v588_v56, %v587_v52  ;;  %v593_v61 = vsel %vm576_vm1, %v571_v53, 0.0  ;;  %v595_v62 = vsel %vm576_vm1, %v575_v54, 0.0 }
  0x2e   : > { %v597_v63 = vmax.f32 %v581_v55, 1e-08  ;;  %v594_v0 = vadd.f32 %v593_v61, %v592_v58 }
  0x2f   : > { %1461 = vrsqrt.f32 %v598_v59  ;;  %v591_v1 = vadd.f32 %v590_v57, %v589_v60 }
  0x30   : > { %501 = vadd.xlane.f32.xlu1 %v500_v30  ;;  %495 = vadd.xlane.f32.xlu0 %v494_v34  ;;  %1463 = vrsqrt.f32 %v597_v63  ;;  %v596_v2 = vadd.f32 %v595_v62, %v594_v0  ;;  %v1454_v30 = vld [vmem:[%s1878_s6 + $0x10] sm:$0xff]  }
  0x31   : > { %v599_v3 = vmax.f32 %v591_v1, 1e-08 }
  0x32   : > { %v600_v4 = vmax.f32 %v596_v2, 1e-08 }
  0x33   : > { %1465 = vrsqrt.f32 %v599_v3 }
  0x34   : > { %1467 = vrsqrt.f32 %v600_v4 }
  0x39   : > { %v1462_v5 = vpop.eup %1461 }
  0x3a   : > { %v1464_v6 = vpop.eup %1463  ;;  %v610_v7 = vmul.f32 %v1462_v5, %v1619_v13  ;;  %v614_v10 = vmul.f32 %v1462_v5, %v1622_v14  ;;  %v618_v12 = vmul.f32 %v1462_v5, %v1625_v15  ;;  %v1449_v15 = vld [vmem:[%s1880_s8 + $0x8] sm:$0xff]  }
  0x3b   : > { %v613_v8 = vmul.f32 %v1464_v6, %v480_v20  ;;  %v609_v9 = vmul.f32 %v1464_v6, %v1639_v19  ;;  %v1448_v19 = vld [vmem:[%s1880_s8] sm:$0xff]   ;;  %v617_v20 = vmul.f32 %v1464_v6, %v1643_v21 }
  0x3c   : > { %1394 = vmatprep.subr.bf16.mxu1 %v1448_v19  ;;  %v1452_v21 = vld [vmem:[%s1878_s6] sm:$0xff]  }
  0x3d   : > { %v1466_v11 = vpop.eup %1465  ;;  %1395 = vmatpush3.bf16.msra.mxu1 %v1448_v19  ;;  %1368 = vmatprep.subr.bf16.mxu0 %v1452_v21 }
  0x3e   : > { %v1468_v16 = vpop.eup %1467  ;;  %v611_v17 = vmul.f32 %v1466_v11, %v478_v33  ;;  %v615_v13 = vmul.f32 %v1466_v11, %v482_v38  ;;  %1396 = vmatprep.subr.bf16.mxu1 %v1449_v15  ;;  %v619_v27 = vmul.f32 %v1466_v11, %v1672_v39  ;;  %1369 = vmatpush3.bf16.msra.mxu0 %v1452_v21  ;;  %v709_v33 = vlaneseq }
  0x3f   : > { %v620_v18 = vmul.f32 %v1468_v16, %v487_v46  ;;  %v612_v25 = vmul.f32 %v1468_v16, %v479_v44  ;;  %v616_v14 = vmul.f32 %v1468_v16, %v483_v45  ;;  %1370 = vmatprep.subr.bf16.mxu0 %v1453_v29  ;;  %v648_v39 = vunpack.c.l.bf16 %v621_v35 }
  0x40   : > { %v710_v34 = vshrl.u32 %v709_v33, 7 }
  0x41   : > { %656 = vperm.xlu1 %1447, %v610_v7   ;;  %1397 = vmatpush3.bf16.msra.mxu1 %v1449_v15 }
  0x42   : > { %1398 = vmatprep.subr.bf16.mxu1 %v1450_v26  ;;  %1371 = vmatpush3.bf16.msra.mxu0 %v1453_v29  ;;  %v711_v40 = vsub.s32 0, %v710_v34 }
  0x43   : > { %1372 = vmatprep.subr.bf16.mxu0 %v1454_v30 }
  0x44   : > { %v1725_v48 = vrot.slane %v648_v39, %v711_v40 }
  0x45   : > { %671 = vperm.xlu1 %1447, %v613_v8   ;;  %1399 = vmatpush3.bf16.msra.mxu1 %v1450_v26 }
  0x46   : > { %651 = vperm.xlu0 %1446, %v609_v9   ;;  %1400 = vmatprep.subr.bf16.mxu1 %v1451_v28 }
  0x47   : > { %1373 = vmatpush3.bf16.msra.mxu0 %v1454_v30 }
  0x48   : > { %1374 = vmatprep.subr.bf16.mxu0 %v1455_v32 }
  0x49   : > { %676 = vperm.xlu1 %1447, %v614_v10   ;;  %1401 = vmatpush3.bf16.msra.mxu1 %v1451_v28  ;;  %v1764_v28 = vld [vmem:[%s1877_s5] sm:$0xff]  }
  0x4a   : > { %696 = vperm.xlu0 %1446, %v618_v12  }
  0x4b   : > { %1375 = vmatpush3.bf16.msra.mxu0 %v1455_v32 }
  0x4c   : > { %1380 = vmatprep.subr.bf16.mxu0 %v1764_v28 }
  0x4d   : > { %661 = vperm.xlu1 %1447, %v611_v17  }
  0x4e   : > { %706 = vperm.xlu0 %1446, %v620_v18  }
  0x51   : > { %666 = vperm.xlu1 %1447, %v612_v25  }
  0x55   : > { %681 = vperm.xlu1 %1447, %v615_v13  }
  0x59   : > { %686 = vperm.xlu1 %1447, %v616_v14  }
  0x5d   : > { %691 = vperm.xlu1 %1447, %v617_v20  }
  0x61   : > { %701 = vperm.xlu1 %1447, %v619_v27  }
  0xb9   : > { %v499_v36 = vpop.xlane.xlu1 %498  ;;  %v493_v37 = vpop.xlane.xlu0 %492 }
  0xba   : > { %v504_v38 = vmul.f32 0.015151516, %v493_v37  ;;  %v506_v41 = vmul.f32 0.015151516, %v499_v36 }
  0xbc   : > { %v1721_v42 = vsub.f32 %v1647_v23, %v504_v38  ;;  %v1728_v49 = vsub.f32 %v1645_v22, %v506_v41 }
  0xbd   : > { %v502_v43 = vpop.xlane.xlu1 %501  ;;  %v496_v44 = vpop.xlane.xlu0 %495 }
  0xbe   : > { %v507_v45 = vmul.f32 0.015151516, %v502_v43  ;;  %v505_v46 = vmul.f32 0.015151516, %v496_v44  ;;  %v512_v47 = vmul.f32 %v1721_v42, %v1721_v42 }
  0xc0   : > { %v1731_v50 = vsub.f32 %v1649_v24, %v507_v45  ;;  %v1734_v51 = vsub.f32 %v1661_v31, %v505_v46  ;;  %v516_v23 = vsel %vm490_vm0, %v512_v47, 0.0  ;;  %v514_v24 = vmul.f32 %v1728_v49, %v1728_v49 }
  0xc1   : > { %517 = vadd.xlane.f32.xlu1 %v516_v23  ;;  %v657_v52 = vpop.permute.xlu1 %656 }
  0xc2   : > { %v515_v53 = vmul.f32 %v1731_v50, %v1731_v50  ;;  %v513_v54 = vmul.f32 %v1734_v51, %v1734_v51  ;;  %v714_v31 = vmul.f32 %v1725_v48, %v657_v52  ;;  %v522_v59 = vsel %vm490_vm0, %v514_v24, 0.0 }
  0xc4   : > { %v525_v55 = vsel %vm490_vm0, %v515_v53, 0.0  ;;  %v519_v22 = vsel %vm490_vm0, %v513_v54, 0.0  ;;  %v728_v0 = vmul.f32 %v714_v31, %v714_v31 }
  0xc5   : > { %526 = vadd.xlane.f32.xlu1 %v525_v55  ;;  %520 = vadd.xlane.f32.xlu0 %v519_v22  ;;  %v672_v56 = vpop.permute.xlu1 %671  ;;  %v652_v57 = vpop.permute.xlu0 %651 }
  0xc6   : > { %v713_v58 = vmul.f32 %v1725_v48, %v652_v57  ;;  %v745_v4 = vsel %vm739_vm2, %v728_v0, 0.0  ;;  %v717_v8 = vmul.f32 %v1725_v48, %v672_v56 }
  0xc8   : > { %v969_v60 = vpack.c.bf16 %v714_v31, %v713_v58  ;;  %v731_v19 = vmul.f32 %v717_v8, %v717_v8  ;;  %v727_v14 = vmul.f32 %v713_v58, %v713_v58 }
  0xc9   : > { %523 = vadd.xlane.f32.xlu0 %v522_v59  ;;  %v677_v61 = vpop.permute.xlu1 %676  ;;  %v697_v63 = vpop.permute.xlu0 %696 }
  0xca   : > { %v718_v62 = vmul.f32 %v1725_v48, %v677_v61  ;;  %1402 = vmatprep.mubr.msk.bf16.mxu1 %vm739_vm2, %v969_v60  ;;  %v722_v2 = vmul.f32 %v1725_v48, %v697_v63  ;;  %v741_v30 = vsel %vm739_vm2, %v731_v19, 0.0  ;;  %v740_v33 = vsel %vm739_vm2, %v727_v14, 0.0 }
  0xcb   : > { %v742_v45 = vadd.f32 %v741_v30, %v740_v33 }
  0xcc   : > { %v732_v1 = vmul.f32 %v718_v62, %v718_v62  ;;  %v736_v7 = vmul.f32 %v722_v2, %v722_v2  ;;  %v971_v12 = vpack.c.bf16 %v718_v62, %v717_v8 }
  0xcd   : > { %v662_v3 = vpop.permute.xlu1 %661  ;;  %v707_v16 = vpop.permute.xlu0 %706 }
  0xce   : > { %v746_v5 = vsel %vm739_vm2, %v732_v1, 0.0  ;;  %v715_v6 = vmul.f32 %v1725_v48, %v662_v3  ;;  %v748_v18 = vsel %vm739_vm2, %v736_v7, 0.0  ;;  %v724_v13 = vmul.f32 %v1725_v48, %v707_v16 }
  0xcf   : > { %v747_v11 = vadd.f32 %v746_v5, %v745_v4 }
  0xd0   : > { %v738_v29 = vmul.f32 %v724_v13, %v724_v13  ;;  %v729_v32 = vmul.f32 %v715_v6, %v715_v6 }
  0xd1   : > { %v667_v9 = vpop.permute.xlu1 %666  ;;  %v749_v15 = vadd.f32 %v748_v18, %v747_v11 }
  0xd2   : > { %v716_v10 = vmul.f32 %v1725_v48, %v667_v9  ;;  %v758_v43 = vsel %vm739_vm2, %v738_v29, 0.0  ;;  %v750_v46 = vsel %vm739_vm2, %v729_v32, 0.0 }
  0xd3   : > { %v761_v34 = vmax.f32 %v749_v15, 1e-08  ;;  %v1457_v15 = vld [vmem:[%s1877_s5 + $0x8] sm:$0xff]  }
  0xd4   : > { %v970_v17 = vpack.c.bf16 %v716_v10, %v715_v6  ;;  %v730_v20 = vmul.f32 %v716_v10, %v716_v10 }
  0xd5   : > { %v682_v25 = vpop.permute.xlu1 %681  ;;  %1469 = vrsqrt.f32 %v761_v34  ;;  %vm773_vm3 = vcmp.eq.f32.partialorder %v761_v34, inf  ;;  %v776_v1 = vand.u32 2147483648, %v761_v34  ;;  %vm775_vm4 = vcmp.eq.f32.partialorder %v761_v34, 0.0 }
  0xd6   : > { %1403 = vmatmul.mubr.msk.bf16.vlgmr.msra.gmra.mrb[0].mxu1 %vm739_vm2, %v970_v17  ;;  %v719_v26 = vmul.f32 %v1725_v48, %v682_v25  ;;  %v755_v35 = vsel %vm739_vm2, %v730_v20, 0.0  ;;  %v1458_v20 = vld [vmem:[%s1877_s5 + $0x10] sm:$0xff]  }
  0xd7   : > { %1406 = vmatprep.mubr.msk.bf16.mxu1 %vm739_vm2, %v971_v12 }
  0xd8   : > { %v733_v36 = vmul.f32 %v719_v26, %v719_v26 }
  0xd9   : > { %v687_v27 = vpop.permute.xlu1 %686 }
  0xda   : > { %v720_v21 = vmul.f32 %v1725_v48, %v687_v27  ;;  %v751_v47 = vsel %vm739_vm2, %v733_v36, 0.0  ;;  %v1460_v27 = vld [vmem:[%s1877_s5 + $0x20] ss:$0 sps:$4 sm:$0x11]  }
  0xdb   : > { %v752_v24 = vadd.f32 %v751_v47, %v750_v46 }
  0xdc   : > { %v734_v37 = vmul.f32 %v720_v21, %v720_v21  ;;  %v972_v38 = vpack.c.bf16 %v720_v21, %v719_v26  ;;  %v1459_v26 = vld [vmem:[%s1877_s5 + $0x18] sm:$0xff]  }
  0xdd   : > { %v692_v39 = vpop.permute.xlu1 %691 }
  0xde   : > { %v756_v40 = vsel %vm739_vm2, %v734_v37, 0.0  ;;  %v721_v41 = vmul.f32 %v1725_v48, %v692_v39  ;;  %1407 = vmatmul.mubr.msk.bf16.gmra.mrb[4].mxu1 %vm739_vm2, %v972_v38 }
  0xdf   : > { %v757_v44 = vadd.f32 %v756_v40, %v755_v35  ;;  %v1470_v62 = vpop.eup %1469 }
  0xe0   : > { %v735_v23 = vmul.f32 %v721_v41, %v721_v41  ;;  %v973_v52 = vpack.c.bf16 %v722_v2, %v721_v41  ;;  %v772_v0 = vmul.f32 %v1470_v62, %v761_v34 }
  0xe1   : > { %v702_v53 = vpop.permute.xlu1 %701  ;;  %v759_v54 = vadd.f32 %v758_v43, %v757_v44  ;;  %v1313_v44 = vld [vmem:[%s1874_s2] ss:$0 sm:$0xff] }
  0xe2   : > { %v743_v55 = vsel %vm739_vm2, %v735_v23, 0.0  ;;  %v723_v22 = vmul.f32 %v1725_v48, %v702_v53  ;;  %1410 = vmatprep.mubr.msk.bf16.mxu1 %vm739_vm2, %v973_v52  ;;  %v774_v2 = vsel %vm773_vm3, %v761_v34, %v772_v0  ;;  %v1314_v53 = vld [vmem:[%s1875_s3] ss:$0 sm:$0xff] }
  0xe3   : > { %v744_v31 = vadd.f32 %v743_v55, %v742_v45  ;;  %v763_v56 = vmax.f32 %v759_v54, 1e-08  ;;  %v777_v7 = vsel %vm775_vm4, %v776_v1, %v774_v2 }
  0xe4   : > { %v737_v57 = vmul.f32 %v723_v22, %v723_v22  ;;  %v974_v58 = vpack.c.bf16 %v724_v13, %v723_v22 }
  0xe5   : > { %v760_v59 = vmax.f32 %v744_v31, 1e-08  ;;  %1471 = vrsqrt.f32 %v763_v56  ;;  %vm787_vm6 = vcmp.eq.f32.partialorder %v763_v56, inf  ;;  %v790_v8 = vand.u32 2147483648, %v763_v56 }
  0xe6   : > { %v753_v60 = vsel %vm739_vm2, %v737_v57, 0.0  ;;  %1411 = vmatmul.mubr.msk.bf16.gmra.mrb[8].mxu1 %vm739_vm2, %v974_v58  ;;  %vm789_vm8 = vcmp.eq.f32.partialorder %v763_v56, 0.0 }
  0xe7   : > { %v754_v61 = vadd.f32 %v753_v60, %v752_v24  ;;  %1473 = vrsqrt.f32 %v760_v59  ;;  %vm766_vm5 = vcmp.eq.f32.partialorder %v760_v59, inf  ;;  %v769_v5 = vand.u32 2147483648, %v760_v59 }
  0xe8   : > { %vm768_vm7 = vcmp.eq.f32.partialorder %v760_v59, 0.0 }
  0xe9   : > { %v762_v63 = vmax.f32 %v754_v61, 1e-08 }
  0xeb   : > { %1475 = vrsqrt.f32 %v762_v63  ;;  %vm780_vm9 = vcmp.eq.f32.partialorder %v762_v63, inf  ;;  %v783_v16 = vand.u32 2147483648, %v762_v63  ;;  %vm782_vm10 = vcmp.eq.f32.partialorder %v762_v63, 0.0 }
  0xef   : > { %v1472_v48 = vpop.eup %1471 }
  0xf0   : > { %v786_v3 = vmul.f32 %v1472_v48, %v763_v56 }
  0xf1   : > { %v1474_v4 = vpop.eup %1473 }
  0xf2   : > { %v765_v6 = vmul.f32 %v1474_v4, %v760_v59  ;;  %v788_v10 = vsel %vm787_vm6, %v763_v56, %v786_v3 }
  0xf3   : > { %v791_v25 = vsel %vm789_vm8, %v790_v8, %v788_v10 }
  0xf4   : > { %v767_v9 = vsel %vm766_vm5, %v760_v59, %v765_v6 }
  0xf5   : > { %v1476_v11 = vpop.eup %1475  ;;  %v770_v12 = vsel %vm768_vm7, %v769_v5, %v767_v9  ;;  %v1328_v5 = vld [vmem:[%s1879_s7] ss:$0 sm:$0xff] }
  0xf6   : > { %v792_v17 = vpack.c.bf16 %v777_v7, %v770_v12  ;;  %v779_v18 = vmul.f32 %v1476_v11, %v762_v63 }
  0xf8   : > { %1376 = vmatprep.mubr.msk.bf16.mxu0 %vm739_vm2, %v792_v17  ;;  %v781_v13 = vsel %vm780_vm9, %v762_v63, %v779_v18 }
  0xf9   : > { %v784_v19 = vsel %vm782_vm10, %v783_v16, %v781_v13 }
  0xfa   : > { %v793_v14 = vpack.c.bf16 %v791_v25, %v784_v19 }
  0xfc   : > { %1377 = vmatmul.mubr.msk.bf16.vlgmr.msra.gmra.mrb[0].mxu0 %vm739_vm2, %v793_v14 }
  0xfd   : > { %1381 = vmatpush3.bf16.msra.mxu0 %v1764_v28  ;;  %v908_v28 = vsel %vm906_vm11, %v1460_v27, 0 }
  0xfe   : > { %1382 = vmatprep.subr.bf16.mxu0 %v1457_v15 }
 0x101   : > { %1383 = vmatpush3.bf16.msra.mxu0 %v1457_v15 }
 0x102   : > { %1384 = vmatprep.subr.bf16.mxu0 %v1458_v20 }
 0x105   : > { %1385 = vmatpush3.bf16.msra.mxu0 %v1458_v20 }
 0x106   : > { %1386 = vmatprep.subr.bf16.mxu0 %v1459_v26 }
 0x109   : > { %1387 = vmatpush3.bf16.msra.mxu0 %v1459_v26 }
 0x10a   : > { %1418 = vmatprep.subr.msk.bf16.mxu0 %vm906_vm11, %v1460_v27 }
 0x10d   : > { %1389 = vmatpush3.bf16.msra.mxu0 %v908_v28 }
 0x14e   : > { %v518_v21 = vpop.xlane.xlu1 %517 }
 0x14f   : > { %v528_v29 = vmul.f32 0.015151516, %v518_v21 }
 0x151   : > { %v532_v30 = vadd.f32 1e-05, %v528_v29 }
 0x152   : > { %v527_v32 = vpop.xlane.xlu1 %526  ;;  %v521_v33 = vpop.xlane.xlu0 %520 }
 0x153   : > { %1477 = vrsqrt.f32 %v532_v30  ;;  %v531_v34 = vmul.f32 0.015151516, %v527_v32  ;;  %v529_v35 = vmul.f32 0.015151516, %v521_v33 }
 0x155   : > { %v535_v36 = vadd.f32 1e-05, %v531_v34  ;;  %v533_v37 = vadd.f32 1e-05, %v529_v35 }
 0x156   : > { %v524_v38 = vpop.xlane.xlu0 %523 }
 0x157   : > { %1479 = vrsqrt.f32 %v535_v36  ;;  %v530_v39 = vmul.f32 0.015151516, %v524_v38 }
 0x158   : > { %1481 = vrsqrt.f32 %v533_v37 }
 0x159   : > { %v534_v40 = vadd.f32 1e-05, %v530_v39 }
 0x15b   : > { %1483 = vrsqrt.f32 %v534_v40 }
 0x15d   : > { %v1478_v41 = vpop.eup %1477 }
 0x15e   : > { %v540_v43 = vmul.f32 %v1478_v41, %v1721_v42 }
 0x160   : > { %v550_v52 = vmul.f32 %v1313_v44, %v540_v43 }
 0x161   : > { %v1480_v45 = vpop.eup %1479 }
 0x162   : > { %v1482_v46 = vpop.eup %1481  ;;  %v543_v47 = vmul.f32 %v1480_v45, %v1731_v50  ;;  %v560_v24 = vadd.f32 %v1314_v53, %v550_v52 }
 0x163   : > { %v541_v23 = vmul.f32 %v1482_v46, %v1734_v51 }
 0x164   : > { %v553_v22 = vmul.f32 %v1313_v44, %v543_v47 }
 0x165   : > { %v1484_v54 = vpop.eup %1483  ;;  %v551_v55 = vmul.f32 %v1313_v44, %v541_v23 }
 0x166   : > { %v542_v42 = vmul.f32 %v1484_v54, %v1728_v49  ;;  %v563_v59 = vadd.f32 %v1314_v53, %v553_v22 }
 0x167   : > { %v561_v31 = vadd.f32 %v1314_v53, %v551_v55 }
 0x168   : > { %v552_v56 = vmul.f32 %v1313_v44, %v542_v42 }
 0x169   : > { %v725_v57 = vpack.c.bf16 %v561_v31, %v560_v24 }
 0x16a   : > { %v562_v58 = vadd.f32 %v1314_v53, %v552_v56 }
 0x16b   : > { %1390 = vmatprep.mubr.msk.bf16.mxu0 %vm490_vm0, %v725_v57 }
 0x16c   : > { %v726_v50 = vpack.c.bf16 %v563_v59, %v562_v58 }
 0x16e   : > { %1391 = vmatmul.mubr.msk.bf16.vlgmr.msra.gmra.mrb[0].mxu0 %vm490_vm0, %v726_v50 }
 0x1a9   : > { %v1404_v51 = vpop.f32.mrb[0].mxu1 }
 0x1aa   : > { %1104 = vst.msk [vmem:[%s1810_s15 + $0x10] sm:$0xff] %vm739_vm2, %v1404_v51  ;;  %v1051_v49 = vpop.f32.mrb[1].mxu1 }
 0x1ab   : > { %1102 = vst.msk [vmem:[%s1810_s15] sm:$0xff] %vm739_vm2, %v1051_v49  ;;  %v1405_v60 = vpop.f32.mrb[2].mxu1 }
 0x1ac   : > { %1105 = vst.msk [vmem:[%s1810_s15 + $0x18] sm:$0xff] %vm739_vm2, %v1405_v60  ;;  %v1054_v61 = vpop.f32.mrb[3].mxu1 }
 0x1ad   : > { %1103 = vst.msk [vmem:[%s1810_s15 + $0x8] sm:$0xff] %vm739_vm2, %v1054_v61 }
 0x1b1   : > { %v1408_v62 = vpop.f32.mrb[4].mxu1  ;;  %v1186_v25 = vld [vmem:[%s1810_s15 + $0x10] sm:$0xff] (%p1596_p5) }
 0x1b2   : > { %1108 = vst.msk [vmem:[%s1810_s15 + $0x30] sm:$0xff] %vm739_vm2, %v1408_v62  ;;  %v1067_v63 = vpop.f32.mrb[5].mxu1  ;;  %v1182_v17 = vld [vmem:[%s1810_s15] sm:$0xff] (%p1596_p5)  ;;  %1187 = vst [vmem:[%s1132_s24 + $0x10] sm:$0xff] (%p1596_p5), %v1186_v25 }
 0x1b3   : > { %1106 = vst.msk [vmem:[%s1810_s15 + $0x20] sm:$0xff] %vm739_vm2, %v1067_v63  ;;  %v1409_v0 = vpop.f32.mrb[6].mxu1  ;;  %v1188_v13 = vld [vmem:[%s1810_s15 + $0x18] sm:$0xff] (%p1596_p5)  ;;  %1183 = vst [vmem:[%s1132_s24] sm:$0xff] (%p1596_p5), %v1182_v17 }
 0x1b4   : > { %1109 = vst.msk [vmem:[%s1810_s15 + $0x38] sm:$0xff] %vm739_vm2, %v1409_v0  ;;  %v1070_v48 = vpop.f32.mrb[7].mxu1  ;;  %v1184_v18 = vld [vmem:[%s1810_s15 + $0x8] sm:$0xff] (%p1596_p5)  ;;  %1189 = vst [vmem:[%s1132_s24 + $0x18] sm:$0xff] (%p1596_p5), %v1188_v13 }
 0x1b5   : > { %1107 = vst.msk [vmem:[%s1810_s15 + $0x28] sm:$0xff] %vm739_vm2, %v1070_v48  ;;  %1185 = vst [vmem:[%s1132_s24 + $0x8] sm:$0xff] (%p1596_p5), %v1184_v18 }
 0x1b9   : > { %v1412_v1 = vpop.f32.mrb[8].mxu1  ;;  %v1194_v15 = vld [vmem:[%s1810_s15 + $0x30] sm:$0xff] (%p1596_p5) }
 0x1ba   : > { %1112 = vst.msk [vmem:[%s1810_s15 + $0x50] sm:$0xff] %vm739_vm2, %v1412_v1  ;;  %v1083_v2 = vpop.f32.mrb[9].mxu1  ;;  %v1190_v19 = vld [vmem:[%s1810_s15 + $0x20] sm:$0xff] (%p1596_p5)  ;;  %1195 = vst [vmem:[%s1132_s24 + $0x50] sm:$0xff] (%p1596_p5), %v1194_v15 }
 0x1bb   : > { %1110 = vst.msk [vmem:[%s1810_s15 + $0x40] sm:$0xff] %vm739_vm2, %v1083_v2  ;;  %v1413_v3 = vpop.f32.mrb[10].mxu1  ;;  %1191 = vst [vmem:[%s1132_s24 + $0x40] sm:$0xff] (%p1596_p5), %v1190_v19  ;;  %v1196_v20 = vld [vmem:[%s1810_s15 + $0x38] sm:$0xff] (%p1596_p5) }
 0x1bc   : > { %1113 = vst.msk [vmem:[%s1810_s15 + $0x58] sm:$0xff] %vm739_vm2, %v1413_v3  ;;  %v1086_v4 = vpop.f32.mrb[11].mxu1  ;;  %v1192_v14 = vld [vmem:[%s1810_s15 + $0x28] sm:$0xff] (%p1596_p5)  ;;  %1197 = vst [vmem:[%s1132_s24 + $0x58] sm:$0xff] (%p1596_p5), %v1196_v20 }
 0x1bd   : > { %1111 = vst.msk [vmem:[%s1810_s15 + $0x48] sm:$0xff] %vm739_vm2, %v1086_v4  ;;  %1193 = vst [vmem:[%s1132_s24 + $0x48] sm:$0xff] (%p1596_p5), %v1192_v14 }
 0x1c1   : > { %v1202_v28 = vld [vmem:[%s1810_s15 + $0x50] sm:$0xff] (%p1596_p5) }
 0x1c2   : > { %v1198_v26 = vld [vmem:[%s1810_s15 + $0x40] sm:$0xff] (%p1596_p5)  ;;  %1203 = vst [vmem:[%s1132_s24 + $0x90] sm:$0xff] (%p1596_p5), %v1202_v28 }
 0x1c3   : > { %1199 = vst [vmem:[%s1132_s24 + $0x80] sm:$0xff] (%p1596_p5), %v1198_v26  ;;  %v1204_v21 = vld [vmem:[%s1810_s15 + $0x58] sm:$0xff] (%p1596_p5) }
 0x1c4   : > { %v1200_v27 = vld [vmem:[%s1810_s15 + $0x48] sm:$0xff] (%p1596_p5)  ;;  %1205 = vst [vmem:[%s1132_s24 + $0x98] sm:$0xff] (%p1596_p5), %v1204_v21 }
 0x1c5   : > { %1201 = vst [vmem:[%s1132_s24 + $0x88] sm:$0xff] (%p1596_p5), %v1200_v27 }
 0x241   : > { %v1392_v6 = vpop.f32.mrb[0].mxu0  ;;  %1129 = sbr.rel (!%p1596_p5) target bundleno = 584 (0x248), region = 102 }
 0x242   : > { %v944_v7 = vpop.f32.mrb[1].mxu0  ;;  %v967_v12 = vadd.f32 %v1392_v6, %v1328_v5 }
 0x243   : > { %v965_v8 = vadd.f32 %v1328_v5, %v944_v7  ;;  %v1393_v9 = vpop.f32.mrb[2].mxu0 }
 0x244   : > { %v947_v10 = vpop.f32.mrb[3].mxu0  ;;  %v968_v16 = vadd.f32 %v1393_v9, %v1328_v5  ;;  %1100 = vst [vmem:[%s468_s22 + $0x10] sm:$0xff] %v967_v12 }
 0x245   : > { %1098 = vst [vmem:[%s468_s22] sm:$0xff] %v965_v8  ;;  %v966_v11 = vadd.f32 %v1328_v5, %v947_v10 }
 0x246   : > { %1101 = vst [vmem:[%s468_s22 + $0x18] sm:$0xff] %v968_v16 }
 0x247   : > { %1099 = vst [vmem:[%s468_s22 + $0x8] sm:$0xff] %v966_v11 }
 0x248 PF: > { %p18_p11 = scmp.ge.s32.totalorder %s1584_s17, 4   ;;  %s1884_s13 = smov %s1503_s14 }
 0x249   : > { %s1885_s14 = smov %s1594_s20  ;;  %s1886_s15 = smov %s1584_s17 }
 0x24a   :  { %20 = sbr.rel (!%p18_p11) target bundleno = 2 (0x2), region = 182 }

// kernel: drug_gvp_forward.10
= control target key start
LH: loop header
LB: loop body
LE: loop exit
PB: predicated region body
PF: predicated region fallthrough
CT: control target
= control target key end

     0   :  { %s2247_s0 = inlined_call_operand.vmem [shape: f32[128,16], index: 0, kind: input, shape index: {}]   ;;  %s2248_s1 = inlined_call_operand.vmem [shape: f32[3,128,1], index: 1, kind: input, shape index: {}]   ;;  %s2249_s2 = inlined_call_operand.vmem [shape: f32[1,16], index: 2, kind: input, shape index: {}]   ;;  %s2250_s3 = inlined_call_operand.vmem [shape: f32[1,16], index: 3, kind: input, shape index: {}]   ;;  %s2251_s4 = inlined_call_operand.<no memory space> [shape: bf16[1,1], index: 4, kind: input, shape index: {}]   ;;  %s2252_s5 = inlined_call_operand.vmem [shape: bf16[16,32], index: 5, kind: input, shape index: {}]   ;;  %s2253_s6 = inlined_call_operand.vmem [shape: bf16[1,32], index: 6, kind: input, shape index: {}]   ;;  %s2254_s7 = inlined_call_operand.vmem [shape: f32[1,32], index: 7, kind: input, shape index: {}]   ;;  %s2255_s9 = inlined_call_operand.vmem [shape: f32[128,32], index: 9, kind: output, shape index: {0}]   ;;  %s2256_s10 = inlined_call_operand.vmem [shape: f32[3,128,1], index: 10, kind: output, shape index: {1}]   ;;  %s2257_s8 = inlined_call_operand.<no memory space> [shape: bf16[1,1], index: 8, kind: input, shape index: {}]  }
   0x1   :  { %v16_v0 = vstv %s2251_s4  ;;  %v18_v1 = vstv %s2257_s8 }
   0x2   :  { %17 = vst [vmem:[#allocation2] sm:$0x1] %v16_v0  ;;  %19 = vst [vmem:[#allocation3] sm:$0x1] %v18_v1 }
   0x3   :  { %s1626_s17 = smov 0   ;;  %s1628_s18 = smov 0  }
   0x4   :  { %s1630_s19 = smov 0  }
   0x5 LB: > { %s1642_s4 = sadd.s32 4294967295, %s1562_s19   ;;  %s1645_s8 = sadd.s32 1, %s1562_s19   ;;  %s1562_s19 = sphi %s1630_s19, %s2261_s19   ;;  %s1558_s18 = sphi %s1628_s18, %s2260_s18   ;;  %s1554_s17 = sphi %s1626_s17, %s2259_s17  }
   0x6   : > { %s55_s20 = ssub.s32 %s1562_s19, %s1645_s8  ;;  %s58_s21 = sadd.s32 1, %s1558_s18 }
   0x7   : > { %p56_p0 = scmp.eq.s32.totalorder %s55_s20, 0  ;;  %p65_p1 = scmp.ne.s32.totalorder %s1558_s18, %s1554_s17 }
   0x8   : > { %p66_p2 = scmp.eq.s32.totalorder %s1562_s19, 0  ;;  %p268_p3 = scmp.eq.s32.totalorder %s1642_s4, 1 }
   0x9   : > { %s1655_s22 = scalar_select %p56_p0, %s1558_s18, %s58_s21  }
   0xa   : > { %p67_p4 = por %p66_p2, %p65_p1  ;;  %p1657_p5 = por %p268_p3, %p65_p1 }
   0xb   : > { %p1423_p6 = scmp.ge.s32.totalorder %s1562_s19, 2 }
   0xd   : > { %311 = sbr.rel (%p1423_p6) target bundleno = 37 (0x25), region = 44 }
  0x14   : > { %323 = sbr.rel (!%p67_p4) target bundleno = 37 (0x25), region = 52  ;;  %s325_s24 = sand.u32 (%p67_p4), 1, %s1558_s18  }
  0x15   : > { %s1443_s25 = sshll.u32 (%p67_p4), %s1562_s19, 6  ;;  %s1462_s26 = smul.u32 (%p67_p4), 192, %s325_s24 }
  0x16   : > { %s1667_s29 = scalar_lea.vmem (%p67_p4), %s2248_s1, %s1443_s25 }
  0x17   : > { %v404_v2 = vld [vmem:[%s1667_s29] sm:$0xff] (%p67_p4)  ;;  %v406_v3 = vld [vmem:[%s1667_s29 + $0x8] sm:$0xff] (%p67_p4)  ;;  %v408_v4 = vld [vmem:[%s1667_s29 + $0x10] sm:$0xff] (%p67_p4)  ;;  %s1675_s30 = scalar_lea.vmem (%p67_p4), [#allocation4], %s1462_s26 }
  0x18   : > { %v410_v5 = vld [vmem:[%s1667_s29 + $0x18] sm:$0xff] (%p67_p4)  ;;  %v412_v6 = vld [vmem:[%s1667_s29 + $0x20] sm:$0xff] (%p67_p4)  ;;  %v414_v7 = vld [vmem:[%s1667_s29 + $0x28] sm:$0xff] (%p67_p4)  ;;  %405 = vst [vmem:[%s1675_s30] sm:$0xff] (%p67_p4), %v404_v2 }
  0x19   : > { %407 = vst [vmem:[%s1675_s30 + $0x8] sm:$0xff] (%p67_p4), %v406_v3  ;;  %409 = vst [vmem:[%s1675_s30 + $0x10] sm:$0xff] (%p67_p4), %v408_v4  ;;  %v416_v8 = vld [vmem:[%s1667_s29 + $0x30] sm:$0xff] (%p67_p4)  ;;  %v418_v9 = vld [vmem:[%s1667_s29 + $0x38] sm:$0xff] (%p67_p4) }
  0x1a   : > { %411 = vst [vmem:[%s1675_s30 + $0x18] sm:$0xff] (%p67_p4), %v410_v5  ;;  %413 = vst [vmem:[%s1675_s30 + $0x20] sm:$0xff] (%p67_p4), %v412_v6  ;;  %v420_v10 = vld [vmem:[%s1667_s29 + $0x80] sm:$0xff] (%p67_p4)  ;;  %v422_v11 = vld [vmem:[%s1667_s29 + $0x88] sm:$0xff] (%p67_p4) }
  0x1b   : > { %415 = vst [vmem:[%s1675_s30 + $0x28] sm:$0xff] %v414_v7  ;;  %417 = vst [vmem:[%s1675_s30 + $0x30] sm:$0xff] %v416_v8  ;;  %v424_v12 = vld [vmem:[%s1667_s29 + $0x90] sm:$0xff]  ;;  %v426_v13 = vld [vmem:[%s1667_s29 + $0x98] sm:$0xff] }
  0x1c   : > { %419 = vst [vmem:[%s1675_s30 + $0x38] sm:$0xff] %v418_v9  ;;  %421 = vst [vmem:[%s1675_s30 + $0x40] sm:$0xff] %v420_v10  ;;  %v428_v14 = vld [vmem:[%s1667_s29 + $0xa0] sm:$0xff]  ;;  %v430_v15 = vld [vmem:[%s1667_s29 + $0xa8] sm:$0xff] }
  0x1d   : > { %423 = vst [vmem:[%s1675_s30 + $0x48] sm:$0xff] %v422_v11  ;;  %425 = vst [vmem:[%s1675_s30 + $0x50] sm:$0xff] %v424_v12  ;;  %v432_v16 = vld [vmem:[%s1667_s29 + $0xb0] sm:$0xff]  ;;  %v434_v17 = vld [vmem:[%s1667_s29 + $0xb8] sm:$0xff] }
  0x1e   : > { %427 = vst [vmem:[%s1675_s30 + $0x58] sm:$0xff] %v426_v13  ;;  %429 = vst [vmem:[%s1675_s30 + $0x60] sm:$0xff] %v428_v14  ;;  %v436_v18 = vld [vmem:[%s1667_s29 + $0x100] sm:$0xff]  ;;  %v438_v19 = vld [vmem:[%s1667_s29 + $0x108] sm:$0xff] }
  0x1f   : > { %431 = vst [vmem:[%s1675_s30 + $0x68] sm:$0xff] %v430_v15  ;;  %433 = vst [vmem:[%s1675_s30 + $0x70] sm:$0xff] %v432_v16  ;;  %v440_v20 = vld [vmem:[%s1667_s29 + $0x110] sm:$0xff]  ;;  %v442_v21 = vld [vmem:[%s1667_s29 + $0x118] sm:$0xff] }
  0x20   : > { %435 = vst [vmem:[%s1675_s30 + $0x78] sm:$0xff] %v434_v17  ;;  %437 = vst [vmem:[%s1675_s30 + $0x80] sm:$0xff] %v436_v18  ;;  %v444_v22 = vld [vmem:[%s1667_s29 + $0x120] sm:$0xff]  ;;  %v446_v23 = vld [vmem:[%s1667_s29 + $0x128] sm:$0xff] }
  0x21   : > { %439 = vst [vmem:[%s1675_s30 + $0x88] sm:$0xff] %v438_v19  ;;  %441 = vst [vmem:[%s1675_s30 + $0x90] sm:$0xff] %v440_v20  ;;  %v448_v24 = vld [vmem:[%s1667_s29 + $0x130] sm:$0xff]  ;;  %v450_v25 = vld [vmem:[%s1667_s29 + $0x138] sm:$0xff] }
  0x22   : > { %443 = vst [vmem:[%s1675_s30 + $0x98] sm:$0xff] %v442_v21  ;;  %445 = vst [vmem:[%s1675_s30 + $0xa0] sm:$0xff] %v444_v22 }
  0x23   : > { %447 = vst [vmem:[%s1675_s30 + $0xa8] sm:$0xff] %v446_v23  ;;  %449 = vst [vmem:[%s1675_s30 + $0xb0] sm:$0xff] %v448_v24 }
  0x24   : > { %451 = vst [vmem:[%s1675_s30 + $0xb8] sm:$0xff] %v450_v25 }
  0x25 PF: > { %p1426_p7 = scmp.ge.s32.totalorder %s1562_s19, 1  ;;  %p456_p8 = scmp.lt.s32.totalorder %s1562_s19, 3 }
  0x27   : > { %p457_p9 = pnand %p1426_p7, %p456_p8 }
  0x28   : > { %s1427_s11 = sshll.u32 (!%p457_p9), %s1642_s4, 3  ;;  %vm558_vm0 = vcmask (!%p457_p9), 130048   ;;  %s463_s16 = sand.u32 (!%p457_p9), 1, %s1554_s17   ;;  %v1491_v22 = vld [vmem:[%s2252_s5] sm:$0xff] (!%p457_p9)   ;;  %vm716_vm1 = vcmask (!%p457_p9), 7168  }
  0x29   : > { %460 = sbr.rel (%p457_p9) target bundleno = 603 (0x25b), region = 90  ;;  %p510_p10 = scmp.lt.s32.totalorder (!%p457_p9), %s1427_s11, 15  ;;  %1450 = vmatprep.subr.bf16.mxu0 (!%p457_p9), %v1491_v22  ;;  %1460 = vmatprep.subr.bf16.mxu1 (!%p457_p9), %v1491_v22 }
  0x2a   : > { %s1779_s19 = smul.u32 (!%p457_p9), 192, %s463_s16  ;;  %1451 = vmatpush3.bf16.msra.mxu0 (!%p457_p9), %v1491_v22  ;;  %1461 = vmatpush3.bf16.msra.mxu1 (!%p457_p9), %v1491_v22 }
  0x2c   : > { %s1782_s20 = scalar_lea.vmem (!%p457_p9), [#allocation4], %s1779_s19  ;;  %s1928_s24 = scalar_lea.vmem (!%p457_p9), [#allocation5], %s1779_s19 }
  0x2d   : > { %v1785_v18 = vld [vmem:[%s1782_s20 + $0x8] sm:$0xff] (!%p457_p9) }
  0x2e   : > { %v1788_v19 = vld [vmem:[%s1782_s20 + $0x48] sm:$0xff] (!%p457_p9)  ;;  %v693_v20 = vmul.f32 (!%p457_p9), %v1785_v18, %v1785_v18 }
  0x2f   : > { %v701_v21 = vmul.f32 (!%p457_p9), %v1788_v19, %v1788_v19  ;;  %v1798_v23 = vld [vmem:[%s1782_s20 + $0x88] sm:$0xff] (!%p457_p9) }
  0x30   : > { %s2263_s11 = smov (!%p510_p10, %s1427_s11), 15  ;;  %v709_v24 = vmul.f32 %v1798_v23, %v1798_v23  ;;  %v722_v25 = vsel %vm716_vm1, %v693_v20, 0.0 }
  0x31   : > { %s1428_s12 = sshll.u32 %s2263_s11, 3  ;;  %s1444_s11 = sshll.u32 (%p1657_p5), %s1642_s4, 6 }
  0x32   : > { %s513_s15 = scalar_lea.vmem %s2247_s0, %s1428_s12  ;;  %s2163_s19 = scalar_lea.vmem %s2255_s9, %s1428_s12 }
  0x33   : > { %v524_v26 = vld [vmem:[%s513_s15] sm:$0xff]  ;;  %v525_v28 = vld [vmem:[%s513_s15 + $0x8] sm:$0xff]  ;;  %v526_v34 = vld [vmem:[%s513_s15 + $0x10] sm:$0xff]  ;;  %s2190_s17 = scalar_lea.vmem (%p1657_p5), %s2256_s10, %s1444_s11 }
  0x34   : > { %v528_v27 = vld [vmem:[%s513_s15 + $0x20] sm:$0xff]  ;;  %v559_v29 = vsel %vm558_vm0, %v524_v26, 0.0  ;;  %v529_v31 = vld [vmem:[%s513_s15 + $0x28] sm:$0xff]  ;;  %v562_v32 = vsel %vm558_vm0, %v525_v28, 0.0  ;;  %v527_v35 = vld [vmem:[%s513_s15 + $0x18] sm:$0xff]  ;;  %v565_v36 = vsel %vm558_vm0, %v526_v34, 0.0 }
  0x35   : > { %v571_v30 = vsel %vm558_vm0, %v528_v27, 0.0  ;;  %560 = vadd.xlane.f32.xlu0 %v559_v29  ;;  %v574_v33 = vsel %vm558_vm0, %v529_v31, 0.0  ;;  %v568_v37 = vsel %vm558_vm0, %v527_v35, 0.0  ;;  %v530_v38 = vld [vmem:[%s513_s15 + $0x30] sm:$0xff]  ;;  %v531_v39 = vld [vmem:[%s513_s15 + $0x38] sm:$0xff] }
  0x36   : > { %572 = vadd.xlane.f32.xlu1 %v571_v30  ;;  %v577_v40 = vsel %vm558_vm0, %v530_v38, 0.0  ;;  %v580_v41 = vsel %vm558_vm0, %v531_v39, 0.0  ;;  %v1808_v29 = vld [vmem:[%s1782_s20 + $0x50] sm:$0xff]  ;;  %v725_v30 = vsel %vm716_vm1, %v709_v24, 0.0 }
  0x39   : > { %563 = vadd.xlane.f32.xlu0 %v562_v32  ;;  %v702_v32 = vmul.f32 %v1808_v29, %v1808_v29 }
  0x3a   : > { %575 = vadd.xlane.f32.xlu1 %v574_v33 }
  0x3d   : > { %566 = vadd.xlane.f32.xlu0 %v565_v36 }
  0x3e   : > { %569 = vadd.xlane.f32.xlu1 %v568_v37  ;;  %v728_v37 = vsel %vm716_vm1, %v702_v32, 0.0 }
  0x41   : > { %578 = vadd.xlane.f32.xlu0 %v577_v40  ;;  %v1823_v40 = vld [vmem:[%s1782_s20 + $0x18] sm:$0xff] }
  0x42   : > { %581 = vadd.xlane.f32.xlu1 %v580_v41  ;;  %v1826_v41 = vld [vmem:[%s1782_s20 + $0x58] sm:$0xff] }
  0xc2   : > { %v561_v42 = vpop.xlane.xlu0 %560 }
  0xc3   : > { %v573_v43 = vpop.xlane.xlu1 %572  ;;  %v584_v44 = vmul.f32 0.0625, %v561_v42 }
  0xc4   : > { %v588_v45 = vmul.f32 0.0625, %v573_v43  ;;  %v695_v43 = vmul.f32 %v1823_v40, %v1823_v40 }
  0xc5   : > { %v1738_v46 = vsub.f32 %v524_v26, %v584_v44  ;;  %v723_v26 = vsel %vm716_vm1, %v701_v21, 0.0  ;;  %v703_v44 = vmul.f32 %v1826_v41, %v1826_v41 }
  0xc6   : > { %v1740_v47 = vsub.f32 %v528_v27, %v588_v45  ;;  %v564_v48 = vpop.xlane.xlu0 %563  ;;  %v724_v27 = vadd.f32 %v723_v26, %v722_v25 }
  0xc7   : > { %v576_v49 = vpop.xlane.xlu1 %575  ;;  %v585_v50 = vmul.f32 0.0625, %v564_v48  ;;  %v600_v52 = vmul.f32 %v1738_v46, %v1738_v46  ;;  %v1834_v48 = vld [vmem:[%s1782_s20 + $0x98] sm:$0xff] }
  0xc8   : > { %v589_v51 = vmul.f32 0.0625, %v576_v49  ;;  %v604_v53 = vmul.f32 %v1740_v47, %v1740_v47  ;;  %v726_v33 = vadd.f32 %v725_v30, %v724_v27  ;;  %v805_v49 = vld [vmem:[#allocation2] sm:$0x1]  ;;  %v1881_v27 = vld [vmem:[%s1782_s20 + $0x70] sm:$0xff] }
  0xc9   : > { %v1746_v54 = vsub.f32 %v525_v28, %v585_v50  ;;  %v608_v56 = vsel %vm558_vm0, %v600_v52, 0.0  ;;  %v1805_v28 = vld [vmem:[%s1782_s20 + $0x10] sm:$0xff]  ;;  %v810_v50 = vld [vmem:[#allocation3] sm:$0x1]  ;;  %v711_v52 = vmul.f32 %v1834_v48, %v1834_v48 }
  0xca   : > { %v1748_v55 = vsub.f32 %v529_v31, %v589_v51  ;;  %609 = vadd.xlane.f32.xlu0 %v608_v56  ;;  %v567_v57 = vpop.xlane.xlu0 %566  ;;  %v620_v59 = vsel %vm558_vm0, %v604_v53, 0.0  ;;  %v694_v31 = vmul.f32 %v1805_v28, %v1805_v28  ;;  %v812_v51 = vlaneseq  ;;  %v1884_v30 = vld [vmem:[%s1782_s20 + $0xb0] sm:$0xff] }
  0xcb   : > { %v570_v58 = vpop.xlane.xlu1 %569  ;;  %v586_v60 = vmul.f32 0.0625, %v567_v57  ;;  %v601_v62 = vmul.f32 %v1746_v54, %v1746_v54  ;;  %v1564_v53 = vmov 0   ;;  %v811_v56 = vunpack.c.l.bf16 %v805_v49 }
  0xcc   : > { %v587_v61 = vmul.f32 0.0625, %v570_v58  ;;  %v605_v63 = vmul.f32 %v1748_v55, %v1748_v55  ;;  %v727_v36 = vsel %vm716_vm1, %v694_v31, 0.0  ;;  %1490 = vset.pattern.permute.xlu1 %v1564_v53  ;;  %v1122_v57 = vunpack.c.l.bf16 %v810_v50  ;;  %1489 = vset.pattern.permute.xlu0 %v1564_v53  ;;  %v1907_v53 = vld [vmem:[%s1782_s20 + $0x78] sm:$0xff] }
  0xcd   : > { %v1756_v0 = vsub.f32 %v526_v34, %v586_v60  ;;  %v611_v2 = vsel %vm558_vm0, %v601_v62, 0.0  ;;  %v1816_v34 = vld [vmem:[%s1782_s20 + $0x90] sm:$0xff]  ;;  %v1840_v60 = vld [vmem:[%s1782_s20 + $0x20] sm:$0xff] }
  0xce   : > { %v1758_v1 = vsub.f32 %v527_v35, %v587_v61  ;;  %621 = vadd.xlane.f32.xlu0 %v620_v59  ;;  %612 = vadd.xlane.f32.xlu1 %v611_v2  ;;  %v579_v3 = vpop.xlane.xlu0 %578  ;;  %v623_v5 = vsel %vm558_vm0, %v605_v63, 0.0  ;;  %v710_v35 = vmul.f32 %v1816_v34, %v1816_v34  ;;  %v732_v59 = vsel %vm716_vm1, %v695_v43, 0.0  ;;  %v1843_v61 = vld [vmem:[%s1782_s20 + $0x60] sm:$0xff] }
  0xcf   : > { %v582_v4 = vpop.xlane.xlu1 %581  ;;  %v590_v6 = vmul.f32 0.0625, %v579_v3  ;;  %v602_v8 = vmul.f32 %v1756_v0, %v1756_v0  ;;  %v1846_v62 = vld [vmem:[%s1782_s20 + $0xa0] sm:$0xff]  ;;  %v813_v63 = vshrl.u32 %v812_v51, 7  ;;  %v733_v2 = vsel %vm716_vm1, %v703_v44, 0.0 }
  0xd0   : > { %v591_v7 = vmul.f32 0.0625, %v582_v4  ;;  %v603_v9 = vmul.f32 %v1758_v1, %v1758_v1  ;;  %v730_v42 = vsel %vm716_vm1, %v710_v35, 0.0  ;;  %v735_v3 = vsel %vm716_vm1, %v711_v52, 0.0 }
  0xd1   : > { %v1766_v10 = vsub.f32 %v530_v38, %v590_v6  ;;  %v614_v12 = vsel %vm558_vm0, %v602_v8, 0.0  ;;  %v758_v38 = vmax.f32 %v726_v33, 1e-08  ;;  %v696_v4 = vmul.f32 %v1840_v60, %v1840_v60  ;;  %v1856_v6 = vld [vmem:[%s1782_s20 + $0x68] sm:$0xff] }
  0xd2   : > { %v1768_v11 = vsub.f32 %v531_v39, %v591_v7  ;;  %624 = vadd.xlane.f32.xlu1 %v623_v5  ;;  %615 = vadd.xlane.f32.xlu0 %v614_v12  ;;  %v617_v13 = vsel %vm558_vm0, %v603_v9, 0.0  ;;  %v729_v39 = vadd.f32 %v728_v37, %v727_v36  ;;  %v1853_v5 = vld [vmem:[%s1782_s20 + $0x28] sm:$0xff]  ;;  %v734_v8 = vadd.f32 %v733_v2, %v732_v59 }
  0xd3   : > { %v606_v14 = vmul.f32 %v1766_v10, %v1766_v10  ;;  %1492 = vrsqrt.f32 %v758_v38  ;;  %v1859_v7 = vld [vmem:[%s1782_s20 + $0xa8] sm:$0xff]  ;;  %v704_v9 = vmul.f32 %v1843_v61, %v1843_v61  ;;  %v712_v12 = vmul.f32 %v1846_v62, %v1846_v62 }
  0xd4   : > { %v607_v15 = vmul.f32 %v1768_v11, %v1768_v11  ;;  %v731_v45 = vadd.f32 %v730_v42, %v729_v39  ;;  %v736_v20 = vadd.f32 %v735_v3, %v734_v8  ;;  %v713_v24 = vmul.f32 %v1859_v7, %v1859_v7  ;;  %v1894_v39 = vld [vmem:[%s1782_s20 + $0x38] sm:$0xff] }
  0xd5   : > { %v626_v16 = vsel %vm558_vm0, %v606_v14, 0.0  ;;  %v737_v14 = vsel %vm716_vm1, %v696_v4, 0.0  ;;  %v738_v21 = vsel %vm716_vm1, %v704_v9, 0.0  ;;  %v740_v22 = vsel %vm716_vm1, %v712_v12, 0.0 }
  0xd6   : > { %618 = vadd.xlane.f32.xlu1 %v617_v13  ;;  %627 = vadd.xlane.f32.xlu0 %v626_v16  ;;  %v629_v17 = vsel %vm558_vm0, %v607_v15, 0.0  ;;  %v759_v58 = vmax.f32 %v731_v45, 1e-08  ;;  %v1865_v13 = vsub.s32 0, %v813_v63  ;;  %v697_v15 = vmul.f32 %v1853_v5, %v1853_v5 }
  0xd7   : > { %v705_v16 = vmul.f32 %v1856_v6, %v1856_v6  ;;  %v739_v25 = vadd.f32 %v738_v21, %v737_v14  ;;  %v760_v31 = vmax.f32 %v736_v20, 1e-08  ;;  %v745_v38 = vsel %vm716_vm1, %v713_v24, 0.0 }
  0xd8   : > { %1494 = vrsqrt.f32 %v759_v58  ;;  %v742_v26 = vsel %vm716_vm1, %v697_v15, 0.0  ;;  %v1890_v35 = vrot.slane %v811_v56, %v1865_v13  ;;  %v1897_v43 = vrot.slane %v1122_v57, %v1865_v13 }
  0xd9   : > { %v743_v32 = vsel %vm716_vm1, %v705_v16, 0.0  ;;  %v741_v36 = vadd.f32 %v740_v22, %v739_v25  ;;  %1496 = vrsqrt.f32 %v760_v31  ;;  %v706_v44 = vmul.f32 %v1881_v27, %v1881_v27 }
  0xda   : > { %630 = vadd.xlane.f32.xlu1 %v629_v17  ;;  %v1873_v17 = vld [vmem:[%s1782_s20 + $0x30] sm:$0xff]  ;;  %v744_v37 = vadd.f32 %v743_v32, %v742_v26  ;;  %v714_v45 = vmul.f32 %v1884_v30, %v1884_v30  ;;  %v699_v58 = vmul.f32 %v1894_v39, %v1894_v39  ;;  %v707_v4 = vmul.f32 %v1907_v53, %v1907_v53 }
  0xdb   : > { %v698_v33 = vmul.f32 %v1873_v17, %v1873_v17  ;;  %v761_v52 = vmax.f32 %v741_v36, 1e-08 }
  0xdc   : > { %v746_v56 = vadd.f32 %v745_v38, %v744_v37  ;;  %v750_v3 = vsel %vm716_vm1, %v714_v45, 0.0  ;;  %v752_v36 = vsel %vm716_vm1, %v699_v58, 0.0  ;;  %v753_v37 = vsel %vm716_vm1, %v707_v4, 0.0 }
  0xdd   : > { %v1493_v42 = vpop.eup %1492  ;;  %v747_v57 = vsel %vm716_vm1, %v698_v33, 0.0  ;;  %1498 = vrsqrt.f32 %v761_v52 }
  0xde   : > { %v782_v49 = vmul.f32 %v1493_v42, %v1785_v18  ;;  %v790_v50 = vmul.f32 %v1493_v42, %v1788_v19  ;;  %v798_v51 = vmul.f32 %v1493_v42, %v1798_v23  ;;  %v762_v19 = vmax.f32 %v746_v56, 1e-08  ;;  %v1947_v56 = vld [vmem:[%s1782_s20 + $0xb8] sm:$0xff] }
  0xdf   : > { %v748_v23 = vsel %vm716_vm1, %v706_v44, 0.0 }
  0xe0   : > { %v817_v59 = vmul.f32 %v1890_v35, %v782_v49  ;;  %v825_v63 = vmul.f32 %v1890_v35, %v790_v50  ;;  %v833_v2 = vmul.f32 %v1890_v35, %v798_v51  ;;  %v749_v32 = vadd.f32 %v748_v23, %v747_v57 }
  0xe1   : > { %1500 = vrsqrt.f32 %v762_v19 }
  0xe2   : > { %v1495_v18 = vpop.eup %1494  ;;  %v845_v8 = vmul.f32 %v817_v59, %v817_v59  ;;  %v853_v9 = vmul.f32 %v825_v63, %v825_v63  ;;  %v861_v12 = vmul.f32 %v833_v2, %v833_v2  ;;  %v1128_v14 = vmul.f32 %v1897_v43, %v817_v59 }
  0xe3   : > { %v1136_v15 = vmul.f32 %v1897_v43, %v825_v63  ;;  %v1144_v16 = vmul.f32 %v1897_v43, %v833_v2  ;;  %v783_v20 = vmul.f32 %v1495_v18, %v1805_v28  ;;  %v791_v21 = vmul.f32 %v1495_v18, %v1808_v29 }
  0xe4   : > { %v873_v22 = vsel %vm716_vm1, %v845_v8, 0.0  ;;  %v874_v24 = vsel %vm716_vm1, %v853_v9, 0.0  ;;  %v876_v25 = vsel %vm716_vm1, %v861_v12, 0.0  ;;  %1161 = vst.msk [vmem:[%s1928_s24 + $0x8] sm:$0xff] %vm716_vm1, %v1128_v14  ;;  %v799_v26 = vmul.f32 %v1495_v18, %v1816_v34  ;;  %v1497_v34 = vpop.eup %1496 }
  0xe5   : > { %v875_v31 = vadd.f32 %v874_v24, %v873_v22  ;;  %1169 = vst.msk [vmem:[%s1928_s24 + $0x48] sm:$0xff] %vm716_vm1, %v1136_v15  ;;  %1177 = vst.msk [vmem:[%s1928_s24 + $0x88] sm:$0xff] %vm716_vm1, %v1144_v16  ;;  %v818_v28 = vmul.f32 %v1890_v35, %v783_v20  ;;  %v826_v29 = vmul.f32 %v1890_v35, %v791_v21 }
  0xe6   : > { %v834_v33 = vmul.f32 %v1890_v35, %v799_v26  ;;  %v784_v52 = vmul.f32 %v1497_v34, %v1823_v40  ;;  %v792_v63 = vmul.f32 %v1497_v34, %v1826_v41  ;;  %v800_v40 = vmul.f32 %v1497_v34, %v1834_v48 }
  0xe7   : > { %v877_v38 = vadd.f32 %v876_v25, %v875_v31  ;;  %v846_v42 = vmul.f32 %v818_v28, %v818_v28  ;;  %v854_v44 = vmul.f32 %v826_v29, %v826_v29  ;;  %v1129_v45 = vmul.f32 %v1897_v43, %v818_v28  ;;  %v1499_v2 = vpop.eup %1498 }
  0xe8   : > { %v862_v49 = vmul.f32 %v834_v33, %v834_v33  ;;  %v1137_v50 = vmul.f32 %v1897_v43, %v826_v29  ;;  %v1145_v51 = vmul.f32 %v1897_v43, %v834_v33  ;;  %v819_v23 = vmul.f32 %v1890_v35, %v784_v52 }
  0xe9   : > { %v1949_v57 = vmax.f32 %v877_v38, 1e-08  ;;  %v878_v58 = vsel %vm716_vm1, %v846_v42, 0.0  ;;  %v879_v59 = vsel %vm716_vm1, %v854_v44, 0.0  ;;  %1162 = vst.msk [vmem:[%s1928_s24 + $0x10] sm:$0xff] %vm716_vm1, %v1129_v45  ;;  %v751_v4 = vadd.f32 %v750_v3, %v749_v32 }
  0xea   : > { %v880_v18 = vadd.f32 %v879_v59, %v878_v58  ;;  %v881_v19 = vsel %vm716_vm1, %v862_v49, 0.0  ;;  %1170 = vst.msk [vmem:[%s1928_s24 + $0x50] sm:$0xff] %vm716_vm1, %v1137_v50  ;;  %1178 = vst.msk [vmem:[%s1928_s24 + $0x90] sm:$0xff] %vm716_vm1, %v1145_v51  ;;  %v715_v8 = vmul.f32 %v1947_v56, %v1947_v56  ;;  %v1966_v41 = vadd.f32 %v753_v37, %v752_v36 }
  0xeb   : > { %1502 = vrsqrt.f32 %v1949_v57  ;;  %v827_v12 = vmul.f32 %v1890_v35, %v792_v63  ;;  %v835_v14 = vmul.f32 %v1890_v35, %v800_v40  ;;  %v847_v15 = vmul.f32 %v819_v23, %v819_v23  ;;  %v1501_v28 = vpop.eup %1500 }
  0xec   : > { %v882_v9 = vadd.f32 %v881_v19, %v880_v18  ;;  %v1130_v16 = vmul.f32 %v1897_v43, %v819_v23  ;;  %v785_v48 = vmul.f32 %v1499_v2, %v1840_v60  ;;  %v793_v20 = vmul.f32 %v1499_v2, %v1843_v61 }
  0xed   : > { %v801_v3 = vmul.f32 %v1499_v2, %v1846_v62  ;;  %v855_v22 = vmul.f32 %v827_v12, %v827_v12  ;;  %v863_v24 = vmul.f32 %v835_v14, %v835_v14  ;;  %v883_v25 = vsel %vm716_vm1, %v847_v15, 0.0 }
  0xee   : > { %v1974_v21 = vmax.f32 %v882_v9, 1e-08  ;;  %v1138_v26 = vmul.f32 %v1897_v43, %v827_v12  ;;  %v1146_v31 = vmul.f32 %v1897_v43, %v835_v14  ;;  %1163 = vst.msk [vmem:[%s1928_s24 + $0x18] sm:$0xff] %vm716_vm1, %v1130_v16  ;;  %v820_v60 = vmul.f32 %v1890_v35, %v785_v48 }
  0xef   : > { %v828_v61 = vmul.f32 %v1890_v35, %v793_v20  ;;  %vm925_vm2 = vcmp.eq.f32.partialorder %v1949_v57, inf  ;;  %vm927_vm3 = vcmp.eq.f32.partialorder %v1949_v57, 0.0  ;;  %v928_v62 = vand.u32 2147483648, %v1949_v57 }
  0xf0   : > { %1504 = vrsqrt.f32 %v1974_v21  ;;  %v884_v29 = vsel %vm716_vm1, %v855_v22, 0.0  ;;  %v886_v32 = vsel %vm716_vm1, %v863_v24, 0.0  ;;  %1171 = vst.msk [vmem:[%s1928_s24 + $0x58] sm:$0xff] %vm716_vm1, %v1138_v26  ;;  %1179 = vst.msk [vmem:[%s1928_s24 + $0x98] sm:$0xff] %vm716_vm1, %v1146_v31  ;;  %v836_v33 = vmul.f32 %v1890_v35, %v801_v3  ;;  %v2033_v26 = vld [vmem:[%s1782_s20] sm:$0xff] }
  0xf1   : > { %v848_v36 = vmul.f32 %v820_v60, %v820_v60  ;;  %v885_v37 = vadd.f32 %v884_v29, %v883_v25  ;;  %v856_v34 = vmul.f32 %v828_v61, %v828_v61  ;;  %v1131_v38 = vmul.f32 %v1897_v43, %v820_v60  ;;  %v2036_v31 = vld [vmem:[%s1782_s20 + $0x40] sm:$0xff] }
  0xf2   : > { %v1139_v42 = vmul.f32 %v1897_v43, %v828_v61  ;;  %v864_v44 = vmul.f32 %v836_v33, %v836_v33  ;;  %v1147_v49 = vmul.f32 %v1897_v43, %v836_v33  ;;  %v786_v50 = vmul.f32 %v1501_v28, %v1853_v5  ;;  %v2042_v61 = vld [vmem:[%s1782_s20 + $0x80] sm:$0xff] }
  0xf3   : > { %v888_v45 = vsel %vm716_vm1, %v848_v36, 0.0  ;;  %v887_v51 = vadd.f32 %v886_v32, %v885_v37  ;;  %v889_v52 = vsel %vm716_vm1, %v856_v34, 0.0  ;;  %1164 = vst.msk [vmem:[%s1928_s24 + $0x20] sm:$0xff] %vm716_vm1, %v1131_v38  ;;  %v794_v58 = vmul.f32 %v1501_v28, %v1856_v6 }
  0xf4   : > { %1172 = vst.msk [vmem:[%s1928_s24 + $0x60] sm:$0xff] %vm716_vm1, %v1139_v42  ;;  %v802_v59 = vmul.f32 %v1501_v28, %v1859_v7  ;;  %v890_v2 = vadd.f32 %v889_v52, %v888_v45  ;;  %v891_v18 = vsel %vm716_vm1, %v864_v44, 0.0  ;;  %1180 = vst.msk [vmem:[%s1928_s24 + $0xa0] sm:$0xff] %vm716_vm1, %v1147_v49  ;;  %v821_v19 = vmul.f32 %v1890_v35, %v786_v50 }
  0xf5   : > { %v1503_v63 = vpop.eup %1502  ;;  %v763_v5 = vmax.f32 %v751_v4, 1e-08  ;;  %v2011_v23 = vmax.f32 %v887_v51, 1e-08  ;;  %v829_v9 = vmul.f32 %v1890_v35, %v794_v58  ;;  %vm932_vm4 = vcmp.eq.f32.partialorder %v1974_v21, inf }
  0xf6   : > { %v924_v40 = vmul.f32 %v1503_v63, %v1949_v57  ;;  %v837_v6 = vmul.f32 %v1890_v35, %v802_v59  ;;  %v892_v12 = vadd.f32 %v891_v18, %v890_v2  ;;  %v849_v7 = vmul.f32 %v821_v19, %v821_v19 }
  0xf7   : > { %v1132_v14 = vmul.f32 %v1897_v43, %v821_v19  ;;  %1506 = vrsqrt.f32 %v763_v5  ;;  %v755_v4 = vsel %vm716_vm1, %v715_v8, 0.0  ;;  %v935_v48 = vand.u32 2147483648, %v1974_v21 }
  0xf8   : > { %v926_v15 = vsel %vm925_vm2, %v1949_v57, %v924_v40  ;;  %1508 = vrsqrt.f32 %v2011_v23  ;;  %v2025_v20 = vmax.f32 %v892_v12, 1e-08  ;;  %v857_v3 = vmul.f32 %v829_v9, %v829_v9 }
  0xf9   : > { %v929_v16 = vsel %vm927_vm3, %v928_v62, %v926_v15  ;;  %1165 = vst.msk [vmem:[%s1928_s24 + $0x28] sm:$0xff] %vm716_vm1, %v1132_v14  ;;  %v865_v24 = vmul.f32 %v837_v6, %v837_v6  ;;  %v893_v25 = vsel %vm716_vm1, %v849_v7, 0.0  ;;  %v1140_v8 = vmul.f32 %v1897_v43, %v829_v9 }
  0xfa   : > { %v1505_v22 = vpop.eup %1504  ;;  %980 = vperm.xlu1 %1490, %v929_v16   ;;  %v1148_v57 = vmul.f32 %v1897_v43, %v837_v6  ;;  %vm934_vm5 = vcmp.eq.f32.partialorder %v1974_v21, 0.0  ;;  %1510 = vrsqrt.f32 %v2025_v20  ;;  %v894_v28 = vsel %vm716_vm1, %v857_v3, 0.0 }
  0xfb   : > { %v931_v60 = vmul.f32 %v1505_v22, %v1974_v21  ;;  %v896_v62 = vsel %vm716_vm1, %v865_v24, 0.0  ;;  %1173 = vst.msk [vmem:[%s1928_s24 + $0x68] sm:$0xff] %vm716_vm1, %v1140_v8  ;;  %v756_v29 = vadd.f32 %v755_v4, %v1966_v41  ;;  %v895_v33 = vadd.f32 %v894_v28, %v893_v25 }
  0xfc   : > { %1181 = vst.msk [vmem:[%s1928_s24 + $0xa8] sm:$0xff] %vm716_vm1, %v1148_v57  ;;  %v692_v36 = vmul.f32 %v2033_v26, %v2033_v26  ;;  %v700_v37 = vmul.f32 %v2036_v31, %v2036_v31  ;;  %v708_v42 = vmul.f32 %v2042_v61, %v2042_v61  ;;  %vm939_vm6 = vcmp.eq.f32.partialorder %v2011_v23, inf }
  0xfd   : > { %v933_v32 = vsel %vm932_vm4, %v1974_v21, %v931_v60  ;;  %v764_v38 = vmax.f32 %v756_v29, 1e-08  ;;  %v897_v44 = vadd.f32 %v896_v62, %v895_v33  ;;  %v942_v51 = vand.u32 2147483648, %v2011_v23 }
  0xfe   : > { %v936_v34 = vsel %vm934_vm5, %v935_v48, %v933_v32  ;;  %v717_v41 = vsel %vm716_vm1, %v692_v36, 0.0  ;;  %v718_v45 = vsel %vm716_vm1, %v700_v37, 0.0  ;;  %v720_v49 = vsel %vm716_vm1, %v708_v42, 0.0 }
  0xff   : > { %985 = vperm.xlu1 %1490, %v936_v34   ;;  %1512 = vrsqrt.f32 %v764_v38  ;;  %v719_v21 = vadd.f32 %v718_v45, %v717_v41  ;;  %v913_v52 = vmax.f32 %v897_v44, 1e-08  ;;  %vm941_vm7 = vcmp.eq.f32.partialorder %v2011_v23, 0.0 }
 0x100   : > { %vm946_vm8 = vcmp.eq.f32.partialorder %v2025_v20, inf  ;;  %vm948_vm9 = vcmp.eq.f32.partialorder %v2025_v20, 0.0 }
 0x101   : > { %v1507_v50 = vpop.eup %1506  ;;  %v721_v18 = vadd.f32 %v720_v49, %v719_v21  ;;  %1514 = vrsqrt.f32 %v913_v52  ;;  %vm953_vm10 = vcmp.eq.f32.partialorder %v913_v52, inf  ;;  %vm955_vm11 = vcmp.eq.f32.partialorder %v913_v52, 0.0 }
 0x102   : > { %v1509_v58 = vpop.eup %1508  ;;  %v787_v59 = vmul.f32 %v1507_v50, %v1873_v17  ;;  %v795_v63 = vmul.f32 %v1507_v50, %v1881_v27  ;;  %v803_v2 = vmul.f32 %v1507_v50, %v1884_v30  ;;  %v949_v27 = vand.u32 2147483648, %v2025_v20 }
 0x103   : > { %v938_v19 = vmul.f32 %v1509_v58, %v2011_v23  ;;  %v757_v30 = vmax.f32 %v721_v18, 1e-08 }
 0x104   : > { %v822_v5 = vmul.f32 %v1890_v35, %v787_v59  ;;  %v830_v40 = vmul.f32 %v1890_v35, %v795_v63  ;;  %v838_v9 = vmul.f32 %v1890_v35, %v803_v2  ;;  %v1511_v6 = vpop.eup %1510 }
 0x105   : > { %v940_v17 = vsel %vm939_vm6, %v2011_v23, %v938_v19  ;;  %v945_v7 = vmul.f32 %v1511_v6, %v2025_v20  ;;  %1516 = vrsqrt.f32 %v757_v30 }
 0x106   : > { %v943_v12 = vsel %vm941_vm7, %v942_v51, %v940_v17  ;;  %v850_v14 = vmul.f32 %v822_v5, %v822_v5  ;;  %v858_v15 = vmul.f32 %v830_v40, %v830_v40  ;;  %v866_v4 = vmul.f32 %v838_v9, %v838_v9 }
 0x107   : > { %990 = vperm.xlu1 %1490, %v943_v12   ;;  %v1133_v16 = vmul.f32 %v1897_v43, %v822_v5  ;;  %v1141_v48 = vmul.f32 %v1897_v43, %v830_v40  ;;  %v1149_v23 = vmul.f32 %v1897_v43, %v838_v9  ;;  %v947_v3 = vsel %vm946_vm8, %v2025_v20, %v945_v7 }
 0x108   : > { %v898_v22 = vsel %vm716_vm1, %v850_v14, 0.0  ;;  %v899_v24 = vsel %vm716_vm1, %v858_v15, 0.0  ;;  %v950_v25 = vsel %vm948_vm9, %v949_v27, %v947_v3  ;;  %v901_v57 = vsel %vm716_vm1, %v866_v4, 0.0 }
 0x109   : > { %v900_v8 = vadd.f32 %v899_v24, %v898_v22  ;;  %1166 = vst.msk [vmem:[%s1928_s24 + $0x30] sm:$0xff] %vm716_vm1, %v1133_v16  ;;  %1174 = vst.msk [vmem:[%s1928_s24 + $0x70] sm:$0xff] %vm716_vm1, %v1141_v48  ;;  %v1513_v60 = vpop.eup %1512  ;;  %v956_v20 = vand.u32 2147483648, %v913_v52 }
 0x10a   : > { %1182 = vst.msk [vmem:[%s1928_s24 + $0xb0] sm:$0xff] %vm716_vm1, %v1149_v23  ;;  %v788_v62 = vmul.f32 %v1513_v60, %v1894_v39  ;;  %v796_v29 = vmul.f32 %v1513_v60, %v1907_v53  ;;  %v804_v32 = vmul.f32 %v1513_v60, %v1947_v56 }
 0x10b   : > { %995 = vperm.xlu1 %1490, %v950_v25   ;;  %v902_v28 = vadd.f32 %v901_v57, %v900_v8  ;;  %v1515_v33 = vpop.eup %1514 }
 0x10c   : > { %v823_v37 = vmul.f32 %v1890_v35, %v788_v62  ;;  %v831_v34 = vmul.f32 %v1890_v35, %v796_v29  ;;  %v839_v38 = vmul.f32 %v1890_v35, %v804_v32  ;;  %v952_v42 = vmul.f32 %v1515_v33, %v913_v52 }
 0x10d   : > { %v914_v36 = vmax.f32 %v902_v28, 1e-08 }
 0x10e   : > { %v954_v39 = vsel %vm953_vm10, %v913_v52, %v952_v42  ;;  %v851_v53 = vmul.f32 %v823_v37, %v823_v37  ;;  %v859_v44 = vmul.f32 %v831_v34, %v831_v34  ;;  %v867_v56 = vmul.f32 %v839_v38, %v839_v38 }
 0x10f   : > { %1518 = vrsqrt.f32 %v914_v36  ;;  %v957_v41 = vsel %vm955_vm11, %v956_v20, %v954_v39  ;;  %v1134_v45 = vmul.f32 %v1897_v43, %v823_v37  ;;  %v1142_v21 = vmul.f32 %v1897_v43, %v831_v34  ;;  %v1517_v50 = vpop.eup %1516 }
 0x110   : > { %v1150_v49 = vmul.f32 %v1897_v43, %v839_v38  ;;  %1000 = vperm.xlu1 %1490, %v957_v41   ;;  %v903_v51 = vsel %vm716_vm1, %v851_v53, 0.0  ;;  %v904_v58 = vsel %vm716_vm1, %v859_v44, 0.0  ;;  %v906_v59 = vsel %vm716_vm1, %v867_v56, 0.0 }
 0x111   : > { %v905_v52 = vadd.f32 %v904_v58, %v903_v51  ;;  %1167 = vst.msk [vmem:[%s1928_s24 + $0x38] sm:$0xff] %vm716_vm1, %v1134_v45  ;;  %1175 = vst.msk [vmem:[%s1928_s24 + $0x78] sm:$0xff] %vm716_vm1, %v1142_v21  ;;  %v781_v63 = vmul.f32 %v1517_v50, %v2033_v26  ;;  %v789_v2 = vmul.f32 %v1517_v50, %v2036_v31  ;;  %vm960_vm12 = vcmp.eq.f32.partialorder %v914_v36, inf }
 0x112   : > { %1183 = vst.msk [vmem:[%s1928_s24 + $0xb8] sm:$0xff] %vm716_vm1, %v1150_v49  ;;  %v797_v18 = vmul.f32 %v1517_v50, %v2042_v61  ;;  %vm962_vm13 = vcmp.eq.f32.partialorder %v914_v36, 0.0  ;;  %v963_v7 = vand.u32 2147483648, %v914_v36 }
 0x113   : > { %v907_v19 = vadd.f32 %v906_v59, %v905_v52  ;;  %v816_v5 = vmul.f32 %v1890_v35, %v781_v63  ;;  %v824_v40 = vmul.f32 %v1890_v35, %v789_v2 }
 0x114   : > { %v832_v9 = vmul.f32 %v1890_v35, %v797_v18 }
 0x115   : > { %v915_v6 = vmax.f32 %v907_v19, 1e-08  ;;  %v844_v17 = vmul.f32 %v816_v5, %v816_v5  ;;  %v852_v27 = vmul.f32 %v824_v40, %v824_v40  ;;  %v1127_v26 = vmul.f32 %v1897_v43, %v816_v5 }
 0x116   : > { %v860_v30 = vmul.f32 %v832_v9, %v832_v9  ;;  %v1135_v31 = vmul.f32 %v1897_v43, %v824_v40  ;;  %v1143_v61 = vmul.f32 %v1897_v43, %v832_v9  ;;  %v1431_v40 = vld [vmem:[%s2249_s2] ss:$0 sm:$0xff] }
 0x117   : > { %1520 = vrsqrt.f32 %v915_v6  ;;  %v868_v35 = vsel %vm716_vm1, %v844_v17, 0.0  ;;  %v869_v15 = vsel %vm716_vm1, %v852_v27, 0.0  ;;  %1160 = vst.msk [vmem:[%s1928_s24] sm:$0xff] %vm716_vm1, %v1127_v26  ;;  %vm967_vm14 = vcmp.eq.f32.partialorder %v915_v6, inf  ;;  %v1432_v26 = vld [vmem:[%s2250_s3] ss:$0 sm:$0xff] }
 0x118   : > { %v871_v4 = vsel %vm716_vm1, %v860_v30, 0.0  ;;  %1168 = vst.msk [vmem:[%s1928_s24 + $0x40] sm:$0xff] %vm716_vm1, %v1135_v31  ;;  %1176 = vst.msk [vmem:[%s1928_s24 + $0x80] sm:$0xff] %vm716_vm1, %v1143_v61  ;;  %v870_v16 = vadd.f32 %v869_v15, %v868_v35  ;;  %v970_v24 = vand.u32 2147483648, %v915_v6  ;;  %vm969_vm15 = vcmp.eq.f32.partialorder %v915_v6, 0.0 }
 0x119   : > { %v1519_v12 = vpop.eup %1518 }
 0x11a   : > { %v959_v14 = vmul.f32 %v1519_v12, %v914_v36  ;;  %v872_v23 = vadd.f32 %v871_v4, %v870_v16 }
 0x11c   : > { %v961_v43 = vsel %vm960_vm12, %v914_v36, %v959_v14  ;;  %v908_v3 = vmax.f32 %v872_v23, 1e-08 }
 0x11d   : > { %v964_v48 = vsel %vm962_vm13, %v963_v7, %v961_v43 }
 0x11e   : > { %1005 = vperm.xlu1 %1490, %v964_v48   ;;  %1522 = vrsqrt.f32 %v908_v3  ;;  %vm918_vm2 = vcmp.eq.f32.partialorder %v908_v3, inf  ;;  %v921_v28 = vand.u32 2147483648, %v908_v3  ;;  %vm920_vm1 = vcmp.eq.f32.partialorder %v908_v3, 0.0 }
 0x121   : > { %v1521_v22 = vpop.eup %1520 }
 0x122   : > { %v966_v25 = vmul.f32 %v1521_v22, %v915_v6 }
 0x124   : > { %v968_v8 = vsel %vm967_vm14, %v915_v6, %v966_v25 }
 0x125   : > { %v971_v57 = vsel %vm969_vm15, %v970_v24, %v968_v8 }
 0x126   : > { %1010 = vperm.xlu1 %1490, %v971_v57  }
 0x128   : > { %v1523_v60 = vpop.eup %1522 }
 0x129   : > { %v917_v29 = vmul.f32 %v1523_v60, %v908_v3 }
 0x12b   : > { %v919_v20 = vsel %vm918_vm2, %v908_v3, %v917_v29 }
 0x12c   : > { %v922_v36 = vsel %vm920_vm1, %v921_v28, %v919_v20 }
 0x12d   : > { %975 = vperm.xlu0 %1489, %v922_v36  }
 0x157   : > { %v610_v62 = vpop.xlane.xlu0 %609 }
 0x158   : > { %v632_v32 = vmul.f32 0.0625, %v610_v62 }
 0x15a   : > { %v640_v33 = vadd.f32 1e-05, %v632_v32 }
 0x15b   : > { %v613_v37 = vpop.xlane.xlu1 %612  ;;  %v622_v34 = vpop.xlane.xlu0 %621 }
 0x15c   : > { %1524 = vrsqrt.f32 %v640_v33  ;;  %v633_v38 = vmul.f32 0.0625, %v613_v37  ;;  %v636_v42 = vmul.f32 0.0625, %v622_v34 }
 0x15e   : > { %v641_v39 = vadd.f32 1e-05, %v633_v38  ;;  %v644_v53 = vadd.f32 1e-05, %v636_v42 }
 0x15f   : > { %v625_v44 = vpop.xlane.xlu1 %624  ;;  %v616_v56 = vpop.xlane.xlu0 %615 }
 0x160   : > { %1526 = vrsqrt.f32 %v641_v39  ;;  %v637_v41 = vmul.f32 0.0625, %v625_v44  ;;  %v634_v45 = vmul.f32 0.0625, %v616_v56 }
 0x161   : > { %1528 = vrsqrt.f32 %v644_v53 }
 0x162   : > { %v645_v21 = vadd.f32 1e-05, %v637_v41  ;;  %v642_v49 = vadd.f32 1e-05, %v634_v45  ;;  %v1438_v41 = vld [vmem:[%s2254_s7] ss:$0 sm:$0xff] }
 0x163   : > { %v619_v50 = vpop.xlane.xlu1 %618  ;;  %v628_v51 = vpop.xlane.xlu0 %627 }
 0x164   : > { %1530 = vrsqrt.f32 %v645_v21  ;;  %v635_v58 = vmul.f32 0.0625, %v619_v50  ;;  %v638_v59 = vmul.f32 0.0625, %v628_v51 }
 0x165   : > { %1532 = vrsqrt.f32 %v642_v49 }
 0x166   : > { %v1525_v52 = vpop.eup %1524  ;;  %v643_v63 = vadd.f32 1e-05, %v635_v58  ;;  %v646_v2 = vadd.f32 1e-05, %v638_v59 }
 0x167   : > { %v631_v18 = vpop.xlane.xlu1 %630  ;;  %v656_v19 = vmul.f32 %v1525_v52, %v1738_v46 }
 0x168   : > { %1534 = vrsqrt.f32 %v643_v63  ;;  %v639_v5 = vmul.f32 0.0625, %v631_v18 }
 0x169   : > { %1536 = vrsqrt.f32 %v646_v2  ;;  %v670_v30 = vmul.f32 %v1431_v40, %v656_v19 }
 0x16a   : > { %v1527_v9 = vpop.eup %1526  ;;  %v647_v6 = vadd.f32 1e-05, %v639_v5 }
 0x16b   : > { %v1529_v17 = vpop.eup %1528  ;;  %v657_v27 = vmul.f32 %v1527_v9, %v1746_v54  ;;  %v684_v7 = vadd.f32 %v1432_v26, %v670_v30 }
 0x16c   : > { %1538 = vrsqrt.f32 %v647_v6  ;;  %v660_v46 = vmul.f32 %v1529_v17, %v1740_v47 }
 0x16d   : > { %v671_v31 = vmul.f32 %v1431_v40, %v657_v27 }
 0x16e   : > { %v1531_v61 = vpop.eup %1530  ;;  %v674_v15 = vmul.f32 %v1431_v40, %v660_v46 }
 0x16f   : > { %v1533_v12 = vpop.eup %1532  ;;  %v685_v14 = vadd.f32 %v1432_v26, %v671_v31  ;;  %v661_v35 = vmul.f32 %v1531_v61, %v1748_v55 }
 0x170   : > { %v658_v4 = vmul.f32 %v1533_v12, %v1756_v0  ;;  %v688_v3 = vadd.f32 %v1432_v26, %v674_v15 }
 0x171   : > { %v840_v16 = vpack.c.bf16 %v685_v14, %v684_v7  ;;  %v675_v54 = vmul.f32 %v1431_v40, %v661_v35 }
 0x172   : > { %v1535_v43 = vpop.eup %1534  ;;  %v672_v22 = vmul.f32 %v1431_v40, %v658_v4 }
 0x173   : > { %v1537_v48 = vpop.eup %1536  ;;  %v659_v23 = vmul.f32 %v1535_v43, %v1758_v1  ;;  %1452 = vmatprep.mubr.msk.bf16.mxu0 %vm558_vm0, %v840_v16  ;;  %v689_v47 = vadd.f32 %v1432_v26, %v675_v54  ;;  %v1276_v54 = vld [vmem:[%s1928_s24] sm:$0xff] (%p1657_p5)  ;;  %v1278_v43 = vld [vmem:[%s1928_s24 + $0x8] sm:$0xff] (%p1657_p5) }
 0x174   : > { %v662_v24 = vmul.f32 %v1537_v48, %v1766_v10  ;;  %v686_v0 = vadd.f32 %v1432_v26, %v672_v22  ;;  %v1280_v48 = vld [vmem:[%s1928_s24 + $0x10] sm:$0xff] (%p1657_p5)  ;;  %1277 = vst [vmem:[%s2190_s17] sm:$0xff] (%p1657_p5), %v1276_v54  ;;  %1279 = vst [vmem:[%s2190_s17 + $0x8] sm:$0xff] (%p1657_p5), %v1278_v43 }
 0x175   : > { %v842_v25 = vpack.c.bf16 %v689_v47, %v688_v3  ;;  %v673_v8 = vmul.f32 %v1431_v40, %v659_v23  ;;  %v1282_v23 = vld [vmem:[%s1928_s24 + $0x18] sm:$0xff] (%p1657_p5)  ;;  %v1284_v3 = vld [vmem:[%s1928_s24 + $0x20] sm:$0xff] (%p1657_p5)  ;;  %v1286_v47 = vld [vmem:[%s1928_s24 + $0x28] sm:$0xff] (%p1657_p5)  ;;  %1281 = vst [vmem:[%s2190_s17 + $0x10] sm:$0xff] (%p1657_p5), %v1280_v48 }
 0x176   : > { %v1539_v57 = vpop.eup %1538  ;;  %v676_v28 = vmul.f32 %v1431_v40, %v662_v24  ;;  %1283 = vst [vmem:[%s2190_s17 + $0x18] sm:$0xff] (%p1657_p5), %v1282_v23  ;;  %1285 = vst [vmem:[%s2190_s17 + $0x20] sm:$0xff] (%p1657_p5), %v1284_v3  ;;  %v1288_v22 = vld [vmem:[%s1928_s24 + $0x30] sm:$0xff] (%p1657_p5)  ;;  %v1290_v24 = vld [vmem:[%s1928_s24 + $0x38] sm:$0xff] (%p1657_p5) }
 0x177   : > { %v663_v55 = vmul.f32 %v1539_v57, %v1768_v11  ;;  %1456 = vmatprep.mubr.msk.bf16.mxu1 %vm558_vm0, %v842_v25  ;;  %v687_v60 = vadd.f32 %v1432_v26, %v673_v8  ;;  %v808_v11 = vld [vmem:[%s2253_s6] sm:$0x1]  ;;  %1287 = vst [vmem:[%s2190_s17 + $0x28] sm:$0xff] (%p1657_p5), %v1286_v47  ;;  %v1292_v25 = vld [vmem:[%s1928_s24 + $0x40] sm:$0xff] (%p1657_p5)  ;;  %1289 = vst [vmem:[%s2190_s17 + $0x30] sm:$0xff] (%p1657_p5), %v1288_v22 }
 0x178   : > { %v690_v1 = vadd.f32 %v1432_v26, %v676_v28  ;;  %v972_v38 = vunpack.c.l.bf16 %v808_v11  ;;  %1291 = vst [vmem:[%s2190_s17 + $0x38] sm:$0xff] (%p1657_p5), %v1290_v24  ;;  %1293 = vst [vmem:[%s2190_s17 + $0x80] sm:$0xff] (%p1657_p5), %v1292_v25  ;;  %v1294_v8 = vld [vmem:[%s1928_s24 + $0x48] sm:$0xff] (%p1657_p5)  ;;  %v1296_v57 = vld [vmem:[%s1928_s24 + $0x50] sm:$0xff] (%p1657_p5) }
 0x179   : > { %v841_v62 = vpack.c.bf16 %v687_v60, %v686_v0  ;;  %v677_v29 = vmul.f32 %v1431_v40, %v663_v55  ;;  %v981_v10 = vpop.permute.xlu1 %980  ;;  %v1298_v55 = vld [vmem:[%s1928_s24 + $0x58] sm:$0xff] (%p1657_p5)  ;;  %1295 = vst [vmem:[%s2190_s17 + $0x88] sm:$0xff] (%p1657_p5), %v1294_v8  ;;  %1297 = vst [vmem:[%s2190_s17 + $0x90] sm:$0xff] (%p1657_p5), %v1296_v57  ;;  %v1300_v0 = vld [vmem:[%s1928_s24 + $0x60] sm:$0xff] (%p1657_p5) }
 0x17a   : > { %v1016_v42 = vrot.slane %v972_v38, %v1865_v13  ;;  %1299 = vst [vmem:[%s2190_s17 + $0x98] sm:$0xff] (%p1657_p5), %v1298_v55  ;;  %v1302_v60 = vld [vmem:[%s1928_s24 + $0x68] sm:$0xff] (%p1657_p5)  ;;  %v1304_v28 = vld [vmem:[%s1928_s24 + $0x70] sm:$0xff] (%p1657_p5)  ;;  %1301 = vst [vmem:[%s2190_s17 + $0xa0] sm:$0xff] (%p1657_p5), %v1300_v0 }
 0x17b   : > { %1453 = vmatmul.mubr.msk.bf16.vlgmr.msra.gmra.mrb[0].mxu0 %vm558_vm0, %v841_v62  ;;  %v691_v32 = vadd.f32 %v1432_v26, %v677_v29  ;;  %1303 = vst [vmem:[%s2190_s17 + $0xa8] sm:$0xff] (%p1657_p5), %v1302_v60  ;;  %1305 = vst [vmem:[%s2190_s17 + $0xb0] sm:$0xff] (%p1657_p5), %v1304_v28  ;;  %v1306_v62 = vld [vmem:[%s1928_s24 + $0x78] sm:$0xff] (%p1657_p5)  ;;  %v1308_v29 = vld [vmem:[%s1928_s24 + $0x80] sm:$0xff] (%p1657_p5) }
 0x17c   : > { %v1018_v13 = vmul.f32 %v1016_v42, %v981_v10  ;;  %1307 = vst [vmem:[%s2190_s17 + $0xb8] sm:$0xff] (%p1657_p5), %v1306_v62  ;;  %1309 = vst [vmem:[%s2190_s17 + $0x100] sm:$0xff] (%p1657_p5), %v1308_v29  ;;  %v1316_v10 = vld [vmem:[%s1928_s24 + $0xa0] sm:$0xff] (%p1657_p5) }
 0x17d   : > { %v843_v20 = vpack.c.bf16 %v691_v32, %v690_v1  ;;  %v1310_v1 = vld [vmem:[%s1928_s24 + $0x88] sm:$0xff] (%p1657_p5)  ;;  %v1312_v32 = vld [vmem:[%s1928_s24 + $0x90] sm:$0xff] (%p1657_p5)  ;;  %1317 = vst [vmem:[%s2190_s17 + $0x120] sm:$0xff] (%p1657_p5), %v1316_v10 }
 0x17e   : > { %v986_v33 = vpop.permute.xlu1 %985  ;;  %1311 = vst [vmem:[%s2190_s17 + $0x108] sm:$0xff] (%p1657_p5), %v1310_v1  ;;  %1313 = vst [vmem:[%s2190_s17 + $0x110] sm:$0xff] (%p1657_p5), %v1312_v32 }
 0x17f   : > { %1457 = vmatmul.mubr.msk.bf16.vlgmr.msra.gmra.mrb[0].mxu1 %vm558_vm0, %v843_v20  ;;  %v1019_v56 = vmul.f32 %v1016_v42, %v986_v33  ;;  %vm1151_vm0 = vcmask 261120   ;;  %v1314_v20 = vld [vmem:[%s1928_s24 + $0x98] sm:$0xff] (%p1657_p5)  ;;  %v1318_v33 = vld [vmem:[%s1928_s24 + $0xa8] sm:$0xff] (%p1657_p5) }
 0x180   : > { %1315 = vst [vmem:[%s2190_s17 + $0x118] sm:$0xff] (%p1657_p5), %v1314_v20  ;;  %1319 = vst [vmem:[%s2190_s17 + $0x128] sm:$0xff] (%p1657_p5), %v1318_v33 }
 0x186   : > { %v991_v36 = vpop.permute.xlu1 %990 }
 0x187   : > { %v1020_v21 = vmul.f32 %v1016_v42, %v991_v36  ;;  %v1320_v36 = vld [vmem:[%s1928_s24 + $0xb0] sm:$0xff] (%p1657_p5) }
 0x188   : > { %1321 = vst [vmem:[%s2190_s17 + $0x130] sm:$0xff] (%p1657_p5), %v1320_v36 }
 0x18a   : > { %v996_v37 = vpop.permute.xlu1 %995 }
 0x18b   : > { %v1021_v19 = vmul.f32 %v1016_v42, %v996_v37  ;;  %v1322_v37 = vld [vmem:[%s1928_s24 + $0xb8] sm:$0xff] (%p1657_p5) }
 0x18c   : > { %1323 = vst [vmem:[%s2190_s17 + $0x138] sm:$0xff] (%p1657_p5), %v1322_v37 }
 0x18f   : > { %v1001_v34 = vpop.permute.xlu1 %1000 }
 0x190   : > { %v1022_v26 = vmul.f32 %v1016_v42, %v1001_v34 }
 0x19d   : > { %v1006_v53 = vpop.permute.xlu1 %1005 }
 0x19e   : > { %v1023_v52 = vmul.f32 %v1016_v42, %v1006_v53 }
 0x1a5   : > { %v1011_v51 = vpop.permute.xlu1 %1010 }
 0x1a6   : > { %v1024_v6 = vmul.f32 %v1016_v42, %v1011_v51 }
 0x1ac   : > { %v976_v39 = vpop.permute.xlu0 %975 }
 0x1ad   : > { %v1017_v44 = vmul.f32 %v1016_v42, %v976_v39 }
 0x24e   : > { %v1454_v45 = vpop.f32.mrb[0].mxu0 }
 0x24f   : > { %v1086_v49 = vadd.f32 %v1454_v45, %v1019_v56  ;;  %v1077_v50 = vpop.f32.mrb[1].mxu0 }
 0x250   : > { %v1078_v58 = vadd.f32 %v1077_v50, %v1017_v44  ;;  %v1455_v59 = vpop.f32.mrb[2].mxu0 }
 0x251   : > { %v1116_v63 = vadd.f32 %v1438_v41, %v1086_v49  ;;  %v1089_v2 = vadd.f32 %v1455_v59, %v1020_v21  ;;  %v1080_v18 = vpop.f32.mrb[3].mxu0 }
 0x252   : > { %v1114_v5 = vadd.f32 %v1438_v41, %v1078_v58  ;;  %v1081_v40 = vadd.f32 %v1080_v18, %v1018_v13  ;;  %v1458_v9 = vpop.f32.mrb[0].mxu1 }
 0x253   : > { %1154 = vst.msk [vmem:[%s2163_s19 + $0x10] sm:$0xff] %vm1151_vm0, %v1116_v63  ;;  %v1117_v17 = vadd.f32 %v1438_v41, %v1089_v2  ;;  %v1102_v27 = vadd.f32 %v1458_v9, %v1023_v52  ;;  %v1093_v30 = vpop.f32.mrb[1].mxu1 }
 0x254   : > { %1152 = vst.msk [vmem:[%s2163_s19] sm:$0xff] %vm1151_vm0, %v1114_v5  ;;  %v1115_v46 = vadd.f32 %v1438_v41, %v1081_v40  ;;  %v1094_v31 = vadd.f32 %v1093_v30, %v1021_v19  ;;  %v1459_v61 = vpop.f32.mrb[2].mxu1  ;;  %1199 = sbr.rel (!%p1657_p5) target bundleno = 603 (0x25b), region = 102 }
 0x255   : > { %1155 = vst.msk [vmem:[%s2163_s19 + $0x18] sm:$0xff] %vm1151_vm0, %v1117_v17  ;;  %v1120_v12 = vadd.f32 %v1438_v41, %v1102_v27  ;;  %v1105_v7 = vadd.f32 %v1459_v61, %v1024_v6  ;;  %v1096_v14 = vpop.f32.mrb[3].mxu1 }
 0x256   : > { %1153 = vst.msk [vmem:[%s2163_s19 + $0x8] sm:$0xff] %vm1151_vm0, %v1115_v46  ;;  %v1118_v35 = vadd.f32 %v1438_v41, %v1094_v31  ;;  %v1097_v15 = vadd.f32 %v1096_v14, %v1022_v26 }
 0x257   : > { %1158 = vst.msk [vmem:[%s2163_s19 + $0x30] sm:$0xff] %vm1151_vm0, %v1120_v12  ;;  %v1121_v4 = vadd.f32 %v1438_v41, %v1105_v7 }
 0x258   : > { %1156 = vst.msk [vmem:[%s2163_s19 + $0x20] sm:$0xff] %vm1151_vm0, %v1118_v35  ;;  %v1119_v16 = vadd.f32 %v1438_v41, %v1097_v15 }
 0x259   : > { %1159 = vst.msk [vmem:[%s2163_s19 + $0x38] sm:$0xff] %vm1151_vm0, %v1121_v4 }
 0x25a   : > { %1157 = vst.msk [vmem:[%s2163_s19 + $0x28] sm:$0xff] %vm1151_vm0, %v1119_v16 }
 0x25b PF: > { %p22_p11 = scmp.ge.s32.totalorder %s1645_s8, 4   ;;  %s2259_s17 = smov %s1558_s18 }
 0x25c   : > { %s2260_s18 = smov %s1655_s22  ;;  %s2261_s19 = smov %s1645_s8 }
 0x25d   :  { %24 = sbr.rel (!%p22_p11) target bundleno = 5 (0x5), region = 182 }

// kernel: drug_gvp_forward.17
= control target key start
LH: loop header
LB: loop body
LE: loop exit
PB: predicated region body
PF: predicated region fallthrough
CT: control target
= control target key end

     0   :  { %s1319_s27 = smov 0   ;;  %s1321_s28 = smov 0   ;;  %s1561_s0 = inlined_call_operand.vmem [shape: f32[64,128], index: 0, kind: input, shape index: {}]   ;;  %s1562_s1 = inlined_call_operand.vmem [shape: f32[3,64,64], index: 1, kind: input, shape index: {}]   ;;  %s1563_s2 = inlined_call_operand.vmem [shape: f32[1,128], index: 2, kind: input, shape index: {}]   ;;  %s1564_s3 = inlined_call_operand.vmem [shape: f32[1,128], index: 3, kind: input, shape index: {}]   ;;  %s1565_s4 = inlined_call_operand.vmem [shape: bf16[64,64], index: 4, kind: input, shape index: {}]   ;;  %s1566_s5 = inlined_call_operand.vmem [shape: bf16[128,128], index: 5, kind: input, shape index: {}]   ;;  %s1567_s6 = inlined_call_operand.vmem [shape: bf16[64,128], index: 6, kind: input, shape index: {}]   ;;  %s1568_s7 = inlined_call_operand.vmem [shape: f32[1,128], index: 7, kind: input, shape index: {}]   ;;  %s1569_s8 = inlined_call_operand.vmem [shape: f32[64,128], index: 8, kind: output, shape index: {}]  }
   0x1   :  { %s1323_s29 = smov 0  }
   0x2 LB: > { %s1061_s30 = sadd.s32 4294967295, %s1272_s29   ;;  %s1336_s9 = sadd.s32 1, %s1272_s29   ;;  %s1272_s29 = sphi %s1323_s29, %s1572_s29   ;;  %s1268_s28 = sphi %s1321_s28, %s1571_s28   ;;  %s1264_s27 = sphi %s1319_s27, %s1570_s27  }
   0x3   : > { %s48_s10 = ssub.s32 %s1272_s29, %s1336_s9  ;;  %s51_s11 = sadd.s32 1, %s1268_s28 }
   0x4   : > { %p49_p0 = scmp.eq.s32.totalorder %s48_s10, 0  ;;  %p58_p1 = scmp.ne.s32.totalorder %s1268_s28, %s1264_s27 }
   0x5   : > { %p59_p2 = scmp.eq.s32.totalorder %s1272_s29, 0  ;;  %p1064_p4 = scmp.ge.s32.totalorder %s1272_s29, 2 }
   0x6   : > { %s1345_s12 = scalar_select %p49_p0, %s1268_s28, %s51_s11  }
   0x7   : > { %p60_p3 = por %p59_p2, %p58_p1  ;;  %254 = sbr.rel (%p1064_p4) target bundleno = 25 (0x19), region = 40 }
   0xe   : > { %266 = sbr.rel (!%p60_p3) target bundleno = 25 (0x19), region = 48  ;;  %s268_s13 = sand.u32 (%p60_p3), 1, %s1268_s28  }
   0xf   : > { %s1101_s14 = sshll.u32 (%p60_p3), %s1272_s29, 5  ;;  %s1184_s15 = smul.u32 (%p60_p3), 96, %s268_s13 }
  0x10   : > { %s273_s18 = scalar_lea.vmem (%p60_p3), %s1562_s1, %s1101_s14 }
  0x11   : > { %v323_v0 = vld [vmem:[%s273_s18] sm:$0xff] (%p60_p3)  ;;  %v325_v1 = vld [vmem:[%s273_s18 + $0x8] sm:$0xff] (%p60_p3)  ;;  %v327_v2 = vld [vmem:[%s273_s18 + $0x10] sm:$0xff] (%p60_p3)  ;;  %s270_s19 = scalar_lea.vmem (%p60_p3), [#allocation2], %s1184_s15 }
  0x12   : > { %v329_v3 = vld [vmem:[%s273_s18 + $0x18] sm:$0xff] (%p60_p3)  ;;  %v331_v4 = vld [vmem:[%s273_s18 + $0x40] sm:$0xff] (%p60_p3)  ;;  %v333_v5 = vld [vmem:[%s273_s18 + $0x48] sm:$0xff] (%p60_p3)  ;;  %324 = vst [vmem:[%s270_s19] sm:$0xff] (%p60_p3), %v323_v0 }
  0x13   : > { %326 = vst [vmem:[%s270_s19 + $0x8] sm:$0xff] (%p60_p3), %v325_v1  ;;  %328 = vst [vmem:[%s270_s19 + $0x10] sm:$0xff] (%p60_p3), %v327_v2  ;;  %v335_v6 = vld [vmem:[%s273_s18 + $0x50] sm:$0xff] (%p60_p3)  ;;  %v337_v7 = vld [vmem:[%s273_s18 + $0x58] sm:$0xff] (%p60_p3) }
  0x14   : > { %330 = vst [vmem:[%s270_s19 + $0x18] sm:$0xff] (%p60_p3), %v329_v3  ;;  %332 = vst [vmem:[%s270_s19 + $0x20] sm:$0xff] (%p60_p3), %v331_v4  ;;  %v339_v8 = vld [vmem:[%s273_s18 + $0x80] sm:$0xff] (%p60_p3)  ;;  %v341_v9 = vld [vmem:[%s273_s18 + $0x88] sm:$0xff] (%p60_p3) }
  0x15   : > { %334 = vst [vmem:[%s270_s19 + $0x28] sm:$0xff] %v333_v5  ;;  %336 = vst [vmem:[%s270_s19 + $0x30] sm:$0xff] %v335_v6  ;;  %v343_v10 = vld [vmem:[%s273_s18 + $0x90] sm:$0xff]  ;;  %v345_v11 = vld [vmem:[%s273_s18 + $0x98] sm:$0xff] }
  0x16   : > { %338 = vst [vmem:[%s270_s19 + $0x38] sm:$0xff] %v337_v7  ;;  %340 = vst [vmem:[%s270_s19 + $0x40] sm:$0xff] %v339_v8 }
  0x17   : > { %342 = vst [vmem:[%s270_s19 + $0x48] sm:$0xff] %v341_v9  ;;  %344 = vst [vmem:[%s270_s19 + $0x50] sm:$0xff] %v343_v10 }
  0x18   : > { %346 = vst [vmem:[%s270_s19 + $0x58] sm:$0xff] %v345_v11 }
  0x19 PF: > { %p1067_p5 = scmp.ge.s32.totalorder %s1272_s29, 1  ;;  %p351_p6 = scmp.lt.s32.totalorder %s1272_s29, 3 }
  0x1b   : > { %p352_p7 = pnand %p1067_p5, %p351_p6 }
  0x1c   : > { %s358_s20 = sand.u32 (!%p352_p7), 1, %s1264_s27   ;;  %s1358_s22 = sshll.u32 (!%p352_p7), %s1061_s30, 2  ;;  %vm505_vm0 = vcmask (!%p352_p7), 523264   ;;  %v1210_v4 = vld [vmem:[%s1565_s4] sm:$0xff] (!%p352_p7)   ;;  %v1211_v5 = vld [vmem:[%s1565_s4 + $0x8] sm:$0xff] (!%p352_p7)   ;;  %v1212_v6 = vld [vmem:[%s1565_s4 + $0x10] sm:$0xff] (!%p352_p7)  }
  0x1d   : > { %355 = sbr.rel (%p352_p7) target bundleno = 688 (0x2b0), region = 86  ;;  %p397_p8 = scmp.lt.s32.totalorder (!%p352_p7), %s1358_s22, 7  ;;  %1128 = vmatprep.subr.bf16.mxu0 (!%p352_p7), %v1210_v4  ;;  %v1213_v7 = vld [vmem:[%s1565_s4 + $0x18] sm:$0xff] (!%p352_p7)   ;;  %v1214_v8 = vld [vmem:[%s1566_s5] sm:$0xff] (!%p352_p7)   ;;  %v1215_v9 = vld [vmem:[%s1566_s5 + $0x8] sm:$0xff] (!%p352_p7)  }
  0x1e   : > { %s1185_s21 = smul.u32 (!%p352_p7), 96, %s358_s20  ;;  %1129 = vmatpush3.bf16.msra.mxu0 (!%p352_p7), %v1210_v4  ;;  %1160 = vmatprep.subr.bf16.mxu1 (!%p352_p7), %v1214_v8 }
  0x1f   : > { %1130 = vmatprep.subr.bf16.mxu0 (!%p352_p7), %v1211_v5  ;;  %1161 = vmatpush3.bf16.msra.mxu1 (!%p352_p7), %v1214_v8 }
  0x20   : > { %s360_s23 = scalar_lea.vmem (!%p352_p7), [#allocation2], %s1185_s21  ;;  %1162 = vmatprep.subr.bf16.mxu1 (!%p352_p7), %v1215_v9 }
  0x21   : > { %v1360_v12 = vld [vmem:[%s360_s23 + $0x10] sm:$0xff] (!%p352_p7)  ;;  %v1372_v18 = vld [vmem:[%s360_s23] sm:$0xff] (!%p352_p7)  ;;  %v1385_v24 = vld [vmem:[%s360_s23 + $0x18] sm:$0xff] (!%p352_p7) }
  0x22   : > { %v1362_v13 = vld [vmem:[%s360_s23 + $0x30] sm:$0xff] (!%p352_p7)  ;;  %v495_v15 = vmul.f32 (!%p352_p7), %v1360_v12, %v1360_v12  ;;  %v1374_v19 = vld [vmem:[%s360_s23 + $0x20] sm:$0xff] (!%p352_p7)  ;;  %v493_v21 = vmul.f32 (!%p352_p7), %v1372_v18, %v1372_v18  ;;  %v1387_v25 = vld [vmem:[%s360_s23 + $0x38] sm:$0xff] (!%p352_p7)  ;;  %v496_v30 = vmul.f32 (!%p352_p7), %v1385_v24, %v1385_v24  ;;  %1131 = vmatpush3.bf16.msra.mxu0 (!%p352_p7), %v1211_v5 }
  0x23   : > { %v1364_v14 = vld [vmem:[%s360_s23 + $0x50] sm:$0xff] (!%p352_p7)  ;;  %v499_v16 = vmul.f32 (!%p352_p7), %v1362_v13, %v1362_v13  ;;  %v1376_v20 = vld [vmem:[%s360_s23 + $0x40] sm:$0xff] (!%p352_p7)  ;;  %v497_v22 = vmul.f32 (!%p352_p7), %v1374_v19, %v1374_v19  ;;  %v1389_v26 = vld [vmem:[%s360_s23 + $0x58] sm:$0xff] (!%p352_p7)  ;;  %v500_v39 = vmul.f32 (!%p352_p7), %v1387_v25, %v1387_v25  ;;  %1132 = vmatprep.subr.bf16.mxu0 (!%p352_p7), %v1212_v6  ;;  %1163 = vmatpush3.bf16.msra.mxu1 (!%p352_p7), %v1215_v9 }
  0x24   : > { %v503_v17 = vmul.f32 %v1364_v14, %v1364_v14  ;;  %v501_v23 = vmul.f32 %v1376_v20, %v1376_v20  ;;  %v516_v27 = vsel %vm505_vm0, %v495_v15, 0.0  ;;  %v1396_v31 = vld [vmem:[%s360_s23 + $0x8] sm:$0xff]  ;;  %v506_v35 = vsel %vm505_vm0, %v493_v21, 0.0  ;;  %s1574_s22 = smov (!%p397_p8, %s1358_s22), 7 }
  0x25   : > { %v517_v28 = vsel %vm505_vm0, %v499_v16, 0.0  ;;  %v1398_v32 = vld [vmem:[%s360_s23 + $0x28] sm:$0xff]  ;;  %v507_v36 = vsel %vm505_vm0, %v497_v22, 0.0  ;;  %v504_v40 = vmul.f32 %v1389_v26, %v1389_v26  ;;  %v521_v41 = vsel %vm505_vm0, %v496_v30, 0.0  ;;  %s1069_s24 = sshll.u32 %s1574_s22, 3 }
  0x26   : > { %v519_v29 = vsel %vm505_vm0, %v503_v17, 0.0  ;;  %v1400_v33 = vld [vmem:[%s360_s23 + $0x48] sm:$0xff]  ;;  %v518_v34 = vadd.f32 %v517_v28, %v516_v27  ;;  %v509_v37 = vsel %vm505_vm0, %v501_v23, 0.0  ;;  %v508_v38 = vadd.f32 %v507_v36, %v506_v35  ;;  %s400_s27 = scalar_lea.vmem %s1561_s0, %s1069_s24  ;;  %1133 = vmatpush3.bf16.msra.mxu0 %v1212_v6  ;;  %s407_s15 = scalar_lea.vmem %s1569_s8, %s1069_s24 }
  0x27   : > { %v494_v43 = vmul.f32 %v1396_v31, %v1396_v31  ;;  %v498_v44 = vmul.f32 %v1398_v32, %v1398_v32  ;;  %v502_v45 = vmul.f32 %v1400_v33, %v1400_v33  ;;  %v522_v47 = vsel %vm505_vm0, %v500_v39, 0.0  ;;  %v411_v0 = vld [vmem:[%s400_s27 + $0x8] sm:$0xff]  ;;  %v410_v1 = vld [vmem:[%s400_s27] sm:$0xff]  ;;  %v413_v2 = vld [vmem:[%s400_s27 + $0x18] sm:$0xff]  ;;  %1134 = vmatprep.subr.bf16.mxu0 %v1213_v7 }
  0x28   : > { %v520_v42 = vadd.f32 %v519_v29, %v518_v34  ;;  %v510_v46 = vadd.f32 %v509_v37, %v508_v38  ;;  %v524_v48 = vsel %vm505_vm0, %v504_v40, 0.0  ;;  %v523_v50 = vadd.f32 %v522_v47, %v521_v41  ;;  %v412_v3 = vld [vmem:[%s400_s27 + $0x10] sm:$0xff] }
  0x29   : > { %v511_v51 = vsel %vm505_vm0, %v494_v43, 0.0  ;;  %v512_v52 = vsel %vm505_vm0, %v498_v44, 0.0  ;;  %v514_v55 = vsel %vm505_vm0, %v502_v45, 0.0 }
  0x2a   : > { %v528_v49 = vmax.f32 %v520_v42, 1e-08  ;;  %v526_v53 = vmax.f32 %v510_v46, 1e-08  ;;  %v513_v54 = vadd.f32 %v512_v52, %v511_v51  ;;  %v525_v57 = vadd.f32 %v524_v48, %v523_v50  ;;  %1135 = vmatpush3.bf16.msra.mxu0 %v1213_v7 }
  0x2c   : > { %v536_v56 = vsel %vm505_vm0, %v528_v49, 0.0  ;;  %v530_v58 = vsel %vm505_vm0, %v526_v53, 0.0  ;;  %v515_v59 = vadd.f32 %v514_v55, %v513_v54  ;;  %v529_v60 = vmax.f32 %v525_v57, 1e-08 }
  0x2d   : > { %537 = vadd.xlane.f32.xlu1 %v536_v56  ;;  %531 = vadd.xlane.f32.xlu0 %v530_v58 }
  0x2e   : > { %v527_v61 = vmax.f32 %v515_v59, 1e-08  ;;  %v539_v62 = vsel %vm505_vm0, %v529_v60, 0.0 }
  0x30   : > { %v533_v63 = vsel %vm505_vm0, %v527_v61, 0.0  ;;  %v1219_v61 = vld [vmem:[%s1566_s5 + $0x28] sm:$0xff]  }
  0x31   : > { %540 = vadd.xlane.f32.xlu1 %v539_v62  ;;  %534 = vadd.xlane.f32.xlu0 %v533_v63  ;;  %v1222_v62 = vld [vmem:[%s1567_s6] sm:$0xff]   ;;  %v1223_v63 = vld [vmem:[%s1567_s6 + $0x8] sm:$0xff]  }
  0x32   : > { %1148 = vmatprep.subr.bf16.mxu0 %v1222_v62 }
  0x35   : > { %430 = vadd.xlane.f32.xlu1 %v411_v0  ;;  %428 = vadd.xlane.f32.xlu0 %v410_v1 }
  0x39   : > { %434 = vadd.xlane.f32.xlu1 %v413_v2  ;;  %432 = vadd.xlane.f32.xlu0 %v412_v3 }
  0xba   : > { %v538_v10 = vpop.xlane.xlu1 %537  ;;  %v532_v15 = vpop.xlane.xlu0 %531 }
  0xbb   : > { %v545_v11 = vmul.f32 0.015625, %v538_v10  ;;  %v543_v16 = vmul.f32 0.015625, %v532_v15 }
  0xbd   : > { %1226 = vrsqrt.f32 %v545_v11 }
  0xbe   : > { %v541_v17 = vpop.xlane.xlu1 %540  ;;  %v535_v22 = vpop.xlane.xlu0 %534  ;;  %1228 = vrsqrt.f32 %v543_v16 }
  0xbf   : > { %v546_v21 = vmul.f32 0.015625, %v541_v17  ;;  %v544_v23 = vmul.f32 0.015625, %v535_v22 }
  0xc1   : > { %1230 = vrsqrt.f32 %v546_v21  ;;  %v1072_v21 = vld [vmem:[%s1563_s2] ss:$0 sm:$0xff] }
  0xc2   : > { %1232 = vrsqrt.f32 %v544_v23  ;;  %v431_v27 = vpop.xlane.xlu1 %430  ;;  %v429_v29 = vpop.xlane.xlu0 %428 }
  0xc3   : > { %v438_v28 = vmul.f32 0.0078125, %v431_v27  ;;  %v437_v30 = vmul.f32 0.0078125, %v429_v29  ;;  %v1073_v27 = vld [vmem:[%s1564_s3] ss:$0 sm:$0xff] }
  0xc5   : > { %v1454_v34 = vsub.f32 %v411_v0, %v438_v28  ;;  %v1456_v35 = vsub.f32 %v410_v1, %v437_v30  ;;  %v1224_v0 = vld [vmem:[%s1567_s6 + $0x10] sm:$0xff]   ;;  %v1225_v1 = vld [vmem:[%s1567_s6 + $0x18] sm:$0xff]  }
  0xc6   : > { %v435_v36 = vpop.xlane.xlu1 %434  ;;  %v433_v38 = vpop.xlane.xlu0 %432 }
  0xc7   : > { %v440_v37 = vmul.f32 0.0078125, %v435_v36  ;;  %v446_v39 = vmul.f32 %v1454_v34, %v1454_v34  ;;  %v439_v40 = vmul.f32 0.0078125, %v433_v38  ;;  %v445_v41 = vmul.f32 %v1456_v35, %v1456_v35  ;;  %v1227_v42 = vpop.eup %1226 }
  0xc8   : > { %v1229_v44 = vpop.eup %1228  ;;  %v553_v50 = vmul.f32 %v1227_v42, %v1360_v12 }
  0xc9   : > { %v1462_v43 = vsub.f32 %v413_v2, %v440_v37  ;;  %451 = vadd.xlane.f32.xlu1 %v446_v39  ;;  %v1464_v45 = vsub.f32 %v412_v3, %v439_v40  ;;  %449 = vadd.xlane.f32.xlu0 %v445_v41  ;;  %v551_v52 = vmul.f32 %v1229_v44, %v1372_v18 }
  0xca   : > { %v555_v57 = vmul.f32 %v1229_v44, %v1374_v19  ;;  %v1216_v19 = vld [vmem:[%s1566_s5 + $0x10] sm:$0xff]  }
  0xcb   : > { %v1231_v46 = vpop.eup %1230  ;;  %v448_v47 = vmul.f32 %v1462_v43, %v1462_v43  ;;  %v447_v49 = vmul.f32 %v1464_v45, %v1464_v45  ;;  %1164 = vmatprep.subr.bf16.mxu1 %v1216_v19 }
  0xcc   : > { %v1233_v48 = vpop.eup %1232  ;;  %v554_v51 = vmul.f32 %v1231_v46, %v1385_v24  ;;  %v558_v12 = vmul.f32 %v1231_v46, %v1387_v25  ;;  %v557_v24 = vmul.f32 %v1227_v42, %v1362_v13  ;;  %v562_v60 = vmul.f32 %v1231_v46, %v1389_v26  ;;  %1165 = vmatpush3.bf16.msra.mxu1 %v1216_v19  ;;  %v1217_v13 = vld [vmem:[%s1566_s5 + $0x18] sm:$0xff]  }
  0xcd   : > { %455 = vadd.xlane.f32.xlu1 %v448_v47  ;;  %v552_v53 = vmul.f32 %v1233_v48, %v1396_v31  ;;  %v556_v54 = vmul.f32 %v1233_v48, %v1398_v32  ;;  %453 = vadd.xlane.f32.xlu0 %v447_v49  ;;  %v560_v18 = vmul.f32 %v1233_v48, %v1400_v33  ;;  %v1218_v33 = vld [vmem:[%s1566_s5 + $0x20] sm:$0xff]   ;;  %v1221_v26 = vld [vmem:[%s1566_s5 + $0x38] sm:$0xff]  }
  0xce   : > { %v597_v55 = vpack.c.bf16 %v554_v51, %v553_v50  ;;  %v559_v31 = vmul.f32 %v1229_v44, %v1376_v20  ;;  %v599_v32 = vpack.c.bf16 %v558_v12, %v557_v24  ;;  %v561_v20 = vmul.f32 %v1227_v42, %v1364_v14  ;;  %1166 = vmatprep.subr.bf16.mxu1 %v1217_v13  ;;  %v1220_v14 = vld [vmem:[%s1566_s5 + $0x30] sm:$0xff]  }
  0xcf   : > { %v596_v56 = vpack.c.bf16 %v552_v53, %v551_v52  ;;  %v598_v58 = vpack.c.bf16 %v556_v54, %v555_v57 }
  0xd0   : > { %v600_v59 = vpack.c.bf16 %v560_v18, %v559_v31  ;;  %v601_v25 = vpack.c.bf16 %v562_v60, %v561_v20  ;;  %1167 = vmatpush3.bf16.msra.mxu1 %v1217_v13 }
  0xd1   : > { %1136 = vmatprep.mubr.msk.bf16.mxu0 %vm505_vm0, %v596_v56  ;;  %1168 = vmatprep.subr.bf16.mxu1 %v1218_v33 }
  0xd2   : > { %1137 = vmatmul.mubr.msk.bf16.vlgmr.msra.gmra.mrb[0].mxu0 %vm505_vm0, %v597_v55 }
  0xd3   : > { %1140 = vmatprep.mubr.msk.bf16.mxu0 %vm505_vm0, %v598_v58  ;;  %1149 = vmatpush3.bf16.msra.mxu0 %v1222_v62 }
  0xd4   : > { %1169 = vmatpush3.bf16.msra.mxu1 %v1218_v33  ;;  %1150 = vmatprep.subr.bf16.mxu0 %v1223_v63 }
  0xd5   : > { %1170 = vmatprep.subr.bf16.mxu1 %v1219_v61 }
  0xd7   : > { %1151 = vmatpush3.bf16.msra.mxu0 %v1223_v63 }
  0xd8   : > { %1171 = vmatpush3.bf16.msra.mxu1 %v1219_v61  ;;  %1152 = vmatprep.subr.bf16.mxu0 %v1224_v0 }
  0xd9   : > { %1172 = vmatprep.subr.bf16.mxu1 %v1220_v14 }
  0xda   : > { %1141 = vmatmul.mubr.msk.bf16.gmra.mrb[4].mxu0 %vm505_vm0, %v599_v32 }
  0xdb   : > { %1144 = vmatprep.mubr.msk.bf16.mxu0 %vm505_vm0, %v600_v59  ;;  %1153 = vmatpush3.bf16.msra.mxu0 %v1224_v0 }
  0xdc   : > { %1173 = vmatpush3.bf16.msra.mxu1 %v1220_v14  ;;  %1154 = vmatprep.subr.bf16.mxu0 %v1225_v1 }
  0xdd   : > { %1174 = vmatprep.subr.bf16.mxu1 %v1221_v26 }
  0xdf   : > { %1155 = vmatpush3.bf16.msra.mxu0 %v1225_v1 }
  0xe0   : > { %1175 = vmatpush3.bf16.msra.mxu1 %v1221_v26 }
  0xe2   : > { %1145 = vmatmul.mubr.msk.bf16.gmra.mrb[8].mxu0 %vm505_vm0, %v601_v25 }
 0x156   : > { %v452_v2 = vpop.xlane.xlu1 %451  ;;  %v450_v4 = vpop.xlane.xlu0 %449 }
 0x157   : > { %v458_v3 = vmul.f32 0.0078125, %v452_v2  ;;  %v457_v5 = vmul.f32 0.0078125, %v450_v4 }
 0x159   : > { %v462_v6 = vadd.f32 1e-05, %v458_v3  ;;  %v461_v7 = vadd.f32 1e-05, %v457_v5 }
 0x15a   : > { %v456_v8 = vpop.xlane.xlu1 %455  ;;  %v454_v10 = vpop.xlane.xlu0 %453 }
 0x15b   : > { %1234 = vrsqrt.f32 %v462_v6  ;;  %v460_v9 = vmul.f32 0.0078125, %v456_v8  ;;  %v459_v11 = vmul.f32 0.0078125, %v454_v10 }
 0x15c   : > { %1236 = vrsqrt.f32 %v461_v7 }
 0x15d   : > { %v464_v15 = vadd.f32 1e-05, %v460_v9  ;;  %v463_v16 = vadd.f32 1e-05, %v459_v11 }
 0x15f   : > { %1238 = vrsqrt.f32 %v464_v15 }
 0x160   : > { %1240 = vrsqrt.f32 %v463_v16 }
 0x165   : > { %v1235_v17 = vpop.eup %1234 }
 0x166   : > { %v1237_v22 = vpop.eup %1236  ;;  %v470_v23 = vmul.f32 %v1235_v17, %v1454_v34 }
 0x167   : > { %v469_v28 = vmul.f32 %v1237_v22, %v1456_v35 }
 0x168   : > { %v480_v29 = vmul.f32 %v1072_v21, %v470_v23 }
 0x169   : > { %v1239_v30 = vpop.eup %1238  ;;  %v479_v36 = vmul.f32 %v1072_v21, %v469_v28 }
 0x16a   : > { %v1241_v37 = vpop.eup %1240  ;;  %v490_v38 = vadd.f32 %v1073_v27, %v480_v29  ;;  %v472_v39 = vmul.f32 %v1239_v30, %v1462_v43 }
 0x16b   : > { %v489_v40 = vadd.f32 %v1073_v27, %v479_v36  ;;  %v471_v41 = vmul.f32 %v1241_v37, %v1464_v45 }
 0x16c   : > { %v482_v42 = vmul.f32 %v1072_v21, %v472_v39 }
 0x16d   : > { %v725_v44 = vpack.c.bf16 %v490_v38, %v489_v40  ;;  %v481_v46 = vmul.f32 %v1072_v21, %v471_v41 }
 0x16e   : > { %v492_v34 = vadd.f32 %v1073_v27, %v482_v42 }
 0x16f   : > { %1176 = vmatprep.mubr.bf16.mxu1 %v725_v44  ;;  %v491_v47 = vadd.f32 %v1073_v27, %v481_v46 }
 0x171   : > { %v726_v48 = vpack.c.bf16 %v492_v34, %v491_v47 }
 0x173   : > { %1177 = vmatmul.mubr.bf16.vlgmr.msra.gmra.mrb[0].mxu1 %v726_v48 }
 0x1a5   : > { %v1138_v49 = vpop.f32.mrb[0].mxu0 }
 0x1a6   : > { %v678_v35 = vpop.f32.mrb[1].mxu0  ;;  %v729_v52 = vmul.f32 %v1138_v49, %v1138_v49 }
 0x1a7   : > { %v1139_v50 = vpop.f32.mrb[2].mxu0  ;;  %v727_v53 = vmul.f32 %v678_v35, %v678_v35 }
 0x1a8   : > { %v681_v51 = vpop.f32.mrb[3].mxu0  ;;  %v730_v55 = vmul.f32 %v1139_v50, %v1139_v50  ;;  %v749_v12 = vsel %vm505_vm0, %v729_v52, 0.0 }
 0x1a9   : > { %v728_v57 = vmul.f32 %v681_v51, %v681_v51  ;;  %v739_v32 = vsel %vm505_vm0, %v727_v53, 0.0 }
 0x1aa   : > { %v754_v13 = vsel %vm505_vm0, %v730_v55, 0.0 }
 0x1ab   : > { %v744_v33 = vsel %vm505_vm0, %v728_v57, 0.0 }
 0x1ad   : > { %v1142_v54 = vpop.f32.mrb[4].mxu0 }
 0x1ae   : > { %v733_v43 = vmul.f32 %v1142_v54, %v1142_v54  ;;  %v694_v56 = vpop.f32.mrb[5].mxu0 }
 0x1af   : > { %v731_v45 = vmul.f32 %v694_v56, %v694_v56  ;;  %v1143_v58 = vpop.f32.mrb[6].mxu0 }
 0x1b0   : > { %v750_v18 = vsel %vm505_vm0, %v733_v43, 0.0  ;;  %v734_v24 = vmul.f32 %v1143_v58, %v1143_v58  ;;  %v697_v31 = vpop.f32.mrb[7].mxu0 }
 0x1b1   : > { %v751_v59 = vadd.f32 %v750_v18, %v749_v12  ;;  %v740_v19 = vsel %vm505_vm0, %v731_v45, 0.0  ;;  %v732_v60 = vmul.f32 %v697_v31, %v697_v31  ;;  %v1098_v45 = vld [vmem:[%s1568_s7] ss:$0 sm:$0xff] }
 0x1b2   : > { %v741_v20 = vadd.f32 %v740_v19, %v739_v32  ;;  %v755_v25 = vsel %vm505_vm0, %v734_v24, 0.0 }
 0x1b3   : > { %v756_v61 = vadd.f32 %v755_v25, %v754_v13  ;;  %v745_v14 = vsel %vm505_vm0, %v732_v60, 0.0 }
 0x1b4   : > { %v746_v26 = vadd.f32 %v745_v14, %v744_v33 }
 0x1b5   : > { %v1146_v62 = vpop.f32.mrb[8].mxu0 }
 0x1b6   : > { %v737_v63 = vmul.f32 %v1146_v62, %v1146_v62  ;;  %v710_v0 = vpop.f32.mrb[9].mxu0 }
 0x1b7   : > { %v735_v1 = vmul.f32 %v710_v0, %v710_v0  ;;  %v1147_v2 = vpop.f32.mrb[10].mxu0 }
 0x1b8   : > { %v752_v3 = vsel %vm505_vm0, %v737_v63, 0.0  ;;  %v738_v4 = vmul.f32 %v1147_v2, %v1147_v2  ;;  %v713_v5 = vpop.f32.mrb[11].mxu0 }
 0x1b9   : > { %v753_v6 = vadd.f32 %v752_v3, %v751_v59  ;;  %v742_v7 = vsel %vm505_vm0, %v735_v1, 0.0  ;;  %v736_v8 = vmul.f32 %v713_v5, %v713_v5 }
 0x1ba   : > { %v743_v9 = vadd.f32 %v742_v7, %v741_v20  ;;  %v757_v10 = vsel %vm505_vm0, %v738_v4, 0.0 }
 0x1bb   : > { %v761_v11 = vmax.f32 %v753_v6, 1e-08  ;;  %v758_v15 = vadd.f32 %v757_v10, %v756_v61  ;;  %v747_v16 = vsel %vm505_vm0, %v736_v8, 0.0 }
 0x1bc   : > { %v759_v17 = vmax.f32 %v743_v9, 1e-08  ;;  %v748_v21 = vadd.f32 %v747_v16, %v746_v26 }
 0x1bd   : > { %1242 = vrsqrt.f32 %v761_v11  ;;  %v762_v22 = vmax.f32 %v758_v15, 1e-08  ;;  %vm779_vm1 = vcmp.eq.f32.partialorder %v761_v11, inf  ;;  %v782_v36 = vand.u32 2147483648, %v761_v11 }
 0x1be   : > { %1244 = vrsqrt.f32 %v759_v17  ;;  %v760_v23 = vmax.f32 %v748_v21, 1e-08  ;;  %vm765_vm2 = vcmp.eq.f32.partialorder %v759_v17, inf  ;;  %vm767_vm3 = vcmp.eq.f32.partialorder %v759_v17, 0.0 }
 0x1bf   : > { %1246 = vrsqrt.f32 %v762_v22  ;;  %vm786_vm4 = vcmp.eq.f32.partialorder %v762_v22, inf  ;;  %v789_v40 = vand.u32 2147483648, %v762_v22  ;;  %v768_v44 = vand.u32 2147483648, %v759_v17 }
 0x1c0   : > { %1248 = vrsqrt.f32 %v760_v23  ;;  %vm772_vm5 = vcmp.eq.f32.partialorder %v760_v23, inf  ;;  %v775_v34 = vand.u32 2147483648, %v760_v23  ;;  %vm781_vm6 = vcmp.eq.f32.partialorder %v761_v11, 0.0 }
 0x1c1   : > { %vm788_vm7 = vcmp.eq.f32.partialorder %v762_v22, 0.0  ;;  %vm774_vm8 = vcmp.eq.f32.partialorder %v760_v23, 0.0 }
 0x1c7   : > { %v1243_v27 = vpop.eup %1242 }
 0x1c8   : > { %v1245_v28 = vpop.eup %1244  ;;  %v778_v29 = vmul.f32 %v1243_v27, %v761_v11 }
 0x1c9   : > { %v1247_v30 = vpop.eup %1246  ;;  %v764_v37 = vmul.f32 %v1245_v28, %v759_v17 }
 0x1ca   : > { %v1249_v38 = vpop.eup %1248  ;;  %v785_v39 = vmul.f32 %v1247_v30, %v762_v22  ;;  %v780_v41 = vsel %vm779_vm1, %v761_v11, %v778_v29 }
 0x1cb   : > { %v766_v42 = vsel %vm765_vm2, %v759_v17, %v764_v37  ;;  %v771_v46 = vmul.f32 %v1249_v38, %v760_v23  ;;  %v783_v49 = vsel %vm781_vm6, %v782_v36, %v780_v41 }
 0x1cc   : > { %v787_v47 = vsel %vm786_vm4, %v762_v22, %v785_v39  ;;  %v769_v50 = vsel %vm767_vm3, %v768_v44, %v766_v42 }
 0x1cd   : > { %v773_v48 = vsel %vm772_vm5, %v760_v23, %v771_v46  ;;  %v790_v35 = vsel %vm788_vm7, %v789_v40, %v787_v47 }
 0x1ce   : > { %v776_v51 = vsel %vm774_vm8, %v775_v34, %v773_v48  ;;  %v792_v52 = vpack.c.bf16 %v790_v35, %v783_v49 }
 0x1cf   : > { %v791_v53 = vpack.c.bf16 %v776_v51, %v769_v50 }
 0x1d1   : > { %1156 = vmatprep.mubr.msk.bf16.mxu0 %vm505_vm0, %v791_v53 }
 0x1d2   : > { %1157 = vmatmul.mubr.msk.bf16.vlgmr.msra.gmra.mrb[12].mxu0 %vm505_vm0, %v792_v52 }
 0x246   : > { %v1178_v54 = vpop.f32.mrb[0].mxu1 }
 0x247   : > { %v954_v55 = vpop.f32.mrb[1].mxu1 }
 0x248   : > { %v1179_v43 = vpop.f32.mrb[2].mxu1 }
 0x249   : > { %v957_v56 = vpop.f32.mrb[3].mxu1 }
 0x2a5   : > { %v1158_v57 = vpop.f32.mrb[12].mxu0 }
 0x2a6   : > { %v963_v58 = vadd.f32 %v1178_v54, %v1158_v57  ;;  %v857_v12 = vpop.f32.mrb[13].mxu0 }
 0x2a7   : > { %v955_v18 = vadd.f32 %v954_v55, %v857_v12  ;;  %v1159_v24 = vpop.f32.mrb[14].mxu0 }
 0x2a8   : > { %v966_v31 = vadd.f32 %v1179_v43, %v1159_v24  ;;  %v860_v32 = vpop.f32.mrb[15].mxu0  ;;  %v977_v60 = vadd.f32 %v1098_v45, %v963_v58 }
 0x2a9   : > { %v975_v59 = vadd.f32 %v1098_v45, %v955_v18  ;;  %v958_v19 = vadd.f32 %v957_v56, %v860_v32 }
 0x2aa   : > { %v978_v20 = vadd.f32 %v1098_v45, %v966_v31  ;;  %v981_v61 = vmax.f32 %v977_v60, 0.0 }
 0x2ab   : > { %v979_v13 = vmax.f32 %v975_v59, 0.0  ;;  %v976_v25 = vadd.f32 %v1098_v45, %v958_v19 }
 0x2ac   : > { %v982_v14 = vmax.f32 %v978_v20, 0.0  ;;  %985 = vst [vmem:[%s407_s15 + $0x10] sm:$0xff] %v981_v61 }
 0x2ad   : > { %983 = vst [vmem:[%s407_s15] sm:$0xff] %v979_v13  ;;  %v980_v33 = vmax.f32 %v976_v25, 0.0 }
 0x2ae   : > { %986 = vst [vmem:[%s407_s15 + $0x18] sm:$0xff] %v982_v14 }
 0x2af   : > { %984 = vst [vmem:[%s407_s15 + $0x8] sm:$0xff] %v980_v33 }
 0x2b0 PF: > { %p15_p9 = scmp.ge.s32.totalorder %s1336_s9, 4   ;;  %s1570_s27 = smov %s1268_s28 }
 0x2b1   : > { %s1571_s28 = smov %s1345_s12  ;;  %s1572_s29 = smov %s1336_s9 }
 0x2b2   :  { %17 = sbr.rel (!%p15_p9) target bundleno = 2 (0x2), region = 128 }

// kernel: drug_gvp_forward.11
= control target key start
LH: loop header
LB: loop body
LE: loop exit
PB: predicated region body
PF: predicated region fallthrough
CT: control target
= control target key end

     0   :  { %s7953_s0 = inlined_call_operand.vmem [shape: f32[128,288], index: 0, kind: input, shape index: {}]   ;;  %s7954_s1 = inlined_call_operand.vmem [shape: f32[3,128,128], index: 1, kind: input, shape index: {}]   ;;  %s7955_s2 = inlined_call_operand.vmem [shape: f32[3,128,1], index: 2, kind: input, shape index: {}]   ;;  %s7956_s3 = inlined_call_operand.vmem [shape: bf16[128,256], index: 3, kind: input, shape index: {}]   ;;  %s7957_s4 = inlined_call_operand.vmem [shape: bf16[1,256], index: 4, kind: input, shape index: {}]   ;;  %s7958_s5 = inlined_call_operand.vmem [shape: bf16[288,128], index: 5, kind: input, shape index: {}]   ;;  %s7959_s6 = inlined_call_operand.vmem [shape: bf16[256,128], index: 6, kind: input, shape index: {}]   ;;  %s7960_s7 = inlined_call_operand.vmem [shape: f32[1,128], index: 7, kind: input, shape index: {}]   ;;  %s7961_s8 = inlined_call_operand.vmem [shape: bf16[256,64], index: 8, kind: input, shape index: {}]   ;;  %s7962_s9 = inlined_call_operand.vmem [shape: bf16[64,64], index: 9, kind: input, shape index: {}]   ;;  %s7963_s10 = inlined_call_operand.vmem [shape: bf16[128,128], index: 10, kind: input, shape index: {}]   ;;  %s7964_s11 = inlined_call_operand.vmem [shape: bf16[64,128], index: 11, kind: input, shape index: {}]   ;;  %s7965_s12 = inlined_call_operand.vmem [shape: f32[1,128], index: 12, kind: input, shape index: {}]   ;;  %s7966_s13 = inlined_call_operand.vmem [shape: bf16[64,64], index: 13, kind: input, shape index: {}]   ;;  %s7967_s14 = inlined_call_operand.vmem [shape: bf16[64,64], index: 14, kind: input, shape index: {}]   ;;  %s7968_s15 = inlined_call_operand.vmem [shape: bf16[128,128], index: 15, kind: input, shape index: {}]   ;;  %s7969_s16 = inlined_call_operand.vmem [shape: bf16[64,128], index: 16, kind: input, shape index: {}]   ;;  %s7970_s17 = inlined_call_operand.vmem [shape: f32[1,128], index: 17, kind: input, shape index: {}]   ;;  %s7971_s18 = inlined_call_operand.vmem [shape: bf16[64,64], index: 18, kind: input, shape index: {}]   ;;  %s7972_s19 = inlined_call_operand.vmem [shape: f32[128,128], index: 19, kind: output, shape index: {0}]   ;;  %s7973_s20 = inlined_call_operand.vmem [shape: f32[3,128,64], index: 20, kind: output, shape index: {1}]  }
   0x1   :  { %7977 = sst [smem:[#allocation7_spill]] %s7953_s0 }
   0x2   :  { %7978 = sst [smem:[#allocation8_spill]] %s7954_s1 }
   0x3   :  { %7979 = sst [smem:[#allocation9_spill]] %s7955_s2 }
   0x4   :  { %7980 = sst [smem:[#allocation10_spill]] %s7956_s3 }
   0x5   :  { %7981 = sst [smem:[#allocation11_spill]] %s7957_s4 }
   0x6   :  { %s5994_s1 = smov 0   ;;  %s5996_s22 = smov 0  }
   0x7   :  { %s5998_s23 = smov 0  }
   0x8 LB: > { %s6010_s24 = sadd.s32 4294967295, %s5886_s23   ;;  %s6013_s2 = sadd.s32 1, %s5886_s23   ;;  %s5886_s23 = sphi %s5998_s23, %s7996_s23   ;;  %s5882_s22 = sphi %s5996_s22, %s7999_s22   ;;  %s5878_s1 = sphi %s5994_s1, %s7998_s1  }
   0x9   : > { %7982 = sst [smem:[#allocation5_spill]] %s6013_s2  ;;  %s61_s25 = ssub.s32 %s5886_s23, %s6013_s2 }
   0xa   : > { %s64_s3 = sadd.s32 1, %s5882_s22  ;;  %p62_p0 = scmp.eq.s32.totalorder %s61_s25, 0 }
   0xb   : > { %p71_p1 = scmp.ne.s32.totalorder %s5882_s22, %s5878_s1  ;;  %p72_p2 = scmp.eq.s32.totalorder %s5886_s23, 0 }
   0xc   : > { %p489_p3 = scmp.eq.s32.totalorder %s6010_s24, 1  ;;  %p4835_p6 = scmp.ge.s32.totalorder %s5886_s23, 2 }
   0xd   : > { %s6023_s26 = scalar_select %p62_p0, %s5882_s22, %s64_s3  }
   0xe   : > { %p6025_p4 = por %p72_p2, %p71_p1  ;;  %p6029_p5 = por %p489_p3, %p71_p1 }
   0xf   : > { %7983 = sst [smem:[#allocation6_spill]] %s6023_s26  ;;  %559 = sbr.rel (%p4835_p6) target bundleno = 68 (0x44), region = 80 }
  0x16   : > { %572 = sbr.rel (!%p6025_p4) target bundleno = 45 (0x2d), region = 88  ;;  %s574_s4 = sand.u32 (%p6025_p4), 1, %s5882_s22  }
  0x17   : > { %s5034_s29 = sshll.u32 (%p6025_p4), %s5886_s23, 6  ;;  %s5559_s30 = smul.u32 (%p6025_p4), 192, %s574_s4 }
  0x18   : > { %s7986_s25 = sld [smem:[#allocation8_spill]] (%p6025_p4) }
  0x19   : > { %s6049_s4 = scalar_lea.vmem (%p6025_p4), [#allocation2], %s5559_s30 }
  0x1e   : > { %s6041_s3 = scalar_lea.vmem %s7986_s25, %s5034_s29 }
  0x1f   : > { %v653_v0 = vld [vmem:[%s6041_s3] sm:$0xff]  ;;  %v655_v1 = vld [vmem:[%s6041_s3 + $0x8] sm:$0xff]  ;;  %v657_v2 = vld [vmem:[%s6041_s3 + $0x10] sm:$0xff] }
  0x20   : > { %v659_v3 = vld [vmem:[%s6041_s3 + $0x18] sm:$0xff]  ;;  %v661_v4 = vld [vmem:[%s6041_s3 + $0x20] sm:$0xff]  ;;  %v663_v5 = vld [vmem:[%s6041_s3 + $0x28] sm:$0xff]  ;;  %654 = vst [vmem:[%s6049_s4] sm:$0xff] %v653_v0 }
  0x21   : > { %656 = vst [vmem:[%s6049_s4 + $0x8] sm:$0xff] %v655_v1  ;;  %658 = vst [vmem:[%s6049_s4 + $0x10] sm:$0xff] %v657_v2  ;;  %v665_v6 = vld [vmem:[%s6041_s3 + $0x30] sm:$0xff]  ;;  %v667_v7 = vld [vmem:[%s6041_s3 + $0x38] sm:$0xff] }
  0x22   : > { %660 = vst [vmem:[%s6049_s4 + $0x18] sm:$0xff] %v659_v3  ;;  %662 = vst [vmem:[%s6049_s4 + $0x20] sm:$0xff] %v661_v4  ;;  %v669_v8 = vld [vmem:[%s6041_s3 + $0x80] sm:$0xff]  ;;  %v671_v9 = vld [vmem:[%s6041_s3 + $0x88] sm:$0xff] }
  0x23   : > { %664 = vst [vmem:[%s6049_s4 + $0x28] sm:$0xff] %v663_v5  ;;  %666 = vst [vmem:[%s6049_s4 + $0x30] sm:$0xff] %v665_v6  ;;  %v673_v10 = vld [vmem:[%s6041_s3 + $0x90] sm:$0xff]  ;;  %v675_v11 = vld [vmem:[%s6041_s3 + $0x98] sm:$0xff] }
  0x24   : > { %668 = vst [vmem:[%s6049_s4 + $0x38] sm:$0xff] %v667_v7  ;;  %670 = vst [vmem:[%s6049_s4 + $0x40] sm:$0xff] %v669_v8  ;;  %v677_v12 = vld [vmem:[%s6041_s3 + $0xa0] sm:$0xff]  ;;  %v679_v13 = vld [vmem:[%s6041_s3 + $0xa8] sm:$0xff] }
  0x25   : > { %672 = vst [vmem:[%s6049_s4 + $0x48] sm:$0xff] %v671_v9  ;;  %674 = vst [vmem:[%s6049_s4 + $0x50] sm:$0xff] %v673_v10  ;;  %v681_v14 = vld [vmem:[%s6041_s3 + $0xb0] sm:$0xff]  ;;  %v683_v15 = vld [vmem:[%s6041_s3 + $0xb8] sm:$0xff] }
  0x26   : > { %676 = vst [vmem:[%s6049_s4 + $0x58] sm:$0xff] %v675_v11  ;;  %678 = vst [vmem:[%s6049_s4 + $0x60] sm:$0xff] %v677_v12  ;;  %v685_v16 = vld [vmem:[%s6041_s3 + $0x100] sm:$0xff]  ;;  %v687_v17 = vld [vmem:[%s6041_s3 + $0x108] sm:$0xff] }
  0x27   : > { %680 = vst [vmem:[%s6049_s4 + $0x68] sm:$0xff] %v679_v13  ;;  %682 = vst [vmem:[%s6049_s4 + $0x70] sm:$0xff] %v681_v14  ;;  %v689_v18 = vld [vmem:[%s6041_s3 + $0x110] sm:$0xff]  ;;  %v691_v19 = vld [vmem:[%s6041_s3 + $0x118] sm:$0xff] }
  0x28   : > { %684 = vst [vmem:[%s6049_s4 + $0x78] sm:$0xff] %v683_v15  ;;  %686 = vst [vmem:[%s6049_s4 + $0x80] sm:$0xff] %v685_v16  ;;  %v693_v20 = vld [vmem:[%s6041_s3 + $0x120] sm:$0xff]  ;;  %v695_v21 = vld [vmem:[%s6041_s3 + $0x128] sm:$0xff] }
  0x29   : > { %688 = vst [vmem:[%s6049_s4 + $0x88] sm:$0xff] %v687_v17  ;;  %690 = vst [vmem:[%s6049_s4 + $0x90] sm:$0xff] %v689_v18  ;;  %v697_v22 = vld [vmem:[%s6041_s3 + $0x130] sm:$0xff]  ;;  %v699_v23 = vld [vmem:[%s6041_s3 + $0x138] sm:$0xff] }
  0x2a   : > { %692 = vst [vmem:[%s6049_s4 + $0x98] sm:$0xff] %v691_v19  ;;  %694 = vst [vmem:[%s6049_s4 + $0xa0] sm:$0xff] %v693_v20 }
  0x2b   : > { %696 = vst [vmem:[%s6049_s4 + $0xa8] sm:$0xff] %v695_v21  ;;  %698 = vst [vmem:[%s6049_s4 + $0xb0] sm:$0xff] %v697_v22 }
  0x2c   : > { %700 = vst [vmem:[%s6049_s4 + $0xb8] sm:$0xff] %v699_v23 }
  0x2d PF: > { %706 = sbr.rel (!%p6025_p4) target bundleno = 68 (0x44), region = 126  ;;  %s708_s29 = sand.u32 (%p6025_p4), 1, %s5882_s22  }
  0x2e   : > { %s5035_s30 = sshll.u32 (%p6025_p4), %s5886_s23, 6  ;;  %s5560_s0 = smul.u32 (%p6025_p4), 192, %s708_s29 }
  0x2f   : > { %s7987_s26 = sld [smem:[#allocation9_spill]] (%p6025_p4) }
  0x35   : > { %s6100_s2 = scalar_lea.vmem %s7987_s26, %s5035_s30  ;;  %s6108_s26 = scalar_lea.vmem [#allocation3], %s5560_s0 }
  0x36   : > { %v787_v24 = vld [vmem:[%s6100_s2] sm:$0xff]  ;;  %v789_v25 = vld [vmem:[%s6100_s2 + $0x8] sm:$0xff]  ;;  %v791_v26 = vld [vmem:[%s6100_s2 + $0x10] sm:$0xff] }
  0x37   : > { %v793_v27 = vld [vmem:[%s6100_s2 + $0x18] sm:$0xff]  ;;  %v795_v28 = vld [vmem:[%s6100_s2 + $0x20] sm:$0xff]  ;;  %v797_v29 = vld [vmem:[%s6100_s2 + $0x28] sm:$0xff]  ;;  %788 = vst [vmem:[%s6108_s26] sm:$0xff] %v787_v24 }
  0x38   : > { %790 = vst [vmem:[%s6108_s26 + $0x8] sm:$0xff] %v789_v25  ;;  %792 = vst [vmem:[%s6108_s26 + $0x10] sm:$0xff] %v791_v26  ;;  %v799_v30 = vld [vmem:[%s6100_s2 + $0x30] sm:$0xff]  ;;  %v801_v31 = vld [vmem:[%s6100_s2 + $0x38] sm:$0xff] }
  0x39   : > { %794 = vst [vmem:[%s6108_s26 + $0x18] sm:$0xff] %v793_v27  ;;  %796 = vst [vmem:[%s6108_s26 + $0x20] sm:$0xff] %v795_v28  ;;  %v803_v32 = vld [vmem:[%s6100_s2 + $0x80] sm:$0xff]  ;;  %v805_v33 = vld [vmem:[%s6100_s2 + $0x88] sm:$0xff] }
  0x3a   : > { %798 = vst [vmem:[%s6108_s26 + $0x28] sm:$0xff] %v797_v29  ;;  %800 = vst [vmem:[%s6108_s26 + $0x30] sm:$0xff] %v799_v30  ;;  %v807_v34 = vld [vmem:[%s6100_s2 + $0x90] sm:$0xff]  ;;  %v809_v35 = vld [vmem:[%s6100_s2 + $0x98] sm:$0xff] }
  0x3b   : > { %802 = vst [vmem:[%s6108_s26 + $0x38] sm:$0xff] %v801_v31  ;;  %804 = vst [vmem:[%s6108_s26 + $0x40] sm:$0xff] %v803_v32  ;;  %v811_v36 = vld [vmem:[%s6100_s2 + $0xa0] sm:$0xff]  ;;  %v813_v37 = vld [vmem:[%s6100_s2 + $0xa8] sm:$0xff] }
  0x3c   : > { %806 = vst [vmem:[%s6108_s26 + $0x48] sm:$0xff] %v805_v33  ;;  %808 = vst [vmem:[%s6108_s26 + $0x50] sm:$0xff] %v807_v34  ;;  %v815_v38 = vld [vmem:[%s6100_s2 + $0xb0] sm:$0xff]  ;;  %v817_v39 = vld [vmem:[%s6100_s2 + $0xb8] sm:$0xff] }
  0x3d   : > { %810 = vst [vmem:[%s6108_s26 + $0x58] sm:$0xff] %v809_v35  ;;  %812 = vst [vmem:[%s6108_s26 + $0x60] sm:$0xff] %v811_v36  ;;  %v819_v40 = vld [vmem:[%s6100_s2 + $0x100] sm:$0xff]  ;;  %v821_v41 = vld [vmem:[%s6100_s2 + $0x108] sm:$0xff] }
  0x3e   : > { %814 = vst [vmem:[%s6108_s26 + $0x68] sm:$0xff] %v813_v37  ;;  %816 = vst [vmem:[%s6108_s26 + $0x70] sm:$0xff] %v815_v38  ;;  %v823_v42 = vld [vmem:[%s6100_s2 + $0x110] sm:$0xff]  ;;  %v825_v43 = vld [vmem:[%s6100_s2 + $0x118] sm:$0xff] }
  0x3f   : > { %818 = vst [vmem:[%s6108_s26 + $0x78] sm:$0xff] %v817_v39  ;;  %820 = vst [vmem:[%s6108_s26 + $0x80] sm:$0xff] %v819_v40  ;;  %v827_v44 = vld [vmem:[%s6100_s2 + $0x120] sm:$0xff]  ;;  %v829_v45 = vld [vmem:[%s6100_s2 + $0x128] sm:$0xff] }
  0x40   : > { %822 = vst [vmem:[%s6108_s26 + $0x88] sm:$0xff] %v821_v41  ;;  %824 = vst [vmem:[%s6108_s26 + $0x90] sm:$0xff] %v823_v42  ;;  %v831_v46 = vld [vmem:[%s6100_s2 + $0x130] sm:$0xff]  ;;  %v833_v47 = vld [vmem:[%s6100_s2 + $0x138] sm:$0xff] }
  0x41   : > { %826 = vst [vmem:[%s6108_s26 + $0x98] sm:$0xff] %v825_v43  ;;  %828 = vst [vmem:[%s6108_s26 + $0xa0] sm:$0xff] %v827_v44 }
  0x42   : > { %830 = vst [vmem:[%s6108_s26 + $0xa8] sm:$0xff] %v829_v45  ;;  %832 = vst [vmem:[%s6108_s26 + $0xb0] sm:$0xff] %v831_v46 }
  0x43   : > { %834 = vst [vmem:[%s6108_s26 + $0xb8] sm:$0xff] %v833_v47 }
  0x44 PF: > { %p4840_p7 = scmp.ge.s32.totalorder %s5886_s23, 1  ;;  %p839_p8 = scmp.lt.s32.totalorder %s5886_s23, 3 }
  0x46   : > { %p840_p9 = pnand %p4840_p7, %p839_p8 }
  0x47   : > { %s7988_s4 = sld [smem:[#allocation10_spill]] (!%p840_p9)  ;;  %v5888_v50 = vmov (!%p840_p9), 0   ;;  %s846_s27 = sand.u32 (!%p840_p9), 1, %s5878_s1   ;;  %v5614_v12 = vld [vmem:[%s7961_s8 + $0x40] sm:$0xff] (!%p840_p9)   ;;  %v5616_v19 = vld [vmem:[%s7961_s8 + $0x48] sm:$0xff] (!%p840_p9)   ;;  %v5618_v24 = vld [vmem:[%s7961_s8 + $0x50] sm:$0xff] (!%p840_p9)  }
  0x48   : > { %843 = sbr.rel (%p840_p9) target bundleno = 1857 (0x741), region = 164  ;;  %1105 = vmatprep.mubr.bf16.mxu0 (!%p840_p9), %v5888_v50  ;;  %5588 = vset.pattern.permute.xlu0 (!%p840_p9), %v5888_v50  ;;  %v5615_v17 = vld [vmem:[%s7961_s8] sm:$0xff] (!%p840_p9)   ;;  %v5617_v23 = vld [vmem:[%s7961_s8 + $0x8] sm:$0xff] (!%p840_p9)   ;;  %v5619_v27 = vld [vmem:[%s7961_s8 + $0x10] sm:$0xff] (!%p840_p9)   ;;  %s7989_s29 = sld [smem:[#allocation11_spill]] (!%p840_p9) }
  0x49   : > { %5589 = vset.pattern.permute.xlu1 (!%p840_p9), %v5888_v50  ;;  %s6179_s0 = smul.u32 (!%p840_p9), 192, %s846_s27  ;;  %v5620_v29 = vld [vmem:[%s7961_s8 + $0x58] sm:$0xff] (!%p840_p9)   ;;  %v5622_v35 = vld [vmem:[%s7961_s8 + $0x60] sm:$0xff] (!%p840_p9)   ;;  %v5624_v40 = vld [vmem:[%s7961_s8 + $0x68] sm:$0xff] (!%p840_p9)   ;;  %s4841_s25 = sshll.u32 (!%p840_p9), %s6010_s24, 3 }
  0x4a   : > { %v5621_v33 = vld [vmem:[%s7961_s8 + $0x18] sm:$0xff] (!%p840_p9)   ;;  %v5623_v39 = vld [vmem:[%s7961_s8 + $0x20] sm:$0xff] (!%p840_p9)   ;;  %v5625_v44 = vld [vmem:[%s7961_s8 + $0x28] sm:$0xff] (!%p840_p9)   ;;  %p6715_p10 = scmp.lt.s32.totalorder (!%p840_p9), %s4841_s25, 15  ;;  %s7991_s27 = sld [smem:[#allocation7_spill]] (!%p840_p9) }
  0x4b   : > { %s6188_s26 = scalar_lea.vmem (!%p840_p9), [#allocation3], %s6179_s0  ;;  %s6220_s23 = scalar_lea.vmem (!%p840_p9), [#allocation2], %s6179_s0  ;;  %v5626_v46 = vld [vmem:[%s7961_s8 + $0x70] sm:$0xff] (!%p840_p9)  }
  0x4c   : > { %v1226_v58 = vld [vmem:[%s6188_s26] sm:$0xff] (!%p840_p9)  ;;  %v1228_v60 = vld [vmem:[%s6188_s26 + $0x10] sm:$0xff] (!%p840_p9)  ;;  %v1227_v62 = vld [vmem:[%s6188_s26 + $0x8] sm:$0xff] (!%p840_p9) }
  0x4d   : > { %v5590_v48 = vld [vmem:[%s7988_s4 + $0x4] ss:$8 sps:$4 sm:$0xff] (!%p840_p9)   ;;  %v5592_v49 = vld [vmem:[%s7988_s4] ss:$8 sps:$4 sm:$0xff] (!%p840_p9)   ;;  %v5593_v51 = vld [vmem:[%s7988_s4 + $0x14] ss:$8 sps:$4 sm:$0xff] (!%p840_p9)   ;;  %1254 = vperm.xlu0 (!%p840_p9), %5588, %v1226_v58   ;;  %1264 = vperm.xlu1 (!%p840_p9), %5589, %v1228_v60  }
  0x4e   : > { %1073 = vmatprep.subr.bf16.mxu0 (!%p840_p9), %v5590_v48  ;;  %v5595_v52 = vld [vmem:[%s7988_s4 + $0x10] ss:$8 sps:$4 sm:$0xff] (!%p840_p9)   ;;  %v5596_v53 = vld [vmem:[%s7988_s4 + $0x24] ss:$8 sps:$4 sm:$0xff] (!%p840_p9)   ;;  %v5598_v54 = vld [vmem:[%s7988_s4 + $0x20] ss:$8 sps:$4 sm:$0xff] (!%p840_p9)  }
  0x4f   : > { %1074 = vmatpush1.bf16.msra.mxu0 %v5592_v49  ;;  %v5599_v55 = vld [vmem:[%s7988_s4 + $0x34] ss:$8 sps:$4 sm:$0xff]   ;;  %v5601_v56 = vld [vmem:[%s7988_s4 + $0x30] ss:$8 sps:$4 sm:$0xff]   ;;  %v5602_v57 = vld [vmem:[%s7988_s4 + $0x44] ss:$8 sps:$4 sm:$0xff]  }
  0x50   : > { %1075 = vmatprep.subr.bf16.mxu0 %v5593_v51  ;;  %v5604_v59 = vld [vmem:[%s7988_s4 + $0x40] ss:$8 sps:$4 sm:$0xff]   ;;  %v5605_v61 = vld [vmem:[%s7988_s4 + $0x54] ss:$8 sps:$4 sm:$0xff]   ;;  %v5607_v0 = vld [vmem:[%s7988_s4 + $0x50] ss:$8 sps:$4 sm:$0xff]  }
  0x51   : > { %v1229_v63 = vld [vmem:[%s6188_s26 + $0x18] sm:$0xff]  ;;  %1259 = vperm.xlu0 %5588, %v1227_v62   ;;  %v5608_v1 = vld [vmem:[%s7988_s4 + $0x64] ss:$8 sps:$4 sm:$0xff]   ;;  %v5610_v4 = vld [vmem:[%s7988_s4 + $0x60] ss:$8 sps:$4 sm:$0xff]   ;;  %s8001_s25 = smov (!%p6715_p10, %s4841_s25), 15 }
  0x52   : > { %v1230_v2 = vld [vmem:[%s6188_s26 + $0x20] sm:$0xff]  ;;  %1269 = vperm.xlu1 %5589, %v1229_v63   ;;  %v1231_v3 = vld [vmem:[%s6188_s26 + $0x28] sm:$0xff]  ;;  %v5611_v5 = vld [vmem:[%s7988_s4 + $0x74] ss:$8 sps:$4 sm:$0xff]  }
  0x53   : > { %1076 = vmatpush1.bf16.msra.mxu0 %v5595_v52  ;;  %v1232_v6 = vld [vmem:[%s6188_s26 + $0x30] sm:$0xff]  ;;  %v1233_v8 = vld [vmem:[%s6188_s26 + $0x38] sm:$0xff]  ;;  %v941_v9 = vld [vmem:[%s6220_s23] sm:$0xff] }
  0x54   : > { %1077 = vmatprep.subr.bf16.mxu0 %v5596_v53  ;;  %v5613_v7 = vld [vmem:[%s7988_s4 + $0x70] ss:$8 sps:$4 sm:$0xff]   ;;  %v942_v10 = vld [vmem:[%s6220_s23 + $0x8] sm:$0xff]  ;;  %v1234_v11 = vld [vmem:[%s6188_s26 + $0x40] sm:$0xff] }
  0x55   : > { %1274 = vperm.xlu0 %5588, %v1230_v2   ;;  %v1235_v13 = vld [vmem:[%s6188_s26 + $0x48] sm:$0xff]  ;;  %v981_v14 = vpack.c.bf16 %v942_v10, %v941_v9  ;;  %v1236_v15 = vld [vmem:[%s6188_s26 + $0x50] sm:$0xff]  ;;  %v1237_v16 = vld [vmem:[%s6188_s26 + $0x58] sm:$0xff] }
  0x56   : > { %1279 = vperm.xlu1 %5589, %v1231_v3   ;;  %v943_v18 = vld [vmem:[%s6220_s23 + $0x10] sm:$0xff]  ;;  %v944_v20 = vld [vmem:[%s6220_s23 + $0x18] sm:$0xff]  ;;  %v1238_v21 = vld [vmem:[%s6188_s26 + $0x60] sm:$0xff] }
  0x57   : > { %1078 = vmatpush1.bf16.msra.mxu0 %v5598_v54  ;;  %v1239_v22 = vld [vmem:[%s6188_s26 + $0x68] sm:$0xff]  ;;  %v982_v25 = vpack.c.bf16 %v944_v20, %v943_v18  ;;  %v1240_v26 = vld [vmem:[%s6188_s26 + $0x70] sm:$0xff]  ;;  %v1241_v28 = vld [vmem:[%s6188_s26 + $0x78] sm:$0xff] }
  0x58   : > { %1079 = vmatprep.subr.bf16.mxu0 %v5599_v55  ;;  %v945_v30 = vld [vmem:[%s6220_s23 + $0x20] sm:$0xff]  ;;  %v946_v31 = vld [vmem:[%s6220_s23 + $0x28] sm:$0xff]  ;;  %v1244_v37 = vld [vmem:[%s6188_s26 + $0x90] sm:$0xff] }
  0x59   : > { %1284 = vperm.xlu0 %5588, %v1232_v6   ;;  %v1242_v32 = vld [vmem:[%s6188_s26 + $0x80] sm:$0xff]  ;;  %v1243_v34 = vld [vmem:[%s6188_s26 + $0x88] sm:$0xff]  ;;  %v983_v36 = vpack.c.bf16 %v946_v31, %v945_v30  ;;  %v1245_v38 = vld [vmem:[%s6188_s26 + $0x98] sm:$0xff]  ;;  %v1373_v30 = vlaneseq }
  0x5a   : > { %1289 = vperm.xlu1 %5589, %v1233_v8   ;;  %v947_v41 = vld [vmem:[%s6220_s23 + $0x30] sm:$0xff]  ;;  %v948_v42 = vld [vmem:[%s6220_s23 + $0x38] sm:$0xff]  ;;  %v1246_v43 = vld [vmem:[%s6188_s26 + $0xa0] sm:$0xff] }
  0x5b   : > { %1080 = vmatpush1.bf16.msra.mxu0 %v5601_v56  ;;  %v1247_v45 = vld [vmem:[%s6188_s26 + $0xa8] sm:$0xff]  ;;  %v984_v47 = vpack.c.bf16 %v948_v42, %v947_v41  ;;  %v1248_v48 = vld [vmem:[%s6188_s26 + $0xb0] sm:$0xff]  ;;  %v1249_v51 = vld [vmem:[%s6188_s26 + $0xb8] sm:$0xff]  ;;  %v1374_v31 = vshrl.u32 %v1373_v30, 7 }
  0x5c   : > { %1081 = vmatprep.subr.bf16.mxu0 %v5602_v57  ;;  %v5627_v49 = vld [vmem:[%s7961_s8 + $0x30] sm:$0xff]   ;;  %v949_v52 = vld [vmem:[%s6220_s23 + $0x40] sm:$0xff]  ;;  %v950_v53 = vld [vmem:[%s6220_s23 + $0x48] sm:$0xff] }
  0x5d   : > { %1294 = vperm.xlu0 %5588, %v1234_v11   ;;  %v5628_v54 = vld [vmem:[%s7961_s8 + $0x78] sm:$0xff]   ;;  %v985_v56 = vpack.c.bf16 %v950_v53, %v949_v52  ;;  %v951_v57 = vld [vmem:[%s6220_s23 + $0x50] sm:$0xff]  ;;  %v953_v60 = vld [vmem:[%s6220_s23 + $0x60] sm:$0xff] }
  0x5e   : > { %1299 = vperm.xlu1 %5589, %v1235_v13   ;;  %v5629_v55 = vld [vmem:[%s7961_s8 + $0x38] sm:$0xff]   ;;  %v955_v63 = vld [vmem:[%s6220_s23 + $0x70] sm:$0xff]  ;;  %v957_v2 = vld [vmem:[%s6220_s23 + $0x80] sm:$0xff] }
  0x5f   : > { %1082 = vmatpush1.bf16.msra.mxu0 %v5604_v59  ;;  %v952_v58 = vld [vmem:[%s6220_s23 + $0x58] sm:$0xff]  ;;  %v958_v3 = vld [vmem:[%s6220_s23 + $0x88] sm:$0xff]  ;;  %v961_v8 = vld [vmem:[%s6220_s23 + $0xa0] sm:$0xff] }
  0x60   : > { %1083 = vmatprep.subr.bf16.mxu0 %v5605_v61  ;;  %v986_v59 = vpack.c.bf16 %v952_v58, %v951_v57  ;;  %v954_v61 = vld [vmem:[%s6220_s23 + $0x68] sm:$0xff]  ;;  %v960_v6 = vld [vmem:[%s6220_s23 + $0x98] sm:$0xff]  ;;  %v963_v11 = vld [vmem:[%s6220_s23 + $0xb0] sm:$0xff] }
  0x61   : > { %1304 = vperm.xlu0 %5588, %v1236_v15   ;;  %v987_v62 = vpack.c.bf16 %v954_v61, %v953_v60  ;;  %v962_v9 = vld [vmem:[%s6220_s23 + $0xa8] sm:$0xff]  ;;  %v5631_v15 = vld [vmem:[%s7959_s6] sm:$0xff]   ;;  %v5635_v18 = vld [vmem:[%s7959_s6 + $0x10] sm:$0xff]  }
  0x62   : > { %1309 = vperm.xlu1 %5589, %v1237_v16   ;;  %v991_v10 = vpack.c.bf16 %v962_v9, %v961_v8  ;;  %v5632_v16 = vld [vmem:[%s7959_s6 + $0x48] sm:$0xff]   ;;  %v5637_v20 = vld [vmem:[%s7959_s6 + $0x18] sm:$0xff]  }
  0x63   : > { %1084 = vmatpush1.bf16.msra.mxu0 %v5607_v0  ;;  %v956_v0 = vld [vmem:[%s6220_s23 + $0x78] sm:$0xff] }
  0x64   : > { %1085 = vmatprep.subr.bf16.mxu0 %v5608_v1  ;;  %v988_v1 = vpack.c.bf16 %v956_v0, %v955_v63 }
  0x65   : > { %1314 = vperm.xlu0 %5588, %v1238_v21   ;;  %v5638_v21 = vld [vmem:[%s7959_s6 + $0x60] sm:$0xff]  }
  0x66   : > { %1319 = vperm.xlu1 %5589, %v1239_v22   ;;  %v5639_v22 = vld [vmem:[%s7959_s6 + $0x20] sm:$0xff]  }
  0x67   : > { %1086 = vmatpush1.bf16.msra.mxu0 %v5610_v4  ;;  %v989_v4 = vpack.c.bf16 %v958_v3, %v957_v2 }
  0x68   : > { %1087 = vmatprep.subr.bf16.mxu0 %v5611_v5  ;;  %v959_v5 = vld [vmem:[%s6220_s23 + $0x90] sm:$0xff] }
  0x69   : > { %1324 = vperm.xlu0 %5588, %v1240_v26   ;;  %v5643_v26 = vld [vmem:[%s7959_s6 + $0x30] sm:$0xff]  }
  0x6a   : > { %1329 = vperm.xlu1 %5589, %v1241_v28   ;;  %v5645_v28 = vld [vmem:[%s7959_s6 + $0x38] sm:$0xff]  }
  0x6b   : > { %1088 = vmatpush1.bf16.msra.mxu0 %v5613_v7  ;;  %v990_v7 = vpack.c.bf16 %v960_v6, %v959_v5 }
  0x6c   : > { %5123 = vmatprep.subr.bf16.mxu0 %v5614_v12  ;;  %v964_v12 = vld [vmem:[%s6220_s23 + $0xb8] sm:$0xff] }
  0x6d   : > { %1334 = vperm.xlu0 %5588, %v1242_v32   ;;  %v992_v13 = vpack.c.bf16 %v964_v12, %v963_v11  ;;  %v1250_v32 = vld [vmem:[%s7989_s29] sm:$0x3]  ;;  %s5562_s29 = smul.u32 24, %s8001_s25 }
  0x6e   : > { %1106 = vmatmul.mubr.bf16.vlgmr.msra.gmra.mrb[0].mxu0 %v981_v14  ;;  %1339 = vperm.xlu1 %5589, %v1243_v34   ;;  %v5630_v14 = vld [vmem:[%s7959_s6 + $0x40] sm:$0xff]   ;;  %v1375_v34 = vsub.s32 0, %v1374_v31 }
  0x6f   : > { %1115 = vmatprep.mubr.bf16.mxu0 %v5888_v50  ;;  %5124 = vmatpush3.bf16.msra.mxu0 %v5615_v17  ;;  %v5634_v17 = vld [vmem:[%s7959_s6 + $0x50] sm:$0xff]   ;;  %s6805_s3 = scalar_lea.vmem %s7991_s27, %s5562_s29  ;;  %s7830_s27 = scalar_lea.vmem [#allocation4], %s6179_s0 }
  0x70   : > { %5125 = vmatprep.subr.bf16.mxu0 %v5616_v19  ;;  %5037 = vmatprep.subr.bf16.mxu1 %v5630_v14  ;;  %v5636_v19 = vld [vmem:[%s7959_s6 + $0x58] sm:$0xff]   ;;  %s4844_s0 = sshll.u32 %s8001_s25, 3  ;;  %s5036_s25 = sshll.u32 (%p6029_p5), %s6010_s24, 6 }
  0x71   : > { %1344 = vperm.xlu0 %5588, %v1244_v37   ;;  %5038 = vmatpush3.bf16.msra.mxu1 %v5631_v15  ;;  %s937_s2 = scalar_lea.vmem %s7972_s19, %s4844_s0  ;;  %s7896_s1 = scalar_lea.vmem (%p6029_p5), %s7973_s20, %s5036_s25 }
  0x72   : > { %1349 = vperm.xlu1 %5589, %v1245_v38   ;;  %5039 = vmatprep.subr.bf16.mxu1 %v5632_v16 }
  0x73   : > { %5126 = vmatpush3.bf16.msra.mxu0 %v5617_v23  ;;  %v5640_v23 = vld [vmem:[%s7959_s6 + $0x68] sm:$0xff]  }
  0x74   : > { %5127 = vmatprep.subr.bf16.mxu0 %v5618_v24  ;;  %v5641_v24 = vld [vmem:[%s7959_s6 + $0x28] sm:$0xff]  }
  0x75   : > { %1354 = vperm.xlu0 %5588, %v1246_v43  }
  0x76   : > { %1116 = vmatmul.mubr.bf16.gmra.mrb[4].mxu0 %v982_v25  ;;  %1359 = vperm.xlu1 %5589, %v1247_v45   ;;  %v5642_v25 = vld [vmem:[%s7959_s6 + $0x70] sm:$0xff]  }
  0x77   : > { %1125 = vmatprep.mubr.bf16.mxu0 %v5888_v50  ;;  %5128 = vmatpush3.bf16.msra.mxu0 %v5619_v27  ;;  %v5644_v27 = vld [vmem:[%s7959_s6 + $0x78] sm:$0xff]  }
  0x78   : > { %5129 = vmatprep.subr.bf16.mxu0 %v5620_v29  ;;  %v5646_v29 = vld [vmem:[%s7958_s5 + $0x40] sm:$0xff]  }
  0x79   : > { %1364 = vperm.xlu0 %5588, %v1248_v48  }
  0x7a   : > { %1369 = vperm.xlu1 %5589, %v1249_v51  }
  0x7b   : > { %5130 = vmatpush3.bf16.msra.mxu0 %v5621_v33  ;;  %v1251_v33 = vunpack.c.l.bf16 %v1250_v32 }
  0x7c   : > { %5131 = vmatprep.subr.bf16.mxu0 %v5622_v35  ;;  %v1379_v35 = vsub.s32 2, %v1374_v31 }
  0x7e   : > { %1126 = vmatmul.mubr.bf16.gmra.mrb[8].mxu0 %v983_v36  ;;  %v1376_v36 = vrot.slane %v1251_v33, %v1375_v34  ;;  %v1380_v37 = vrot.slane %v1251_v33, %v1379_v35 }
  0x7f   : > { %1135 = vmatprep.mubr.bf16.mxu0 %v5888_v50  ;;  %5132 = vmatpush3.bf16.msra.mxu0 %v5623_v39 }
  0x80   : > { %5133 = vmatprep.subr.bf16.mxu0 %v5624_v40  ;;  %v6375_v39 = vrot.slane %v1376_v36, %v1375_v34  ;;  %v6377_v40 = vrot.slane %v1380_v37, %v1375_v34 }
  0x83   : > { %5134 = vmatpush3.bf16.msra.mxu0 %v5625_v44 }
  0x84   : > { %5135 = vmatprep.subr.bf16.mxu0 %v5626_v46 }
  0x86   : > { %1136 = vmatmul.mubr.bf16.gmra.mrb[12].mxu0 %v984_v47 }
  0x87   : > { %1145 = vmatprep.mubr.bf16.mxu0 %v5888_v50  ;;  %5136 = vmatpush3.bf16.msra.mxu0 %v5627_v49 }
  0x88   : > { %5137 = vmatprep.subr.bf16.mxu0 %v5628_v54 }
  0x8b   : > { %5138 = vmatpush3.bf16.msra.mxu0 %v5629_v55 }
  0x8e   : > { %1146 = vmatmul.mubr.bf16.gmra.mrb[16].mxu0 %v985_v56 }
  0x8f   : > { %1155 = vmatprep.mubr.bf16.mxu0 %v5888_v50 }
  0x96   : > { %1156 = vmatmul.mubr.bf16.gmra.mrb[20].mxu0 %v986_v59 }
  0x97   : > { %1165 = vmatprep.mubr.bf16.mxu0 %v5888_v50 }
  0x9e   : > { %1166 = vmatmul.mubr.bf16.gmra.mrb[24].mxu0 %v987_v62 }
  0x9f   : > { %1175 = vmatprep.mubr.bf16.mxu0 %v5888_v50 }
  0xa6   : > { %1176 = vmatmul.mubr.bf16.gmra.mrb[28].mxu0 %v988_v1 }
  0xa7   : > { %1185 = vmatprep.mubr.bf16.mxu0 %v5888_v50 }
  0xae   : > { %1186 = vmatmul.mubr.bf16.gmra.mrb[32].mxu0 %v989_v4 }
  0xaf   : > { %1195 = vmatprep.mubr.bf16.mxu0 %v5888_v50 }
  0xb6   : > { %1196 = vmatmul.mubr.bf16.gmra.mrb[36].mxu0 %v990_v7 }
  0xb7   : > { %1205 = vmatprep.mubr.bf16.mxu0 %v5888_v50 }
  0xbe   : > { %1206 = vmatmul.mubr.bf16.gmra.mrb[40].mxu0 %v991_v10 }
  0xbf   : > { %1215 = vmatprep.mubr.bf16.mxu0 %v5888_v50  ;;  %v5633_v50 = vld [vmem:[%s7959_s6 + $0x8] sm:$0xff]  }
  0xc0   : > { %5040 = vmatpush3.bf16.msra.mxu1 %v5633_v50 }
  0xc1   : > { %5041 = vmatprep.subr.bf16.mxu1 %v5634_v17 }
  0xc4   : > { %5042 = vmatpush3.bf16.msra.mxu1 %v5635_v18 }
  0xc5   : > { %5043 = vmatprep.subr.bf16.mxu1 %v5636_v19 }
  0xc6   : > { %1216 = vmatmul.mubr.bf16.gmra.mrb[44].mxu0 %v992_v13 }
  0xc8   : > { %5044 = vmatpush3.bf16.msra.mxu1 %v5637_v20 }
  0xc9   : > { %5045 = vmatprep.subr.bf16.mxu1 %v5638_v21 }
  0xcc   : > { %5046 = vmatpush3.bf16.msra.mxu1 %v5639_v22  ;;  %v1255_v38 = vpop.permute.xlu0 %1254  ;;  %v1265_v48 = vpop.permute.xlu1 %1264 }
  0xcd   : > { %5047 = vmatprep.subr.bf16.mxu1 %v5640_v23  ;;  %v1391_v41 = vmul.f32 %v6375_v39, %v1255_v38  ;;  %v1392_v46 = vmul.f32 %v6377_v40, %v1255_v38  ;;  %v1395_v58 = vmul.f32 %v6375_v39, %v1265_v48  ;;  %v1396_v63 = vmul.f32 %v6377_v40, %v1265_v48 }
  0xd0   : > { %5048 = vmatpush3.bf16.msra.mxu1 %v5641_v24  ;;  %v1260_v42 = vpop.permute.xlu0 %1259 }
  0xd1   : > { %5049 = vmatprep.subr.bf16.mxu1 %v5642_v25  ;;  %v1393_v44 = vmul.f32 %v6375_v39, %v1260_v42  ;;  %v1394_v47 = vmul.f32 %v6377_v40, %v1260_v42  ;;  %v1270_v59 = vpop.permute.xlu1 %1269 }
  0xd2   : > { %v1397_v61 = vmul.f32 %v6375_v39, %v1270_v59  ;;  %v1398_v0 = vmul.f32 %v6377_v40, %v1270_v59 }
  0xd4   : > { %5050 = vmatpush3.bf16.msra.mxu1 %v5643_v26  ;;  %v1275_v9 = vpop.permute.xlu0 %1274 }
  0xd5   : > { %5051 = vmatprep.subr.bf16.mxu1 %v5644_v27  ;;  %v1280_v10 = vpop.permute.xlu1 %1279  ;;  %v1399_v12 = vmul.f32 %v6375_v39, %v1275_v9  ;;  %v1400_v15 = vmul.f32 %v6377_v40, %v1275_v9 }
  0xd6   : > { %v1401_v13 = vmul.f32 %v6375_v39, %v1280_v10  ;;  %v1402_v16 = vmul.f32 %v6377_v40, %v1280_v10 }
  0xd8   : > { %5052 = vmatpush3.bf16.msra.mxu1 %v5645_v28  ;;  %v1285_v24 = vpop.permute.xlu0 %1284 }
  0xd9   : > { %5077 = vmatprep.subr.bf16.mxu1 %v5646_v29  ;;  %v1290_v25 = vpop.permute.xlu1 %1289  ;;  %v1403_v27 = vmul.f32 %v6375_v39, %v1285_v24  ;;  %v1404_v30 = vmul.f32 %v6377_v40, %v1285_v24 }
  0xda   : > { %v1405_v28 = vmul.f32 %v6375_v39, %v1290_v25  ;;  %v1406_v31 = vmul.f32 %v6377_v40, %v1290_v25 }
 0x141   : > { %v1107_v43 = vpop.f32.mrb[0].mxu0 }
 0x142   : > { %v1109_v45 = vpop.f32.mrb[1].mxu0  ;;  %v6383_v51 = vadd.f32 %v1391_v41, %v1107_v43  ;;  %v1295_v41 = vpop.permute.xlu0 %1294 }
 0x143   : > { %v1111_v49 = vpop.f32.mrb[2].mxu0  ;;  %v6387_v54 = vadd.f32 %v1392_v46, %v1109_v45  ;;  %v1407_v43 = vmul.f32 %v6375_v39, %v1295_v41  ;;  %v1300_v45 = vpop.permute.xlu1 %1299 }
 0x144   : > { %v6385_v52 = vadd.f32 %v1393_v44, %v1111_v49  ;;  %v1113_v53 = vpop.f32.mrb[3].mxu0  ;;  %v1408_v44 = vmul.f32 %v6377_v40, %v1295_v41 }
 0x145   : > { %v6389_v55 = vadd.f32 %v1394_v47, %v1113_v53  ;;  %v1409_v47 = vmul.f32 %v6375_v39, %v1300_v45  ;;  %v1410_v53 = vmul.f32 %v6377_v40, %v1300_v45 }
 0x146   : > { %v2274_v56 = vpack.c.bf16 %v6385_v52, %v6383_v51  ;;  %v1305_v9 = vpop.permute.xlu0 %1304 }
 0x147   : > { %v2275_v57 = vpack.c.bf16 %v6389_v55, %v6387_v54  ;;  %v1627_v10 = vmul.f32 %v6389_v55, %v6389_v55 }
 0x149   : > { %v1117_v60 = vpop.f32.mrb[4].mxu0  ;;  %2426 = vmatprep.mubr.bf16.mxu0 %v2275_v57 }
 0x14a   : > { %v1119_v62 = vpop.f32.mrb[5].mxu0  ;;  %2427 = vmatmul.mubr.bf16.vlgmr.msra.gmra.mrb[48].mxu0 %v2274_v56  ;;  %v6399_v2 = vadd.f32 %v1395_v58, %v1117_v60  ;;  %v1624_v58 = vmul.f32 %v6383_v51, %v6383_v51 }
 0x14b   : > { %v1121_v1 = vpop.f32.mrb[6].mxu0  ;;  %v6403_v5 = vadd.f32 %v1396_v63, %v1119_v62  ;;  %v1625_v62 = vmul.f32 %v6387_v54, %v6387_v54 }
 0x14c   : > { %v6401_v3 = vadd.f32 %v1397_v61, %v1121_v1  ;;  %v1123_v4 = vpop.f32.mrb[7].mxu0  ;;  %v1626_v1 = vmul.f32 %v6385_v52, %v6385_v52  ;;  %v1628_v25 = vmul.f32 %v6399_v2, %v6399_v2 }
 0x14d   : > { %v6405_v6 = vadd.f32 %v1398_v0, %v1123_v4 }
 0x14e   : > { %v2276_v7 = vpack.c.bf16 %v6401_v3, %v6399_v2 }
 0x14f   : > { %v2277_v8 = vpack.c.bf16 %v6405_v6, %v6403_v5  ;;  %v1631_v2 = vmul.f32 %v6405_v6, %v6405_v6 }
 0x151   : > { %v1127_v11 = vpop.f32.mrb[8].mxu0  ;;  %2434 = vmatprep.mubr.bf16.mxu0 %v2277_v8 }
 0x152   : > { %v1129_v14 = vpop.f32.mrb[9].mxu0  ;;  %2435 = vmatmul.mubr.bf16.gmra.mrb[52].mxu0 %v2276_v7  ;;  %v6415_v17 = vadd.f32 %v1399_v12, %v1127_v11 }
 0x153   : > { %v1131_v50 = vpop.f32.mrb[10].mxu0  ;;  %v6419_v20 = vadd.f32 %v1400_v15, %v1129_v14  ;;  %v1412_v14 = vmul.f32 %v6377_v40, %v1305_v9  ;;  %v1310_v15 = vpop.permute.xlu1 %1309 }
 0x154   : > { %v6417_v18 = vadd.f32 %v1401_v13, %v1131_v50  ;;  %v1133_v19 = vpop.f32.mrb[11].mxu0  ;;  %v1411_v13 = vmul.f32 %v6375_v39, %v1305_v9  ;;  %v1413_v50 = vmul.f32 %v6375_v39, %v1310_v15  ;;  %v1414_v55 = vmul.f32 %v6377_v40, %v1310_v15 }
 0x155   : > { %v6421_v21 = vadd.f32 %v1402_v16, %v1133_v19 }
 0x156   : > { %v2278_v22 = vpack.c.bf16 %v6417_v18, %v6415_v17 }
 0x157   : > { %v2279_v23 = vpack.c.bf16 %v6421_v21, %v6419_v20 }
 0x159   : > { %v1137_v26 = vpop.f32.mrb[12].mxu0  ;;  %2442 = vmatprep.mubr.bf16.mxu0 %v2279_v23 }
 0x15a   : > { %v1139_v29 = vpop.f32.mrb[13].mxu0  ;;  %2443 = vmatmul.mubr.bf16.gmra.mrb[56].mxu0 %v2278_v22  ;;  %v6431_v33 = vadd.f32 %v1403_v27, %v1137_v26 }
 0x15b   : > { %v1141_v32 = vpop.f32.mrb[14].mxu0  ;;  %v6435_v36 = vadd.f32 %v1404_v30, %v1139_v29  ;;  %v1629_v29 = vmul.f32 %v6403_v5, %v6403_v5 }
 0x15c   : > { %v6433_v34 = vadd.f32 %v1405_v28, %v1141_v32  ;;  %v1143_v35 = vpop.f32.mrb[15].mxu0  ;;  %v1315_v32 = vpop.permute.xlu0 %1314 }
 0x15d   : > { %v6437_v37 = vadd.f32 %v1406_v31, %v1143_v35  ;;  %v1630_v35 = vmul.f32 %v6401_v3, %v6401_v3  ;;  %v1415_v5 = vmul.f32 %v6375_v39, %v1315_v32 }
 0x15e   : > { %v2280_v38 = vpack.c.bf16 %v6433_v34, %v6431_v33 }
 0x15f   : > { %v2281_v42 = vpack.c.bf16 %v6437_v37, %v6435_v36 }
 0x161   : > { %v1147_v46 = vpop.f32.mrb[16].mxu0  ;;  %2450 = vmatprep.mubr.bf16.mxu0 %v2281_v42 }
 0x162   : > { %v1455_v48 = vadd.f32 %v1407_v43, %v1147_v46  ;;  %v1149_v49 = vpop.f32.mrb[17].mxu0  ;;  %2451 = vmatmul.mubr.bf16.gmra.mrb[60].mxu0 %v2280_v38  ;;  %v1320_v43 = vpop.permute.xlu1 %1319 }
 0x163   : > { %v1456_v56 = vadd.f32 %v1408_v44, %v1149_v49  ;;  %v1151_v57 = vpop.f32.mrb[18].mxu0  ;;  %v1418_v6 = vmul.f32 %v6377_v40, %v1320_v43 }
 0x164   : > { %v1640_v59 = vmul.f32 %v1455_v48, %v1455_v48  ;;  %v1457_v60 = vadd.f32 %v1409_v47, %v1151_v57  ;;  %v1153_v61 = vpop.f32.mrb[19].mxu0 }
 0x165   : > { %v1641_v63 = vmul.f32 %v1456_v56, %v1456_v56  ;;  %v1458_v0 = vadd.f32 %v1410_v53, %v1153_v61  ;;  %v1417_v53 = vmul.f32 %v6375_v39, %v1320_v43  ;;  %v1632_v61 = vmul.f32 %v6415_v17, %v6415_v17 }
 0x166   : > { %v6453_v4 = vadd.f32 %v1640_v59, %v1624_v58  ;;  %v1642_v7 = vmul.f32 %v1457_v60, %v1457_v60  ;;  %v2282_v8 = vpack.c.bf16 %v1457_v60, %v1455_v48  ;;  %v1416_v48 = vmul.f32 %v6377_v40, %v1315_v32  ;;  %v1325_v60 = vpop.permute.xlu0 %1324 }
 0x167   : > { %v6457_v51 = vadd.f32 %v1641_v63, %v1625_v62  ;;  %v1643_v11 = vmul.f32 %v1458_v0, %v1458_v0  ;;  %v2283_v12 = vpack.c.bf16 %v1458_v0, %v1456_v56  ;;  %v1638_v43 = vmul.f32 %v6433_v34, %v6433_v34 }
 0x168   : > { %v6460_v54 = vadd.f32 %v1642_v7, %v1626_v1  ;;  %v1330_v1 = vpop.permute.xlu1 %1329  ;;  %v1633_v7 = vmul.f32 %v6419_v20, %v6419_v20  ;;  %v1420_v20 = vmul.f32 %v6377_v40, %v1325_v60 }
 0x169   : > { %v6463_v52 = vadd.f32 %v1643_v11, %v1627_v10  ;;  %v1157_v16 = vpop.f32.mrb[20].mxu0  ;;  %2458 = vmatprep.mubr.bf16.mxu0 %v2283_v12  ;;  %v1634_v10 = vmul.f32 %v6417_v18, %v6417_v18 }
 0x16a   : > { %v1459_v19 = vadd.f32 %v1411_v13, %v1157_v16  ;;  %v1159_v22 = vpop.f32.mrb[21].mxu0  ;;  %2459 = vmatmul.mubr.bf16.gmra.mrb[64].mxu0 %v2282_v8 }
 0x16b   : > { %v1460_v23 = vadd.f32 %v1412_v14, %v1159_v22  ;;  %v1161_v24 = vpop.f32.mrb[22].mxu0  ;;  %v1635_v14 = vmul.f32 %v6421_v21, %v6421_v21  ;;  %v1422_v21 = vmul.f32 %v6377_v40, %v1330_v1 }
 0x16c   : > { %v1644_v26 = vmul.f32 %v1459_v19, %v1459_v19  ;;  %v1461_v27 = vadd.f32 %v1413_v50, %v1161_v24  ;;  %v1163_v28 = vpop.f32.mrb[23].mxu0  ;;  %v1419_v50 = vmul.f32 %v6375_v39, %v1325_v60 }
 0x16d   : > { %v1645_v30 = vmul.f32 %v1460_v23, %v1460_v23  ;;  %v1462_v31 = vadd.f32 %v1414_v55, %v1163_v28  ;;  %v1335_v55 = vpop.permute.xlu0 %1334 }
 0x16e   : > { %v6473_v38 = vadd.f32 %v1644_v26, %v1628_v25  ;;  %v1646_v41 = vmul.f32 %v1461_v27, %v1461_v27  ;;  %v2284_v42 = vpack.c.bf16 %v1461_v27, %v1459_v19  ;;  %v1340_v26 = vpop.permute.xlu1 %1339 }
 0x16f   : > { %v6477_v44 = vadd.f32 %v1645_v30, %v1629_v29  ;;  %v1647_v45 = vmul.f32 %v1462_v31, %v1462_v31  ;;  %v2285_v46 = vpack.c.bf16 %v1462_v31, %v1460_v23  ;;  %v1421_v23 = vmul.f32 %v6375_v39, %v1330_v1 }
 0x170   : > { %v6480_v47 = vadd.f32 %v1646_v41, %v1630_v35  ;;  %v1636_v29 = vmul.f32 %v6431_v33, %v6431_v33  ;;  %v1637_v35 = vmul.f32 %v6435_v36, %v6435_v36 }
 0x171   : > { %v6483_v49 = vadd.f32 %v1647_v45, %v1631_v2  ;;  %v1167_v3 = vpop.f32.mrb[24].mxu0  ;;  %2466 = vmatprep.mubr.bf16.mxu0 %v2285_v46 }
 0x172   : > { %v1463_v56 = vadd.f32 %v1415_v5, %v1167_v3  ;;  %v1169_v57 = vpop.f32.mrb[25].mxu0  ;;  %2467 = vmatmul.mubr.bf16.gmra.mrb[68].mxu0 %v2284_v42  ;;  %v1639_v5 = vmul.f32 %v6437_v37, %v6437_v37 }
 0x173   : > { %v1464_v58 = vadd.f32 %v1416_v48, %v1169_v57  ;;  %v1171_v59 = vpop.f32.mrb[26].mxu0  ;;  %v1424_v57 = vmul.f32 %v6377_v40, %v1335_v55 }
 0x174   : > { %v1648_v62 = vmul.f32 %v1463_v56, %v1463_v56  ;;  %v1465_v63 = vadd.f32 %v1417_v53, %v1171_v59  ;;  %v1173_v0 = vpop.f32.mrb[27].mxu0  ;;  %v1423_v53 = vmul.f32 %v6375_v39, %v1335_v55  ;;  %v1425_v59 = vmul.f32 %v6375_v39, %v1340_v26 }
 0x175   : > { %v1649_v8 = vmul.f32 %v1464_v58, %v1464_v58  ;;  %v1466_v9 = vadd.f32 %v1418_v6, %v1173_v0  ;;  %v1350_v6 = vpop.permute.xlu1 %1349 }
 0x176   : > { %v6493_v11 = vadd.f32 %v1648_v62, %v1632_v61  ;;  %v1650_v12 = vmul.f32 %v1465_v63, %v1465_v63  ;;  %v2286_v13 = vpack.c.bf16 %v1465_v63, %v1463_v56  ;;  %v1345_v56 = vpop.permute.xlu0 %1344  ;;  %v1426_v61 = vmul.f32 %v6377_v40, %v1340_v26 }
 0x177   : > { %v6497_v17 = vadd.f32 %v1649_v8, %v1633_v7  ;;  %v1651_v15 = vmul.f32 %v1466_v9, %v1466_v9  ;;  %v2287_v16 = vpack.c.bf16 %v1466_v9, %v1464_v58  ;;  %v1429_v26 = vmul.f32 %v6375_v39, %v1350_v6 }
 0x178   : > { %v6500_v19 = vadd.f32 %v1650_v12, %v1634_v10 }
 0x179   : > { %v6503_v22 = vadd.f32 %v1651_v15, %v1635_v14  ;;  %v1177_v18 = vpop.f32.mrb[28].mxu0  ;;  %2474 = vmatprep.mubr.bf16.mxu0 %v2287_v16  ;;  %v1360_v15 = vpop.permute.xlu1 %1359 }
 0x17a   : > { %v1467_v24 = vadd.f32 %v1419_v50, %v1177_v18  ;;  %v1179_v25 = vpop.f32.mrb[29].mxu0  ;;  %2475 = vmatmul.mubr.bf16.gmra.mrb[72].mxu0 %v2286_v13  ;;  %v1355_v10 = vpop.permute.xlu0 %1354  ;;  %v1427_v18 = vmul.f32 %v6375_v39, %v1345_v56 }
 0x17b   : > { %v1468_v27 = vadd.f32 %v1420_v20, %v1179_v25  ;;  %v1181_v28 = vpop.f32.mrb[30].mxu0 }
 0x17c   : > { %v1652_v30 = vmul.f32 %v1467_v24, %v1467_v24  ;;  %v1469_v31 = vadd.f32 %v1421_v23, %v1181_v28  ;;  %v1183_v32 = vpop.f32.mrb[31].mxu0 }
 0x17d   : > { %v1653_v41 = vmul.f32 %v1468_v27, %v1468_v27  ;;  %v1470_v42 = vadd.f32 %v1422_v21, %v1183_v32 }
 0x17e   : > { %v6513_v2 = vadd.f32 %v1652_v30, %v1636_v29  ;;  %v1654_v45 = vmul.f32 %v1469_v31, %v1469_v31  ;;  %v2288_v46 = vpack.c.bf16 %v1469_v31, %v1467_v24  ;;  %v1428_v24 = vmul.f32 %v6377_v40, %v1345_v56  ;;  %v1365_v32 = vpop.permute.xlu0 %1364 }
 0x17f   : > { %v6517_v48 = vadd.f32 %v1653_v41, %v1637_v35  ;;  %v1655_v33 = vmul.f32 %v1470_v42, %v1470_v42  ;;  %v2289_v3 = vpack.c.bf16 %v1470_v42, %v1468_v27  ;;  %v1431_v29 = vmul.f32 %v6375_v39, %v1355_v10 }
 0x180   : > { %v6520_v36 = vadd.f32 %v1654_v45, %v1638_v43  ;;  %v1433_v35 = vmul.f32 %v6375_v39, %v1360_v15  ;;  %v1370_v45 = vpop.permute.xlu1 %1369 }
 0x181   : > { %v6523_v34 = vadd.f32 %v1655_v33, %v1639_v5  ;;  %v1187_v58 = vpop.f32.mrb[32].mxu0  ;;  %2482 = vmatprep.mubr.bf16.mxu0 %v2289_v3  ;;  %v1434_v3 = vmul.f32 %v6377_v40, %v1360_v15 }
 0x182   : > { %v1471_v60 = vadd.f32 %v1423_v53, %v1187_v58  ;;  %v1189_v37 = vpop.f32.mrb[33].mxu0  ;;  %2483 = vmatmul.mubr.bf16.gmra.mrb[76].mxu0 %v2288_v46 }
 0x183   : > { %v1472_v62 = vadd.f32 %v1424_v57, %v1189_v37  ;;  %v1191_v63 = vpop.f32.mrb[34].mxu0  ;;  %v1436_v37 = vmul.f32 %v6377_v40, %v1365_v32 }
 0x184   : > { %v1656_v0 = vmul.f32 %v1471_v60, %v1471_v60  ;;  %v1473_v1 = vadd.f32 %v1425_v59, %v1191_v63  ;;  %v1193_v7 = vpop.f32.mrb[35].mxu0 }
 0x185   : > { %v1657_v8 = vmul.f32 %v1472_v62, %v1472_v62  ;;  %v1474_v9 = vadd.f32 %v1426_v61, %v1193_v7  ;;  %v6555_v61 = vmul.f32 %v6375_v39, %v1370_v45 }
 0x186   : > { %v1673_v12 = vadd.f32 %v6453_v4, %v1656_v0  ;;  %v1658_v13 = vmul.f32 %v1473_v1, %v1473_v1  ;;  %v2290_v14 = vpack.c.bf16 %v1473_v1, %v1471_v60 }
 0x187   : > { %v1675_v16 = vadd.f32 %v6457_v51, %v1657_v8  ;;  %v1659_v50 = vmul.f32 %v1474_v9, %v1474_v9  ;;  %v2291_v20 = vpack.c.bf16 %v1474_v9, %v1472_v62  ;;  %v1430_v51 = vmul.f32 %v6377_v40, %v1350_v6 }
 0x188   : > { %v6530_v55 = vmax.f32 %v1673_v12, 1e-08  ;;  %v1677_v23 = vadd.f32 %v6460_v54, %v1658_v13  ;;  %v1435_v6 = vmul.f32 %v6375_v39, %v1365_v32  ;;  %v6558_v62 = vmul.f32 %v6377_v40, %v1370_v45 }
 0x189   : > { %v6534_v25 = vmax.f32 %v1675_v16, 1e-08  ;;  %v1679_v21 = vadd.f32 %v6463_v52, %v1659_v50  ;;  %v1197_v4 = vpop.f32.mrb[36].mxu0  ;;  %2490 = vmatprep.mubr.bf16.mxu0 %v2291_v20  ;;  %v1432_v52 = vmul.f32 %v6377_v40, %v1355_v10 }
 0x18a   : > { %v1475_v27 = vadd.f32 %v1427_v18, %v1197_v4  ;;  %v1199_v28 = vpop.f32.mrb[37].mxu0  ;;  %2491 = vmatmul.mubr.bf16.gmra.mrb[80].mxu0 %v2290_v14  ;;  %5704 = vrsqrt.f32 %v6530_v55  ;;  %v6546_v46 = vmax.f32 %v1677_v23, 1e-08  ;;  %vm1722_vm1 = vcmp.eq.f32.partialorder %v6530_v55, inf }
 0x18b   : > { %v6541_v54 = vmax.f32 %v1679_v21, 1e-08  ;;  %v1476_v30 = vadd.f32 %v1428_v24, %v1199_v28  ;;  %v1201_v31 = vpop.f32.mrb[38].mxu0  ;;  %5706 = vrsqrt.f32 %v6534_v25  ;;  %vm1729_vm0 = vcmp.eq.f32.partialorder %v6534_v25, inf }
 0x18c   : > { %v1660_v41 = vmul.f32 %v1475_v27, %v1475_v27  ;;  %v1477_v42 = vadd.f32 %v1429_v26, %v1201_v31  ;;  %v1203_v43 = vpop.f32.mrb[39].mxu0  ;;  %vm1731_vm2 = vcmp.eq.f32.partialorder %v6534_v25, 0.0  ;;  %v1732_v40 = vand.u32 2147483648, %v6534_v25 }
 0x18d   : > { %v1661_v5 = vmul.f32 %v1476_v30, %v1476_v30  ;;  %v1478_v33 = vadd.f32 %v1430_v51, %v1203_v43  ;;  %5708 = vrsqrt.f32 %v6541_v54  ;;  %vm1743_vm3 = vcmp.eq.f32.partialorder %v6541_v54, inf }
 0x18e   : > { %v1681_v53 = vadd.f32 %v6473_v38, %v1660_v41  ;;  %v1662_v56 = vmul.f32 %v1477_v42, %v1477_v42  ;;  %v2292_v57 = vpack.c.bf16 %v1477_v42, %v1475_v27  ;;  %5710 = vrsqrt.f32 %v6546_v46 }
 0x18f   : > { %v1683_v58 = vadd.f32 %v6477_v44, %v1661_v5  ;;  %v1663_v59 = vmul.f32 %v1478_v33, %v1478_v33  ;;  %v2293_v60 = vpack.c.bf16 %v1478_v33, %v1476_v30  ;;  %vm1745_vm4 = vcmp.eq.f32.partialorder %v6541_v54, 0.0 }
 0x190   : > { %v1685_v63 = vadd.f32 %v6480_v47, %v1662_v56  ;;  %v6574_v9 = vmax.f32 %v1681_v53, 1e-08  ;;  %v1746_v14 = vand.u32 2147483648, %v6541_v54  ;;  %vm1724_vm5 = vcmp.eq.f32.partialorder %v6530_v55, 0.0 }
 0x191   : > { %v6561_v0 = vmax.f32 %v1683_v58, 1e-08  ;;  %v1687_v38 = vadd.f32 %v6483_v49, %v1663_v59  ;;  %v1207_v1 = vpop.f32.mrb[40].mxu0  ;;  %2498 = vmatprep.mubr.bf16.mxu0 %v2293_v60  ;;  %v1725_v30 = vand.u32 2147483648, %v6530_v55  ;;  %vm1736_vm6 = vcmp.eq.f32.partialorder %v6546_v46, inf }
 0x192   : > { %v1479_v44 = vadd.f32 %v1431_v29, %v1207_v1  ;;  %v1209_v39 = vpop.f32.mrb[41].mxu0  ;;  %2499 = vmatmul.mubr.bf16.gmra.mrb[84].mxu0 %v2292_v57  ;;  %v6593_v31 = vmax.f32 %v1685_v63, 1e-08  ;;  %vm1738_vm7 = vcmp.eq.f32.partialorder %v6546_v46, 0.0  ;;  %v1739_v42 = vand.u32 2147483648, %v6546_v46 }
 0x193   : > { %v6570_v47 = vmax.f32 %v1687_v38, 1e-08  ;;  %v1480_v49 = vadd.f32 %v1432_v52, %v1209_v39  ;;  %v1211_v7 = vpop.f32.mrb[42].mxu0  ;;  %5712 = vrsqrt.f32 %v6561_v0  ;;  %vm1757_vm8 = vcmp.eq.f32.partialorder %v6561_v0, inf }
 0x194   : > { %v5705_v8 = vpop.eup %5704  ;;  %v1664_v10 = vmul.f32 %v1479_v44, %v1479_v44  ;;  %v1481_v12 = vadd.f32 %v1433_v35, %v1211_v7  ;;  %v1213_v13 = vpop.f32.mrb[43].mxu0  ;;  %vm1759_vm9 = vcmp.eq.f32.partialorder %v6561_v0, 0.0  ;;  %vm1750_vm12 = vcmp.eq.f32.partialorder %v6574_v9, inf }
 0x195   : > { %v5707_v15 = vpop.eup %5706  ;;  %v1665_v16 = vmul.f32 %v1480_v49, %v1480_v49  ;;  %v1482_v50 = vadd.f32 %v1434_v3, %v1213_v13  ;;  %v1721_v20 = vmul.f32 %v5705_v8, %v6530_v55  ;;  %5714 = vrsqrt.f32 %v6570_v47 }
 0x196   : > { %v6580_v18 = vadd.f32 %v6493_v11, %v1664_v10  ;;  %v1666_v23 = vmul.f32 %v1481_v12, %v1481_v12  ;;  %v2294_v24 = vpack.c.bf16 %v1481_v12, %v1479_v44  ;;  %v1728_v21 = vmul.f32 %v5707_v15, %v6534_v25 }
 0x197   : > { %v5709_v4 = vpop.eup %5708  ;;  %v1691_v26 = vadd.f32 %v6497_v17, %v1665_v16  ;;  %v1667_v51 = vmul.f32 %v1482_v50, %v1482_v50  ;;  %v2295_v27 = vpack.c.bf16 %v1482_v50, %v1480_v49  ;;  %v1723_v41 = vsel %vm1722_vm1, %v6530_v55, %v1721_v20  ;;  %v5648_v49 = vld [vmem:[%s7958_s5 + $0x48] sm:$0xff]  }
 0x198   : > { %v6586_v28 = vadd.f32 %v6500_v19, %v1666_v23  ;;  %v1730_v29 = vsel %vm1729_vm0, %v6534_v25, %v1728_v21  ;;  %v1742_v11 = vmul.f32 %v5709_v4, %v6541_v54  ;;  %v1726_v25 = vsel %vm1724_vm5, %v1725_v30, %v1723_v41  ;;  %v5654_v30 = vld [vmem:[%s7958_s5 + $0x60] sm:$0xff]  }
 0x199   : > { %v1695_v52 = vadd.f32 %v6503_v22, %v1667_v51  ;;  %v1217_v17 = vpop.f32.mrb[44].mxu0  ;;  %2506 = vmatprep.mubr.bf16.mxu0 %v2295_v27  ;;  %v5711_v22 = vpop.eup %5710  ;;  %v1733_v5 = vsel %vm1731_vm2, %v1732_v40, %v1730_v29  ;;  %5716 = vrsqrt.f32 %v6574_v9  ;;  %v1760_v8 = vand.u32 2147483648, %v6561_v0  ;;  %v5653_v29 = vld [vmem:[%s7958_s5 + $0x18] sm:$0xff]  }
 0x19a   : > { %v1483_v19 = vadd.f32 %v1435_v6, %v1217_v17  ;;  %v1219_v32 = vpop.f32.mrb[45].mxu0  ;;  %2507 = vmatmul.mubr.bf16.gmra.mrb[88].mxu0 %v2294_v24  ;;  %v1744_v35 = vsel %vm1743_vm3, %v6541_v54, %v1742_v11  ;;  %v1735_v6 = vmul.f32 %v5711_v22, %v6546_v46  ;;  %vm1771_vm10 = vcmp.eq.f32.partialorder %v6570_v47, inf  ;;  %v5655_v22 = vld [vmem:[%s7958_s5 + $0x20] sm:$0xff]  }
 0x19b   : > { %v1484_v43 = vadd.f32 %v1436_v37, %v1219_v32  ;;  %v1221_v45 = vpop.f32.mrb[46].mxu0  ;;  %v1747_v33 = vsel %vm1745_vm4, %v1746_v14, %v1744_v35  ;;  %v6637_v12 = vmax.f32 %v1695_v52, 1e-08  ;;  %v1774_v13 = vand.u32 2147483648, %v6570_v47 }
 0x19c   : > { %v1668_v3 = vmul.f32 %v1483_v19, %v1483_v19  ;;  %v1485_v53 = vadd.f32 %v6555_v61, %v1221_v45  ;;  %v1223_v56 = vpop.f32.mrb[47].mxu0  ;;  %v1833_v57 = vpack.c.bf16 %v1747_v33, %v1733_v5  ;;  %v1737_v61 = vsel %vm1736_vm6, %v6546_v46, %v1735_v6  ;;  %v5656_v33 = vld [vmem:[%s7958_s5 + $0x68] sm:$0xff]  }
 0x19d   : > { %v5713_v58 = vpop.eup %5712  ;;  %v1669_v59 = vmul.f32 %v1484_v43, %v1484_v43  ;;  %v1486_v60 = vadd.f32 %v6558_v62, %v1223_v56  ;;  %v1740_v55 = vsel %vm1738_vm7, %v1739_v42, %v1737_v61  ;;  %v5647_v62 = vld [vmem:[%s7958_s5] sm:$0xff]   ;;  %v6645_v14 = vmax.f32 %v6580_v18, 1e-08  ;;  %v5650_v18 = vld [vmem:[%s7958_s5 + $0x50] sm:$0xff]  }
 0x19e   : > { %v1697_v54 = vadd.f32 %v6513_v2, %v1668_v3  ;;  %v1670_v37 = vmul.f32 %v1485_v53, %v1485_v53  ;;  %v2296_v63 = vpack.c.bf16 %v1485_v53, %v1483_v19  ;;  %1968 = vmatprep.mubr.bf16.mxu1 %v1833_v57  ;;  %v1832_v40 = vpack.c.bf16 %v1740_v55, %v1726_v25  ;;  %v5658_v55 = vld [vmem:[%s7958_s5 + $0x70] sm:$0xff]  }
 0x19f   : > { %v5715_v38 = vpop.eup %5714  ;;  %v1699_v1 = vadd.f32 %v6517_v48, %v1669_v59  ;;  %v1671_v44 = vmul.f32 %v1486_v60, %v1486_v60  ;;  %v2297_v39 = vpack.c.bf16 %v1486_v60, %v1484_v43  ;;  %v1756_v7 = vmul.f32 %v5713_v58, %v6561_v0 }
 0x1a0   : > { %v1701_v2 = vadd.f32 %v6520_v36, %v1670_v37  ;;  %v6632_v48 = vmax.f32 %v1691_v26, 1e-08  ;;  %v1770_v10 = vmul.f32 %v5715_v38, %v6570_v47  ;;  %1969 = vmatmul.mubr.bf16.vlgmr.msra.gmra.mrb[0].mxu1 %v1832_v40  ;;  %vm1773_vm11 = vcmp.eq.f32.partialorder %v6570_v47, 0.0  ;;  %v5652_v26 = vld [vmem:[%s7958_s5 + $0x58] sm:$0xff]  }
 0x1a1   : > { %v1703_v46 = vadd.f32 %v6523_v34, %v1671_v44  ;;  %2514 = vmatprep.mubr.bf16.mxu0 %v2297_v39  ;;  %v1758_v36 = vsel %vm1757_vm8, %v6561_v0, %v1756_v7  ;;  %5078 = vmatpush3.bf16.msra.mxu1 %v5647_v62  ;;  %v5649_v34 = vld [vmem:[%s7958_s5 + $0x8] sm:$0xff]   ;;  %5718 = vrsqrt.f32 %v6593_v31  ;;  %v6654_v16 = vmax.f32 %v6586_v28, 1e-08  ;;  %v5651_v0 = vld [vmem:[%s7958_s5 + $0x10] sm:$0xff]  }
 0x1a2   : > { %2515 = vmatmul.mubr.bf16.gmra.mrb[92].mxu0 %v2296_v63  ;;  %v1772_v15 = vsel %vm1771_vm10, %v6570_v47, %v1770_v10  ;;  %5079 = vmatprep.subr.bf16.mxu1 %v5648_v49  ;;  %v1761_v50 = vsel %vm1759_vm9, %v1760_v8, %v1758_v36  ;;  %v6661_v23 = vmax.f32 %v1699_v1, 1e-08  ;;  %5720 = vrsqrt.f32 %v6632_v48  ;;  %v5657_v63 = vld [vmem:[%s7958_s5 + $0x28] sm:$0xff]  }
 0x1a3   : > { %v1775_v20 = vsel %vm1773_vm11, %v1774_v13, %v1772_v15  ;;  %v6664_v47 = vmax.f32 %v1703_v46, 1e-08  ;;  %5722 = vrsqrt.f32 %v6637_v12  ;;  %v5717_v21 = vpop.eup %5716  ;;  %v6671_v4 = vmax.f32 %v1697_v54, 1e-08  ;;  %v5659_v13 = vld [vmem:[%s7958_s5 + $0x30] sm:$0xff]  }
 0x1a4   : > { %v1835_v24 = vpack.c.bf16 %v1775_v20, %v1761_v50  ;;  %5724 = vrsqrt.f32 %v6645_v14  ;;  %v6677_v51 = vmax.f32 %v1701_v2, 1e-08  ;;  %v1749_v27 = vmul.f32 %v5717_v21, %v6574_v9  ;;  %v5660_v50 = vld [vmem:[%s7958_s5 + $0x78] sm:$0xff]  }
 0x1a5   : > { %5080 = vmatpush3.bf16.msra.mxu1 %v5649_v34  ;;  %5726 = vrsqrt.f32 %v6654_v16  ;;  %vm1752_vm13 = vcmp.eq.f32.partialorder %v6574_v9, 0.0  ;;  %v1753_v28 = vand.u32 2147483648, %v6574_v9  ;;  %vm1764_vm14 = vcmp.eq.f32.partialorder %v6593_v31, inf }
 0x1a6   : > { %1976 = vmatprep.mubr.bf16.mxu1 %v1835_v24  ;;  %5081 = vmatprep.subr.bf16.mxu1 %v5650_v18  ;;  %5728 = vrsqrt.f32 %v6661_v23  ;;  %vm1766_vm15 = vcmp.eq.f32.partialorder %v6593_v31, 0.0  ;;  %v1767_v11 = vand.u32 2147483648, %v6593_v31  ;;  %vm1785_vm0 = vcmp.eq.f32.partialorder %v6632_v48, inf }
 0x1a7   : > { %5730 = vrsqrt.f32 %v6664_v47  ;;  %vm1787_vm1 = vcmp.eq.f32.partialorder %v6632_v48, 0.0  ;;  %v1788_v17 = vand.u32 2147483648, %v6632_v48  ;;  %v1751_v19 = vsel %vm1750_vm12, %v6574_v9, %v1749_v27  ;;  %v1488_v27 = vld [vmem:[%s6805_s3 + $0x8] sm:$0xff] }
 0x1a8   : > { %5732 = vrsqrt.f32 %v6671_v4  ;;  %vm1799_vm2 = vcmp.eq.f32.partialorder %v6637_v12, inf  ;;  %vm1801_vm3 = vcmp.eq.f32.partialorder %v6637_v12, 0.0  ;;  %v1802_v41 = vand.u32 2147483648, %v6637_v12 }
 0x1a9   : > { %5082 = vmatpush3.bf16.msra.mxu1 %v5651_v0  ;;  %5734 = vrsqrt.f32 %v6677_v51  ;;  %vm1778_vm4 = vcmp.eq.f32.partialorder %v6645_v14, inf  ;;  %vm1780_vm5 = vcmp.eq.f32.partialorder %v6645_v14, 0.0  ;;  %v1781_v42 = vand.u32 2147483648, %v6645_v14 }
 0x1aa   : > { %5083 = vmatprep.subr.bf16.mxu1 %v5652_v26  ;;  %vm1792_vm6 = vcmp.eq.f32.partialorder %v6654_v16, inf  ;;  %vm1794_vm7 = vcmp.eq.f32.partialorder %v6654_v16, 0.0  ;;  %v1754_v53 = vsel %vm1752_vm13, %v1753_v28, %v1751_v19  ;;  %v1795_v6 = vand.u32 2147483648, %v6654_v16  ;;  %v5661_v26 = vld [vmem:[%s7958_s5 + $0x38] sm:$0xff]   ;;  %v1491_v28 = vld [vmem:[%s6805_s3 + $0x20] sm:$0xff] }
 0x1ab   : > { %v5719_v52 = vpop.eup %5718  ;;  %vm1813_vm8 = vcmp.eq.f32.partialorder %v6661_v23, inf  ;;  %vm1815_vm9 = vcmp.eq.f32.partialorder %v6661_v23, 0.0  ;;  %v1816_v39 = vand.u32 2147483648, %v6661_v23  ;;  %vm1827_vm10 = vcmp.eq.f32.partialorder %v6664_v47, inf }
 0x1ac   : > { %v1763_v32 = vmul.f32 %v5719_v52, %v6593_v31  ;;  %v5721_v35 = vpop.eup %5720  ;;  %v1830_v8 = vand.u32 2147483648, %v6664_v47  ;;  %vm1829_vm11 = vcmp.eq.f32.partialorder %v6664_v47, 0.0  ;;  %vm1806_vm12 = vcmp.eq.f32.partialorder %v6671_v4, inf  ;;  %v1494_v52 = vld [vmem:[%s6805_s3 + $0x38] sm:$0xff] }
 0x1ad   : > { %5084 = vmatpush3.bf16.msra.mxu1 %v5653_v29  ;;  %v5723_v43 = vpop.eup %5722  ;;  %v1784_v5 = vmul.f32 %v5721_v35, %v6632_v48  ;;  %v1809_v18 = vand.u32 2147483648, %v6671_v4  ;;  %vm1820_vm13 = vcmp.eq.f32.partialorder %v6677_v51, inf  ;;  %v1823_v24 = vand.u32 2147483648, %v6677_v51  ;;  %v5663_v35 = vld [vmem:[%s7958_s5 + $0x88] sm:$0xff]  }
 0x1ae   : > { %v1765_v45 = vsel %vm1764_vm14, %v6593_v31, %v1763_v32  ;;  %5085 = vmatprep.subr.bf16.mxu1 %v5654_v30  ;;  %v5725_v3 = vpop.eup %5724  ;;  %v1798_v57 = vmul.f32 %v5723_v43, %v6637_v12  ;;  %vm1808_vm14 = vcmp.eq.f32.partialorder %v6671_v4, 0.0  ;;  %v1548_v29 = vpack.c.bf16 %v1491_v28, %v1488_v27  ;;  %v1490_v30 = vld [vmem:[%s6805_s3 + $0x18] sm:$0xff]  ;;  %v1503_v43 = vld [vmem:[%s6805_s3 + $0x80] sm:$0xff] }
 0x1af   : > { %v1768_v56 = vsel %vm1766_vm15, %v1767_v11, %v1765_v45  ;;  %v5727_v58 = vpop.eup %5726  ;;  %v1786_v60 = vsel %vm1785_vm0, %v6632_v48, %v1784_v5  ;;  %v1777_v25 = vmul.f32 %v5725_v3, %v6645_v14  ;;  %vm1822_vm15 = vcmp.eq.f32.partialorder %v6677_v51, 0.0  ;;  %v1487_v11 = vld [vmem:[%s6805_s3] sm:$0xff]  ;;  %v1502_v3 = vld [vmem:[%s6805_s3 + $0x78] sm:$0xff] }
 0x1b0   : > { %v1834_v59 = vpack.c.bf16 %v1768_v56, %v1754_v53  ;;  %v5729_v9 = vpop.eup %5728  ;;  %v1789_v31 = vsel %vm1787_vm1, %v1788_v17, %v1786_v60  ;;  %v1800_v54 = vsel %vm1799_vm2, %v6637_v12, %v1798_v57  ;;  %v1791_v37 = vmul.f32 %v5727_v58, %v6654_v16  ;;  %v1497_v17 = vld [vmem:[%s6805_s3 + $0x50] sm:$0xff]  ;;  %v1506_v53 = vld [vmem:[%s6805_s3 + $0x98] sm:$0xff] }
 0x1b1   : > { %5086 = vmatpush3.bf16.msra.mxu1 %v5655_v22  ;;  %v5731_v61 = vpop.eup %5730  ;;  %v1803_v38 = vsel %vm1801_vm3, %v1802_v41, %v1800_v54  ;;  %v1779_v1 = vsel %vm1778_vm4, %v6645_v14, %v1777_v25  ;;  %v1812_v44 = vmul.f32 %v5729_v9, %v6661_v23  ;;  %v1547_v19 = vpack.c.bf16 %v1490_v30, %v1487_v11  ;;  %v1493_v41 = vld [vmem:[%s6805_s3 + $0x30] sm:$0xff]  ;;  %v1500_v22 = vld [vmem:[%s6805_s3 + $0x68] sm:$0xff]  ;;  %v1495_v54 = vld [vmem:[%s6805_s3 + $0x40] sm:$0xff] }
 0x1b2   : > { %1977 = vmatmul.mubr.bf16.gmra.mrb[4].mxu1 %v1834_v59  ;;  %5087 = vmatprep.subr.bf16.mxu1 %v5656_v33  ;;  %v1837_v62 = vpack.c.bf16 %v1803_v38, %v1789_v31  ;;  %v1793_v2 = vsel %vm1792_vm6, %v6654_v16, %v1791_v37  ;;  %v1826_v40 = vmul.f32 %v5731_v61, %v6664_v47  ;;  %v5733_v49 = vpop.eup %5732  ;;  %v1499_v33 = vld [vmem:[%s6805_s3 + $0x60] sm:$0xff]  ;;  %v1509_v56 = vld [vmem:[%s6805_s3 + $0xb0] sm:$0xff]  ;;  %v1508_v59 = vld [vmem:[%s6805_s3 + $0xa8] sm:$0xff]  ;;  %vm2109_vm0 = vcmask 261120  }
 0x1b3   : > { %v1782_v7 = vsel %vm1780_vm5, %v1781_v42, %v1779_v1  ;;  %v1796_v48 = vsel %vm1794_vm7, %v1795_v6, %v1793_v2  ;;  %v1814_v46 = vsel %vm1813_vm8, %v6661_v23, %v1812_v44  ;;  %v5735_v10 = vpop.eup %5734  ;;  %v1805_v15 = vmul.f32 %v5733_v49, %v6671_v4  ;;  %v1496_v42 = vld [vmem:[%s6805_s3 + $0x48] sm:$0xff]  ;;  %v1505_v58 = vld [vmem:[%s6805_s3 + $0x90] sm:$0xff]  ;;  %v1498_v37 = vld [vmem:[%s6805_s3 + $0x58] sm:$0xff] }
 0x1b4   : > { %1984 = vmatprep.mubr.bf16.mxu1 %v1837_v62  ;;  %v1836_v12 = vpack.c.bf16 %v1796_v48, %v1782_v7  ;;  %v1828_v36 = vsel %vm1827_vm10, %v6664_v47, %v1826_v40  ;;  %v1817_v14 = vsel %vm1815_vm9, %v1816_v39, %v1814_v46  ;;  %v1819_v16 = vmul.f32 %v5735_v10, %v6677_v51  ;;  %v1489_v60 = vld [vmem:[%s6805_s3 + $0x10] sm:$0xff]  ;;  %v1492_v25 = vld [vmem:[%s6805_s3 + $0x28] sm:$0xff]  ;;  %v1507_v44 = vld [vmem:[%s6805_s3 + $0xa0] sm:$0xff] }
 0x1b5   : > { %5088 = vmatpush3.bf16.msra.mxu1 %v5657_v63  ;;  %v1831_v34 = vsel %vm1829_vm11, %v1830_v8, %v1828_v36  ;;  %v1807_v23 = vsel %vm1806_vm12, %v6671_v4, %v1805_v15  ;;  %v1551_v32 = vpack.c.bf16 %v1497_v17, %v1494_v52  ;;  %v1550_v45 = vpack.c.bf16 %v1496_v42, %v1493_v41  ;;  %v1501_v63 = vld [vmem:[%s6805_s3 + $0x70] sm:$0xff]  ;;  %v1504_v61 = vld [vmem:[%s6805_s3 + $0x88] sm:$0xff]  ;;  %v1510_v39 = vld [vmem:[%s6805_s3 + $0xb8] sm:$0xff] }
 0x1b6   : > { %5089 = vmatprep.subr.bf16.mxu1 %v5658_v55  ;;  %v1839_v20 = vpack.c.bf16 %v1831_v34, %v1817_v14  ;;  %v1821_v47 = vsel %vm1820_vm13, %v6677_v51, %v1819_v16  ;;  %v1810_v21 = vsel %vm1808_vm14, %v1809_v18, %v1807_v23  ;;  %v5662_v51 = vld [vmem:[%s7958_s5 + $0x80] sm:$0xff]   ;;  %v1554_v5 = vpack.c.bf16 %v1503_v43, %v1500_v22  ;;  %v5665_v8 = vld [vmem:[%s7962_s9 + $0x8] sm:$0xff]   ;;  %v5667_v16 = vld [vmem:[%s7962_s9 + $0x18] sm:$0xff]  }
 0x1b7   : > { %v1824_v0 = vsel %vm1822_vm15, %v1823_v24, %v1821_v47  ;;  %v1553_v57 = vpack.c.bf16 %v1502_v3, %v1499_v33  ;;  %v1557_v6 = vpack.c.bf16 %v1509_v56, %v1506_v53  ;;  %v1556_v9 = vpack.c.bf16 %v1508_v59, %v1505_v58  ;;  %v5664_v2 = vld [vmem:[%s7962_s9] sm:$0xff]  }
 0x1b8   : > { %v1838_v4 = vpack.c.bf16 %v1824_v0, %v1810_v21  ;;  %v1549_v31 = vpack.c.bf16 %v1492_v25, %v1489_v60  ;;  %v1552_v38 = vpack.c.bf16 %v1498_v37, %v1495_v54  ;;  %v1555_v1 = vpack.c.bf16 %v1504_v61, %v1501_v63 }
 0x1b9   : > { %5090 = vmatpush3.bf16.msra.mxu1 %v5659_v13  ;;  %v1558_v55 = vpack.c.bf16 %v1510_v39, %v1507_v44  ;;  %vm2547_vm1 = vcmask 523264  }
 0x1ba   : > { %1985 = vmatmul.mubr.bf16.gmra.mrb[8].mxu1 %v1836_v12  ;;  %5091 = vmatprep.subr.bf16.mxu1 %v5660_v50  ;;  %v5666_v12 = vld [vmem:[%s7962_s9 + $0x10] sm:$0xff]  }
 0x1bb   : > { %1992 = vmatprep.mubr.bf16.mxu1 %v1839_v20 }
 0x1bd   : > { %5092 = vmatpush3.bf16.msra.mxu1 %v5661_v26 }
 0x1be   : > { %5315 = vmatprep.subr.bf16.mxu1 %v5662_v51 }
 0x1c2   : > { %1993 = vmatmul.mubr.bf16.gmra.mrb[12].mxu1 %v1838_v4 }
 0x1c3   : > { %2154 = vmatprep.mubr.bf16.mxu1 %v1548_v29 }
 0x1ca   : > { %2155 = vmatmul.mubr.bf16.vlgmr.msra.gmra.mrb[16].mxu1 %v1547_v19 }
 0x1cb   : > { %2162 = vmatprep.mubr.bf16.mxu1 %v1551_v32  ;;  %5316 = vmatpush3.bf16.msra.mxu1 %v5662_v51 }
 0x1cc   : > { %5317 = vmatprep.subr.bf16.mxu1 %v5663_v35 }
 0x1cf   : > { %5318 = vmatpush3.bf16.msra.mxu1 %v5663_v35 }
 0x1d0   : > { %5327 = vmatprep.subr.bf16.mxu1 %v5664_v2 }
 0x1d2   : > { %2163 = vmatmul.mubr.bf16.gmra.mrb[20].mxu1 %v1550_v45 }
 0x1d3   : > { %2170 = vmatprep.mubr.bf16.mxu1 %v1554_v5 }
 0x1da   : > { %2171 = vmatmul.mubr.bf16.gmra.mrb[24].mxu1 %v1553_v57 }
 0x1db   : > { %2178 = vmatprep.mubr.bf16.mxu1 %v1557_v6 }
 0x1e2   : > { %2179 = vmatmul.mubr.bf16.gmra.mrb[28].mxu1 %v1556_v9 }
 0x1e3   : > { %5319 = vmatprep.mubr.msk.bf16.mxu1 %vm2109_vm0, %v1549_v31 }
 0x1ea   : > { %5320 = vmatmul.mubr.msk.bf16.vlgmr.msra.gmra.mrb[32].mxu1 %vm2109_vm0, %v1552_v38 }
 0x1eb   : > { %5323 = vmatprep.mubr.msk.bf16.mxu1 %vm2109_vm0, %v1555_v1  ;;  %5328 = vmatpush3.bf16.msra.mxu1 %v5664_v2 }
 0x1ec   : > { %5329 = vmatprep.subr.bf16.mxu1 %v5665_v8 }
 0x1ef   : > { %5330 = vmatpush3.bf16.msra.mxu1 %v5665_v8 }
 0x1f0   : > { %5331 = vmatprep.subr.bf16.mxu1 %v5666_v12 }
 0x1f2   : > { %5324 = vmatmul.mubr.msk.bf16.gmra.mrb[36].mxu1 %vm2109_vm0, %v1558_v55 }
 0x1f3   : > { %5332 = vmatpush3.bf16.msra.mxu1 %v5666_v12 }
 0x1f4   : > { %5333 = vmatprep.subr.bf16.mxu1 %v5667_v16 }
 0x1f7   : > { %5334 = vmatpush3.bf16.msra.mxu1 %v5667_v16 }
 0x21d   : > { %v5139_v62 = vpop.f32.mrb[48].mxu0 }
 0x21e   : > { %v5140_v40 = vpop.f32.mrb[49].mxu0 }
 0x21f   : > { %v6840_v49 = vadd.f32 %v5140_v40, %v5139_v62  ;;  %v5142_v7 = vpop.f32.mrb[50].mxu0 }
 0x220   : > { %v5143_v48 = vpop.f32.mrb[51].mxu0 }
 0x221   : > { %v6842_v46 = vadd.f32 %v5143_v48, %v5142_v7  ;;  %v2523_v9 = vmul.f32 %v6840_v49, %v6840_v49 }
 0x223   : > { %v2524_v63 = vmul.f32 %v6842_v46, %v6842_v46  ;;  %v2548_v39 = vsel %vm2547_vm1, %v2523_v9, 0.0 }
 0x225   : > { %v5145_v10 = vpop.f32.mrb[52].mxu0  ;;  %v2553_v7 = vsel %vm2547_vm1, %v2524_v63, 0.0 }
 0x226   : > { %v5146_v36 = vpop.f32.mrb[53].mxu0 }
 0x227   : > { %v6850_v13 = vadd.f32 %v5146_v36, %v5145_v10  ;;  %v5148_v14 = vpop.f32.mrb[54].mxu0 }
 0x228   : > { %v5149_v34 = vpop.f32.mrb[55].mxu0 }
 0x229   : > { %v6852_v15 = vadd.f32 %v5149_v34, %v5148_v14  ;;  %v2525_v16 = vmul.f32 %v6850_v13, %v6850_v13 }
 0x22d   : > { %v5151_v50 = vpop.f32.mrb[56].mxu0 }
 0x22e   : > { %v5152_v20 = vpop.f32.mrb[57].mxu0 }
 0x22f   : > { %v6857_v18 = vadd.f32 %v5152_v20, %v5151_v50  ;;  %v5154_v24 = vpop.f32.mrb[58].mxu0 }
 0x230   : > { %v5155_v23 = vpop.f32.mrb[59].mxu0 }
 0x231   : > { %v6859_v47 = vadd.f32 %v5155_v23, %v5154_v24 }
 0x235   : > { %v5157_v21 = vpop.f32.mrb[60].mxu0 }
 0x236   : > { %v5158_v0 = vpop.f32.mrb[61].mxu0 }
 0x237   : > { %v6861_v26 = vadd.f32 %v5158_v0, %v5157_v21  ;;  %v5160_v4 = vpop.f32.mrb[62].mxu0  ;;  %v2526_v21 = vmul.f32 %v6852_v15, %v6852_v15 }
 0x238   : > { %v5161_v51 = vpop.f32.mrb[63].mxu0 }
 0x239   : > { %v6863_v27 = vadd.f32 %v5161_v51, %v5160_v4 }
 0x23d   : > { %v5163_v28 = vpop.f32.mrb[64].mxu0 }
 0x23e   : > { %v5164_v29 = vpop.f32.mrb[65].mxu0 }
 0x23f   : > { %v6865_v11 = vadd.f32 %v5164_v29, %v5163_v28  ;;  %v5166_v30 = vpop.f32.mrb[66].mxu0 }
 0x240   : > { %v5167_v52 = vpop.f32.mrb[67].mxu0 }
 0x241   : > { %v6867_v17 = vadd.f32 %v5167_v52, %v5166_v30  ;;  %v2531_v25 = vmul.f32 %v6865_v11, %v6865_v11 }
 0x243   : > { %v2532_v31 = vmul.f32 %v6867_v17, %v6867_v17  ;;  %v2549_v61 = vsel %vm2547_vm1, %v2531_v25, 0.0 }
 0x244   : > { %v2550_v40 = vadd.f32 %v2549_v61, %v2548_v39 }
 0x245   : > { %v5169_v19 = vpop.f32.mrb[68].mxu0  ;;  %v2554_v55 = vsel %vm2547_vm1, %v2532_v31, 0.0 }
 0x246   : > { %v5170_v32 = vpop.f32.mrb[69].mxu0  ;;  %v2555_v10 = vadd.f32 %v2554_v55, %v2553_v7 }
 0x247   : > { %v6869_v35 = vadd.f32 %v5170_v32, %v5169_v19  ;;  %v5172_v41 = vpop.f32.mrb[70].mxu0  ;;  %v2558_v19 = vsel %vm2547_vm1, %v2525_v16, 0.0 }
 0x248   : > { %v5173_v42 = vpop.f32.mrb[71].mxu0 }
 0x249   : > { %v6871_v22 = vadd.f32 %v5173_v42, %v5172_v41  ;;  %v2533_v12 = vmul.f32 %v6869_v35, %v6869_v35  ;;  %v2563_v42 = vsel %vm2547_vm1, %v2526_v21, 0.0 }
 0x24b   : > { %v2534_v50 = vmul.f32 %v6871_v22, %v6871_v22  ;;  %v2559_v51 = vsel %vm2547_vm1, %v2533_v12, 0.0 }
 0x24d   : > { %v5175_v43 = vpop.f32.mrb[72].mxu0  ;;  %v2564_v32 = vsel %vm2547_vm1, %v2534_v50, 0.0 }
 0x24e   : > { %v5176_v45 = vpop.f32.mrb[73].mxu0 }
 0x24f   : > { %v6873_v5 = vadd.f32 %v5176_v45, %v5175_v43  ;;  %v5178_v33 = vpop.f32.mrb[74].mxu0  ;;  %v2560_v43 = vadd.f32 %v2559_v51, %v2558_v19  ;;  %v2527_v45 = vmul.f32 %v6857_v18, %v6857_v18 }
 0x250   : > { %v5179_v3 = vpop.f32.mrb[75].mxu0 }
 0x251   : > { %v6875_v53 = vadd.f32 %v5179_v3, %v5178_v33  ;;  %v2535_v41 = vmul.f32 %v6873_v5, %v6873_v5  ;;  %v2568_v55 = vsel %vm2547_vm1, %v2527_v45, 0.0 }
 0x253   : > { %v2536_v33 = vmul.f32 %v6875_v53, %v6875_v53  ;;  %v2569_v31 = vsel %vm2547_vm1, %v2535_v41, 0.0 }
 0x254   : > { %v2570_v12 = vadd.f32 %v2569_v31, %v2568_v55 }
 0x255   : > { %v5181_v56 = vpop.f32.mrb[76].mxu0 }
 0x256   : > { %v5182_v57 = vpop.f32.mrb[77].mxu0 }
 0x257   : > { %v6877_v6 = vadd.f32 %v5182_v57, %v5181_v56  ;;  %v5184_v58 = vpop.f32.mrb[78].mxu0  ;;  %v2528_v57 = vmul.f32 %v6859_v47, %v6859_v47 }
 0x258   : > { %v5185_v59 = vpop.f32.mrb[79].mxu0 }
 0x259   : > { %v6879_v60 = vadd.f32 %v5185_v59, %v5184_v58  ;;  %v2529_v58 = vmul.f32 %v6861_v26, %v6861_v26  ;;  %v2565_v59 = vadd.f32 %v2564_v32, %v2563_v42  ;;  %v2537_v63 = vmul.f32 %v6877_v6, %v6877_v6 }
 0x25a   : > { %v2573_v7 = vsel %vm2547_vm1, %v2528_v57, 0.0 }
 0x25b   : > { %v2579_v50 = vsel %vm2547_vm1, %v2537_v63, 0.0 }
 0x25d   : > { %v5187_v54 = vpop.f32.mrb[80].mxu0 }
 0x25e   : > { %v5188_v37 = vpop.f32.mrb[81].mxu0 }
 0x25f   : > { %v6890_v38 = vadd.f32 %v5188_v37, %v5187_v54  ;;  %v5190_v1 = vpop.f32.mrb[82].mxu0 }
 0x260   : > { %v5191_v44 = vpop.f32.mrb[83].mxu0 }
 0x261   : > { %v2539_v62 = vmul.f32 %v6890_v38, %v6890_v38  ;;  %v6896_v2 = vadd.f32 %v5191_v44, %v5190_v1 }
 0x263   : > { %v2551_v48 = vsel %vm2547_vm1, %v2539_v62, 0.0  ;;  %v2540_v8 = vmul.f32 %v6896_v2, %v6896_v2  ;;  %v2574_v62 = vsel %vm2547_vm1, %v2536_v33, 0.0 }
 0x264   : > { %v2552_v36 = vadd.f32 %v2551_v48, %v2550_v40  ;;  %v2578_v48 = vsel %vm2547_vm1, %v2529_v58, 0.0  ;;  %v2575_v16 = vadd.f32 %v2574_v62, %v2573_v7 }
 0x265   : > { %v2556_v14 = vsel %vm2547_vm1, %v2540_v8, 0.0  ;;  %v5193_v34 = vpop.f32.mrb[84].mxu0  ;;  %v2530_v8 = vmul.f32 %v6863_v27, %v6863_v27  ;;  %v2580_v62 = vadd.f32 %v2579_v50, %v2578_v48 }
 0x266   : > { %v6909_v20 = vmax.f32 %v2552_v36, 1e-08  ;;  %v2557_v24 = vadd.f32 %v2556_v14, %v2555_v10  ;;  %v5194_v23 = vpop.f32.mrb[85].mxu0 }
 0x267   : > { %v6913_v0 = vadd.f32 %v5194_v23, %v5193_v34  ;;  %v5196_v4 = vpop.f32.mrb[86].mxu0 }
 0x268   : > { %5736 = vrsqrt.f32 %v6909_v20  ;;  %v5197_v28 = vpop.f32.mrb[87].mxu0  ;;  %v6917_v29 = vmax.f32 %v2557_v24, 1e-08  ;;  %v2538_v24 = vmul.f32 %v6879_v60, %v6879_v60  ;;  %vm2598_vm2 = vcmp.eq.f32.partialorder %v6909_v20, inf }
 0x269   : > { %v2541_v30 = vmul.f32 %v6913_v0, %v6913_v0  ;;  %v6921_v52 = vadd.f32 %v5197_v28, %v5196_v4  ;;  %vm2600_vm3 = vcmp.eq.f32.partialorder %v6909_v20, 0.0  ;;  %v2601_v21 = vand.u32 2147483648, %v6909_v20 }
 0x26a   : > { %5738 = vrsqrt.f32 %v6917_v29  ;;  %vm2605_vm4 = vcmp.eq.f32.partialorder %v6917_v29, inf  ;;  %vm2607_vm5 = vcmp.eq.f32.partialorder %v6917_v29, 0.0 }
 0x26b   : > { %v2561_v3 = vsel %vm2547_vm1, %v2541_v30, 0.0  ;;  %v2542_v56 = vmul.f32 %v6921_v52, %v6921_v52 }
 0x26c   : > { %v2562_v25 = vadd.f32 %v2561_v3, %v2560_v43  ;;  %v2608_v43 = vand.u32 2147483648, %v6917_v29 }
 0x26d   : > { %v5199_v9 = vpop.f32.mrb[88].mxu0  ;;  %v2566_v54 = vsel %vm2547_vm1, %v2542_v56, 0.0 }
 0x26e   : > { %v5200_v37 = vpop.f32.mrb[89].mxu0  ;;  %v6944_v61 = vmax.f32 %v2562_v25, 1e-08  ;;  %v2567_v1 = vadd.f32 %v2566_v54, %v2565_v59 }
 0x26f   : > { %v6946_v44 = vadd.f32 %v5200_v37, %v5199_v9  ;;  %v5202_v39 = vpop.f32.mrb[90].mxu0 }
 0x270   : > { %v5203_v40 = vpop.f32.mrb[91].mxu0  ;;  %5740 = vrsqrt.f32 %v6944_v61  ;;  %v6955_v36 = vmax.f32 %v2567_v1, 1e-08  ;;  %vm2612_vm6 = vcmp.eq.f32.partialorder %v6944_v61, inf  ;;  %v2615_v48 = vand.u32 2147483648, %v6944_v61 }
 0x271   : > { %v2543_v14 = vmul.f32 %v6946_v44, %v6946_v44  ;;  %v6959_v34 = vadd.f32 %v5203_v40, %v5202_v39  ;;  %vm2614_vm7 = vcmp.eq.f32.partialorder %v6944_v61, 0.0 }
 0x272   : > { %v5737_v10 = vpop.eup %5736  ;;  %5742 = vrsqrt.f32 %v6955_v36  ;;  %vm2619_vm8 = vcmp.eq.f32.partialorder %v6955_v36, inf  ;;  %vm2621_vm9 = vcmp.eq.f32.partialorder %v6955_v36, 0.0 }
 0x273   : > { %v2597_v23 = vmul.f32 %v5737_v10, %v6909_v20  ;;  %v2571_v28 = vsel %vm2547_vm1, %v2543_v14, 0.0  ;;  %v2544_v30 = vmul.f32 %v6959_v34, %v6959_v34  ;;  %v5053_v19 = vpop.f32.mrb[0].mxu1 }
 0x274   : > { %v5739_v4 = vpop.eup %5738  ;;  %v2572_v45 = vadd.f32 %v2571_v28, %v2570_v12  ;;  %v5054_v33 = vpop.f32.mrb[1].mxu1 }
 0x275   : > { %v2599_v51 = vsel %vm2598_vm2, %v6909_v20, %v2597_v23  ;;  %v5205_v32 = vpop.f32.mrb[92].mxu0  ;;  %v2604_v42 = vmul.f32 %v5739_v4, %v6917_v29  ;;  %v2576_v20 = vsel %vm2547_vm1, %v2544_v30, 0.0  ;;  %v6977_v57 = vadd.f32 %v5054_v33, %v5053_v19  ;;  %v5056_v58 = vpop.f32.mrb[2].mxu1 }
 0x276   : > { %v2602_v41 = vsel %vm2600_vm3, %v2601_v21, %v2599_v51  ;;  %v5206_v3 = vpop.f32.mrb[93].mxu0  ;;  %v2592_v31 = vmax.f32 %v2572_v45, 1e-08  ;;  %v2577_v54 = vadd.f32 %v2576_v20, %v2575_v16  ;;  %v5057_v37 = vpop.f32.mrb[3].mxu1  ;;  %v2583_v21 = vsel %vm2547_vm1, %v2530_v8, 0.0 }
 0x277   : > { %v4916_v56 = vmul.f32 -1.442695, %v2602_v41  ;;  %v6979_v59 = vadd.f32 %v5206_v3, %v5205_v32  ;;  %v5208_v25 = vpop.f32.mrb[94].mxu0  ;;  %v2606_v9 = vsel %vm2605_vm4, %v6917_v29, %v2604_v42  ;;  %v6985_v39 = vadd.f32 %v5057_v37, %v5056_v58 }
 0x278   : > { %v5209_v63 = vpop.f32.mrb[95].mxu0  ;;  %v2609_v1 = vsel %vm2607_vm5, %v2608_v43, %v2606_v9  ;;  %v2593_v10 = vmax.f32 %v2577_v54, 1e-08  ;;  %v2584_v29 = vsel %vm2547_vm1, %v2538_v24, 0.0  ;;  %v2622_v8 = vand.u32 2147483648, %v6955_v36 }
 0x279   : > { %5744 = vpow2.f32 %v4916_v56  ;;  %v2545_v55 = vmul.f32 %v6979_v59, %v6979_v59  ;;  %v4917_v40 = vmul.f32 -1.442695, %v2609_v1  ;;  %v6990_v14 = vadd.f32 %v5209_v63, %v5208_v25 }
 0x27a   : > { %5746 = vrsqrt.f32 %v2592_v31  ;;  %v5741_v7 = vpop.eup %5740  ;;  %v2585_v28 = vadd.f32 %v2584_v29, %v2583_v21  ;;  %vm2626_vm10 = vcmp.eq.f32.partialorder %v2592_v31, inf  ;;  %v2629_v9 = vand.u32 2147483648, %v2592_v31 }
 0x27b   : > { %v2581_v12 = vsel %vm2547_vm1, %v2545_v55, 0.0  ;;  %5748 = vpow2.f32 %v4917_v40  ;;  %v2611_v16 = vmul.f32 %v5741_v7, %v6944_v61  ;;  %v2546_v24 = vmul.f32 %v6990_v14, %v6990_v14 }
 0x27c   : > { %v2582_v23 = vadd.f32 %v2581_v12, %v2580_v62  ;;  %5750 = vrsqrt.f32 %v2593_v10  ;;  %v5743_v50 = vpop.eup %5742  ;;  %vm2628_vm11 = vcmp.eq.f32.partialorder %v2592_v31, 0.0  ;;  %vm2633_vm12 = vcmp.eq.f32.partialorder %v2593_v10, inf }
 0x27d   : > { %v2613_v4 = vsel %vm2612_vm6, %v6944_v61, %v2611_v16  ;;  %v2618_v19 = vmul.f32 %v5743_v50, %v6955_v36  ;;  %v2586_v61 = vsel %vm2547_vm1, %v2546_v24, 0.0  ;;  %v2636_v7 = vand.u32 2147483648, %v2593_v10 }
 0x27e   : > { %v2594_v51 = vmax.f32 %v2582_v23, 1e-08  ;;  %v2616_v30 = vsel %vm2614_vm7, %v2615_v48, %v2613_v4  ;;  %v2587_v43 = vadd.f32 %v2586_v61, %v2585_v28  ;;  %vm2635_vm13 = vcmp.eq.f32.partialorder %v2593_v10, 0.0 }
 0x27f   : > { %v4918_v32 = vmul.f32 -1.442695, %v2616_v30  ;;  %v2620_v41 = vsel %vm2619_vm8, %v6955_v36, %v2618_v19 }
 0x280   : > { %5752 = vrsqrt.f32 %v2594_v51  ;;  %v2623_v42 = vsel %vm2621_vm9, %v2622_v8, %v2620_v41  ;;  %v7007_v20 = vmax.f32 %v2587_v43, 1e-08  ;;  %vm2640_vm14 = vcmp.eq.f32.partialorder %v2594_v51, inf }
 0x281   : > { %5754 = vpow2.f32 %v4918_v32  ;;  %v4919_v33 = vmul.f32 -1.442695, %v2623_v42  ;;  %v2643_v28 = vand.u32 2147483648, %v2594_v51  ;;  %vm2642_vm15 = vcmp.eq.f32.partialorder %v2594_v51, 0.0 }
 0x282   : > { %vm2647_vm0 = vcmp.eq.f32.partialorder %v7007_v20, inf  ;;  %vm2649_vm2 = vcmp.eq.f32.partialorder %v7007_v20, 0.0 }
 0x283   : > { %v5745_v45 = vpop.eup %5744  ;;  %5756 = vpow2.f32 %v4919_v33 }
 0x284   : > { %v5747_v3 = vpop.eup %5746  ;;  %v2676_v56 = vadd.f32 1.0, %v5745_v45 }
 0x285   : > { %v2625_v58 = vmul.f32 %v5747_v3, %v2592_v31  ;;  %v5749_v25 = vpop.eup %5748  ;;  %v5059_v63 = vpop.f32.mrb[4].mxu1 }
 0x286   : > { %5758 = vrcp.f32 %v2676_v56  ;;  %v5751_v54 = vpop.eup %5750  ;;  %v2677_v37 = vadd.f32 1.0, %v5749_v25  ;;  %v5060_v62 = vpop.f32.mrb[5].mxu1 }
 0x287   : > { %v2627_v36 = vsel %vm2626_vm10, %v2592_v31, %v2625_v58  ;;  %5760 = vrsqrt.f32 %v7007_v20  ;;  %v2632_v55 = vmul.f32 %v5751_v54, %v2593_v10  ;;  %v7010_v12 = vadd.f32 %v5060_v62, %v5059_v63  ;;  %v5062_v29 = vpop.f32.mrb[6].mxu1 }
 0x288   : > { %v2630_v1 = vsel %vm2628_vm11, %v2629_v9, %v2627_v36  ;;  %5762 = vrcp.f32 %v2677_v37  ;;  %v5063_v21 = vpop.f32.mrb[7].mxu1  ;;  %v2650_v54 = vand.u32 2147483648, %v7007_v20 }
 0x289   : > { %v4920_v40 = vmul.f32 -1.442695, %v2630_v1  ;;  %v2634_v23 = vsel %vm2633_vm12, %v2593_v10, %v2632_v55  ;;  %v7012_v50 = vadd.f32 %v5063_v21, %v5062_v29 }
 0x28a   : > { %v5753_v16 = vpop.eup %5752  ;;  %v2637_v48 = vsel %vm2635_vm13, %v2636_v7, %v2634_v23 }
 0x28b   : > { %5764 = vpow2.f32 %v4920_v40  ;;  %v2639_v31 = vmul.f32 %v5753_v16, %v2594_v51  ;;  %v5755_v4 = vpop.eup %5754  ;;  %v4921_v24 = vmul.f32 -1.442695, %v2637_v48 }
 0x28c   : > { %v2678_v30 = vadd.f32 1.0, %v5755_v4 }
 0x28d   : > { %v2641_v19 = vsel %vm2640_vm14, %v2594_v51, %v2639_v31  ;;  %5766 = vpow2.f32 %v4921_v24  ;;  %v5757_v8 = vpop.eup %5756  ;;  %v5065_v61 = vpop.f32.mrb[8].mxu1 }
 0x28e   : > { %v2644_v32 = vsel %vm2642_vm15, %v2643_v28, %v2641_v19  ;;  %5768 = vrcp.f32 %v2678_v30  ;;  %v2679_v42 = vadd.f32 1.0, %v5757_v8  ;;  %v5066_v43 = vpop.f32.mrb[9].mxu1 }
 0x28f   : > { %v4922_v41 = vmul.f32 -1.442695, %v2644_v32  ;;  %v7017_v3 = vadd.f32 %v5066_v43, %v5065_v61  ;;  %v5068_v56 = vpop.f32.mrb[10].mxu1 }
 0x290   : > { %v5759_v10 = vpop.eup %5758  ;;  %v5069_v25 = vpop.f32.mrb[11].mxu1 }
 0x291   : > { %v5761_v45 = vpop.eup %5760  ;;  %v7015_v33 = vmul.f32 %v5759_v10, %v6890_v38  ;;  %5770 = vpow2.f32 %v4922_v41  ;;  %v2700_v58 = vmul.f32 %v5759_v10, %v6840_v49  ;;  %v7024_v37 = vadd.f32 %v5069_v25, %v5068_v56 }
 0x292   : > { %5772 = vrcp.f32 %v2679_v42  ;;  %v2646_v51 = vmul.f32 %v5761_v45, %v7007_v20  ;;  %v5763_v9 = vpop.eup %5762  ;;  %v7035_v62 = vmul.f32 %v5759_v10, %v6865_v11 }
 0x293   : > { %v7027_v38 = vmul.f32 %v5763_v9, %v6896_v2  ;;  %v2701_v49 = vmul.f32 %v5763_v9, %v6842_v46  ;;  %v7032_v63 = vmul.f32 %v5763_v9, %v6867_v17 }
 0x294   : > { %v2648_v36 = vsel %vm2647_vm0, %v7007_v20, %v2646_v51 }
 0x295   : > { %v5765_v1 = vpop.eup %5764  ;;  %v2651_v55 = vsel %vm2649_vm2, %v2650_v54, %v2648_v36  ;;  %v2773_v40 = vpack.c.bf16 %v7027_v38, %v7015_v33  ;;  %v2765_v16 = vpack.c.bf16 %v2701_v49, %v2700_v58  ;;  %v5071_v2 = vpop.f32.mrb[12].mxu1  ;;  %v2769_v20 = vpack.c.bf16 %v7032_v63, %v7035_v62 }
 0x296   : > { %v2680_v7 = vadd.f32 1.0, %v5765_v1  ;;  %v4923_v29 = vmul.f32 -1.442695, %v2651_v55  ;;  %v5072_v46 = vpop.f32.mrb[13].mxu1 }
 0x297   : > { %v5767_v23 = vpop.eup %5766  ;;  %5335 = vmatprep.mubr.msk.bf16.mxu1 %vm2547_vm1, %v2765_v16  ;;  %v7042_v11 = vadd.f32 %v5072_v46, %v5071_v2  ;;  %v5074_v48 = vpop.f32.mrb[14].mxu1 }
 0x298   : > { %5774 = vrcp.f32 %v2680_v7  ;;  %v5769_v17 = vpop.eup %5768  ;;  %v2681_v21 = vadd.f32 1.0, %v5767_v23  ;;  %v5075_v4 = vpop.f32.mrb[15].mxu1 }
 0x299   : > { %5776 = vpow2.f32 %v4923_v29  ;;  %v7045_v31 = vmul.f32 %v5769_v17, %v6913_v0  ;;  %v2702_v24 = vmul.f32 %v5769_v17, %v6850_v13  ;;  %v7048_v30 = vadd.f32 %v5075_v4, %v5074_v48 }
 0x29a   : > { %5778 = vrcp.f32 %v2681_v21  ;;  %v7055_v61 = vmul.f32 %v5769_v17, %v6869_v35 }
 0x29b   : > { %v5771_v28 = vpop.eup %5770 }
 0x29c   : > { %v5773_v19 = vpop.eup %5772  ;;  %v2682_v32 = vadd.f32 1.0, %v5771_v28 }
 0x29d   : > { %v7051_v8 = vmul.f32 %v5773_v19, %v6921_v52  ;;  %v2703_v41 = vmul.f32 %v5773_v19, %v6852_v15  ;;  %v7058_v0 = vmul.f32 %v5773_v19, %v6871_v22  ;;  %v5093_v10 = vpop.f32.mrb[16].mxu1 }
 0x29e   : > { %5780 = vrcp.f32 %v2682_v32  ;;  %v5094_v45 = vpop.f32.mrb[17].mxu1 }
 0x29f   : > { %v2774_v13 = vpack.c.bf16 %v7051_v8, %v7045_v31  ;;  %v2766_v42 = vpack.c.bf16 %v2703_v41, %v2702_v24  ;;  %v2770_v43 = vpack.c.bf16 %v7058_v0, %v7055_v61  ;;  %v5095_v52 = vadd.f32 %v5094_v45, %v5093_v10  ;;  %v5096_v56 = vpop.f32.mrb[18].mxu1  ;;  %v5668_v31 = vld [vmem:[%s7964_s11] sm:$0xff]   ;;  %v5669_v8 = vld [vmem:[%s7964_s11 + $0x8] sm:$0xff]  }
 0x2a0   : > { %v5097_v35 = vpop.f32.mrb[19].mxu1  ;;  %5359 = vmatprep.subr.bf16.mxu1 %v5668_v31 }
 0x2a1   : > { %5336 = vmatmul.mubr.msk.bf16.vlgmr.msra.gmra.mrb[40].mxu1 %vm2547_vm1, %v2766_v42  ;;  %v5098_v51 = vadd.f32 %v5097_v35, %v5096_v56  ;;  %v2157_v9 = vadd.f32 %v5095_v52, %v6977_v57 }
 0x2a2   : > { %v5775_v15 = vpop.eup %5774  ;;  %5360 = vmatpush3.bf16.msra.mxu1 %v5668_v31 }
 0x2a3   : > { %v5777_v58 = vpop.eup %5776  ;;  %v7066_v22 = vmul.f32 %v5775_v15, %v6946_v44  ;;  %v2704_v25 = vmul.f32 %v5775_v15, %v6857_v18  ;;  %v2160_v49 = vadd.f32 %v5098_v51, %v6985_v39  ;;  %v2712_v1 = vmul.f32 %v5775_v15, %v6873_v5  ;;  %5361 = vmatprep.subr.bf16.mxu1 %v5669_v8 }
 0x2a4   : > { %v2683_v54 = vadd.f32 1.0, %v5777_v58  ;;  %v5779_v36 = vpop.eup %5778 }
 0x2a5   : > { %v7073_v55 = vmul.f32 %v5779_v36, %v6959_v34  ;;  %v2705_v7 = vmul.f32 %v5779_v36, %v6859_v47  ;;  %v2713_v44 = vmul.f32 %v5779_v36, %v6875_v53  ;;  %v5099_v29 = vpop.f32.mrb[20].mxu1 }
 0x2a6   : > { %5782 = vrcp.f32 %v2683_v54  ;;  %v5100_v57 = vpop.f32.mrb[21].mxu1  ;;  %5362 = vmatpush3.bf16.msra.mxu1 %v5669_v8 }
 0x2a7   : > { %v2775_v18 = vpack.c.bf16 %v7073_v55, %v7066_v22  ;;  %v2767_v2 = vpack.c.bf16 %v2705_v7, %v2704_v25  ;;  %v2771_v23 = vpack.c.bf16 %v2713_v44, %v2712_v1  ;;  %v5101_v5 = vadd.f32 %v5100_v57, %v5099_v29  ;;  %v5102_v46 = vpop.f32.mrb[22].mxu1  ;;  %v5671_v22 = vld [vmem:[%s7964_s11 + $0x18] sm:$0xff]   ;;  %v7145_v55 = vld [vmem:[%s7963_s10] sm:$0xff]  }
 0x2a8   : > { %v5781_v16 = vpop.eup %5780  ;;  %v5103_v17 = vpop.f32.mrb[23].mxu1 }
 0x2a9   : > { %v7080_v39 = vmul.f32 %v5781_v16, %v6979_v59  ;;  %v2706_v34 = vmul.f32 %v5781_v16, %v6861_v26  ;;  %5339 = vmatprep.mubr.msk.bf16.mxu1 %vm2547_vm1, %v2767_v2  ;;  %v5104_v47 = vadd.f32 %v5103_v17, %v5102_v46  ;;  %v2165_v53 = vadd.f32 %v5101_v5, %v7010_v12 }
 0x2aa   : > { %v2714_v61 = vmul.f32 %v5781_v16, %v6877_v6 }
 0x2ab   : > { %v2168_v21 = vadd.f32 %v5104_v47, %v7012_v50 }
 0x2ad   : > { %v5105_v48 = vpop.f32.mrb[24].mxu1 }
 0x2ae   : > { %v5106_v24 = vpop.f32.mrb[25].mxu1 }
 0x2af   : > { %v5107_v59 = vadd.f32 %v5106_v24, %v5105_v48  ;;  %v5108_v19 = vpop.f32.mrb[26].mxu1 }
 0x2b0   : > { %v5783_v4 = vpop.eup %5782  ;;  %v5109_v41 = vpop.f32.mrb[27].mxu1 }
 0x2b1   : > { %v7087_v28 = vmul.f32 %v5783_v4, %v6990_v14  ;;  %v2707_v32 = vmul.f32 %v5783_v4, %v6863_v27  ;;  %v2715_v26 = vmul.f32 %v5783_v4, %v6879_v60  ;;  %v5110_v0 = vadd.f32 %v5109_v41, %v5108_v19 }
 0x2b2   : > { %v2173_v10 = vadd.f32 %v5107_v59, %v7017_v3 }
 0x2b3   : > { %v2776_v12 = vpack.c.bf16 %v7087_v28, %v7080_v39  ;;  %v2768_v50 = vpack.c.bf16 %v2707_v32, %v2706_v34  ;;  %v2772_v42 = vpack.c.bf16 %v2715_v26, %v2714_v61  ;;  %v2176_v14 = vadd.f32 %v5110_v0, %v7024_v37  ;;  %v4899_v37 = vld [vmem:[%s7960_s7] ss:$0 sm:$0xff] }
 0x2b5   : > { %5340 = vmatmul.mubr.msk.bf16.gmra.mrb[44].mxu1 %vm2547_vm1, %v2768_v50  ;;  %v5111_v27 = vpop.f32.mrb[28].mxu1 }
 0x2b6   : > { %5343 = vmatprep.mubr.msk.bf16.mxu1 %vm2547_vm1, %v2769_v20  ;;  %v5112_v60 = vpop.f32.mrb[29].mxu1 }
 0x2b7   : > { %v5113_v6 = vadd.f32 %v5112_v60, %v5111_v27  ;;  %v5114_v45 = vpop.f32.mrb[30].mxu1 }
 0x2b8   : > { %v5115_v52 = vpop.f32.mrb[31].mxu1 }
 0x2b9   : > { %v5116_v56 = vadd.f32 %v5115_v52, %v5114_v45  ;;  %v2181_v15 = vadd.f32 %v5113_v6, %v7042_v11 }
 0x2bb   : > { %v2184_v3 = vadd.f32 %v5116_v56, %v7048_v30 }
 0x2bd   : > { %5344 = vmatmul.mubr.msk.bf16.gmra.mrb[48].mxu1 %vm2547_vm1, %v2770_v43  ;;  %v5321_v63 = vpop.f32.mrb[32].mxu1 }
 0x2be   : > { %5347 = vmatprep.mubr.msk.bf16.mxu1 %vm2547_vm1, %v2771_v23  ;;  %v2230_v62 = vadd.f32 %v5321_v63, %v2165_v53  ;;  %v2221_v20 = vpop.f32.mrb[33].mxu1 }
 0x2bf   : > { %v2222_v35 = vadd.f32 %v2221_v20, %v2157_v9  ;;  %v5322_v58 = vpop.f32.mrb[34].mxu1 }
 0x2c0   : > { %v2260_v51 = vadd.f32 %v4899_v37, %v2230_v62  ;;  %v2233_v25 = vadd.f32 %v5322_v58, %v2168_v21  ;;  %v2224_v54 = vpop.f32.mrb[35].mxu1 }
 0x2c1   : > { %v2258_v36 = vadd.f32 %v4899_v37, %v2222_v35  ;;  %v2225_v11 = vadd.f32 %v2224_v54, %v2160_v49 }
 0x2c2   : > { %v2261_v1 = vadd.f32 %v4899_v37, %v2233_v25  ;;  %v2268_v30 = vmax.f32 %v2260_v51, 0.0 }
 0x2c3   : > { %v2259_v43 = vadd.f32 %v4899_v37, %v2225_v11  ;;  %v2266_v44 = vmax.f32 %v2258_v36, 0.0 }
 0x2c4   : > { %v2269_v7 = vmax.f32 %v2261_v1, 0.0 }
 0x2c5   : > { %5348 = vmatmul.mubr.msk.bf16.gmra.mrb[52].mxu1 %vm2547_vm1, %v2772_v42  ;;  %v2267_v29 = vmax.f32 %v2259_v43, 0.0  ;;  %v5325_v9 = vpop.f32.mrb[36].mxu1 }
 0x2c6   : > { %5351 = vmatprep.mubr.msk.bf16.mxu1 %vm2547_vm1, %v2773_v40  ;;  %v7113_v16 = vpack.c.bf16 %v2269_v7, %v2268_v30  ;;  %v2246_v57 = vadd.f32 %v5325_v9, %v2181_v15  ;;  %v2237_v2 = vpop.f32.mrb[37].mxu1 }
 0x2c7   : > { %v2238_v23 = vadd.f32 %v2237_v2, %v2173_v10  ;;  %v5326_v49 = vpop.f32.mrb[38].mxu1  ;;  %v7115_v39 = vpack.c.bf16 %v2267_v29, %v2266_v44 }
 0x2c8   : > { %v2264_v5 = vadd.f32 %v4899_v37, %v2246_v57  ;;  %v2249_v46 = vadd.f32 %v5326_v49, %v2184_v3  ;;  %v2240_v34 = vpop.f32.mrb[39].mxu1 }
 0x2c9   : > { %v2262_v17 = vadd.f32 %v4899_v37, %v2238_v23  ;;  %v2241_v47 = vadd.f32 %v2240_v34, %v2176_v14 }
 0x2ca   : > { %v2265_v53 = vadd.f32 %v4899_v37, %v2249_v46  ;;  %v2272_v38 = vmax.f32 %v2264_v5, 0.0 }
 0x2cb   : > { %v2263_v33 = vadd.f32 %v4899_v37, %v2241_v47  ;;  %v2270_v21 = vmax.f32 %v2262_v17, 0.0 }
 0x2cc   : > { %v2273_v40 = vmax.f32 %v2265_v53, 0.0 }
 0x2cd   : > { %5352 = vmatmul.mubr.msk.bf16.gmra.mrb[56].mxu1 %vm2547_vm1, %v2774_v13  ;;  %v2271_v48 = vmax.f32 %v2263_v33, 0.0  ;;  %v5670_v13 = vld [vmem:[%s7964_s11 + $0x10] sm:$0xff]  }
 0x2ce   : > { %5355 = vmatprep.mubr.msk.bf16.mxu1 %vm2547_vm1, %v2775_v18  ;;  %v7125_v4 = vpack.c.bf16 %v2273_v40, %v2272_v38  ;;  %5363 = vmatprep.subr.bf16.mxu1 %v5670_v13 }
 0x2cf   : > { %v7127_v24 = vpack.c.bf16 %v2271_v48, %v2270_v21  ;;  %5364 = vmatpush3.bf16.msra.mxu1 %v5670_v13 }
 0x2d0   : > { %5365 = vmatprep.subr.bf16.mxu1 %v5671_v22 }
 0x2d3   : > { %5366 = vmatpush3.bf16.msra.mxu1 %v5671_v22 }
 0x2d4   : > { %5375 = vmatprep.subr.bf16.mxu1 %v7145_v55 }
 0x2d5   : > { %5356 = vmatmul.mubr.msk.bf16.gmra.mrb[60].mxu1 %vm2547_vm1, %v2776_v12 }
 0x374   : > { %v7148_v18 = vpop.f32.mrb[40].mxu1 }
 0x375   : > { %v7150_v28 = vpop.f32.mrb[41].mxu1  ;;  %v2972_v42 = vmul.f32 %v7148_v18, %v7148_v18 }
 0x376   : > { %v7152_v59 = vpop.f32.mrb[42].mxu1  ;;  %v2970_v14 = vmul.f32 %v7150_v28, %v7150_v28 }
 0x377   : > { %v3339_v19 = vpack.c.bf16 %v7152_v59, %v7148_v18  ;;  %v7156_v32 = vpop.f32.mrb[43].mxu1  ;;  %v2973_v60 = vmul.f32 %v7152_v59, %v7152_v59  ;;  %v3004_v52 = vsel %vm2547_vm1, %v2972_v42, 0.0  ;;  %v5685_v59 = vld [vmem:[%s7967_s14 + $0x8] sm:$0xff]  }
 0x378   : > { %v3338_v26 = vpack.c.bf16 %v7156_v32, %v7150_v28  ;;  %v2971_v56 = vmul.f32 %v7156_v32, %v7156_v32  ;;  %v2994_v37 = vsel %vm2547_vm1, %v2970_v14, 0.0  ;;  %v5684_v28 = vld [vmem:[%s7967_s14] sm:$0xff]   ;;  %v5687_v32 = vld [vmem:[%s7967_s14 + $0x18] sm:$0xff]  }
 0x379   : > { %v3009_v36 = vsel %vm2547_vm1, %v2973_v60, 0.0  ;;  %5431 = vmatprep.subr.bf16.mxu0 %v5684_v28 }
 0x37a   : > { %v2999_v43 = vsel %vm2547_vm1, %v2971_v56, 0.0  ;;  %5432 = vmatpush3.bf16.msra.mxu0 %v5684_v28 }
 0x37b   : > { %5433 = vmatprep.subr.bf16.mxu0 %v5685_v59 }
 0x37e   : > { %5434 = vmatpush3.bf16.msra.mxu0 %v5685_v59 }
 0x388   : > { %v7160_v41 = vpop.f32.mrb[44].mxu1 }
 0x389   : > { %v7162_v61 = vpop.f32.mrb[45].mxu1  ;;  %v2976_v30 = vmul.f32 %v7160_v41, %v7160_v41 }
 0x38a   : > { %v7164_v12 = vpop.f32.mrb[46].mxu1  ;;  %v2974_v29 = vmul.f32 %v7162_v61, %v7162_v61 }
 0x38b   : > { %v3341_v0 = vpack.c.bf16 %v7164_v12, %v7160_v41  ;;  %v7168_v50 = vpop.f32.mrb[47].mxu1  ;;  %v2977_v2 = vmul.f32 %v7164_v12, %v7164_v12  ;;  %v3024_v5 = vsel %vm2547_vm1, %v2976_v30, 0.0 }
 0x38c   : > { %v3340_v10 = vpack.c.bf16 %v7168_v50, %v7162_v61  ;;  %v2975_v46 = vmul.f32 %v7168_v50, %v7168_v50  ;;  %v3014_v47 = vsel %vm2547_vm1, %v2974_v29, 0.0 }
 0x38d   : > { %v3029_v13 = vsel %vm2547_vm1, %v2977_v2, 0.0 }
 0x38e   : > { %v3019_v14 = vsel %vm2547_vm1, %v2975_v46, 0.0 }
 0x390   : > { %v7176_v27 = vpop.f32.mrb[48].mxu1 }
 0x391   : > { %v2980_v6 = vmul.f32 %v7176_v27, %v7176_v27  ;;  %v7182_v45 = vpop.f32.mrb[49].mxu1 }
 0x392   : > { %v2978_v15 = vmul.f32 %v7182_v45, %v7182_v45  ;;  %v7189_v3 = vpop.f32.mrb[50].mxu1 }
 0x393   : > { %v3005_v63 = vsel %vm2547_vm1, %v2980_v6, 0.0  ;;  %v2981_v62 = vmul.f32 %v7189_v3, %v7189_v3  ;;  %v3343_v20 = vpack.c.bf16 %v7189_v3, %v7176_v27  ;;  %v7197_v35 = vpop.f32.mrb[51].mxu1 }
 0x394   : > { %v3006_v58 = vadd.f32 %v3005_v63, %v3004_v52  ;;  %v2995_v51 = vsel %vm2547_vm1, %v2978_v15, 0.0  ;;  %v2979_v25 = vmul.f32 %v7197_v35, %v7197_v35  ;;  %v3342_v54 = vpack.c.bf16 %v7197_v35, %v7182_v45 }
 0x395   : > { %v2996_v11 = vadd.f32 %v2995_v51, %v2994_v37  ;;  %v3010_v1 = vsel %vm2547_vm1, %v2981_v62, 0.0 }
 0x396   : > { %v3011_v7 = vadd.f32 %v3010_v1, %v3009_v36  ;;  %v3000_v44 = vsel %vm2547_vm1, %v2979_v25, 0.0 }
 0x397   : > { %v3001_v9 = vadd.f32 %v3000_v44, %v2999_v43 }
 0x398   : > { %v7212_v57 = vpop.f32.mrb[52].mxu1 }
 0x399   : > { %v2984_v23 = vmul.f32 %v7212_v57, %v7212_v57  ;;  %v7218_v49 = vpop.f32.mrb[53].mxu1 }
 0x39a   : > { %v2982_v34 = vmul.f32 %v7218_v49, %v7218_v49  ;;  %v7225_v17 = vpop.f32.mrb[54].mxu1 }
 0x39b   : > { %v3025_v53 = vsel %vm2547_vm1, %v2984_v23, 0.0  ;;  %v2985_v33 = vmul.f32 %v7225_v17, %v7225_v17  ;;  %v3345_v38 = vpack.c.bf16 %v7225_v17, %v7212_v57  ;;  %v7233_v40 = vpop.f32.mrb[55].mxu1 }
 0x39c   : > { %v3026_v21 = vadd.f32 %v3025_v53, %v3024_v5  ;;  %v3015_v48 = vsel %vm2547_vm1, %v2982_v34, 0.0  ;;  %v2983_v31 = vmul.f32 %v7233_v40, %v7233_v40  ;;  %v3344_v8 = vpack.c.bf16 %v7233_v40, %v7218_v49 }
 0x39d   : > { %v3016_v22 = vadd.f32 %v3015_v48, %v3014_v47  ;;  %v3030_v42 = vsel %vm2547_vm1, %v2985_v33, 0.0 }
 0x39e   : > { %v3031_v60 = vadd.f32 %v3030_v42, %v3029_v13  ;;  %v3020_v6 = vsel %vm2547_vm1, %v2983_v31, 0.0 }
 0x39f   : > { %v3021_v52 = vadd.f32 %v3020_v6, %v3019_v14 }
 0x3a0   : > { %v7244_v56 = vpop.f32.mrb[56].mxu1 }
 0x3a1   : > { %v2988_v15 = vmul.f32 %v7244_v56, %v7244_v56  ;;  %v7248_v37 = vpop.f32.mrb[57].mxu1 }
 0x3a2   : > { %v2986_v63 = vmul.f32 %v7248_v37, %v7248_v37  ;;  %v7252_v62 = vpop.f32.mrb[58].mxu1 }
 0x3a3   : > { %v3007_v51 = vsel %vm2547_vm1, %v2988_v15, 0.0  ;;  %v2989_v25 = vmul.f32 %v7252_v62, %v7252_v62  ;;  %v7259_v1 = vpop.f32.mrb[59].mxu1 }
 0x3a4   : > { %v3008_v43 = vadd.f32 %v3007_v51, %v3006_v58  ;;  %v2997_v30 = vsel %vm2547_vm1, %v2986_v63, 0.0  ;;  %v2987_v44 = vmul.f32 %v7259_v1, %v7259_v1 }
 0x3a5   : > { %v2998_v2 = vadd.f32 %v2997_v30, %v2996_v11  ;;  %v3012_v23 = vsel %vm2547_vm1, %v2989_v25, 0.0 }
 0x3a6   : > { %v7267_v5 = vmax.f32 %v3008_v43, 1e-08  ;;  %v3013_v46 = vadd.f32 %v3012_v23, %v3011_v7  ;;  %v3002_v34 = vsel %vm2547_vm1, %v2987_v44, 0.0 }
 0x3a7   : > { %v3034_v47 = vmax.f32 %v2998_v2, 1e-08  ;;  %v3003_v53 = vadd.f32 %v3002_v34, %v3001_v9 }
 0x3a8   : > { %5784 = vrsqrt.f32 %v7267_v5  ;;  %v3037_v58 = vmax.f32 %v3013_v46, 1e-08  ;;  %v7271_v33 = vpop.f32.mrb[60].mxu1  ;;  %vm3058_vm3 = vcmp.eq.f32.partialorder %v7267_v5, inf  ;;  %vm3060_vm6 = vcmp.eq.f32.partialorder %v7267_v5, 0.0 }
 0x3a9   : > { %5786 = vrsqrt.f32 %v3034_v47  ;;  %v3035_v48 = vmax.f32 %v3003_v53, 1e-08  ;;  %v2992_v31 = vmul.f32 %v7271_v33, %v7271_v33  ;;  %v7275_v11 = vpop.f32.mrb[61].mxu1  ;;  %vm3044_vm4 = vcmp.eq.f32.partialorder %v3034_v47, inf }
 0x3aa   : > { %5788 = vrsqrt.f32 %v3037_v58  ;;  %v2990_v7 = vmul.f32 %v7275_v11, %v7275_v11  ;;  %v7279_v13 = vpop.f32.mrb[62].mxu1  ;;  %vm3046_vm5 = vcmp.eq.f32.partialorder %v3034_v47, 0.0  ;;  %vm3065_vm7 = vcmp.eq.f32.partialorder %v3037_v58, inf }
 0x3ab   : > { %5790 = vrsqrt.f32 %v3035_v48  ;;  %v3027_v9 = vsel %vm2547_vm1, %v2992_v31, 0.0  ;;  %v2993_v42 = vmul.f32 %v7279_v13, %v7279_v13  ;;  %v7286_v6 = vpop.f32.mrb[63].mxu1  ;;  %vm3051_vm8 = vcmp.eq.f32.partialorder %v3035_v48, inf }
 0x3ac   : > { %v3028_v15 = vadd.f32 %v3027_v9, %v3026_v21  ;;  %v3017_v63 = vsel %vm2547_vm1, %v2990_v7, 0.0  ;;  %v2991_v51 = vmul.f32 %v7286_v6, %v7286_v6  ;;  %vm3067_vm9 = vcmp.eq.f32.partialorder %v3037_v58, 0.0 }
 0x3ad   : > { %v3018_v43 = vadd.f32 %v3017_v63, %v3016_v22  ;;  %v3032_v30 = vsel %vm2547_vm1, %v2993_v42, 0.0  ;;  %vm3053_vm10 = vcmp.eq.f32.partialorder %v3035_v48, 0.0  ;;  %v7995_v18 = vpack.c.bf16 %v7279_v13, %v7271_v33 }
 0x3ae   : > { %v7294_v44 = vmax.f32 %v3028_v15, 1e-08  ;;  %v3033_v2 = vadd.f32 %v3032_v30, %v3031_v60  ;;  %v3022_v23 = vsel %vm2547_vm1, %v2991_v51, 0.0  ;;  %v3047_v15 = vand.u32 2147483648, %v3034_v47 }
 0x3af   : > { %v7297_v46 = vmax.f32 %v3018_v43, 1e-08  ;;  %v3023_v34 = vadd.f32 %v3022_v23, %v3021_v52  ;;  %v3061_v51 = vand.u32 2147483648, %v7267_v5  ;;  %v3054_v23 = vand.u32 2147483648, %v3035_v48 }
 0x3b0   : > { %5792 = vrsqrt.f32 %v7294_v44  ;;  %v7300_v21 = vmax.f32 %v3033_v2, 1e-08  ;;  %v3068_v2 = vand.u32 2147483648, %v3037_v58  ;;  %vm3086_vm13 = vcmp.eq.f32.partialorder %v7294_v44, inf }
 0x3b1   : > { %5794 = vrsqrt.f32 %v7297_v46  ;;  %v7303_v53 = vmax.f32 %v3023_v34, 1e-08  ;;  %vm3072_vm11 = vcmp.eq.f32.partialorder %v7297_v46, inf  ;;  %vm3074_vm12 = vcmp.eq.f32.partialorder %v7297_v46, 0.0 }
 0x3b2   : > { %v5785_v31 = vpop.eup %5784  ;;  %5796 = vrsqrt.f32 %v7300_v21  ;;  %vm3088_vm14 = vcmp.eq.f32.partialorder %v7294_v44, 0.0  ;;  %vm3093_vm15 = vcmp.eq.f32.partialorder %v7300_v21, inf  ;;  %vm3095_vm2 = vcmp.eq.f32.partialorder %v7300_v21, 0.0 }
 0x3b3   : > { %v5787_v22 = vpop.eup %5786  ;;  %v3057_v7 = vmul.f32 %v5785_v31, %v7267_v5  ;;  %5798 = vrsqrt.f32 %v7303_v53  ;;  %vm3079_vm0 = vcmp.eq.f32.partialorder %v7303_v53, inf }
 0x3b4   : > { %v5789_v60 = vpop.eup %5788  ;;  %v3043_v52 = vmul.f32 %v5787_v22, %v3034_v47 }
 0x3b5   : > { %v5791_v9 = vpop.eup %5790  ;;  %v3064_v42 = vmul.f32 %v5789_v60, %v3037_v58  ;;  %v3059_v63 = vsel %vm3058_vm3, %v7267_v5, %v3057_v7  ;;  %vm3081_vm3 = vcmp.eq.f32.partialorder %v7303_v53, 0.0 }
 0x3b6   : > { %v3045_v43 = vsel %vm3044_vm4, %v3034_v47, %v3043_v52  ;;  %v3050_v30 = vmul.f32 %v5791_v9, %v3035_v48  ;;  %v3062_v22 = vsel %vm3060_vm6, %v3061_v51, %v3059_v63  ;;  %v5673_v9 = vld [vmem:[%s7963_s10 + $0x8] sm:$0xff]   ;;  %v3075_v47 = vand.u32 2147483648, %v7297_v46 }
 0x3b7   : > { %v3066_v34 = vsel %vm3065_vm7, %v3037_v58, %v3064_v42  ;;  %v3048_v60 = vsel %vm3046_vm5, %v3047_v15, %v3045_v43  ;;  %v3096_v63 = vand.u32 2147483648, %v7300_v21  ;;  %v3082_v51 = vand.u32 2147483648, %v7303_v53  ;;  %v5674_v43 = vld [vmem:[%s7963_s10 + $0x10] sm:$0xff]  }
 0x3b8   : > { %v3052_v31 = vsel %vm3051_vm8, %v3035_v48, %v3050_v30  ;;  %v3069_v14 = vsel %vm3067_vm9, %v3068_v2, %v3066_v34 }
 0x3b9   : > { %v3055_v25 = vsel %vm3053_vm10, %v3054_v23, %v3052_v31  ;;  %v3099_v7 = vpack.c.bf16 %v3069_v14, %v3062_v22 }
 0x3ba   : > { %v5793_v36 = vpop.eup %5792  ;;  %v3098_v29 = vpack.c.bf16 %v3055_v25, %v3048_v60 }
 0x3bb   : > { %v5795_v52 = vpop.eup %5794  ;;  %v3085_v58 = vmul.f32 %v5793_v36, %v7294_v44  ;;  %v3089_v36 = vand.u32 2147483648, %v7294_v44 }
 0x3bc   : > { %v5797_v48 = vpop.eup %5796  ;;  %5367 = vmatprep.mubr.msk.bf16.mxu1 %vm2547_vm1, %v3098_v29  ;;  %v3071_v5 = vmul.f32 %v5795_v52, %v7297_v46  ;;  %v5681_v52 = vld [vmem:[%s7966_s13 + $0x8] sm:$0xff]  }
 0x3bd   : > { %v5799_v14 = vpop.eup %5798  ;;  %5368 = vmatmul.mubr.msk.bf16.vlgmr.msra.gmra.mrb[64].mxu1 %vm2547_vm1, %v3099_v7  ;;  %v3087_v25 = vsel %vm3086_vm13, %v7294_v44, %v3085_v58  ;;  %v3092_v42 = vmul.f32 %v5797_v48, %v7300_v21  ;;  %v5676_v44 = vld [vmem:[%s7963_s10 + $0x20] sm:$0xff]   ;;  %v5683_v58 = vld [vmem:[%s7966_s13 + $0x18] sm:$0xff]  }
 0x3be   : > { %5376 = vmatpush3.bf16.msra.mxu1 %v7145_v55  ;;  %v3073_v29 = vsel %vm3072_vm11, %v7297_v46, %v3071_v5  ;;  %v3078_v15 = vmul.f32 %v5799_v14, %v7303_v53  ;;  %v3090_v2 = vsel %vm3088_vm14, %v3089_v36, %v3087_v25  ;;  %v5677_v46 = vld [vmem:[%s7963_s10 + $0x28] sm:$0xff]   ;;  %v5680_v7 = vld [vmem:[%s7966_s13] sm:$0xff]  }
 0x3bf   : > { %5377 = vmatprep.subr.bf16.mxu1 %v5673_v9  ;;  %v3094_v30 = vsel %vm3093_vm15, %v7300_v21, %v3092_v42  ;;  %v3076_v34 = vsel %vm3074_vm12, %v3075_v47, %v3073_v29  ;;  %v5675_v21 = vld [vmem:[%s7963_s10 + $0x18] sm:$0xff]  }
 0x3c0   : > { %v3080_v55 = vsel %vm3079_vm0, %v7303_v53, %v3078_v15  ;;  %v3097_v23 = vsel %vm3095_vm2, %v3096_v63, %v3094_v30  ;;  %v5678_v53 = vld [vmem:[%s7963_s10 + $0x30] sm:$0xff]   ;;  %v7467_v15 = vld [vmem:[%s7971_s18] sm:$0xff]  }
 0x3c1   : > { %v3083_v31 = vsel %vm3081_vm3, %v3082_v51, %v3080_v55  ;;  %v3101_v22 = vpack.c.bf16 %v3097_v23, %v3090_v2 }
 0x3c2   : > { %5378 = vmatpush3.bf16.msra.mxu1 %v5673_v9  ;;  %v3100_v60 = vpack.c.bf16 %v3083_v31, %v3076_v34  ;;  %v5682_v9 = vld [vmem:[%s7966_s13 + $0x10] sm:$0xff]  }
 0x3c3   : > { %5379 = vmatprep.subr.bf16.mxu1 %v5674_v43 }
 0x3c4   : > { %5371 = vmatprep.mubr.msk.bf16.mxu1 %vm2547_vm1, %v3100_v60 }
 0x3c5   : > { %5372 = vmatmul.mubr.msk.bf16.gmra.mrb[68].mxu1 %vm2547_vm1, %v3101_v22 }
 0x3c6   : > { %5380 = vmatpush3.bf16.msra.mxu1 %v5674_v43  ;;  %5391 = vmatprep.mubr.bf16.mxu1 %v7115_v39  ;;  %v5679_v39 = vld [vmem:[%s7963_s10 + $0x38] sm:$0xff]  }
 0x3c7   : > { %5381 = vmatprep.subr.bf16.mxu1 %v5675_v21 }
 0x3ca   : > { %5382 = vmatpush3.bf16.msra.mxu1 %v5675_v21 }
 0x3cb   : > { %5383 = vmatprep.subr.bf16.mxu1 %v5676_v44 }
 0x3ce   : > { %5384 = vmatpush3.bf16.msra.mxu1 %v5676_v44 }
 0x3cf   : > { %5385 = vmatprep.subr.bf16.mxu1 %v5677_v46 }
 0x3d2   : > { %5386 = vmatpush3.bf16.msra.mxu1 %v5677_v46 }
 0x3d3   : > { %5387 = vmatprep.subr.bf16.mxu1 %v5678_v53 }
 0x3d6   : > { %5388 = vmatpush3.bf16.msra.mxu1 %v5678_v53 }
 0x3d7   : > { %5389 = vmatprep.subr.bf16.mxu1 %v5679_v39 }
 0x3da   : > { %5390 = vmatpush3.bf16.msra.mxu1 %v5679_v39 }
 0x3db   : > { %5399 = vmatprep.subr.bf16.mxu1 %v5680_v7 }
 0x3dd   : > { %5392 = vmatmul.mubr.bf16.vlgmr.msra.gmra.mrb[64].mxu1 %v7113_v16  ;;  %v7992_v16 = vpack.c.bf16 %v7259_v1, %v7248_v37 }
 0x3de   : > { %5395 = vmatprep.mubr.bf16.mxu1 %v7127_v24  ;;  %5400 = vmatpush3.bf16.msra.mxu1 %v5680_v7  ;;  %v7994_v24 = vpack.c.bf16 %v7286_v6, %v7275_v11 }
 0x3df   : > { %5401 = vmatprep.subr.bf16.mxu1 %v5681_v52 }
 0x3e2   : > { %5402 = vmatpush3.bf16.msra.mxu1 %v5681_v52 }
 0x3e3   : > { %5403 = vmatprep.subr.bf16.mxu1 %v5682_v9 }
 0x3e5   : > { %5396 = vmatmul.mubr.bf16.gmra.mrb[68].mxu1 %v7125_v4  ;;  %v7993_v4 = vpack.c.bf16 %v7252_v62, %v7244_v56 }
 0x3e6   : > { %5404 = vmatpush3.bf16.msra.mxu1 %v5682_v9  ;;  %5407 = vmatprep.mubr.msk.bf16.mxu1 %vm2547_vm1, %v3338_v26  ;;  %v4956_v26 = vld [vmem:[%s7965_s12] ss:$0 sm:$0xff] }
 0x3e7   : > { %5405 = vmatprep.subr.bf16.mxu1 %v5683_v58 }
 0x3ea   : > { %5406 = vmatpush3.bf16.msra.mxu1 %v5683_v58 }
 0x3ed   : > { %5408 = vmatmul.mubr.msk.bf16.vlgmr.msra.gmra.mrb[72].mxu1 %vm2547_vm1, %v3339_v19  ;;  %v5686_v19 = vld [vmem:[%s7967_s14 + $0x10] sm:$0xff]  }
 0x3ee   : > { %5411 = vmatprep.mubr.msk.bf16.mxu1 %vm2547_vm1, %v3340_v10  ;;  %5435 = vmatprep.subr.bf16.mxu0 %v5686_v19 }
 0x3ef   : > { %5436 = vmatpush3.bf16.msra.mxu0 %v5686_v19 }
 0x3f0   : > { %5437 = vmatprep.subr.bf16.mxu0 %v5687_v32 }
 0x3f3   : > { %5438 = vmatpush3.bf16.msra.mxu0 %v5687_v32 }
 0x3f4   : > { %5503 = vmatprep.subr.bf16.mxu0 %v7467_v15 }
 0x3f5   : > { %5412 = vmatmul.mubr.msk.bf16.gmra.mrb[76].mxu1 %vm2547_vm1, %v3341_v0 }
 0x3f6   : > { %5415 = vmatprep.mubr.msk.bf16.mxu1 %vm2547_vm1, %v3342_v54 }
 0x3fd   : > { %5416 = vmatmul.mubr.msk.bf16.gmra.mrb[80].mxu1 %vm2547_vm1, %v3343_v20 }
 0x3fe   : > { %5419 = vmatprep.mubr.msk.bf16.mxu1 %vm2547_vm1, %v3344_v8 }
 0x405   : > { %5420 = vmatmul.mubr.msk.bf16.gmra.mrb[84].mxu1 %vm2547_vm1, %v3345_v38 }
 0x406   : > { %5423 = vmatprep.mubr.msk.bf16.mxu1 %vm2547_vm1, %v7992_v16 }
 0x40d   : > { %5424 = vmatmul.mubr.msk.bf16.gmra.mrb[88].mxu1 %vm2547_vm1, %v7993_v4 }
 0x40e   : > { %5427 = vmatprep.mubr.msk.bf16.mxu1 %vm2547_vm1, %v7994_v24 }
 0x415   : > { %5428 = vmatmul.mubr.msk.bf16.gmra.mrb[92].mxu1 %vm2547_vm1, %v7995_v18 }
 0x4b0   : > { %v5393_v41 = vpop.f32.mrb[64].mxu1 }
 0x4b1   : > { %v3324_v61 = vadd.f32 %v5393_v41, %v4956_v26  ;;  %v3285_v12 = vpop.f32.mrb[65].mxu1 }
 0x4b2   : > { %v3322_v0 = vadd.f32 %v4956_v26, %v3285_v12  ;;  %v5394_v50 = vpop.f32.mrb[66].mxu1 }
 0x4b3   : > { %v3325_v10 = vadd.f32 %v5394_v50, %v4956_v26  ;;  %v3288_v27 = vpop.f32.mrb[67].mxu1  ;;  %v3332_v3 = vmax.f32 %v3324_v61, 0.0 }
 0x4b4   : > { %v3323_v45 = vadd.f32 %v4956_v26, %v3288_v27  ;;  %v3330_v35 = vmax.f32 %v3322_v0, 0.0 }
 0x4b5   : > { %v3333_v20 = vmax.f32 %v3325_v10, 0.0 }
 0x4b6   : > { %v3331_v54 = vmax.f32 %v3323_v45, 0.0 }
 0x4b7   : > { %v7444_v57 = vpack.c.bf16 %v3333_v20, %v3332_v3 }
 0x4b8   : > { %v7446_v49 = vpack.c.bf16 %v3331_v54, %v3330_v35  ;;  %v5397_v17 = vpop.f32.mrb[68].mxu1 }
 0x4b9   : > { %v3328_v38 = vadd.f32 %v5397_v17, %v4956_v26  ;;  %v3301_v40 = vpop.f32.mrb[69].mxu1 }
 0x4ba   : > { %v3326_v8 = vadd.f32 %v4956_v26, %v3301_v40  ;;  %v5398_v56 = vpop.f32.mrb[70].mxu1 }
 0x4bb   : > { %v3329_v37 = vadd.f32 %v5398_v56, %v4956_v26  ;;  %v3304_v62 = vpop.f32.mrb[71].mxu1  ;;  %v3336_v33 = vmax.f32 %v3328_v38, 0.0 }
 0x4bc   : > { %v3327_v1 = vadd.f32 %v4956_v26, %v3304_v62  ;;  %v3334_v13 = vmax.f32 %v3326_v8, 0.0 }
 0x4bd   : > { %v3337_v11 = vmax.f32 %v3329_v37, 0.0 }
 0x4be   : > { %v3335_v6 = vmax.f32 %v3327_v1, 0.0 }
 0x4bf   : > { %v7448_v48 = vpack.c.bf16 %v3337_v11, %v3336_v33 }
 0x4c0   : > { %v7450_v5 = vpack.c.bf16 %v3335_v6, %v3334_v13  ;;  %v7452_v47 = vpop.f32.mrb[72].mxu1 }
 0x4c1   : > { %v7454_v14 = vpop.f32.mrb[73].mxu1  ;;  %v3541_v43 = vmul.f32 %v7452_v47, %v7452_v47 }
 0x4c2   : > { %v7456_v25 = vpop.f32.mrb[74].mxu1  ;;  %v3539_v30 = vmul.f32 %v7454_v14, %v7454_v14 }
 0x4c3   : > { %v7458_v36 = vpop.f32.mrb[75].mxu1  ;;  %v3542_v2 = vmul.f32 %v7456_v25, %v7456_v25  ;;  %v3573_v21 = vsel %vm2547_vm1, %v3541_v43, 0.0 }
 0x4c4   : > { %v3540_v31 = vmul.f32 %v7458_v36, %v7458_v36  ;;  %v3563_v39 = vsel %vm2547_vm1, %v3539_v30, 0.0 }
 0x4c5   : > { %v3578_v58 = vsel %vm2547_vm1, %v3542_v2, 0.0 }
 0x4c6   : > { %v3568_v24 = vsel %vm2547_vm1, %v3540_v31, 0.0 }
 0x4c8   : > { %v7460_v42 = vpop.f32.mrb[76].mxu1 }
 0x4c9   : > { %v7462_v29 = vpop.f32.mrb[77].mxu1  ;;  %v3545_v59 = vmul.f32 %v7460_v42, %v7460_v42 }
 0x4ca   : > { %v7469_v63 = vpop.f32.mrb[78].mxu1  ;;  %v3543_v32 = vmul.f32 %v7462_v29, %v7462_v29 }
 0x4cb   : > { %v7471_v51 = vpop.f32.mrb[79].mxu1  ;;  %v3546_v41 = vmul.f32 %v7469_v63, %v7469_v63  ;;  %v3593_v27 = vsel %vm2547_vm1, %v3545_v59, 0.0 }
 0x4cc   : > { %v3544_v0 = vmul.f32 %v7471_v51, %v7471_v51  ;;  %v3583_v35 = vsel %vm2547_vm1, %v3543_v32, 0.0 }
 0x4cd   : > { %v3598_v40 = vsel %vm2547_vm1, %v3546_v41, 0.0 }
 0x4ce   : > { %v3588_v37 = vsel %vm2547_vm1, %v3544_v0, 0.0 }
 0x4d0   : > { %v7478_v55 = vpop.f32.mrb[80].mxu1 }
 0x4d1   : > { %v3549_v23 = vmul.f32 %v7478_v55, %v7478_v55  ;;  %v7484_v34 = vpop.f32.mrb[81].mxu1 }
 0x4d2   : > { %v3547_v22 = vmul.f32 %v7484_v34, %v7484_v34  ;;  %v7490_v60 = vpop.f32.mrb[82].mxu1 }
 0x4d3   : > { %v3574_v44 = vsel %vm2547_vm1, %v3549_v23, 0.0  ;;  %v3550_v46 = vmul.f32 %v7490_v60, %v7490_v60  ;;  %v7496_v53 = vpop.f32.mrb[83].mxu1 }
 0x4d4   : > { %v3575_v7 = vadd.f32 %v3574_v44, %v3573_v21  ;;  %v3564_v52 = vsel %vm2547_vm1, %v3547_v22, 0.0  ;;  %v3548_v9 = vmul.f32 %v7496_v53, %v7496_v53 }
 0x4d5   : > { %v3565_v16 = vadd.f32 %v3564_v52, %v3563_v39  ;;  %v3579_v4 = vsel %vm2547_vm1, %v3550_v46, 0.0 }
 0x4d6   : > { %v3580_v18 = vadd.f32 %v3579_v4, %v3578_v58  ;;  %v3569_v28 = vsel %vm2547_vm1, %v3548_v9, 0.0 }
 0x4d7   : > { %v3570_v19 = vadd.f32 %v3569_v28, %v3568_v24 }
 0x4d8   : > { %v7510_v26 = vpop.f32.mrb[84].mxu1 }
 0x4d9   : > { %v3553_v61 = vmul.f32 %v7510_v26, %v7510_v26  ;;  %v7516_v12 = vpop.f32.mrb[85].mxu1 }
 0x4da   : > { %v3551_v50 = vmul.f32 %v7516_v12, %v7516_v12  ;;  %v7522_v10 = vpop.f32.mrb[86].mxu1 }
 0x4db   : > { %v3594_v45 = vsel %vm2547_vm1, %v3553_v61, 0.0  ;;  %v3554_v3 = vmul.f32 %v7522_v10, %v7522_v10  ;;  %v7528_v20 = vpop.f32.mrb[87].mxu1 }
 0x4dc   : > { %v3595_v54 = vadd.f32 %v3594_v45, %v3593_v27  ;;  %v3584_v17 = vsel %vm2547_vm1, %v3551_v50, 0.0  ;;  %v3552_v38 = vmul.f32 %v7528_v20, %v7528_v20 }
 0x4dd   : > { %v3585_v8 = vadd.f32 %v3584_v17, %v3583_v35  ;;  %v3599_v56 = vsel %vm2547_vm1, %v3554_v3, 0.0 }
 0x4de   : > { %v3600_v62 = vadd.f32 %v3599_v56, %v3598_v40  ;;  %v3589_v1 = vsel %vm2547_vm1, %v3552_v38, 0.0 }
 0x4df   : > { %v3590_v33 = vadd.f32 %v3589_v1, %v3588_v37 }
 0x4e0   : > { %v7538_v11 = vpop.f32.mrb[88].mxu1 }
 0x4e1   : > { %v3557_v13 = vmul.f32 %v7538_v11, %v7538_v11  ;;  %v7542_v6 = vpop.f32.mrb[89].mxu1 }
 0x4e2   : > { %v3555_v43 = vmul.f32 %v7542_v6, %v7542_v6  ;;  %v7546_v30 = vpop.f32.mrb[90].mxu1 }
 0x4e3   : > { %v3576_v2 = vsel %vm2547_vm1, %v3557_v13, 0.0  ;;  %v3558_v23 = vmul.f32 %v7546_v30, %v7546_v30  ;;  %v7551_v31 = vpop.f32.mrb[91].mxu1 }
 0x4e4   : > { %v3577_v22 = vadd.f32 %v3576_v2, %v3575_v7  ;;  %v3566_v21 = vsel %vm2547_vm1, %v3555_v43, 0.0  ;;  %v3556_v44 = vmul.f32 %v7551_v31, %v7551_v31 }
 0x4e5   : > { %v3567_v46 = vadd.f32 %v3566_v21, %v3565_v16  ;;  %v3581_v39 = vsel %vm2547_vm1, %v3558_v23, 0.0 }
 0x4e6   : > { %v3605_v52 = vmax.f32 %v3577_v22, 1e-08  ;;  %v3582_v9 = vadd.f32 %v3581_v39, %v3580_v18  ;;  %v3571_v58 = vsel %vm2547_vm1, %v3556_v44, 0.0 }
 0x4e7   : > { %v3603_v4 = vmax.f32 %v3567_v46, 1e-08  ;;  %v3572_v24 = vadd.f32 %v3571_v58, %v3570_v19 }
 0x4e8   : > { %5800 = vrsqrt.f32 %v3605_v52  ;;  %v7558_v28 = vpop.f32.mrb[92].mxu1  ;;  %v3606_v7 = vmax.f32 %v3582_v9, 1e-08  ;;  %vm3627_vm4 = vcmp.eq.f32.partialorder %v3605_v52, inf  ;;  %vm3629_vm5 = vcmp.eq.f32.partialorder %v3605_v52, 0.0 }
 0x4e9   : > { %5802 = vrsqrt.f32 %v3603_v4  ;;  %v7560_v59 = vpop.f32.mrb[93].mxu1  ;;  %v3604_v32 = vmax.f32 %v3572_v24, 1e-08  ;;  %v3561_v41 = vmul.f32 %v7558_v28, %v7558_v28  ;;  %v3630_v23 = vand.u32 2147483648, %v3605_v52 }
 0x4ea   : > { %v3559_v16 = vmul.f32 %v7560_v59, %v7560_v59  ;;  %v7566_v61 = vpop.f32.mrb[94].mxu1  ;;  %5804 = vrsqrt.f32 %v3606_v7  ;;  %vm3613_vm6 = vcmp.eq.f32.partialorder %v3603_v4, inf  ;;  %vm3615_vm7 = vcmp.eq.f32.partialorder %v3603_v4, 0.0 }
 0x4eb   : > { %v3562_v18 = vmul.f32 %v7566_v61, %v7566_v61  ;;  %v7570_v19 = vpop.f32.mrb[95].mxu1  ;;  %5806 = vrsqrt.f32 %v3604_v32  ;;  %v3596_v0 = vsel %vm2547_vm1, %v3561_v41, 0.0  ;;  %vm3634_vm8 = vcmp.eq.f32.partialorder %v3606_v7, inf }
 0x4ec   : > { %v3586_v50 = vsel %vm2547_vm1, %v3559_v16, 0.0  ;;  %v3560_v45 = vmul.f32 %v7570_v19, %v7570_v19  ;;  %v3597_v3 = vadd.f32 %v3596_v0, %v3595_v54  ;;  %vm3636_vm9 = vcmp.eq.f32.partialorder %v3606_v7, 0.0 }
 0x4ed   : > { %v3601_v27 = vsel %vm2547_vm1, %v3562_v18, 0.0  ;;  %v3587_v35 = vadd.f32 %v3586_v50, %v3585_v8  ;;  %v3616_v8 = vand.u32 2147483648, %v3603_v4  ;;  %v3637_v24 = vand.u32 2147483648, %v3606_v7 }
 0x4ee   : > { %v3602_v17 = vadd.f32 %v3601_v27, %v3600_v62  ;;  %v3591_v38 = vsel %vm2547_vm1, %v3560_v45, 0.0  ;;  %v3609_v40 = vmax.f32 %v3597_v3, 1e-08  ;;  %vm3620_vm10 = vcmp.eq.f32.partialorder %v3604_v32, inf }
 0x4ef   : > { %v7578_v56 = vmax.f32 %v3587_v35, 1e-08  ;;  %v3592_v1 = vadd.f32 %v3591_v38, %v3590_v33  ;;  %v3623_v18 = vand.u32 2147483648, %v3604_v32  ;;  %vm3622_vm11 = vcmp.eq.f32.partialorder %v3604_v32, 0.0 }
 0x4f0   : > { %v7580_v37 = vmax.f32 %v3602_v17, 1e-08  ;;  %5808 = vrsqrt.f32 %v3609_v40  ;;  %vm3655_vm12 = vcmp.eq.f32.partialorder %v3609_v40, inf  ;;  %vm3657_vm13 = vcmp.eq.f32.partialorder %v3609_v40, 0.0 }
 0x4f1   : > { %5810 = vrsqrt.f32 %v7578_v56  ;;  %v3608_v16 = vmax.f32 %v3592_v1, 1e-08  ;;  %v3658_v1 = vand.u32 2147483648, %v3609_v40  ;;  %vm3641_vm14 = vcmp.eq.f32.partialorder %v7578_v56, inf }
 0x4f2   : > { %v5801_v13 = vpop.eup %5800  ;;  %5812 = vrsqrt.f32 %v7580_v37  ;;  %vm3643_vm15 = vcmp.eq.f32.partialorder %v7578_v56, 0.0  ;;  %vm3662_vm0 = vcmp.eq.f32.partialorder %v7580_v37, inf  ;;  %vm3664_vm2 = vcmp.eq.f32.partialorder %v7580_v37, 0.0 }
 0x4f3   : > { %v5803_v43 = vpop.eup %5802  ;;  %v3626_v2 = vmul.f32 %v5801_v13, %v3605_v52  ;;  %vm3648_vm3 = vcmp.eq.f32.partialorder %v3608_v16, inf }
 0x4f4   : > { %v3612_v22 = vmul.f32 %v5803_v43, %v3603_v4  ;;  %v5805_v62 = vpop.eup %5804 }
 0x4f5   : > { %v3628_v54 = vsel %vm3627_vm4, %v3605_v52, %v3626_v2  ;;  %v5807_v33 = vpop.eup %5806  ;;  %v3633_v9 = vmul.f32 %v5805_v62, %v3606_v7  ;;  %vm3650_vm4 = vcmp.eq.f32.partialorder %v3608_v16, 0.0 }
 0x4f6   : > { %v3631_v21 = vsel %vm3629_vm5, %v3630_v23, %v3628_v54  ;;  %v3614_v44 = vsel %vm3613_vm6, %v3603_v4, %v3612_v22  ;;  %v3619_v41 = vmul.f32 %v5807_v33, %v3604_v32  ;;  %v3665_v22 = vand.u32 2147483648, %v7580_v37 }
 0x4f7   : > { %v4975_v46 = vmul.f32 -1.442695, %v3631_v21  ;;  %v3617_v39 = vsel %vm3615_vm7, %v3616_v8, %v3614_v44  ;;  %v3635_v52 = vsel %vm3634_vm8, %v3606_v7, %v3633_v9 }
 0x4f8   : > { %v4973_v58 = vmul.f32 -1.442695, %v3617_v39  ;;  %v3638_v0 = vsel %vm3636_vm9, %v3637_v24, %v3635_v52  ;;  %v3621_v50 = vsel %vm3620_vm10, %v3604_v32, %v3619_v41  ;;  %v3644_v32 = vand.u32 2147483648, %v7578_v56 }
 0x4f9   : > { %5814 = vpow2.f32 %v4975_v46  ;;  %v4976_v27 = vmul.f32 -1.442695, %v3638_v0  ;;  %v3624_v4 = vsel %vm3622_vm11, %v3623_v18, %v3621_v50  ;;  %v3651_v41 = vand.u32 2147483648, %v3608_v16 }
 0x4fa   : > { %5816 = vpow2.f32 %v4973_v58  ;;  %v4974_v45 = vmul.f32 -1.442695, %v3624_v4  ;;  %v5809_v3 = vpop.eup %5808 }
 0x4fb   : > { %5818 = vrsqrt.f32 %v3608_v16  ;;  %v5811_v35 = vpop.eup %5810  ;;  %v3654_v17 = vmul.f32 %v5809_v3, %v3609_v40 }
 0x4fc   : > { %5820 = vpow2.f32 %v4976_v27  ;;  %v5813_v38 = vpop.eup %5812  ;;  %v3640_v7 = vmul.f32 %v5811_v35, %v7578_v56 }
 0x4fd   : > { %5822 = vpow2.f32 %v4974_v45  ;;  %v3656_v13 = vsel %vm3655_vm12, %v3609_v40, %v3654_v17  ;;  %v3661_v43 = vmul.f32 %v5813_v38, %v7580_v37 }
 0x4fe   : > { %v3659_v2 = vsel %vm3657_vm13, %v3658_v1, %v3656_v13  ;;  %v3642_v23 = vsel %vm3641_vm14, %v7578_v56, %v3640_v7 }
 0x4ff   : > { %v4979_v54 = vmul.f32 -1.442695, %v3659_v2  ;;  %v3645_v8 = vsel %vm3643_vm15, %v3644_v32, %v3642_v23  ;;  %v3663_v62 = vsel %vm3662_vm0, %v7580_v37, %v3661_v43 }
 0x500   : > { %v4977_v21 = vmul.f32 -1.442695, %v3645_v8  ;;  %v3666_v44 = vsel %vm3664_vm2, %v3665_v22, %v3663_v62 }
 0x501   : > { %5824 = vpow2.f32 %v4979_v54  ;;  %v4980_v39 = vmul.f32 -1.442695, %v3666_v44 }
 0x502   : > { %5826 = vpow2.f32 %v4977_v21 }
 0x503   : > { %v5815_v40 = vpop.eup %5814 }
 0x504   : > { %v5817_v33 = vpop.eup %5816  ;;  %v3693_v46 = vadd.f32 1.0, %v5815_v40 }
 0x505   : > { %v5819_v9 = vpop.eup %5818  ;;  %v3691_v58 = vadd.f32 1.0, %v5817_v33 }
 0x506   : > { %5828 = vrcp.f32 %v3693_v46  ;;  %v3647_v56 = vmul.f32 %v5819_v9, %v3608_v16  ;;  %v5821_v24 = vpop.eup %5820 }
 0x507   : > { %5830 = vrcp.f32 %v3691_v58  ;;  %v5823_v52 = vpop.eup %5822  ;;  %v3694_v18 = vadd.f32 1.0, %v5821_v24  ;;  %v7627_v24 = vld [vmem:[%s7971_s18 + $0x10] sm:$0xff]  }
 0x508   : > { %5832 = vpow2.f32 %v4980_v39  ;;  %v3649_v37 = vsel %vm3648_vm3, %v3608_v16, %v3647_v56  ;;  %v3692_v0 = vadd.f32 1.0, %v5823_v52 }
 0x509   : > { %v3652_v50 = vsel %vm3650_vm4, %v3651_v41, %v3649_v37  ;;  %5834 = vrcp.f32 %v3694_v18 }
 0x50a   : > { %v4978_v27 = vmul.f32 -1.442695, %v3652_v50  ;;  %5836 = vrcp.f32 %v3692_v0 }
 0x50b   : > { %v5825_v4 = vpop.eup %5824 }
 0x50c   : > { %5838 = vpow2.f32 %v4978_v27  ;;  %v5827_v45 = vpop.eup %5826  ;;  %v3697_v3 = vadd.f32 1.0, %v5825_v4  ;;  %v5695_v27 = vld [vmem:[%s7969_s16 + $0x18] sm:$0xff]   ;;  %v7670_v4 = vld [vmem:[%s7968_s15] sm:$0xff]  }
 0x50d   : > { %v3695_v17 = vadd.f32 1.0, %v5827_v45 }
 0x50e   : > { %5840 = vrcp.f32 %v3697_v3 }
 0x50f   : > { %5842 = vrcp.f32 %v3695_v17 }
 0x510   : > { %v5829_v35 = vpop.eup %5828 }
 0x511   : > { %v5831_v38 = vpop.eup %5830  ;;  %v7595_v1 = vmul.f32 %v5829_v35, %v7538_v11  ;;  %v3717_v7 = vmul.f32 %v5829_v35, %v7452_v47  ;;  %v3725_v16 = vmul.f32 %v5829_v35, %v7478_v55 }
 0x512   : > { %v5833_v13 = vpop.eup %5832  ;;  %v3731_v32 = vmul.f32 %v5831_v38, %v7542_v6  ;;  %v3715_v43 = vmul.f32 %v5831_v38, %v7454_v14  ;;  %v3723_v2 = vmul.f32 %v5831_v38, %v7484_v34 }
 0x513   : > { %v3698_v23 = vadd.f32 1.0, %v5833_v13  ;;  %v5835_v22 = vpop.eup %5834 }
 0x514   : > { %v5837_v54 = vpop.eup %5836  ;;  %v3734_v8 = vmul.f32 %v5835_v22, %v7546_v30  ;;  %v3718_v11 = vmul.f32 %v5835_v22, %v7456_v25  ;;  %v3726_v47 = vmul.f32 %v5835_v22, %v7490_v60  ;;  %v7612_v25 = vld [vmem:[%s7971_s18 + $0x8] sm:$0xff]  }
 0x515   : > { %5844 = vrcp.f32 %v3698_v23  ;;  %v3732_v55 = vmul.f32 %v5837_v54, %v7551_v31  ;;  %v3716_v6 = vmul.f32 %v5837_v54, %v7458_v36  ;;  %v3724_v40 = vmul.f32 %v5837_v54, %v7496_v53 }
 0x516   : > { %v5839_v62 = vpop.eup %5838  ;;  %v3789_v14 = vpack.c.bf16 %v3734_v8, %v7595_v1  ;;  %v3781_v21 = vpack.c.bf16 %v3718_v11, %v3717_v7  ;;  %v3785_v44 = vpack.c.bf16 %v3726_v47, %v3725_v16 }
 0x517   : > { %v3696_v34 = vadd.f32 1.0, %v5839_v62  ;;  %v3788_v33 = vpack.c.bf16 %v3732_v55, %v3731_v32  ;;  %v3780_v46 = vpack.c.bf16 %v3716_v6, %v3715_v43  ;;  %v3784_v30 = vpack.c.bf16 %v3724_v40, %v3723_v2 }
 0x518   : > { %v5841_v60 = vpop.eup %5840 }
 0x519   : > { %5846 = vrcp.f32 %v3696_v34  ;;  %5439 = vmatprep.mubr.msk.bf16.mxu0 %vm2547_vm1, %v3780_v46  ;;  %v5843_v36 = vpop.eup %5842  ;;  %v3737_v53 = vmul.f32 %v5841_v60, %v7558_v28  ;;  %v3721_v31 = vmul.f32 %v5841_v60, %v7460_v42  ;;  %v3729_v39 = vmul.f32 %v5841_v60, %v7510_v26 }
 0x51a   : > { %5440 = vmatmul.mubr.msk.bf16.vlgmr.msra.gmra.mrb[96].mxu0 %vm2547_vm1, %v3781_v21  ;;  %v3735_v9 = vmul.f32 %v5843_v36, %v7560_v59  ;;  %v3719_v58 = vmul.f32 %v5843_v36, %v7462_v29  ;;  %v3727_v56 = vmul.f32 %v5843_v36, %v7516_v12 }
 0x51b   : > { %5504 = vmatpush3.bf16.msra.mxu0 %v7467_v15 }
 0x51c   : > { %5505 = vmatprep.subr.bf16.mxu0 %v7612_v25 }
 0x51f   : > { %v5845_v28 = vpop.eup %5844  ;;  %5506 = vmatpush3.bf16.msra.mxu0 %v7612_v25 }
 0x520   : > { %v3738_v42 = vmul.f32 %v5845_v28, %v7566_v61  ;;  %v3722_v26 = vmul.f32 %v5845_v28, %v7469_v63  ;;  %v3730_v41 = vmul.f32 %v5845_v28, %v7522_v10  ;;  %5507 = vmatprep.subr.bf16.mxu0 %v7627_v24  ;;  %v5692_v10 = vld [vmem:[%s7969_s16] sm:$0xff]  }
 0x521   : > { %5463 = vmatprep.subr.bf16.mxu1 %v5692_v10 }
 0x522   : > { %v3791_v29 = vpack.c.bf16 %v3738_v42, %v3737_v53  ;;  %v3783_v12 = vpack.c.bf16 %v3722_v26, %v3721_v31  ;;  %v3787_v59 = vpack.c.bf16 %v3730_v41, %v3729_v39  ;;  %5464 = vmatpush3.bf16.msra.mxu1 %v5692_v10 }
 0x523   : > { %v5847_v52 = vpop.eup %5846  ;;  %5508 = vmatpush3.bf16.msra.mxu0 %v7627_v24 }
 0x524   : > { %v3736_v18 = vmul.f32 %v5847_v52, %v7570_v19  ;;  %v3720_v37 = vmul.f32 %v5847_v52, %v7471_v51  ;;  %v3728_v0 = vmul.f32 %v5847_v52, %v7528_v20  ;;  %v7651_v51 = vld [vmem:[%s7971_s18 + $0x18] sm:$0xff]   ;;  %v5693_v20 = vld [vmem:[%s7969_s16 + $0x8] sm:$0xff]   ;;  %v5694_v19 = vld [vmem:[%s7969_s16 + $0x10] sm:$0xff]  }
 0x525   : > { %5509 = vmatprep.subr.bf16.mxu0 %v7651_v51  ;;  %5465 = vmatprep.subr.bf16.mxu1 %v5693_v20 }
 0x526   : > { %v3790_v61 = vpack.c.bf16 %v3736_v18, %v3735_v9  ;;  %v3782_v63 = vpack.c.bf16 %v3720_v37, %v3719_v58  ;;  %v3786_v50 = vpack.c.bf16 %v3728_v0, %v3727_v56  ;;  %5466 = vmatpush3.bf16.msra.mxu1 %v5693_v20 }
 0x527   : > { %5510 = vmatpush3.bf16.msra.mxu0 %v7651_v51  ;;  %5467 = vmatprep.subr.bf16.mxu1 %v5694_v19 }
 0x528   : > { %5443 = vmatprep.mubr.msk.bf16.mxu0 %vm2547_vm1, %v3782_v63 }
 0x529   : > { %5444 = vmatmul.mubr.msk.bf16.gmra.mrb[100].mxu0 %vm2547_vm1, %v3783_v12 }
 0x52a   : > { %5447 = vmatprep.mubr.msk.bf16.mxu0 %vm2547_vm1, %v3784_v30  ;;  %5468 = vmatpush3.bf16.msra.mxu1 %v5694_v19 }
 0x52b   : > { %5469 = vmatprep.subr.bf16.mxu1 %v5695_v27 }
 0x52e   : > { %5470 = vmatpush3.bf16.msra.mxu1 %v5695_v27 }
 0x52f   : > { %5479 = vmatprep.subr.bf16.mxu1 %v7670_v4 }
 0x531   : > { %5448 = vmatmul.mubr.msk.bf16.gmra.mrb[104].mxu0 %vm2547_vm1, %v3785_v44 }
 0x532   : > { %5451 = vmatprep.mubr.msk.bf16.mxu0 %vm2547_vm1, %v3786_v50 }
 0x539   : > { %5452 = vmatmul.mubr.msk.bf16.gmra.mrb[108].mxu0 %vm2547_vm1, %v3787_v59 }
 0x53a   : > { %5455 = vmatprep.mubr.msk.bf16.mxu0 %vm2547_vm1, %v3788_v33 }
 0x541   : > { %5456 = vmatmul.mubr.msk.bf16.gmra.mrb[112].mxu0 %vm2547_vm1, %v3789_v14 }
 0x542   : > { %5459 = vmatprep.mubr.msk.bf16.mxu0 %vm2547_vm1, %v3790_v61 }
 0x549   : > { %5460 = vmatmul.mubr.msk.bf16.gmra.mrb[116].mxu0 %vm2547_vm1, %v3791_v29 }
 0x5ed   : > { %v5441_v45 = vpop.f32.mrb[96].mxu0 }
 0x5ee   : > { %v3886_v3 = vpop.f32.mrb[97].mxu0  ;;  %v3987_v23 = vmul.f32 %v5441_v45, %v5441_v45 }
 0x5ef   : > { %v5442_v35 = vpop.f32.mrb[98].mxu0  ;;  %v3985_v22 = vmul.f32 %v3886_v3, %v3886_v3 }
 0x5f0   : > { %v4346_v17 = vpack.c.bf16 %v5442_v35, %v5441_v45  ;;  %v3889_v38 = vpop.f32.mrb[99].mxu0  ;;  %v3988_v8 = vmul.f32 %v5442_v35, %v5442_v35  ;;  %v4019_v62 = vsel %vm2547_vm1, %v3987_v23, 0.0 }
 0x5f1   : > { %v4345_v1 = vpack.c.bf16 %v3889_v38, %v3886_v3  ;;  %v3986_v55 = vmul.f32 %v3889_v38, %v3889_v38  ;;  %v4009_v14 = vsel %vm2547_vm1, %v3985_v22, 0.0 }
 0x5f2   : > { %v4024_v53 = vsel %vm2547_vm1, %v3988_v8, 0.0 }
 0x5f3   : > { %5511 = vmatprep.mubr.msk.bf16.mxu0 %vm2547_vm1, %v4345_v1  ;;  %v4014_v9 = vsel %vm2547_vm1, %v3986_v55, 0.0 }
 0x5f4   : > { %5512 = vmatmul.mubr.msk.bf16.vlgmr.msra.gmra.mrb[120].mxu0 %vm2547_vm1, %v4346_v17 }
 0x5fc   : > { %v5445_v7 = vpop.f32.mrb[100].mxu0 }
 0x5fd   : > { %v3902_v16 = vpop.f32.mrb[101].mxu0  ;;  %v3991_v58 = vmul.f32 %v5445_v7, %v5445_v7 }
 0x5fe   : > { %v5446_v13 = vpop.f32.mrb[102].mxu0  ;;  %v3989_v42 = vmul.f32 %v3902_v16, %v3902_v16 }
 0x5ff   : > { %v4348_v32 = vpack.c.bf16 %v5446_v13, %v5445_v7  ;;  %v3905_v43 = vpop.f32.mrb[103].mxu0  ;;  %v3992_v29 = vmul.f32 %v5446_v13, %v5446_v13  ;;  %v4039_v52 = vsel %vm2547_vm1, %v3991_v58, 0.0 }
 0x600   : > { %v4347_v2 = vpack.c.bf16 %v3905_v43, %v3902_v16  ;;  %v3990_v18 = vmul.f32 %v3905_v43, %v3905_v43  ;;  %v4029_v61 = vsel %vm2547_vm1, %v3989_v42, 0.0 }
 0x601   : > { %v4044_v35 = vsel %vm2547_vm1, %v3992_v29, 0.0 }
 0x602   : > { %5515 = vmatprep.mubr.msk.bf16.mxu0 %vm2547_vm1, %v4347_v2  ;;  %v4034_v1 = vsel %vm2547_vm1, %v3990_v18, 0.0 }
 0x603   : > { %5516 = vmatmul.mubr.msk.bf16.gmra.mrb[124].mxu0 %vm2547_vm1, %v4348_v32 }
 0x604   : > { %v5449_v54 = vpop.f32.mrb[104].mxu0 }
 0x605   : > { %v3995_v11 = vmul.f32 %v5449_v54, %v5449_v54  ;;  %v3918_v47 = vpop.f32.mrb[105].mxu0 }
 0x606   : > { %v3993_v6 = vmul.f32 %v3918_v47, %v3918_v47  ;;  %v5450_v40 = vpop.f32.mrb[106].mxu0 }
 0x607   : > { %v4020_v34 = vsel %vm2547_vm1, %v3995_v11, 0.0  ;;  %v3996_v21 = vmul.f32 %v5450_v40, %v5450_v40  ;;  %v4350_v44 = vpack.c.bf16 %v5450_v40, %v5449_v54  ;;  %v3921_v33 = vpop.f32.mrb[107].mxu0 }
 0x608   : > { %v4021_v46 = vadd.f32 %v4020_v34, %v4019_v62  ;;  %v4010_v30 = vsel %vm2547_vm1, %v3993_v6, 0.0  ;;  %v3994_v60 = vmul.f32 %v3921_v33, %v3921_v33  ;;  %v4349_v36 = vpack.c.bf16 %v3921_v33, %v3918_v47 }
 0x609   : > { %v4011_v31 = vadd.f32 %v4010_v30, %v4009_v14  ;;  %v4025_v39 = vsel %vm2547_vm1, %v3996_v21, 0.0 }
 0x60a   : > { %v4026_v56 = vadd.f32 %v4025_v39, %v4024_v53  ;;  %v4015_v28 = vsel %vm2547_vm1, %v3994_v60, 0.0  ;;  %5519 = vmatprep.mubr.msk.bf16.mxu0 %vm2547_vm1, %v4349_v36 }
 0x60b   : > { %v4016_v26 = vadd.f32 %v4015_v28, %v4014_v9  ;;  %5520 = vmatmul.mubr.msk.bf16.gmra.mrb[128].mxu0 %vm2547_vm1, %v4350_v44 }
 0x60c   : > { %v5453_v41 = vpop.f32.mrb[108].mxu0 }
 0x60d   : > { %v3999_v12 = vmul.f32 %v5453_v41, %v5453_v41  ;;  %v3934_v59 = vpop.f32.mrb[109].mxu0 }
 0x60e   : > { %v3997_v37 = vmul.f32 %v3934_v59, %v3934_v59  ;;  %v5454_v0 = vpop.f32.mrb[110].mxu0 }
 0x60f   : > { %v4040_v63 = vsel %vm2547_vm1, %v3999_v12, 0.0  ;;  %v4000_v50 = vmul.f32 %v5454_v0, %v5454_v0  ;;  %v4352_v10 = vpack.c.bf16 %v5454_v0, %v5453_v41  ;;  %v3937_v20 = vpop.f32.mrb[111].mxu0 }
 0x610   : > { %v4041_v19 = vadd.f32 %v4040_v63, %v4039_v52  ;;  %v4030_v27 = vsel %vm2547_vm1, %v3997_v37, 0.0  ;;  %v3998_v45 = vmul.f32 %v3937_v20, %v3937_v20  ;;  %v4351_v3 = vpack.c.bf16 %v3937_v20, %v3934_v59 }
 0x611   : > { %v4031_v17 = vadd.f32 %v4030_v27, %v4029_v61  ;;  %v4045_v38 = vsel %vm2547_vm1, %v4000_v50, 0.0 }
 0x612   : > { %v4046_v7 = vadd.f32 %v4045_v38, %v4044_v35  ;;  %v4035_v16 = vsel %vm2547_vm1, %v3998_v45, 0.0  ;;  %5523 = vmatprep.mubr.msk.bf16.mxu0 %vm2547_vm1, %v4351_v3 }
 0x613   : > { %v4036_v13 = vadd.f32 %v4035_v16, %v4034_v1  ;;  %5524 = vmatmul.mubr.msk.bf16.gmra.mrb[132].mxu0 %vm2547_vm1, %v4352_v10 }
 0x614   : > { %v5457_v32 = vpop.f32.mrb[112].mxu0 }
 0x615   : > { %v4003_v43 = vmul.f32 %v5457_v32, %v5457_v32  ;;  %v3950_v2 = vpop.f32.mrb[113].mxu0 }
 0x616   : > { %v4001_v23 = vmul.f32 %v3950_v2, %v3950_v2  ;;  %v5458_v22 = vpop.f32.mrb[114].mxu0 }
 0x617   : > { %v4022_v54 = vsel %vm2547_vm1, %v4003_v43, 0.0  ;;  %v4004_v8 = vmul.f32 %v5458_v22, %v5458_v22  ;;  %v4354_v11 = vpack.c.bf16 %v5458_v22, %v5457_v32  ;;  %v3953_v47 = vpop.f32.mrb[115].mxu0 }
 0x618   : > { %v4023_v62 = vadd.f32 %v4022_v54, %v4021_v46  ;;  %v4012_v55 = vsel %vm2547_vm1, %v4001_v23, 0.0  ;;  %v4002_v6 = vmul.f32 %v3953_v47, %v3953_v47  ;;  %v4353_v40 = vpack.c.bf16 %v3953_v47, %v3950_v2 }
 0x619   : > { %v4013_v14 = vadd.f32 %v4012_v55, %v4011_v31  ;;  %v4027_v34 = vsel %vm2547_vm1, %v4004_v8, 0.0 }
 0x61a   : > { %v7700_v21 = vmax.f32 %v4023_v62, 1e-08  ;;  %v4028_v44 = vadd.f32 %v4027_v34, %v4026_v56  ;;  %v4017_v33 = vsel %vm2547_vm1, %v4002_v6, 0.0  ;;  %5527 = vmatprep.mubr.msk.bf16.mxu0 %vm2547_vm1, %v4353_v40 }
 0x61b   : > { %v7704_v30 = vmax.f32 %v4013_v14, 1e-08  ;;  %v4018_v60 = vadd.f32 %v4017_v33, %v4016_v26  ;;  %5528 = vmatmul.mubr.msk.bf16.gmra.mrb[136].mxu0 %vm2547_vm1, %v4354_v11  ;;  %v5697_v14 = vld [vmem:[%s7968_s15 + $0x8] sm:$0xff]  }
 0x61c   : > { %5848 = vrsqrt.f32 %v7700_v21  ;;  %v4052_v46 = vmax.f32 %v4028_v44, 1e-08  ;;  %v7708_v36 = vpop.f32.mrb[116].mxu0  ;;  %vm4073_vm5 = vcmp.eq.f32.partialorder %v7700_v21, inf  ;;  %vm4075_vm8 = vcmp.eq.f32.partialorder %v7700_v21, 0.0 }
 0x61d   : > { %5850 = vrsqrt.f32 %v7704_v30  ;;  %v4050_v53 = vmax.f32 %v4018_v60, 1e-08  ;;  %v4007_v31 = vmul.f32 %v7708_v36, %v7708_v36  ;;  %v7713_v39 = vpop.f32.mrb[117].mxu0  ;;  %vm4059_vm6 = vcmp.eq.f32.partialorder %v7704_v30, inf }
 0x61e   : > { %5852 = vrsqrt.f32 %v4052_v46  ;;  %v4005_v9 = vmul.f32 %v7713_v39, %v7713_v39  ;;  %v7717_v58 = vpop.f32.mrb[118].mxu0  ;;  %vm4061_vm7 = vcmp.eq.f32.partialorder %v7704_v30, 0.0  ;;  %v4062_v1 = vand.u32 2147483648, %v7704_v30 }
 0x61f   : > { %5854 = vrsqrt.f32 %v4050_v53  ;;  %v4042_v56 = vsel %vm2547_vm1, %v4007_v31, 0.0  ;;  %v4008_v28 = vmul.f32 %v7717_v58, %v7717_v58  ;;  %v4356_v42 = vpack.c.bf16 %v7717_v58, %v7708_v36  ;;  %v7724_v26 = vpop.f32.mrb[119].mxu0 }
 0x620   : > { %v4043_v41 = vadd.f32 %v4042_v56, %v4041_v19  ;;  %v4032_v29 = vsel %vm2547_vm1, %v4005_v9, 0.0  ;;  %v4006_v12 = vmul.f32 %v7724_v26, %v7724_v26  ;;  %v4355_v59 = vpack.c.bf16 %v7724_v26, %v7713_v39 }
 0x621   : > { %v4033_v52 = vadd.f32 %v4032_v29, %v4031_v17  ;;  %v4047_v18 = vsel %vm2547_vm1, %v4008_v28, 0.0  ;;  %v4076_v16 = vand.u32 2147483648, %v7700_v21  ;;  %vm4080_vm9 = vcmp.eq.f32.partialorder %v4052_v46, inf }
 0x622   : > { %v7732_v37 = vmax.f32 %v4043_v41, 1e-08  ;;  %v4048_v0 = vadd.f32 %v4047_v18, %v4046_v7  ;;  %v4037_v61 = vsel %vm2547_vm1, %v4006_v12, 0.0  ;;  %v4083_v43 = vand.u32 2147483648, %v4052_v46  ;;  %v5698_v41 = vld [vmem:[%s7968_s15 + $0x10] sm:$0xff]  }
 0x623   : > { %v7735_v63 = vmax.f32 %v4033_v52, 1e-08  ;;  %v4038_v50 = vadd.f32 %v4037_v61, %v4036_v13  ;;  %vm4066_vm10 = vcmp.eq.f32.partialorder %v4050_v53, inf  ;;  %v4069_v2 = vand.u32 2147483648, %v4050_v53 }
 0x624   : > { %5856 = vrsqrt.f32 %v7732_v37  ;;  %v7738_v10 = vmax.f32 %v4048_v0, 1e-08  ;;  %vm4082_vm11 = vcmp.eq.f32.partialorder %v4052_v46, 0.0  ;;  %vm4068_vm12 = vcmp.eq.f32.partialorder %v4050_v53, 0.0 }
 0x625   : > { %5858 = vrsqrt.f32 %v7735_v63  ;;  %v7741_v20 = vmax.f32 %v4038_v50, 1e-08  ;;  %vm4087_vm13 = vcmp.eq.f32.partialorder %v7735_v63, inf  ;;  %vm4089_vm14 = vcmp.eq.f32.partialorder %v7735_v63, 0.0 }
 0x626   : > { %v5849_v19 = vpop.eup %5848  ;;  %5860 = vrsqrt.f32 %v7738_v10  ;;  %v4090_v33 = vand.u32 2147483648, %v7735_v63  ;;  %vm4101_vm15 = vcmp.eq.f32.partialorder %v7732_v37, inf  ;;  %vm4103_vm0 = vcmp.eq.f32.partialorder %v7732_v37, 0.0 }
 0x627   : > { %v5851_v27 = vpop.eup %5850  ;;  %v4072_v45 = vmul.f32 %v5849_v19, %v7700_v21  ;;  %5862 = vrsqrt.f32 %v7741_v20  ;;  %vm4108_vm2 = vcmp.eq.f32.partialorder %v7738_v10, inf  ;;  %v4111_v56 = vand.u32 2147483648, %v7738_v10 }
 0x628   : > { %v5853_v3 = vpop.eup %5852  ;;  %v4058_v35 = vmul.f32 %v5851_v27, %v7704_v30  ;;  %vm4094_vm3 = vcmp.eq.f32.partialorder %v7741_v20, inf  ;;  %v4097_v28 = vand.u32 2147483648, %v7741_v20  ;;  %vm4110_vm4 = vcmp.eq.f32.partialorder %v7738_v10, 0.0 }
 0x629   : > { %v5855_v17 = vpop.eup %5854  ;;  %v4079_v38 = vmul.f32 %v5853_v3, %v4052_v46  ;;  %v4074_v7 = vsel %vm4073_vm5, %v7700_v21, %v4072_v45  ;;  %vm4096_vm5 = vcmp.eq.f32.partialorder %v7741_v20, 0.0 }
 0x62a   : > { %v4060_v13 = vsel %vm4059_vm6, %v7704_v30, %v4058_v35  ;;  %v4065_v32 = vmul.f32 %v5855_v17, %v4050_v53  ;;  %v4077_v54 = vsel %vm4075_vm8, %v4076_v16, %v4074_v7 }
 0x62b   : > { %v4081_v23 = vsel %vm4080_vm9, %v4052_v46, %v4079_v38  ;;  %v4063_v11 = vsel %vm4061_vm7, %v4062_v1, %v4060_v13  ;;  %v4104_v46 = vand.u32 2147483648, %v7732_v37  ;;  %v5013_v1 = vld [vmem:[%s7970_s17] ss:$0 sm:$0xff] }
 0x62c   : > { %v4067_v22 = vsel %vm4066_vm10, %v4050_v53, %v4065_v32  ;;  %v4084_v8 = vsel %vm4082_vm11, %v4083_v43, %v4081_v23 }
 0x62d   : > { %v4070_v47 = vsel %vm4068_vm12, %v4069_v2, %v4067_v22  ;;  %v4114_v62 = vpack.c.bf16 %v4084_v8, %v4077_v54 }
 0x62e   : > { %v5857_v55 = vpop.eup %5856  ;;  %v4113_v6 = vpack.c.bf16 %v4070_v47, %v4063_v11 }
 0x62f   : > { %v5859_v40 = vpop.eup %5858  ;;  %v4100_v34 = vmul.f32 %v5857_v55, %v7732_v37 }
 0x630   : > { %v5861_v44 = vpop.eup %5860  ;;  %5471 = vmatprep.mubr.msk.bf16.mxu1 %vm2547_vm1, %v4113_v6  ;;  %v4086_v21 = vmul.f32 %v5859_v40, %v7735_v63 }
 0x631   : > { %v5863_v30 = vpop.eup %5862  ;;  %5472 = vmatmul.mubr.msk.bf16.vlgmr.msra.gmra.mrb[96].mxu1 %vm2547_vm1, %v4114_v62  ;;  %v4102_v60 = vsel %vm4101_vm15, %v7732_v37, %v4100_v34  ;;  %v4107_v53 = vmul.f32 %v5861_v44, %v7738_v10  ;;  %v5700_v37 = vld [vmem:[%s7968_s15 + $0x20] sm:$0xff]  }
 0x632   : > { %5480 = vmatpush3.bf16.msra.mxu1 %v7670_v4  ;;  %v4088_v31 = vsel %vm4087_vm13, %v7735_v63, %v4086_v21  ;;  %v4093_v9 = vmul.f32 %v5863_v30, %v7741_v20  ;;  %v4105_v12 = vsel %vm4103_vm0, %v4104_v46, %v4102_v60  ;;  %v5701_v63 = vld [vmem:[%s7968_s15 + $0x28] sm:$0xff]  }
 0x633   : > { %5481 = vmatprep.subr.bf16.mxu1 %v5697_v14  ;;  %v4109_v29 = vsel %vm4108_vm2, %v7738_v10, %v4107_v53  ;;  %v4091_v18 = vsel %vm4089_vm14, %v4090_v33, %v4088_v31  ;;  %v5699_v10 = vld [vmem:[%s7968_s15 + $0x18] sm:$0xff]  }
 0x634   : > { %v4095_v4 = vsel %vm4094_vm3, %v7741_v20, %v4093_v9  ;;  %v4112_v52 = vsel %vm4110_vm4, %v4111_v56, %v4109_v29  ;;  %v5702_v20 = vld [vmem:[%s7968_s15 + $0x30] sm:$0xff]  }
 0x635   : > { %v4098_v0 = vsel %vm4096_vm5, %v4097_v28, %v4095_v4  ;;  %v4116_v61 = vpack.c.bf16 %v4112_v52, %v4105_v12 }
 0x636   : > { %5482 = vmatpush3.bf16.msra.mxu1 %v5697_v14  ;;  %v4115_v50 = vpack.c.bf16 %v4098_v0, %v4091_v18 }
 0x637   : > { %5483 = vmatprep.subr.bf16.mxu1 %v5698_v41 }
 0x638   : > { %5475 = vmatprep.mubr.msk.bf16.mxu1 %vm2547_vm1, %v4115_v50 }
 0x639   : > { %5476 = vmatmul.mubr.msk.bf16.gmra.mrb[100].mxu1 %vm2547_vm1, %v4116_v61 }
 0x63a   : > { %5484 = vmatpush3.bf16.msra.mxu1 %v5698_v41  ;;  %5495 = vmatprep.mubr.bf16.mxu1 %v7446_v49  ;;  %v5703_v49 = vld [vmem:[%s7968_s15 + $0x38] sm:$0xff]  }
 0x63b   : > { %5485 = vmatprep.subr.bf16.mxu1 %v5699_v10 }
 0x63e   : > { %5486 = vmatpush3.bf16.msra.mxu1 %v5699_v10 }
 0x63f   : > { %5487 = vmatprep.subr.bf16.mxu1 %v5700_v37 }
 0x642   : > { %5488 = vmatpush3.bf16.msra.mxu1 %v5700_v37 }
 0x643   : > { %5489 = vmatprep.subr.bf16.mxu1 %v5701_v63 }
 0x646   : > { %5490 = vmatpush3.bf16.msra.mxu1 %v5701_v63 }
 0x647   : > { %5491 = vmatprep.subr.bf16.mxu1 %v5702_v20 }
 0x64a   : > { %5492 = vmatpush3.bf16.msra.mxu1 %v5702_v20 }
 0x64b   : > { %5493 = vmatprep.subr.bf16.mxu1 %v5703_v49 }
 0x64e   : > { %5494 = vmatpush3.bf16.msra.mxu1 %v5703_v49 }
 0x64f   : > { %5535 = vmatprep.subr.bf16.mxu1 %v7467_v15 }
 0x651   : > { %5496 = vmatmul.mubr.bf16.vlgmr.msra.gmra.mrb[96].mxu1 %v7444_v57 }
 0x652   : > { %5499 = vmatprep.mubr.bf16.mxu1 %v7450_v5  ;;  %5539 = vmatpush3.bf16.msra.mxu1 %v7467_v15 }
 0x653   : > { %5536 = vmatprep.subr.bf16.mxu1 %v7612_v25 }
 0x656   : > { %5540 = vmatpush3.bf16.msra.mxu1 %v7612_v25 }
 0x657   : > { %5537 = vmatprep.subr.bf16.mxu1 %v7627_v24 }
 0x659   : > { %5500 = vmatmul.mubr.bf16.gmra.mrb[100].mxu1 %v7448_v48 }
 0x65a   : > { %5541 = vmatpush3.bf16.msra.mxu1 %v7627_v24  ;;  %5531 = vmatprep.mubr.msk.bf16.mxu1 %vm2547_vm1, %v4355_v59 }
 0x65b   : > { %5538 = vmatprep.subr.bf16.mxu1 %v7651_v51 }
 0x65e   : > { %5542 = vmatpush3.bf16.msra.mxu1 %v7651_v51 }
 0x661   : > { %5532 = vmatmul.mubr.msk.bf16.vlgmr.msra.gmra.mrb[104].mxu1 %vm2547_vm1, %v4356_v42 }
 0x6c7   : > { %v5513_v57 = vpop.f32.mrb[120].mxu0 }
 0x6c8   : > { %4556 = vst.msk [vmem:[%s7830_s27 + $0x10] sm:$0xff] %vm2547_vm1, %v5513_v57  ;;  %v4451_v48 = vpop.f32.mrb[121].mxu0 }
 0x6c9   : > { %4554 = vst.msk [vmem:[%s7830_s27] sm:$0xff] %vm2547_vm1, %v4451_v48  ;;  %v5514_v5 = vpop.f32.mrb[122].mxu0 }
 0x6ca   : > { %4557 = vst.msk [vmem:[%s7830_s27 + $0x18] sm:$0xff] %vm2547_vm1, %v5514_v5  ;;  %v4454_v15 = vpop.f32.mrb[123].mxu0 }
 0x6cb   : > { %4555 = vst.msk [vmem:[%s7830_s27 + $0x8] sm:$0xff] %vm2547_vm1, %v4454_v15 }
 0x6cf   : > { %v4674_v60 = vld [vmem:[%s7830_s27 + $0x10] sm:$0xff] (%p6029_p5) }
 0x6d0   : > { %v4670_v33 = vld [vmem:[%s7830_s27] sm:$0xff] (%p6029_p5)  ;;  %4675 = vst [vmem:[%s7896_s1 + $0x10] sm:$0xff] (%p6029_p5), %v4674_v60 }
 0x6d1   : > { %v4676_v46 = vld [vmem:[%s7830_s27 + $0x18] sm:$0xff] (%p6029_p5)  ;;  %4671 = vst [vmem:[%s7896_s1] sm:$0xff] (%p6029_p5), %v4670_v33 }
 0x6d2   : > { %v4672_v30 = vld [vmem:[%s7830_s27 + $0x8] sm:$0xff] (%p6029_p5)  ;;  %4677 = vst [vmem:[%s7896_s1 + $0x18] sm:$0xff] (%p6029_p5), %v4676_v46 }
 0x6d3   : > { %4673 = vst [vmem:[%s7896_s1 + $0x8] sm:$0xff] (%p6029_p5), %v4672_v30 }
 0x6d6   : > { %v5517_v25 = vpop.f32.mrb[124].mxu0 }
 0x6d7   : > { %4560 = vst.msk [vmem:[%s7830_s27 + $0x30] sm:$0xff] %vm2547_vm1, %v5517_v25  ;;  %v4467_v24 = vpop.f32.mrb[125].mxu0 }
 0x6d8   : > { %4558 = vst.msk [vmem:[%s7830_s27 + $0x20] sm:$0xff] %vm2547_vm1, %v4467_v24  ;;  %v5518_v51 = vpop.f32.mrb[126].mxu0 }
 0x6d9   : > { %4561 = vst.msk [vmem:[%s7830_s27 + $0x38] sm:$0xff] %vm2547_vm1, %v5518_v51  ;;  %v4470_v36 = vpop.f32.mrb[127].mxu0 }
 0x6da   : > { %4559 = vst.msk [vmem:[%s7830_s27 + $0x28] sm:$0xff] %vm2547_vm1, %v4470_v36 }
 0x6de   : > { %v5521_v39 = vpop.f32.mrb[128].mxu0  ;;  %v4682_v9 = vld [vmem:[%s7830_s27 + $0x30] sm:$0xff] (%p6029_p5) }
 0x6df   : > { %4564 = vst.msk [vmem:[%s7830_s27 + $0x50] sm:$0xff] %vm2547_vm1, %v5521_v39  ;;  %v4483_v58 = vpop.f32.mrb[129].mxu0  ;;  %v4678_v53 = vld [vmem:[%s7830_s27 + $0x20] sm:$0xff] (%p6029_p5)  ;;  %4683 = vst [vmem:[%s7896_s1 + $0x30] sm:$0xff] (%p6029_p5), %v4682_v9 }
 0x6e0   : > { %4562 = vst.msk [vmem:[%s7830_s27 + $0x40] sm:$0xff] %vm2547_vm1, %v4483_v58  ;;  %v5522_v42 = vpop.f32.mrb[130].mxu0  ;;  %4679 = vst [vmem:[%s7896_s1 + $0x20] sm:$0xff] (%p6029_p5), %v4678_v53  ;;  %v4684_v56 = vld [vmem:[%s7830_s27 + $0x38] sm:$0xff] (%p6029_p5) }
 0x6e1   : > { %4565 = vst.msk [vmem:[%s7830_s27 + $0x58] sm:$0xff] %vm2547_vm1, %v5522_v42  ;;  %v4486_v26 = vpop.f32.mrb[131].mxu0  ;;  %v4680_v31 = vld [vmem:[%s7830_s27 + $0x28] sm:$0xff] (%p6029_p5)  ;;  %4685 = vst [vmem:[%s7896_s1 + $0x38] sm:$0xff] (%p6029_p5), %v4684_v56 }
 0x6e2   : > { %4563 = vst.msk [vmem:[%s7830_s27 + $0x48] sm:$0xff] %vm2547_vm1, %v4486_v26  ;;  %4681 = vst [vmem:[%s7896_s1 + $0x28] sm:$0xff] (%p6029_p5), %v4680_v31 }
 0x6e6   : > { %v5525_v59 = vpop.f32.mrb[132].mxu0  ;;  %v4690_v29 = vld [vmem:[%s7830_s27 + $0x50] sm:$0xff] (%p6029_p5) }
 0x6e7   : > { %4568 = vst.msk [vmem:[%s7830_s27 + $0x70] sm:$0xff] %vm2547_vm1, %v5525_v59  ;;  %v4499_v19 = vpop.f32.mrb[133].mxu0  ;;  %v4686_v28 = vld [vmem:[%s7830_s27 + $0x40] sm:$0xff] (%p6029_p5)  ;;  %4691 = vst [vmem:[%s7896_s1 + $0x90] sm:$0xff] (%p6029_p5), %v4690_v29 }
 0x6e8   : > { %4566 = vst.msk [vmem:[%s7830_s27 + $0x60] sm:$0xff] %vm2547_vm1, %v4499_v19  ;;  %v5526_v27 = vpop.f32.mrb[134].mxu0  ;;  %4687 = vst [vmem:[%s7896_s1 + $0x80] sm:$0xff] (%p6029_p5), %v4686_v28  ;;  %v4692_v4 = vld [vmem:[%s7830_s27 + $0x58] sm:$0xff] (%p6029_p5) }
 0x6e9   : > { %4569 = vst.msk [vmem:[%s7830_s27 + $0x78] sm:$0xff] %vm2547_vm1, %v5526_v27  ;;  %v4502_v45 = vpop.f32.mrb[135].mxu0  ;;  %v4688_v41 = vld [vmem:[%s7830_s27 + $0x48] sm:$0xff] (%p6029_p5)  ;;  %4693 = vst [vmem:[%s7896_s1 + $0x98] sm:$0xff] (%p6029_p5), %v4692_v4 }
 0x6ea   : > { %4567 = vst.msk [vmem:[%s7830_s27 + $0x68] sm:$0xff] %vm2547_vm1, %v4502_v45  ;;  %4689 = vst [vmem:[%s7896_s1 + $0x88] sm:$0xff] (%p6029_p5), %v4688_v41 }
 0x6ee   : > { %v5529_v3 = vpop.f32.mrb[136].mxu0  ;;  %v4698_v18 = vld [vmem:[%s7830_s27 + $0x70] sm:$0xff] (%p6029_p5) }
 0x6ef   : > { %4572 = vst.msk [vmem:[%s7830_s27 + $0x90] sm:$0xff] %vm2547_vm1, %v5529_v3  ;;  %v4515_v35 = vpop.f32.mrb[137].mxu0  ;;  %v4694_v12 = vld [vmem:[%s7830_s27 + $0x60] sm:$0xff] (%p6029_p5)  ;;  %4699 = vst [vmem:[%s7896_s1 + $0xb0] sm:$0xff] (%p6029_p5), %v4698_v18 }
 0x6f0   : > { %4570 = vst.msk [vmem:[%s7830_s27 + $0x80] sm:$0xff] %vm2547_vm1, %v4515_v35  ;;  %v5530_v17 = vpop.f32.mrb[138].mxu0  ;;  %4695 = vst [vmem:[%s7896_s1 + $0xa0] sm:$0xff] (%p6029_p5), %v4694_v12  ;;  %v4700_v0 = vld [vmem:[%s7830_s27 + $0x78] sm:$0xff] (%p6029_p5) }
 0x6f1   : > { %4573 = vst.msk [vmem:[%s7830_s27 + $0x98] sm:$0xff] %vm2547_vm1, %v5530_v17  ;;  %v4518_v38 = vpop.f32.mrb[139].mxu0  ;;  %v4696_v52 = vld [vmem:[%s7830_s27 + $0x68] sm:$0xff] (%p6029_p5)  ;;  %4701 = vst [vmem:[%s7896_s1 + $0xb8] sm:$0xff] (%p6029_p5), %v4700_v0 }
 0x6f2   : > { %4571 = vst.msk [vmem:[%s7830_s27 + $0x88] sm:$0xff] %vm2547_vm1, %v4518_v38  ;;  %4697 = vst [vmem:[%s7896_s1 + $0xa8] sm:$0xff] (%p6029_p5), %v4696_v52 }
 0x6f6   : > { %v4706_v10 = vld [vmem:[%s7830_s27 + $0x90] sm:$0xff] (%p6029_p5) }
 0x6f7   : > { %v4702_v61 = vld [vmem:[%s7830_s27 + $0x80] sm:$0xff] (%p6029_p5)  ;;  %4707 = vst [vmem:[%s7896_s1 + $0x110] sm:$0xff] (%p6029_p5), %v4706_v10 }
 0x6f8   : > { %4703 = vst [vmem:[%s7896_s1 + $0x100] sm:$0xff] (%p6029_p5), %v4702_v61  ;;  %v4708_v37 = vld [vmem:[%s7830_s27 + $0x98] sm:$0xff] (%p6029_p5) }
 0x6f9   : > { %v4704_v50 = vld [vmem:[%s7830_s27 + $0x88] sm:$0xff] (%p6029_p5)  ;;  %4709 = vst [vmem:[%s7896_s1 + $0x118] sm:$0xff] (%p6029_p5), %v4708_v37 }
 0x6fa   : > { %4705 = vst [vmem:[%s7896_s1 + $0x108] sm:$0xff] (%p6029_p5), %v4704_v50 }
 0x724   : > { %v5497_v7 = vpop.f32.mrb[96].mxu1 }
 0x725   : > { %v4339_v16 = vadd.f32 %v5497_v7, %v5013_v1  ;;  %v4300_v13 = vpop.f32.mrb[97].mxu1 }
 0x726   : > { %v4337_v32 = vadd.f32 %v5013_v1, %v4300_v13  ;;  %v5498_v43 = vpop.f32.mrb[98].mxu1 }
 0x727   : > { %4548 = vst [vmem:[%s937_s2 + $0x10] sm:$0xff] %v4339_v16  ;;  %v4340_v2 = vadd.f32 %v5498_v43, %v5013_v1  ;;  %v4303_v23 = vpop.f32.mrb[99].mxu1 }
 0x728   : > { %4546 = vst [vmem:[%s937_s2] sm:$0xff] %v4337_v32  ;;  %v4338_v22 = vadd.f32 %v5013_v1, %v4303_v23 }
 0x729   : > { %4549 = vst [vmem:[%s937_s2 + $0x18] sm:$0xff] %v4340_v2 }
 0x72a   : > { %4547 = vst [vmem:[%s937_s2 + $0x8] sm:$0xff] %v4338_v22 }
 0x72c   : > { %v5501_v54 = vpop.f32.mrb[100].mxu1 }
 0x72d   : > { %v4343_v8 = vadd.f32 %v5501_v54, %v5013_v1  ;;  %v4316_v11 = vpop.f32.mrb[101].mxu1 }
 0x72e   : > { %v4341_v47 = vadd.f32 %v5013_v1, %v4316_v11  ;;  %v5502_v62 = vpop.f32.mrb[102].mxu1 }
 0x72f   : > { %4552 = vst [vmem:[%s937_s2 + $0x30] sm:$0xff] %v4343_v8  ;;  %v4344_v55 = vadd.f32 %v5502_v62, %v5013_v1  ;;  %v4319_v6 = vpop.f32.mrb[103].mxu1 }
 0x730   : > { %4550 = vst [vmem:[%s937_s2 + $0x20] sm:$0xff] %v4341_v47  ;;  %v4342_v40 = vadd.f32 %v5013_v1, %v4319_v6 }
 0x731   : > { %4553 = vst [vmem:[%s937_s2 + $0x38] sm:$0xff] %v4344_v55 }
 0x732   : > { %4551 = vst [vmem:[%s937_s2 + $0x28] sm:$0xff] %v4342_v40  ;;  %4593 = sbr.rel (!%p6029_p5) target bundleno = 1857 (0x741), region = 180 }
 0x734   : > { %v5533_v14 = vpop.f32.mrb[104].mxu1 }
 0x735   : > { %4576 = vst.msk [vmem:[%s7830_s27 + $0xb0] sm:$0xff] %vm2547_vm1, %v5533_v14  ;;  %v4531_v34 = vpop.f32.mrb[105].mxu1 }
 0x736   : > { %4574 = vst.msk [vmem:[%s7830_s27 + $0xa0] sm:$0xff] %vm2547_vm1, %v4531_v34  ;;  %v5534_v44 = vpop.f32.mrb[106].mxu1 }
 0x737   : > { %4577 = vst.msk [vmem:[%s7830_s27 + $0xb8] sm:$0xff] %vm2547_vm1, %v5534_v44  ;;  %v4534_v21 = vpop.f32.mrb[107].mxu1 }
 0x738   : > { %4575 = vst.msk [vmem:[%s7830_s27 + $0xa8] sm:$0xff] %vm2547_vm1, %v4534_v21 }
 0x73c   : > { %v4714_v49 = vld [vmem:[%s7830_s27 + $0xb0] sm:$0xff] }
 0x73d   : > { %v4710_v63 = vld [vmem:[%s7830_s27 + $0xa0] sm:$0xff]  ;;  %4715 = vst [vmem:[%s7896_s1 + $0x130] sm:$0xff] %v4714_v49 }
 0x73e   : > { %4711 = vst [vmem:[%s7896_s1 + $0x120] sm:$0xff] %v4710_v63  ;;  %v4716_v57 = vld [vmem:[%s7830_s27 + $0xb8] sm:$0xff] }
 0x73f   : > { %v4712_v20 = vld [vmem:[%s7830_s27 + $0xa8] sm:$0xff]  ;;  %4717 = vst [vmem:[%s7896_s1 + $0x138] sm:$0xff] %v4716_v57 }
 0x740   : > { %4713 = vst [vmem:[%s7896_s1 + $0x128] sm:$0xff] %v4712_v20 }
 0x741 PF: > { %s7996_s23 = sld [smem:[#allocation5_spill]]  ;;  %s7997_s24 = sld [smem:[#allocation6_spill]] }
 0x742   : > { %s7998_s1 = smov %s5882_s22 }
 0x747   : > { %p28_p11 = scmp.ge.s32.totalorder %s7996_s23, 4   ;;  %s7999_s22 = smov %s7997_s24 }
 0x749   :  { %30 = sbr.rel (!%p28_p11) target bundleno = 8 (0x8), region = 268 }

// kernel: drug_gvp_forward.12
= control target key start
LH: loop header
LB: loop body
LE: loop exit
PB: predicated region body
PF: predicated region fallthrough
CT: control target
= control target key end

     0   :  { %s5314_s0 = inlined_call_operand.vmem [shape: f32[64,128], index: 0, kind: input, shape index: {}]   ;;  %s5315_s1 = inlined_call_operand.vmem [shape: f32[3,64,64], index: 1, kind: input, shape index: {}]   ;;  %s5316_s2 = inlined_call_operand.vmem [shape: f32[64,128], index: 2, kind: input, shape index: {}]   ;;  %s5317_s3 = inlined_call_operand.vmem [shape: f32[3,64,64], index: 3, kind: input, shape index: {}]   ;;  %s5318_s4 = inlined_call_operand.vmem [shape: f32[64,1], index: 4, kind: input, shape index: {}]   ;;  %s5319_s5 = inlined_call_operand.vmem [shape: f32[1,128], index: 5, kind: input, shape index: {}]   ;;  %s5320_s6 = inlined_call_operand.vmem [shape: f32[1,128], index: 6, kind: input, shape index: {}]   ;;  %s5321_s7 = inlined_call_operand.vmem [shape: bf16[64,128], index: 7, kind: input, shape index: {}]   ;;  %s5322_s8 = inlined_call_operand.vmem [shape: bf16[128,512], index: 8, kind: input, shape index: {}]   ;;  %s5323_s9 = inlined_call_operand.vmem [shape: bf16[128,512], index: 9, kind: input, shape index: {}]   ;;  %s5324_s10 = inlined_call_operand.vmem [shape: f32[1,512], index: 10, kind: input, shape index: {}]   ;;  %s5325_s11 = inlined_call_operand.vmem [shape: bf16[128,128], index: 11, kind: input, shape index: {}]   ;;  %s5326_s12 = inlined_call_operand.vmem [shape: bf16[128,128], index: 12, kind: input, shape index: {}]   ;;  %s5327_s13 = inlined_call_operand.vmem [shape: bf16[512,128], index: 13, kind: input, shape index: {}]   ;;  %s5328_s14 = inlined_call_operand.vmem [shape: bf16[128,128], index: 14, kind: input, shape index: {}]   ;;  %s5329_s15 = inlined_call_operand.vmem [shape: f32[1,128], index: 15, kind: input, shape index: {}]   ;;  %s5330_s16 = inlined_call_operand.vmem [shape: bf16[128,64], index: 16, kind: input, shape index: {}]   ;;  %s5331_s17 = inlined_call_operand.vmem [shape: f32[1,128], index: 17, kind: input, shape index: {}]   ;;  %s5332_s18 = inlined_call_operand.vmem [shape: f32[1,128], index: 18, kind: input, shape index: {}]   ;;  %s5333_s19 = inlined_call_operand.vmem [shape: f32[64,128], index: 19, kind: output, shape index: {0}]   ;;  %s5334_s20 = inlined_call_operand.vmem [shape: f32[3,64,64], index: 20, kind: output, shape index: {1}]  }
   0x1   :  { %5337 = sst [smem:[#allocation7_spill]] %s5314_s0 }
   0x2   :  { %5338 = sst [smem:[#allocation8_spill]] %s5315_s1 }
   0x3   :  { %5339 = sst [smem:[#allocation9_spill]] %s5316_s2 }
   0x4   :  { %5340 = sst [smem:[#allocation10_spill]] %s5317_s3 }
   0x5   :  { %5341 = sst [smem:[#allocation11_spill]] %s5318_s4 }
   0x6   :  { %s4256_s1 = smov 0   ;;  %s4258_s22 = smov 0  }
   0x7   :  { %s4260_s23 = smov 0  }
   0x8 LB: > { %s4272_s24 = sadd.s32 4294967295, %s4148_s23   ;;  %s4275_s2 = sadd.s32 1, %s4148_s23   ;;  %s4148_s23 = sphi %s4260_s23, %s5351_s23   ;;  %s4144_s22 = sphi %s4258_s22, %s5354_s22   ;;  %s4140_s1 = sphi %s4256_s1, %s5353_s1  }
   0x9   : > { %5342 = sst [smem:[#allocation5_spill]] %s4275_s2  ;;  %s61_s25 = ssub.s32 %s4148_s23, %s4275_s2 }
   0xa   : > { %s64_s3 = sadd.s32 1, %s4144_s22  ;;  %p62_p0 = scmp.eq.s32.totalorder %s61_s25, 0 }
   0xb   : > { %p71_p1 = scmp.ne.s32.totalorder %s4144_s22, %s4140_s1  ;;  %p72_p2 = scmp.eq.s32.totalorder %s4148_s23, 0 }
   0xc   : > { %p499_p3 = scmp.eq.s32.totalorder %s4272_s24, 1  ;;  %p3434_p6 = scmp.ge.s32.totalorder %s4148_s23, 2 }
   0xd   : > { %s4285_s26 = scalar_select %p62_p0, %s4144_s22, %s64_s3  }
   0xe   : > { %p4287_p4 = por %p72_p2, %p71_p1  ;;  %p4291_p5 = por %p499_p3, %p71_p1 }
   0xf   : > { %5343 = sst [smem:[#allocation6_spill]] %s4285_s26  ;;  %563 = sbr.rel (%p3434_p6) target bundleno = 56 (0x38), region = 72 }
  0x16   : > { %575 = sbr.rel (!%p4287_p4) target bundleno = 39 (0x27), region = 80  ;;  %s577_s4 = sand.u32 (%p4287_p4), 1, %s4144_s22  }
  0x17   : > { %s3599_s29 = sshll.u32 (%p4287_p4), %s4148_s23, 5  ;;  %s3860_s30 = smul.u32 (%p4287_p4), 96, %s577_s4 }
  0x18   : > { %s5346_s25 = sld [smem:[#allocation8_spill]] (%p4287_p4) }
  0x19   : > { %s579_s26 = scalar_lea.vmem (%p4287_p4), [#allocation2], %s3860_s30 }
  0x1e   : > { %s582_s3 = scalar_lea.vmem %s5346_s25, %s3599_s29 }
  0x1f   : > { %v632_v0 = vld [vmem:[%s582_s3] sm:$0xff]  ;;  %v634_v1 = vld [vmem:[%s582_s3 + $0x8] sm:$0xff]  ;;  %v636_v2 = vld [vmem:[%s582_s3 + $0x10] sm:$0xff] }
  0x20   : > { %v638_v3 = vld [vmem:[%s582_s3 + $0x18] sm:$0xff]  ;;  %v640_v4 = vld [vmem:[%s582_s3 + $0x40] sm:$0xff]  ;;  %v642_v5 = vld [vmem:[%s582_s3 + $0x48] sm:$0xff]  ;;  %633 = vst [vmem:[%s579_s26] sm:$0xff] %v632_v0 }
  0x21   : > { %635 = vst [vmem:[%s579_s26 + $0x8] sm:$0xff] %v634_v1  ;;  %637 = vst [vmem:[%s579_s26 + $0x10] sm:$0xff] %v636_v2  ;;  %v644_v6 = vld [vmem:[%s582_s3 + $0x50] sm:$0xff]  ;;  %v646_v7 = vld [vmem:[%s582_s3 + $0x58] sm:$0xff] }
  0x22   : > { %639 = vst [vmem:[%s579_s26 + $0x18] sm:$0xff] %v638_v3  ;;  %641 = vst [vmem:[%s579_s26 + $0x20] sm:$0xff] %v640_v4  ;;  %v648_v8 = vld [vmem:[%s582_s3 + $0x80] sm:$0xff]  ;;  %v650_v9 = vld [vmem:[%s582_s3 + $0x88] sm:$0xff] }
  0x23   : > { %643 = vst [vmem:[%s579_s26 + $0x28] sm:$0xff] %v642_v5  ;;  %645 = vst [vmem:[%s579_s26 + $0x30] sm:$0xff] %v644_v6  ;;  %v652_v10 = vld [vmem:[%s582_s3 + $0x90] sm:$0xff]  ;;  %v654_v11 = vld [vmem:[%s582_s3 + $0x98] sm:$0xff] }
  0x24   : > { %647 = vst [vmem:[%s579_s26 + $0x38] sm:$0xff] %v646_v7  ;;  %649 = vst [vmem:[%s579_s26 + $0x40] sm:$0xff] %v648_v8 }
  0x25   : > { %651 = vst [vmem:[%s579_s26 + $0x48] sm:$0xff] %v650_v9  ;;  %653 = vst [vmem:[%s579_s26 + $0x50] sm:$0xff] %v652_v10 }
  0x26   : > { %655 = vst [vmem:[%s579_s26 + $0x58] sm:$0xff] %v654_v11 }
  0x27 PF: > { %670 = sbr.rel (!%p4287_p4) target bundleno = 56 (0x38), region = 122  ;;  %s672_s4 = sand.u32 (%p4287_p4), 1, %s4144_s22  }
  0x28   : > { %s3600_s29 = sshll.u32 (%p4287_p4), %s4148_s23, 5  ;;  %s3861_s30 = smul.u32 (%p4287_p4), 96, %s672_s4 }
  0x29   : > { %s5347_s25 = sld [smem:[#allocation10_spill]] (%p4287_p4) }
  0x2a   : > { %s674_s26 = scalar_lea.vmem (%p4287_p4), [#allocation3], %s3861_s30 }
  0x2f   : > { %s677_s2 = scalar_lea.vmem %s5347_s25, %s3600_s29 }
  0x30   : > { %v727_v12 = vld [vmem:[%s677_s2] sm:$0xff]  ;;  %v729_v13 = vld [vmem:[%s677_s2 + $0x8] sm:$0xff]  ;;  %v731_v14 = vld [vmem:[%s677_s2 + $0x10] sm:$0xff] }
  0x31   : > { %v733_v15 = vld [vmem:[%s677_s2 + $0x18] sm:$0xff]  ;;  %v735_v16 = vld [vmem:[%s677_s2 + $0x40] sm:$0xff]  ;;  %v737_v17 = vld [vmem:[%s677_s2 + $0x48] sm:$0xff]  ;;  %728 = vst [vmem:[%s674_s26] sm:$0xff] %v727_v12 }
  0x32   : > { %730 = vst [vmem:[%s674_s26 + $0x8] sm:$0xff] %v729_v13  ;;  %732 = vst [vmem:[%s674_s26 + $0x10] sm:$0xff] %v731_v14  ;;  %v739_v18 = vld [vmem:[%s677_s2 + $0x50] sm:$0xff]  ;;  %v741_v19 = vld [vmem:[%s677_s2 + $0x58] sm:$0xff] }
  0x33   : > { %734 = vst [vmem:[%s674_s26 + $0x18] sm:$0xff] %v733_v15  ;;  %736 = vst [vmem:[%s674_s26 + $0x20] sm:$0xff] %v735_v16  ;;  %v743_v20 = vld [vmem:[%s677_s2 + $0x80] sm:$0xff]  ;;  %v745_v21 = vld [vmem:[%s677_s2 + $0x88] sm:$0xff] }
  0x34   : > { %738 = vst [vmem:[%s674_s26 + $0x28] sm:$0xff] %v737_v17  ;;  %740 = vst [vmem:[%s674_s26 + $0x30] sm:$0xff] %v739_v18  ;;  %v747_v22 = vld [vmem:[%s677_s2 + $0x90] sm:$0xff]  ;;  %v749_v23 = vld [vmem:[%s677_s2 + $0x98] sm:$0xff] }
  0x35   : > { %742 = vst [vmem:[%s674_s26 + $0x38] sm:$0xff] %v741_v19  ;;  %744 = vst [vmem:[%s674_s26 + $0x40] sm:$0xff] %v743_v20 }
  0x36   : > { %746 = vst [vmem:[%s674_s26 + $0x48] sm:$0xff] %v745_v21  ;;  %748 = vst [vmem:[%s674_s26 + $0x50] sm:$0xff] %v747_v22 }
  0x37   : > { %750 = vst [vmem:[%s674_s26 + $0x58] sm:$0xff] %v749_v23 }
  0x38 PF: > { %p3439_p7 = scmp.ge.s32.totalorder %s4148_s23, 1  ;;  %p764_p8 = scmp.lt.s32.totalorder %s4148_s23, 3 }
  0x3a   : > { %p765_p9 = pnand %p3439_p7, %p764_p8 }
  0x3b   : > { %s3440_s27 = sshll.u32 (!%p765_p9), %s4272_s24, 2  ;;  %v4150_v24 = vmov (!%p765_p9), 0   ;;  %s5348_s23 = sld [smem:[#allocation11_spill]] (!%p765_p9)  ;;  %vm1053_vm0 = vcmask (!%p765_p9), 523264  }
  0x3c   : > { %768 = sbr.rel (%p765_p9) target bundleno = 1825 (0x721), region = 164  ;;  %3889 = vset.pattern.permute.xlu1 (!%p765_p9), %v4150_v24  ;;  %3888 = vset.pattern.permute.xlu0 (!%p765_p9), %v4150_v24  ;;  %p859_p10 = scmp.lt.s32.totalorder (!%p765_p9), %s3440_s27, 7 }
  0x3d   : > { %1630 = vmatprep.mubr.bf16.mxu0 (!%p765_p9), %v4150_v24  ;;  %s771_s30 = sand.u32 (!%p765_p9), 1, %s4140_s1  }
  0x3e   : > { %s4323_s0 = smul.u32 (!%p765_p9), 96, %s771_s30 }
  0x40   : > { %s780_s21 = scalar_lea.vmem (!%p765_p9), [#allocation3], %s4323_s0  ;;  %s4327_s25 = scalar_lea.vmem (!%p765_p9), [#allocation2], %s4323_s0 }
  0x41   : > { %v940_v29 = vld [vmem:[%s780_s21 + $0x10] sm:$0xff] (!%p765_p9)  ;;  %v938_v32 = vld [vmem:[%s780_s21] sm:$0xff] (!%p765_p9)  ;;  %v941_v47 = vld [vmem:[%s780_s21 + $0x18] sm:$0xff] (!%p765_p9) }
  0x42   : > { %v944_v30 = vld [vmem:[%s780_s21 + $0x30] sm:$0xff] (!%p765_p9)  ;;  %v942_v34 = vld [vmem:[%s780_s21 + $0x20] sm:$0xff] (!%p765_p9)  ;;  %v945_v50 = vld [vmem:[%s780_s21 + $0x38] sm:$0xff] (!%p765_p9) }
  0x43   : > { %s5356_s27 = smov (!%p859_p10, %s3440_s27), 7  ;;  %v948_v31 = vld [vmem:[%s780_s21 + $0x50] sm:$0xff]  ;;  %v946_v35 = vld [vmem:[%s780_s21 + $0x40] sm:$0xff]  ;;  %v949_v51 = vld [vmem:[%s780_s21 + $0x58] sm:$0xff] }
  0x44   : > { %s4316_s2 = sshll.u32 %s5356_s27, 3  ;;  %v928_v33 = vld [vmem:[%s4327_s25 + $0x10] sm:$0xff]  ;;  %v926_v40 = vld [vmem:[%s4327_s25] sm:$0xff]  ;;  %v939_v52 = vld [vmem:[%s780_s21 + $0x8] sm:$0xff]  ;;  %s5349_s27 = sld [smem:[#allocation9_spill]] }
  0x45   : > { %s876_s29 = scalar_lea.vmem %s5348_s23, %s4316_s2  ;;  %v932_v37 = vld [vmem:[%s4327_s25 + $0x30] sm:$0xff]  ;;  %v930_v44 = vld [vmem:[%s4327_s25 + $0x20] sm:$0xff]  ;;  %v929_v55 = vld [vmem:[%s4327_s25 + $0x18] sm:$0xff] }
  0x46   : > { %v888_v25 = vld [vmem:[%s876_s29 + $0x10] sm:$0xff]  ;;  %v886_v26 = vld [vmem:[%s876_s29] sm:$0xff]  ;;  %v889_v27 = vld [vmem:[%s876_s29 + $0x18] sm:$0xff] }
  0x47   : > { %910 = vperm.xlu1 %3889, %v888_v25   ;;  %900 = vperm.xlu0 %3888, %v886_v26   ;;  %v887_v28 = vld [vmem:[%s876_s29 + $0x8] sm:$0xff]  ;;  %v936_v38 = vld [vmem:[%s4327_s25 + $0x50] sm:$0xff]  ;;  %v934_v45 = vld [vmem:[%s4327_s25 + $0x40] sm:$0xff]  ;;  %s5350_s29 = sld [smem:[#allocation7_spill]] }
  0x48   : > { %v943_v56 = vld [vmem:[%s780_s21 + $0x28] sm:$0xff]  ;;  %v933_v63 = vld [vmem:[%s4327_s25 + $0x38] sm:$0xff] }
  0x49   : > { %v947_v57 = vld [vmem:[%s780_s21 + $0x48] sm:$0xff]  ;;  %v937_v0 = vld [vmem:[%s4327_s25 + $0x58] sm:$0xff] }
  0x4a   : > { %v927_v2 = vld [vmem:[%s4327_s25 + $0x8] sm:$0xff]  ;;  %s4414_s3 = scalar_lea.vmem %s5349_s27, %s4316_s2 }
  0x4b   : > { %915 = vperm.xlu1 %3889, %v889_v27   ;;  %905 = vperm.xlu0 %3888, %v887_v28   ;;  %v931_v6 = vld [vmem:[%s4327_s25 + $0x28] sm:$0xff] }
  0x4c   : > { %v935_v7 = vld [vmem:[%s4327_s25 + $0x48] sm:$0xff] }
  0x4d   : > { %s862_s30 = scalar_lea.vmem %s5350_s29, %s4316_s2  ;;  %s5239_s29 = scalar_lea.vmem %s5333_s19, %s4316_s2 }
  0x4e   : > { %s5251_s2 = scalar_lea.vmem [#allocation4], %s4323_s0  ;;  %s3601_s0 = sshll.u32 (%p4291_p5), %s4272_s24, 5 }
  0x4f   : > { %s3219_s25 = scalar_lea.vmem (%p4291_p5), %s5334_s20, %s3601_s0 }
  0xc6   : > { %v4330_v36 = vpop.permute.xlu1 %910  ;;  %v4334_v39 = vpop.permute.xlu0 %900 }
  0xc7   : > { %v952_v41 = vmul.f32 %v940_v29, %v4330_v36  ;;  %v956_v42 = vmul.f32 %v944_v30, %v4330_v36  ;;  %v960_v43 = vmul.f32 %v948_v31, %v4330_v36  ;;  %v950_v46 = vmul.f32 %v938_v32, %v4334_v39 }
  0xc8   : > { %v954_v48 = vmul.f32 %v942_v34, %v4334_v39  ;;  %v958_v49 = vmul.f32 %v946_v35, %v4334_v39 }
  0xc9   : > { %v4345_v53 = vadd.f32 %v952_v41, %v928_v33  ;;  %v4347_v54 = vadd.f32 %v950_v46, %v926_v40  ;;  %v4350_v58 = vadd.f32 %v956_v42, %v932_v37  ;;  %v4352_v59 = vadd.f32 %v960_v43, %v936_v38 }
  0xca   : > { %v4354_v60 = vadd.f32 %v954_v48, %v930_v44  ;;  %v4356_v61 = vadd.f32 %v958_v49, %v934_v45  ;;  %v4358_v62 = vpop.permute.xlu1 %915  ;;  %v4362_v1 = vpop.permute.xlu0 %905  ;;  %v894_v48 = vld [vmem:[%s4414_s3] sm:$0xff] }
  0xcb   : > { %v953_v3 = vmul.f32 %v941_v47, %v4358_v62  ;;  %v957_v4 = vmul.f32 %v945_v50, %v4358_v62  ;;  %v961_v5 = vmul.f32 %v949_v51, %v4358_v62  ;;  %v951_v8 = vmul.f32 %v939_v52, %v4362_v1 }
  0xcc   : > { %v955_v9 = vmul.f32 %v943_v56, %v4362_v1  ;;  %v959_v10 = vmul.f32 %v947_v57, %v4362_v1  ;;  %v1041_v11 = vmul.f32 %v4347_v54, %v4347_v54  ;;  %v1045_v12 = vmul.f32 %v4354_v60, %v4354_v60 }
  0xcd   : > { %v4377_v13 = vadd.f32 %v953_v3, %v929_v55  ;;  %v4379_v14 = vadd.f32 %v957_v4, %v933_v63  ;;  %v4381_v15 = vadd.f32 %v961_v5, %v937_v0  ;;  %v4383_v16 = vadd.f32 %v951_v8, %v927_v2  ;;  %v890_v3 = vld [vmem:[%s862_s30] sm:$0xff]  ;;  %v896_v4 = vld [vmem:[%s4414_s3 + $0x10] sm:$0xff] }
  0xce   : > { %v4385_v17 = vadd.f32 %v955_v9, %v931_v6  ;;  %v4387_v18 = vadd.f32 %v959_v10, %v935_v7  ;;  %v1049_v19 = vmul.f32 %v4356_v61, %v4356_v61  ;;  %v1054_v20 = vsel %vm1053_vm0, %v1041_v11, 0.0  ;;  %v895_v7 = vld [vmem:[%s4414_s3 + $0x8] sm:$0xff]  ;;  %v892_v10 = vld [vmem:[%s862_s30 + $0x10] sm:$0xff] }
  0xcf   : > { %v1055_v21 = vsel %vm1053_vm0, %v1045_v12, 0.0  ;;  %v1042_v22 = vmul.f32 %v4383_v16, %v4383_v16  ;;  %v1043_v23 = vmul.f32 %v4345_v53, %v4345_v53  ;;  %v1047_v25 = vmul.f32 %v4350_v58, %v4350_v58  ;;  %v891_v12 = vld [vmem:[%s862_s30 + $0x8] sm:$0xff] }
  0xd0   : > { %v1056_v26 = vadd.f32 %v1055_v21, %v1054_v20  ;;  %v1057_v27 = vsel %vm1053_vm0, %v1049_v19, 0.0  ;;  %v1046_v28 = vmul.f32 %v4385_v17, %v4385_v17  ;;  %v1050_v29 = vmul.f32 %v4387_v18, %v4387_v18  ;;  %v897_v19 = vld [vmem:[%s4414_s3 + $0x18] sm:$0xff] }
  0xd1   : > { %v1059_v30 = vsel %vm1053_vm0, %v1042_v22, 0.0  ;;  %v1051_v31 = vmul.f32 %v4352_v59, %v4352_v59  ;;  %v1064_v32 = vsel %vm1053_vm0, %v1043_v23, 0.0  ;;  %v1065_v33 = vsel %vm1053_vm0, %v1047_v25, 0.0  ;;  %v893_v23 = vld [vmem:[%s862_s30 + $0x18] sm:$0xff] }
  0xd2   : > { %v1058_v34 = vadd.f32 %v1057_v27, %v1056_v26  ;;  %v1060_v35 = vsel %vm1053_vm0, %v1046_v28, 0.0  ;;  %v1066_v37 = vadd.f32 %v1065_v33, %v1064_v32  ;;  %v1044_v41 = vmul.f32 %v4377_v13, %v4377_v13  ;;  %v3893_v26 = vld [vmem:[%s5321_s7 + $0x18] sm:$0xff]  }
  0xd3   : > { %v1061_v38 = vadd.f32 %v1060_v35, %v1059_v30  ;;  %v1067_v40 = vsel %vm1053_vm0, %v1051_v31, 0.0  ;;  %v1048_v42 = vmul.f32 %v4379_v14, %v4379_v14  ;;  %v1062_v44 = vsel %vm1053_vm0, %v1050_v29, 0.0 }
  0xd4   : > { %v1074_v43 = vmax.f32 %v1058_v34, 1e-08  ;;  %v1068_v45 = vadd.f32 %v1067_v40, %v1066_v37  ;;  %v1052_v46 = vmul.f32 %v4381_v15, %v4381_v15  ;;  %v1069_v49 = vsel %vm1053_vm0, %v1044_v41, 0.0 }
  0xd5   : > { %v1063_v47 = vadd.f32 %v1062_v44, %v1061_v38  ;;  %v1070_v50 = vsel %vm1053_vm0, %v1048_v42, 0.0  ;;  %v918_v63 = vmul.f32 %v4334_v39, %v894_v48  ;;  %v920_v9 = vmul.f32 %v4330_v36, %v896_v4  ;;  %v3890_v36 = vld [vmem:[%s5321_s7] sm:$0xff]  }
  0xd6   : > { %v1078_v51 = vsel %vm1053_vm0, %v1074_v43, 0.0  ;;  %v1076_v52 = vmax.f32 %v1068_v45, 1e-08  ;;  %v1071_v55 = vadd.f32 %v1070_v50, %v1069_v49  ;;  %v1072_v57 = vsel %vm1053_vm0, %v1052_v46, 0.0  ;;  %3720 = vmatprep.subr.bf16.mxu1 %v3890_v36 }
  0xd7   : > { %1079 = vadd.xlane.f32.xlu0 %v1078_v51  ;;  %v1075_v56 = vmax.f32 %v1063_v47, 1e-08  ;;  %v922_v8 = vadd.f32 %v918_v63, %v890_v3  ;;  %v919_v11 = vmul.f32 %v4362_v1, %v895_v7  ;;  %v924_v20 = vadd.f32 %v920_v9, %v892_v10  ;;  %3721 = vmatpush3.bf16.msra.mxu1 %v3890_v36  ;;  %v3891_v1 = vld [vmem:[%s5321_s7 + $0x8] sm:$0xff]   ;;  %v3896_v10 = vld [vmem:[%s5323_s9 + $0x4] ss:$16 sps:$4 sm:$0xff]  }
  0xd8   : > { %v1073_v0 = vadd.f32 %v1072_v57, %v1071_v55  ;;  %v1084_v5 = vsel %vm1053_vm0, %v1076_v52, 0.0  ;;  %v921_v22 = vmul.f32 %v4358_v62, %v897_v19  ;;  %3722 = vmatprep.subr.bf16.mxu1 %v3891_v1  ;;  %v3892_v62 = vld [vmem:[%s5321_s7 + $0x10] sm:$0xff]   ;;  %v3905_v19 = vld [vmem:[%s5323_s9 + $0x28] ss:$16 sps:$4 sm:$0xff]   ;;  %v3915_v36 = vld [vmem:[%s5323_s9 + $0x6c] ss:$16 sps:$4 sm:$0xff]  }
  0xd9   : > { %v1081_v2 = vsel %vm1053_vm0, %v1075_v56, 0.0  ;;  %v923_v21 = vadd.f32 %v919_v11, %v891_v12  ;;  %v3902_v11 = vld [vmem:[%s5323_s9 + $0x24] ss:$16 sps:$4 sm:$0xff]   ;;  %v3900_v12 = vld [vmem:[%s5323_s9 + $0x20] ss:$16 sps:$4 sm:$0xff]  }
  0xda   : > { %1082 = vadd.xlane.f32.xlu1 %v1081_v2  ;;  %v1077_v6 = vmax.f32 %v1073_v0, 1e-08  ;;  %v925_v25 = vadd.f32 %v921_v22, %v893_v23  ;;  %v3906_v22 = vld [vmem:[%s5323_s9 + $0x40] ss:$16 sps:$4 sm:$0xff]   ;;  %v3911_v23 = vld [vmem:[%s5323_s9 + $0x48] ss:$16 sps:$4 sm:$0xff]  }
  0xdb   : > { %1085 = vadd.xlane.f32.xlu0 %v1084_v5  ;;  %3723 = vmatpush3.bf16.msra.mxu1 %v3891_v1  ;;  %v3912_v1 = vld [vmem:[%s5323_s9 + $0x60] ss:$16 sps:$4 sm:$0xff]  }
  0xdc   : > { %v1087_v39 = vsel %vm1053_vm0, %v1077_v6, 0.0  ;;  %3724 = vmatprep.subr.bf16.mxu1 %v3892_v62 }
  0xde   : > { %976 = vadd.xlane.f32.xlu1 %v922_v8 }
  0xdf   : > { %1088 = vadd.xlane.f32.xlu0 %v1087_v39  ;;  %3725 = vmatpush3.bf16.msra.mxu1 %v3892_v62  ;;  %v3903_v39 = vld [vmem:[%s5323_s9 + $0x2c] ss:$16 sps:$4 sm:$0xff]   ;;  %v3917_v62 = vld [vmem:[%s5323_s9 + $0x68] ss:$16 sps:$4 sm:$0xff]  }
  0xe0   : > { %3726 = vmatprep.subr.bf16.mxu1 %v3893_v26 }
  0xe2   : > { %980 = vadd.xlane.f32.xlu1 %v924_v20 }
  0xe3   : > { %978 = vadd.xlane.f32.xlu0 %v923_v21  ;;  %3727 = vmatpush3.bf16.msra.mxu1 %v3893_v26  ;;  %v3920_v26 = vld [vmem:[%s5323_s9 + $0x84] ss:$16 sps:$4 sm:$0xff]  }
  0xe4   : > { %1545 = vmatprep.subr.bf16.mxu1 %v3896_v10 }
  0xe7   : > { %982 = vadd.xlane.f32.xlu0 %v925_v25 }
 0x164   : > { %v1080_v27 = vpop.xlane.xlu0 %1079 }
 0x165   : > { %v1091_v28 = vmul.f32 0.015625, %v1080_v27  ;;  %v3921_v27 = vld [vmem:[%s5323_s9 + $0x8c] ss:$16 sps:$4 sm:$0xff]  }
 0x167   : > { %v1083_v29 = vpop.xlane.xlu1 %1082  ;;  %4054 = vrsqrt.f32 %v1091_v28  ;;  %v3918_v28 = vld [vmem:[%s5323_s9 + $0x80] ss:$16 sps:$4 sm:$0xff]  }
 0x168   : > { %v1092_v30 = vmul.f32 0.015625, %v1083_v29  ;;  %v1086_v31 = vpop.xlane.xlu0 %1085  ;;  %v3923_v29 = vld [vmem:[%s5323_s9 + $0x88] ss:$16 sps:$4 sm:$0xff]  }
 0x169   : > { %v1093_v32 = vmul.f32 0.015625, %v1086_v31  ;;  %v3927_v31 = vld [vmem:[%s5323_s9 + $0xac] ss:$16 sps:$4 sm:$0xff]  }
 0x16a   : > { %4056 = vrsqrt.f32 %v1092_v30  ;;  %v3926_v30 = vld [vmem:[%s5323_s9 + $0xa4] ss:$16 sps:$4 sm:$0xff]  }
 0x16b   : > { %v977_v33 = vpop.xlane.xlu1 %976  ;;  %4058 = vrsqrt.f32 %v1093_v32  ;;  %v3924_v32 = vld [vmem:[%s5323_s9 + $0xa0] ss:$16 sps:$4 sm:$0xff]  }
 0x16c   : > { %v985_v34 = vmul.f32 0.0078125, %v977_v33  ;;  %v1089_v35 = vpop.xlane.xlu0 %1088  ;;  %v3929_v33 = vld [vmem:[%s5323_s9 + $0xa8] ss:$16 sps:$4 sm:$0xff]  }
 0x16d   : > { %v1094_v37 = vmul.f32 0.015625, %v1089_v35  ;;  %v3933_v35 = vld [vmem:[%s5323_s9 + $0xcc] ss:$16 sps:$4 sm:$0xff]  }
 0x16e   : > { %v4455_v38 = vsub.f32 %v922_v8, %v985_v34  ;;  %v3932_v34 = vld [vmem:[%s5323_s9 + $0xc4] ss:$16 sps:$4 sm:$0xff]  }
 0x16f   : > { %4060 = vrsqrt.f32 %v1094_v37  ;;  %v981_v40 = vpop.xlane.xlu1 %980  ;;  %v3930_v37 = vld [vmem:[%s5323_s9 + $0xc0] ss:$16 sps:$4 sm:$0xff]  }
 0x170   : > { %v987_v41 = vmul.f32 0.0078125, %v981_v40  ;;  %v979_v42 = vpop.xlane.xlu0 %978  ;;  %v993_v43 = vmul.f32 %v4455_v38, %v4455_v38  ;;  %v3935_v40 = vld [vmem:[%s5323_s9 + $0xc8] ss:$16 sps:$4 sm:$0xff]  }
 0x171   : > { %v986_v44 = vmul.f32 0.0078125, %v979_v42  ;;  %v4055_v45 = vpop.eup %4054  ;;  %v3939_v42 = vld [vmem:[%s5323_s9 + $0xec] ss:$16 sps:$4 sm:$0xff]  }
 0x172   : > { %v4459_v46 = vsub.f32 %v924_v20, %v987_v41  ;;  %997 = vadd.xlane.f32.xlu1 %v993_v43  ;;  %v4468_v55 = vmul.f32 %v4055_v45, %v4347_v54  ;;  %v4490_v5 = vmul.f32 %v4055_v45, %v4354_v60  ;;  %v4508_v60 = vmul.f32 %v4055_v45, %v4356_v61  ;;  %v3894_v61 = vld [vmem:[%s5323_s9] ss:$16 sps:$4 sm:$0xff]   ;;  %v3908_v20 = vld [vmem:[%s5323_s9 + $0x44] ss:$16 sps:$4 sm:$0xff]  }
 0x173   : > { %v4461_v47 = vsub.f32 %v923_v21, %v986_v44  ;;  %v3909_v21 = vld [vmem:[%s5323_s9 + $0x4c] ss:$16 sps:$4 sm:$0xff]   ;;  %v3938_v41 = vld [vmem:[%s5323_s9 + $0xe4] ss:$16 sps:$4 sm:$0xff]   ;;  %v3936_v43 = vld [vmem:[%s5323_s9 + $0xe0] ss:$16 sps:$4 sm:$0xff]  }
 0x174   : > { %v4057_v48 = vpop.eup %4056  ;;  %v983_v49 = vpop.xlane.xlu0 %982  ;;  %v995_v50 = vmul.f32 %v4459_v46, %v4459_v46  ;;  %v3941_v44 = vld [vmem:[%s5323_s9 + $0xe8] ss:$16 sps:$4 sm:$0xff]   ;;  %v3944_v45 = vld [vmem:[%s5322_s8 + $0x4] ss:$16 sps:$4 sm:$0xff]  }
 0x175   : > { %v988_v51 = vmul.f32 0.0078125, %v983_v49  ;;  %v994_v52 = vmul.f32 %v4461_v47, %v4461_v47  ;;  %v4471_v56 = vmul.f32 %v4057_v48, %v4383_v16  ;;  %v4059_v57 = vpop.eup %4058  ;;  %v4481_v54 = vmul.f32 %v4057_v48, %v4385_v17 }
 0x176   : > { %1001 = vadd.xlane.f32.xlu1 %v995_v50  ;;  %v4484_v16 = vmul.f32 %v4059_v57, %v4345_v53  ;;  %v4505_v17 = vmul.f32 %v4059_v57, %v4350_v58 }
 0x177   : > { %v4473_v63 = vsub.f32 %v925_v25, %v988_v51  ;;  %999 = vadd.xlane.f32.xlu0 %v994_v52  ;;  %v1200_v0 = vpack.c.bf16 %v4471_v56, %v4468_v55  ;;  %v1202_v7 = vpack.c.bf16 %v4481_v54, %v4490_v5  ;;  %v3914_v25 = vld [vmem:[%s5323_s9 + $0x64] ss:$16 sps:$4 sm:$0xff]  }
 0x179   : > { %v4061_v2 = vpop.eup %4060  ;;  %3728 = vmatprep.mubr.msk.bf16.mxu1 %vm1053_vm0, %v1200_v0  ;;  %v996_v3 = vmul.f32 %v4473_v63, %v4473_v63 }
 0x17a   : > { %v4487_v4 = vmul.f32 %v4061_v2, %v4377_v13  ;;  %v4499_v53 = vmul.f32 %v4061_v2, %v4379_v14  ;;  %v4502_v13 = vmul.f32 %v4057_v48, %v4387_v18  ;;  %v4517_v14 = vmul.f32 %v4061_v2, %v4381_v15  ;;  %v3899_v15 = vld [vmem:[%s5323_s9 + $0x8] ss:$16 sps:$4 sm:$0xff]   ;;  %v3947_v48 = vld [vmem:[%s5322_s8 + $0xc] ss:$16 sps:$4 sm:$0xff]  }
 0x17b   : > { %1003 = vadd.xlane.f32.xlu0 %v996_v3  ;;  %v4520_v18 = vmul.f32 %v4059_v57, %v4352_v59  ;;  %v3897_v59 = vld [vmem:[%s5323_s9 + $0xc] ss:$16 sps:$4 sm:$0xff]  }
 0x17c   : > { %v1201_v6 = vpack.c.bf16 %v4487_v4, %v4484_v16  ;;  %v1203_v8 = vpack.c.bf16 %v4499_v53, %v4505_v17  ;;  %v1204_v9 = vpack.c.bf16 %v4502_v13, %v4508_v60  ;;  %1598 = vmatprep.subr.bf16.mxu0 %v3897_v59 }
 0x17d   : > { %v1205_v58 = vpack.c.bf16 %v4517_v14, %v4520_v18  ;;  %1599 = vmatpush1.bf16.msra.mxu0 %v3899_v15 }
 0x17e   : > { %3729 = vmatmul.mubr.msk.bf16.vlgmr.msra.gmra.mrb[0].mxu1 %vm1053_vm0, %v1201_v6  ;;  %1600 = vmatprep.subr.bf16.mxu0 %v3903_v39 }
 0x17f   : > { %3732 = vmatprep.mubr.msk.bf16.mxu1 %vm1053_vm0, %v1202_v7  ;;  %1546 = vmatpush1.bf16.msra.mxu1 %v3894_v61 }
 0x180   : > { %1547 = vmatprep.subr.bf16.mxu1 %v3902_v11 }
 0x181   : > { %1601 = vmatpush1.bf16.msra.mxu0 %v3905_v19 }
 0x182   : > { %1602 = vmatprep.subr.bf16.mxu0 %v3909_v21 }
 0x183   : > { %1548 = vmatpush1.bf16.msra.mxu1 %v3900_v12 }
 0x184   : > { %1549 = vmatprep.subr.bf16.mxu1 %v3908_v20 }
 0x185   : > { %1603 = vmatpush1.bf16.msra.mxu0 %v3911_v23 }
 0x186   : > { %3733 = vmatmul.mubr.msk.bf16.gmra.mrb[4].mxu1 %vm1053_vm0, %v1203_v8  ;;  %1604 = vmatprep.subr.bf16.mxu0 %v3915_v36 }
 0x187   : > { %3736 = vmatprep.mubr.msk.bf16.mxu1 %vm1053_vm0, %v1204_v9  ;;  %1550 = vmatpush1.bf16.msra.mxu1 %v3906_v22 }
 0x188   : > { %1551 = vmatprep.subr.bf16.mxu1 %v3914_v25 }
 0x189   : > { %1605 = vmatpush1.bf16.msra.mxu0 %v3917_v62 }
 0x18a   : > { %1606 = vmatprep.subr.bf16.mxu0 %v3921_v27 }
 0x18b   : > { %1552 = vmatpush1.bf16.msra.mxu1 %v3912_v1 }
 0x18c   : > { %1553 = vmatprep.subr.bf16.mxu1 %v3920_v26 }
 0x18d   : > { %1607 = vmatpush1.bf16.msra.mxu0 %v3923_v29 }
 0x18e   : > { %3737 = vmatmul.mubr.msk.bf16.gmra.mrb[8].mxu1 %vm1053_vm0, %v1205_v58  ;;  %1608 = vmatprep.subr.bf16.mxu0 %v3927_v31 }
 0x18f   : > { %1577 = vmatprep.mubr.bf16.mxu1 %v4150_v24  ;;  %1554 = vmatpush1.bf16.msra.mxu1 %v3918_v28 }
 0x190   : > { %1555 = vmatprep.subr.bf16.mxu1 %v3926_v30 }
 0x191   : > { %1609 = vmatpush1.bf16.msra.mxu0 %v3929_v33 }
 0x192   : > { %1610 = vmatprep.subr.bf16.mxu0 %v3933_v35 }
 0x193   : > { %1556 = vmatpush1.bf16.msra.mxu1 %v3924_v32 }
 0x194   : > { %1557 = vmatprep.subr.bf16.mxu1 %v3932_v34 }
 0x195   : > { %1611 = vmatpush1.bf16.msra.mxu0 %v3935_v40 }
 0x196   : > { %1612 = vmatprep.subr.bf16.mxu0 %v3939_v42 }
 0x197   : > { %1558 = vmatpush1.bf16.msra.mxu1 %v3930_v37 }
 0x198   : > { %1559 = vmatprep.subr.bf16.mxu1 %v3938_v41 }
 0x199   : > { %1613 = vmatpush1.bf16.msra.mxu0 %v3941_v44 }
 0x19a   : > { %1864 = vmatprep.subr.bf16.mxu0 %v3947_v48 }
 0x19b   : > { %1560 = vmatpush1.bf16.msra.mxu1 %v3936_v43 }
 0x19c   : > { %1811 = vmatprep.subr.bf16.mxu1 %v3944_v45 }
 0x251   : > { %v4628_v49 = vpop.f32.mrb[0].mxu1 }
 0x252   : > { %v4630_v50 = vpop.f32.mrb[1].mxu1  ;;  %v1333_v3 = vmul.f32 %v4628_v49, %v4628_v49 }
 0x253   : > { %v4632_v51 = vpop.f32.mrb[2].mxu1  ;;  %v1331_v8 = vmul.f32 %v4630_v50, %v4630_v50 }
 0x254   : > { %v1971_v52 = vpack.c.bf16 %v4632_v51, %v4628_v49  ;;  %v4636_v57 = vpop.f32.mrb[3].mxu1  ;;  %v1334_v61 = vmul.f32 %v4632_v51, %v4632_v51  ;;  %v1183_v49 = vld [vmem:[%s5324_s10] sm:$0xf] }
 0x255   : > { %v1970_v0 = vpack.c.bf16 %v4636_v57, %v4630_v50  ;;  %v1332_v39 = vmul.f32 %v4636_v57, %v4636_v57  ;;  %v3997_v50 = vld [vmem:[%s5325_s11 + $0x38] sm:$0xff]   ;;  %v1918_v57 = vlaneseq }
 0x259   : > { %v4640_v2 = vpop.f32.mrb[4].mxu1 }
 0x25a   : > { %v1337_v6 = vmul.f32 %v4640_v2, %v4640_v2  ;;  %v4646_v7 = vpop.f32.mrb[5].mxu1 }
 0x25b   : > { %v1335_v9 = vmul.f32 %v4646_v7, %v4646_v7  ;;  %v4652_v58 = vpop.f32.mrb[6].mxu1 }
 0x25c   : > { %v1347_v10 = vadd.f32 %v1337_v6, %v1333_v3  ;;  %v1338_v59 = vmul.f32 %v4652_v58, %v4652_v58  ;;  %v1973_v15 = vpack.c.bf16 %v4652_v58, %v4640_v2  ;;  %v4660_v11 = vpop.f32.mrb[7].mxu1  ;;  %v3998_v58 = vld [vmem:[%s5326_s12] sm:$0xff]  }
 0x25d   : > { %v1343_v12 = vadd.f32 %v1335_v9, %v1331_v8  ;;  %v1336_v19 = vmul.f32 %v4660_v11, %v4660_v11  ;;  %v1972_v20 = vpack.c.bf16 %v4660_v11, %v4646_v7  ;;  %v4000_v11 = vld [vmem:[%s5326_s12 + $0x10] sm:$0xff]  }
 0x25e   : > { %v1349_v21 = vadd.f32 %v1338_v59, %v1334_v61 }
 0x25f   : > { %v1345_v22 = vadd.f32 %v1336_v19, %v1332_v39 }
 0x261   : > { %v4668_v23 = vpop.f32.mrb[8].mxu1 }
 0x262   : > { %v1341_v25 = vmul.f32 %v4668_v23, %v4668_v23  ;;  %v4672_v36 = vpop.f32.mrb[9].mxu1 }
 0x263   : > { %v1339_v1 = vmul.f32 %v4672_v36, %v4672_v36  ;;  %v4676_v62 = vpop.f32.mrb[10].mxu1 }
 0x264   : > { %v1348_v26 = vadd.f32 %v1347_v10, %v1341_v25  ;;  %v1342_v27 = vmul.f32 %v4676_v62, %v4676_v62  ;;  %v1975_v28 = vpack.c.bf16 %v4676_v62, %v4668_v23  ;;  %v4682_v29 = vpop.f32.mrb[11].mxu1  ;;  %v1000_v10 = vpop.xlane.xlu0 %999  ;;  %v4002_v23 = vld [vmem:[%s5326_s12 + $0x20] sm:$0xff]   ;;  %v4004_v62 = vld [vmem:[%s5326_s12 + $0x30] sm:$0xff]  }
 0x265   : > { %v1344_v30 = vadd.f32 %v1343_v12, %v1339_v1  ;;  %v1340_v31 = vmul.f32 %v4682_v29, %v4682_v29  ;;  %v1974_v32 = vpack.c.bf16 %v4682_v29, %v4672_v36  ;;  %v4003_v36 = vld [vmem:[%s5326_s12 + $0x28] sm:$0xff]   ;;  %v4006_v29 = vld [vmem:[%s5327_s13 + $0x40] sm:$0xff]  }
 0x266   : > { %v1353_v33 = vmax.f32 %v1348_v26, 1e-08  ;;  %v1350_v34 = vadd.f32 %v1349_v21, %v1342_v27  ;;  %v1006_v27 = vmul.f32 0.0078125, %v1000_v10  ;;  %v3954_v10 = vld [vmem:[%s5322_s8 + $0x40] ss:$16 sps:$4 sm:$0xff]  }
 0x267   : > { %v1351_v35 = vmax.f32 %v1344_v30, 1e-08  ;;  %v1346_v37 = vadd.f32 %v1345_v22, %v1340_v31  ;;  %v998_v22 = vpop.xlane.xlu1 %997  ;;  %v3942_v30 = vld [vmem:[%s5322_s8] ss:$16 sps:$4 sm:$0xff]   ;;  %v3945_v31 = vld [vmem:[%s5322_s8 + $0x8] ss:$16 sps:$4 sm:$0xff]  }
 0x268   : > { %4062 = vrsqrt.f32 %v1353_v33  ;;  %v1354_v40 = vmax.f32 %v1350_v34, 1e-08  ;;  %vm1371_vm1 = vcmp.eq.f32.partialorder %v1353_v33, inf  ;;  %vm1373_vm4 = vcmp.eq.f32.partialorder %v1353_v33, 0.0 }
 0x269   : > { %4064 = vrsqrt.f32 %v1351_v35  ;;  %v1352_v41 = vmax.f32 %v1346_v37, 1e-08  ;;  %vm1357_vm2 = vcmp.eq.f32.partialorder %v1351_v35, inf  ;;  %vm1359_vm3 = vcmp.eq.f32.partialorder %v1351_v35, 0.0 }
 0x26a   : > { %4066 = vrsqrt.f32 %v1354_v40  ;;  %v1360_v6 = vand.u32 2147483648, %v1351_v35  ;;  %v1374_v9 = vand.u32 2147483648, %v1353_v33  ;;  %vm1378_vm5 = vcmp.eq.f32.partialorder %v1354_v40, inf }
 0x26b   : > { %4068 = vrsqrt.f32 %v1352_v41  ;;  %v1381_v12 = vand.u32 2147483648, %v1354_v40  ;;  %vm1364_vm6 = vcmp.eq.f32.partialorder %v1352_v41, inf  ;;  %v1367_v19 = vand.u32 2147483648, %v1352_v41 }
 0x26c   : > { %vm1380_vm7 = vcmp.eq.f32.partialorder %v1354_v40, 0.0  ;;  %vm1366_vm8 = vcmp.eq.f32.partialorder %v1352_v41, 0.0 }
 0x272   : > { %v4063_v42 = vpop.eup %4062 }
 0x273   : > { %v4065_v43 = vpop.eup %4064  ;;  %v1370_v44 = vmul.f32 %v4063_v42, %v1353_v33 }
 0x274   : > { %v4067_v45 = vpop.eup %4066  ;;  %v1356_v48 = vmul.f32 %v4065_v43, %v1351_v35  ;;  %v1005_v43 = vmul.f32 0.0078125, %v998_v22  ;;  %v3960_v22 = vld [vmem:[%s5322_s8 + $0x60] ss:$16 sps:$4 sm:$0xff]  }
 0x275   : > { %v4069_v3 = vpop.eup %4068  ;;  %v1372_v8 = vsel %vm1371_vm1, %v1353_v33, %v1370_v44  ;;  %v1377_v61 = vmul.f32 %v4067_v45, %v1354_v40  ;;  %v3950_v33 = vld [vmem:[%s5322_s8 + $0x24] ss:$16 sps:$4 sm:$0xff]   ;;  %v1010_v44 = vadd.f32 1e-05, %v1006_v27  ;;  %v3951_v45 = vld [vmem:[%s5322_s8 + $0x28] ss:$16 sps:$4 sm:$0xff]  }
 0x276   : > { %v1358_v59 = vsel %vm1357_vm2, %v1351_v35, %v1356_v48  ;;  %v1363_v39 = vmul.f32 %v4069_v3, %v1352_v41  ;;  %v1375_v1 = vsel %vm1373_vm4, %v1374_v9, %v1372_v8  ;;  %v3948_v35 = vld [vmem:[%s5322_s8 + $0x20] ss:$16 sps:$4 sm:$0xff]   ;;  %v1004_v48 = vpop.xlane.xlu0 %1003  ;;  %v3956_v3 = vld [vmem:[%s5322_s8 + $0x44] ss:$16 sps:$4 sm:$0xff]   ;;  %v1009_v8 = vadd.f32 1e-05, %v1005_v43  ;;  %v1002_v9 = vpop.xlane.xlu1 %1001 }
 0x277   : > { %v1379_v21 = vsel %vm1378_vm5, %v1354_v40, %v1377_v61  ;;  %v1361_v34 = vsel %vm1359_vm3, %v1360_v6, %v1358_v59  ;;  %v3959_v6 = vld [vmem:[%s5322_s8 + $0x4c] ss:$16 sps:$4 sm:$0xff]   ;;  %4070 = vrsqrt.f32 %v1010_v44  ;;  %v1008_v61 = vmul.f32 0.0078125, %v1004_v48  ;;  %v3957_v59 = vld [vmem:[%s5322_s8 + $0x48] ss:$16 sps:$4 sm:$0xff]  }
 0x278   : > { %v1365_v25 = vsel %vm1364_vm6, %v1352_v41, %v1363_v39  ;;  %v1382_v26 = vsel %vm1380_vm7, %v1381_v12, %v1379_v21  ;;  %v3953_v41 = vld [vmem:[%s5322_s8 + $0x2c] ss:$16 sps:$4 sm:$0xff]   ;;  %v3962_v39 = vld [vmem:[%s5322_s8 + $0x64] ss:$16 sps:$4 sm:$0xff]   ;;  %4072 = vrsqrt.f32 %v1009_v8  ;;  %v3448_v48 = vld [vmem:[%s5319_s5] ss:$0 sm:$0xff] }
 0x279   : > { %v1368_v37 = vsel %vm1366_vm8, %v1367_v19, %v1365_v25  ;;  %v1384_v42 = vpack.c.bf16 %v1382_v26, %v1375_v1  ;;  %v3965_v12 = vld [vmem:[%s5322_s8 + $0x6c] ss:$16 sps:$4 sm:$0xff]   ;;  %v1007_v19 = vmul.f32 0.0078125, %v1002_v9  ;;  %v1012_v21 = vadd.f32 1e-05, %v1008_v61 }
 0x27a   : > { %v1383_v40 = vpack.c.bf16 %v1368_v37, %v1361_v34  ;;  %v3963_v25 = vld [vmem:[%s5322_s8 + $0x68] ss:$16 sps:$4 sm:$0xff]   ;;  %v3968_v1 = vld [vmem:[%s5322_s8 + $0x84] ss:$16 sps:$4 sm:$0xff]   ;;  %v3971_v26 = vld [vmem:[%s5322_s8 + $0x8c] ss:$16 sps:$4 sm:$0xff]  }
 0x27b   : > { %v1011_v27 = vadd.f32 1e-05, %v1007_v19  ;;  %4074 = vrsqrt.f32 %v1012_v21  ;;  %v3974_v34 = vld [vmem:[%s5322_s8 + $0xa4] ss:$16 sps:$4 sm:$0xff]   ;;  %v3977_v37 = vld [vmem:[%s5322_s8 + $0xac] ss:$16 sps:$4 sm:$0xff]  }
 0x27c   : > { %1578 = vmatmul.mubr.bf16.vlgmr.msra.gmra.mrb[12].mxu1 %v1383_v40  ;;  %1631 = vmatmul.mubr.bf16.vlgmr.msra.gmra.mrb[0].mxu0 %v1383_v40  ;;  %v3980_v44 = vld [vmem:[%s5322_s8 + $0xc4] ss:$16 sps:$4 sm:$0xff]   ;;  %v3989_v8 = vld [vmem:[%s5322_s8 + $0xec] ss:$16 sps:$4 sm:$0xff]  }
 0x27d   : > { %1812 = vmatpush1.bf16.msra.mxu1 %v3942_v30  ;;  %1865 = vmatpush1.bf16.msra.mxu0 %v3945_v31  ;;  %v3966_v30 = vld [vmem:[%s5322_s8 + $0x80] ss:$16 sps:$4 sm:$0xff]   ;;  %v3969_v31 = vld [vmem:[%s5322_s8 + $0x88] ss:$16 sps:$4 sm:$0xff]   ;;  %4076 = vrsqrt.f32 %v1011_v27 }
 0x27e   : > { %1813 = vmatprep.subr.bf16.mxu1 %v3950_v33  ;;  %1866 = vmatprep.subr.bf16.mxu0 %v3953_v41  ;;  %v3972_v33 = vld [vmem:[%s5322_s8 + $0xa0] ss:$16 sps:$4 sm:$0xff]   ;;  %v3975_v41 = vld [vmem:[%s5322_s8 + $0xa8] ss:$16 sps:$4 sm:$0xff]  }
 0x27f   : > { %1587 = vmatprep.mubr.bf16.mxu1 %v4150_v24  ;;  %1640 = vmatprep.mubr.bf16.mxu0 %v4150_v24  ;;  %v3990_v21 = vld [vmem:[%s5325_s11] sm:$0xff]   ;;  %v3991_v27 = vld [vmem:[%s5325_s11 + $0x8] sm:$0xff]  }
 0x281   : > { %1814 = vmatpush1.bf16.msra.mxu1 %v3948_v35  ;;  %1867 = vmatpush1.bf16.msra.mxu0 %v3951_v45  ;;  %v3983_v35 = vld [vmem:[%s5322_s8 + $0xcc] ss:$16 sps:$4 sm:$0xff]  }
 0x282   : > { %1815 = vmatprep.subr.bf16.mxu1 %v3956_v3  ;;  %1868 = vmatprep.subr.bf16.mxu0 %v3959_v6  ;;  %v3981_v3 = vld [vmem:[%s5322_s8 + $0xc8] ss:$16 sps:$4 sm:$0xff]  }
 0x284   : > { %1588 = vmatmul.mubr.bf16.gmra.mrb[16].mxu1 %v1384_v42  ;;  %1641 = vmatmul.mubr.bf16.gmra.mrb[4].mxu0 %v1384_v42  ;;  %v4071_v42 = vpop.eup %4070 }
 0x285   : > { %1816 = vmatpush1.bf16.msra.mxu1 %v3954_v10  ;;  %1869 = vmatpush1.bf16.msra.mxu0 %v3957_v59  ;;  %v4073_v40 = vpop.eup %4072  ;;  %v1018_v43 = vmul.f32 %v4071_v42, %v4461_v47  ;;  %v3978_v47 = vld [vmem:[%s5322_s8 + $0xc0] ss:$16 sps:$4 sm:$0xff]   ;;  %v3993_v42 = vld [vmem:[%s5325_s11 + $0x18] sm:$0xff]  }
 0x286   : > { %1817 = vmatprep.subr.bf16.mxu1 %v3962_v39  ;;  %1870 = vmatprep.subr.bf16.mxu0 %v3965_v12  ;;  %v1017_v45 = vmul.f32 %v4073_v40, %v4455_v38  ;;  %v3986_v38 = vld [vmem:[%s5322_s8 + $0xe4] ss:$16 sps:$4 sm:$0xff]   ;;  %v4075_v9 = vpop.eup %4074  ;;  %v3984_v59 = vld [vmem:[%s5322_s8 + $0xe0] ss:$16 sps:$4 sm:$0xff]   ;;  %v3987_v39 = vld [vmem:[%s5322_s8 + $0xe8] ss:$16 sps:$4 sm:$0xff]  }
 0x287   : > { %1843 = vmatprep.mubr.bf16.mxu1 %v4150_v24  ;;  %1896 = vmatprep.mubr.bf16.mxu0 %v4150_v24  ;;  %v1028_v6 = vmul.f32 %v3448_v48, %v1018_v43  ;;  %v4077_v10 = vpop.eup %4076  ;;  %v3449_v12 = vld [vmem:[%s5320_s6] ss:$0 sm:$0xff]  ;;  %v3995_v40 = vld [vmem:[%s5325_s11 + $0x28] sm:$0xff]  }
 0x288   : > { %v1027_v61 = vmul.f32 %v3448_v48, %v1017_v45 }
 0x289   : > { %1818 = vmatpush1.bf16.msra.mxu1 %v3960_v22  ;;  %1871 = vmatpush1.bf16.msra.mxu0 %v3963_v25  ;;  %v4792_v19 = vadd.f32 %v3449_v12, %v1028_v6  ;;  %v1020_v22 = vmul.f32 %v4075_v9, %v4473_v63  ;;  %v3992_v63 = vld [vmem:[%s5325_s11 + $0x10] sm:$0xff]  }
 0x28a   : > { %1819 = vmatprep.subr.bf16.mxu1 %v3968_v1  ;;  %1872 = vmatprep.subr.bf16.mxu0 %v3971_v26  ;;  %v4798_v25 = vadd.f32 %v3449_v12, %v1027_v61  ;;  %v1019_v1 = vmul.f32 %v4077_v10, %v4459_v46 }
 0x28c   : > { %v1329_v26 = vpack.c.bf16 %v4792_v19, %v4798_v25 }
 0x28d   : > { %1820 = vmatpush1.bf16.msra.mxu1 %v3966_v30  ;;  %1873 = vmatpush1.bf16.msra.mxu0 %v3969_v31  ;;  %v1030_v30 = vmul.f32 %v3448_v48, %v1020_v22  ;;  %v1029_v31 = vmul.f32 %v3448_v48, %v1019_v1 }
 0x28e   : > { %1821 = vmatprep.subr.bf16.mxu1 %v3974_v34  ;;  %1874 = vmatprep.subr.bf16.mxu0 %v3977_v37 }
 0x28f   : > { %v4808_v46 = vadd.f32 %v3449_v12, %v1030_v30  ;;  %v4813_v34 = vadd.f32 %v3449_v12, %v1029_v31 }
 0x291   : > { %1822 = vmatpush1.bf16.msra.mxu1 %v3972_v33  ;;  %1875 = vmatpush1.bf16.msra.mxu0 %v3975_v41  ;;  %v1330_v37 = vpack.c.bf16 %v4808_v46, %v4813_v34  ;;  %v3996_v33 = vld [vmem:[%s5325_s11 + $0x30] sm:$0xff]  }
 0x292   : > { %1823 = vmatprep.subr.bf16.mxu1 %v3980_v44  ;;  %1876 = vmatprep.subr.bf16.mxu0 %v3983_v35 }
 0x295   : > { %1824 = vmatpush1.bf16.msra.mxu1 %v3978_v47  ;;  %1877 = vmatpush1.bf16.msra.mxu0 %v3981_v3 }
 0x296   : > { %1825 = vmatprep.subr.bf16.mxu1 %v3986_v38  ;;  %1878 = vmatprep.subr.bf16.mxu0 %v3989_v8 }
 0x299   : > { %1826 = vmatpush1.bf16.msra.mxu1 %v3984_v59  ;;  %1879 = vmatpush1.bf16.msra.mxu0 %v3987_v39 }
 0x29a   : > { %3740 = vmatprep.subr.bf16.mxu1 %v3990_v21  ;;  %3768 = vmatprep.subr.bf16.mxu0 %v3998_v58 }
 0x29c   : > { %1844 = vmatmul.mubr.bf16.vlgmr.msra.gmra.mrb[12].mxu1 %v1329_v26  ;;  %1897 = vmatmul.mubr.bf16.vlgmr.msra.gmra.mrb[0].mxu0 %v1329_v26 }
 0x29d   : > { %3741 = vmatpush3.bf16.msra.mxu1 %v3990_v21  ;;  %1853 = vmatprep.mubr.bf16.mxu1 %v4150_v24 }
 0x29e   : > { %3742 = vmatprep.subr.bf16.mxu1 %v3991_v27  ;;  %1906 = vmatprep.mubr.bf16.mxu0 %v4150_v24  ;;  %v3994_v24 = vld [vmem:[%s5325_s11 + $0x20] sm:$0xff]  }
 0x29f   : > { %3769 = vmatpush3.bf16.msra.mxu0 %v3998_v58 }
 0x2a1   : > { %3743 = vmatpush3.bf16.msra.mxu1 %v3991_v27 }
 0x2a2   : > { %3744 = vmatprep.subr.bf16.mxu1 %v3992_v63 }
 0x2a4   : > { %1854 = vmatmul.mubr.bf16.gmra.mrb[16].mxu1 %v1330_v37  ;;  %1907 = vmatmul.mubr.bf16.gmra.mrb[4].mxu0 %v1330_v37 }
 0x2a5   : > { %3745 = vmatpush3.bf16.msra.mxu1 %v3992_v63  ;;  %3756 = vmatprep.mubr.bf16.mxu1 %v1970_v0  ;;  %v1919_v0 = vshrl.u32 %v1918_v57, 7 }
 0x2a6   : > { %3746 = vmatprep.subr.bf16.mxu1 %v3993_v42 }
 0x2a7   : > { %v1928_v51 = vsub.s32 2, %v1919_v0  ;;  %v1924_v41 = vsub.s32 1, %v1919_v0 }
 0x2a9   : > { %3747 = vmatpush3.bf16.msra.mxu1 %v3993_v42  ;;  %v4853_v7 = vrot.slane %v1183_v49, %v1928_v51  ;;  %v1925_v44 = vrot.slane %v1183_v49, %v1924_v41 }
 0x2aa   : > { %3748 = vmatprep.subr.bf16.mxu1 %v3994_v24 }
 0x2ad   : > { %3749 = vmatpush3.bf16.msra.mxu1 %v3994_v24 }
 0x2ae   : > { %3750 = vmatprep.subr.bf16.mxu1 %v3995_v40 }
 0x2b1   : > { %3751 = vmatpush3.bf16.msra.mxu1 %v3995_v40 }
 0x2b2   : > { %3752 = vmatprep.subr.bf16.mxu1 %v3996_v33 }
 0x2b5   : > { %3753 = vmatpush3.bf16.msra.mxu1 %v3996_v33 }
 0x2b6   : > { %3754 = vmatprep.subr.bf16.mxu1 %v3997_v50 }
 0x2b9   : > { %3755 = vmatpush3.bf16.msra.mxu1 %v3997_v50 }
 0x2bc   : > { %3757 = vmatmul.mubr.bf16.vlgmr.msra.gmra.mrb[20].mxu1 %v1971_v52  ;;  %v1932_v52 = vsub.s32 3, %v1919_v0 }
 0x2bd   : > { %3760 = vmatprep.mubr.bf16.mxu1 %v1972_v20  ;;  %v4001_v20 = vld [vmem:[%s5326_s12 + $0x18] sm:$0xff]  }
 0x2be   : > { %v4855_v2 = vrot.slane %v1183_v49, %v1932_v52 }
 0x2c4   : > { %3761 = vmatmul.mubr.bf16.gmra.mrb[24].mxu1 %v1973_v15  ;;  %v3999_v15 = vld [vmem:[%s5326_s12 + $0x8] sm:$0xff]  }
 0x2c5   : > { %3764 = vmatprep.mubr.bf16.mxu1 %v1974_v32  ;;  %3770 = vmatprep.subr.bf16.mxu0 %v3999_v15  ;;  %v1920_v32 = vsub.s32 0, %v1919_v0 }
 0x2c6   : > { %3771 = vmatpush3.bf16.msra.mxu0 %v3999_v15 }
 0x2c7   : > { %3772 = vmatprep.subr.bf16.mxu0 %v4000_v11  ;;  %v1921_v43 = vrot.slane %v1183_v49, %v1920_v32 }
 0x2ca   : > { %3773 = vmatpush3.bf16.msra.mxu0 %v4000_v11 }
 0x2cb   : > { %3774 = vmatprep.subr.bf16.mxu0 %v4001_v20 }
 0x2cc   : > { %3765 = vmatmul.mubr.bf16.gmra.mrb[28].mxu1 %v1975_v28  ;;  %v4005_v28 = vld [vmem:[%s5326_s12 + $0x38] sm:$0xff]  }
 0x2ce   : > { %3775 = vmatpush3.bf16.msra.mxu0 %v4001_v20 }
 0x2cf   : > { %3776 = vmatprep.subr.bf16.mxu0 %v4002_v23 }
 0x2d2   : > { %3777 = vmatpush3.bf16.msra.mxu0 %v4002_v23 }
 0x2d3   : > { %3778 = vmatprep.subr.bf16.mxu0 %v4003_v36 }
 0x2d6   : > { %3779 = vmatpush3.bf16.msra.mxu0 %v4003_v36 }
 0x2d7   : > { %3780 = vmatprep.subr.bf16.mxu0 %v4004_v62 }
 0x2da   : > { %3781 = vmatpush3.bf16.msra.mxu0 %v4004_v62 }
 0x2db   : > { %3782 = vmatprep.subr.bf16.mxu0 %v4005_v28 }
 0x2de   : > { %3783 = vmatpush3.bf16.msra.mxu0 %v4005_v28 }
 0x2df   : > { %3650 = vmatprep.subr.bf16.mxu0 %v4006_v29 }
 0x36f   : > { %v1845_v35 = vpop.f32.mrb[12].mxu1  ;;  %v1898_v45 = vpop.f32.mrb[0].mxu0 }
 0x370   : > { %v1938_v48 = vadd.f32 %v1921_v43, %v1845_v35  ;;  %v1940_v47 = vadd.f32 %v4853_v7, %v1898_v45  ;;  %v1847_v3 = vpop.f32.mrb[13].mxu1  ;;  %v1900_v6 = vpop.f32.mrb[1].mxu0 }
 0x371   : > { %v1939_v38 = vadd.f32 %v1925_v44, %v1847_v3  ;;  %v1941_v8 = vadd.f32 %v4855_v2, %v1900_v6  ;;  %v1849_v9 = vpop.f32.mrb[14].mxu1  ;;  %v1902_v61 = vpop.f32.mrb[2].mxu0 }
 0x372   : > { %v1942_v10 = vadd.f32 %v1921_v43, %v1849_v9  ;;  %v1944_v59 = vadd.f32 %v4853_v7, %v1902_v61  ;;  %v1851_v39 = vpop.f32.mrb[15].mxu1  ;;  %v1904_v12 = vpop.f32.mrb[3].mxu0  ;;  %v1954_v1 = vmax.f32 %v1938_v48, 0.0  ;;  %v1956_v26 = vmax.f32 %v1940_v47, 0.0 }
 0x373   : > { %v1943_v21 = vadd.f32 %v1925_v44, %v1851_v39  ;;  %v1945_v22 = vadd.f32 %v4855_v2, %v1904_v12  ;;  %v1955_v31 = vmax.f32 %v1939_v38, 0.0  ;;  %v1957_v63 = vmax.f32 %v1941_v8, 0.0 }
 0x374   : > { %v1958_v27 = vmax.f32 %v1942_v10, 0.0  ;;  %v1960_v30 = vmax.f32 %v1944_v59, 0.0 }
 0x375   : > { %v1959_v37 = vmax.f32 %v1943_v21, 0.0  ;;  %v1961_v42 = vmax.f32 %v1945_v22, 0.0 }
 0x376   : > { %v4888_v24 = vpack.c.bf16 %v1958_v27, %v1954_v1  ;;  %v4890_v40 = vpack.c.bf16 %v1960_v30, %v1956_v26 }
 0x377   : > { %v4892_v33 = vpack.c.bf16 %v1959_v37, %v1955_v31  ;;  %v4894_v50 = vpack.c.bf16 %v1961_v42, %v1957_v63  ;;  %v1855_v57 = vpop.f32.mrb[16].mxu1  ;;  %v1908_v0 = vpop.f32.mrb[4].mxu0 }
 0x378   : > { %v1946_v49 = vadd.f32 %v1921_v43, %v1855_v57  ;;  %v1948_v51 = vadd.f32 %v4853_v7, %v1908_v0  ;;  %v1857_v52 = vpop.f32.mrb[17].mxu1  ;;  %v1910_v58 = vpop.f32.mrb[5].mxu0 }
 0x379   : > { %v1947_v15 = vadd.f32 %v1925_v44, %v1857_v52  ;;  %v1949_v11 = vadd.f32 %v4855_v2, %v1910_v58  ;;  %v1859_v20 = vpop.f32.mrb[18].mxu1  ;;  %v1912_v23 = vpop.f32.mrb[6].mxu0 }
 0x37a   : > { %v1950_v36 = vadd.f32 %v1921_v43, %v1859_v20  ;;  %v1952_v62 = vadd.f32 %v4853_v7, %v1912_v23  ;;  %v1861_v28 = vpop.f32.mrb[19].mxu1  ;;  %v1914_v29 = vpop.f32.mrb[7].mxu0  ;;  %v1962_v35 = vmax.f32 %v1946_v49, 0.0  ;;  %v1964_v45 = vmax.f32 %v1948_v51, 0.0 }
 0x37b   : > { %v1951_v32 = vadd.f32 %v1925_v44, %v1861_v28  ;;  %v1953_v41 = vadd.f32 %v4855_v2, %v1914_v29  ;;  %v1963_v3 = vmax.f32 %v1947_v15, 0.0  ;;  %v1965_v6 = vmax.f32 %v1949_v11, 0.0 }
 0x37c   : > { %v1966_v48 = vmax.f32 %v1950_v36, 0.0  ;;  %v1968_v47 = vmax.f32 %v1952_v62, 0.0 }
 0x37d   : > { %v1967_v38 = vmax.f32 %v1951_v32, 0.0  ;;  %v1969_v8 = vmax.f32 %v1953_v41, 0.0 }
 0x37e   : > { %v4900_v9 = vpack.c.bf16 %v1966_v48, %v1962_v35  ;;  %v4902_v61 = vpack.c.bf16 %v1968_v47, %v1964_v45 }
 0x37f   : > { %v4904_v43 = vpack.c.bf16 %v1967_v38, %v1963_v3  ;;  %v4906_v7 = vpack.c.bf16 %v1969_v8, %v1965_v6 }
 0x38f   : > { %v4908_v10 = vpop.f32.mrb[20].mxu1 }
 0x390   : > { %v4910_v44 = vpop.f32.mrb[21].mxu1  ;;  %v2107_v12 = vmul.f32 %v4908_v10, %v4908_v10 }
 0x391   : > { %v4912_v2 = vpop.f32.mrb[22].mxu1  ;;  %v2105_v1 = vmul.f32 %v4910_v44, %v4910_v44 }
 0x392   : > { %v4914_v59 = vpop.f32.mrb[23].mxu1  ;;  %v2108_v30 = vmul.f32 %v4912_v2, %v4912_v2 }
 0x393   : > { %v2106_v42 = vmul.f32 %v4914_v59, %v4914_v59 }
 0x397   : > { %v4916_v39 = vpop.f32.mrb[24].mxu1 }
 0x398   : > { %v2111_v21 = vmul.f32 %v4916_v39, %v4916_v39  ;;  %v4922_v22 = vpop.f32.mrb[25].mxu1 }
 0x399   : > { %v2109_v26 = vmul.f32 %v4922_v22, %v4922_v22  ;;  %v4928_v27 = vpop.f32.mrb[26].mxu1 }
 0x39a   : > { %v2121_v31 = vadd.f32 %v2111_v21, %v2107_v12  ;;  %v2112_v63 = vmul.f32 %v4928_v27, %v4928_v27  ;;  %v4934_v37 = vpop.f32.mrb[27].mxu1 }
 0x39b   : > { %v2117_v57 = vadd.f32 %v2109_v26, %v2105_v1  ;;  %v2110_v0 = vmul.f32 %v4934_v37, %v4934_v37 }
 0x39c   : > { %v2123_v49 = vadd.f32 %v2112_v63, %v2108_v30 }
 0x39d   : > { %v2119_v51 = vadd.f32 %v2110_v0, %v2106_v42 }
 0x39f   : > { %v4940_v52 = vpop.f32.mrb[28].mxu1 }
 0x3a0   : > { %v2115_v58 = vmul.f32 %v4940_v52, %v4940_v52  ;;  %v4944_v15 = vpop.f32.mrb[29].mxu1 }
 0x3a1   : > { %v2113_v11 = vmul.f32 %v4944_v15, %v4944_v15  ;;  %v4948_v20 = vpop.f32.mrb[30].mxu1 }
 0x3a2   : > { %v2122_v23 = vadd.f32 %v2121_v31, %v2115_v58  ;;  %v2116_v36 = vmul.f32 %v4948_v20, %v4948_v20  ;;  %v4952_v62 = vpop.f32.mrb[31].mxu1 }
 0x3a3   : > { %v2118_v28 = vadd.f32 %v2117_v57, %v2113_v11  ;;  %v2114_v29 = vmul.f32 %v4952_v62, %v4952_v62 }
 0x3a4   : > { %v2127_v32 = vmax.f32 %v2122_v23, 1e-08  ;;  %v2124_v41 = vadd.f32 %v2123_v49, %v2116_v36 }
 0x3a5   : > { %v2125_v35 = vmax.f32 %v2118_v28, 1e-08  ;;  %v2120_v45 = vadd.f32 %v2119_v51, %v2114_v29 }
 0x3a6   : > { %4078 = vrsqrt.f32 %v2127_v32  ;;  %v2128_v48 = vmax.f32 %v2124_v41, 1e-08  ;;  %vm2145_vm9 = vcmp.eq.f32.partialorder %v2127_v32, inf  ;;  %v2148_v8 = vand.u32 2147483648, %v2127_v32 }
 0x3a7   : > { %4080 = vrsqrt.f32 %v2125_v35  ;;  %v2126_v47 = vmax.f32 %v2120_v45, 1e-08  ;;  %vm2147_vm10 = vcmp.eq.f32.partialorder %v2127_v32, 0.0  ;;  %vm2131_vm11 = vcmp.eq.f32.partialorder %v2125_v35, inf }
 0x3a8   : > { %4082 = vrsqrt.f32 %v2128_v48  ;;  %v2134_v1 = vand.u32 2147483648, %v2125_v35  ;;  %vm2133_vm12 = vcmp.eq.f32.partialorder %v2125_v35, 0.0  ;;  %vm2152_vm13 = vcmp.eq.f32.partialorder %v2128_v48, inf }
 0x3a9   : > { %4084 = vrsqrt.f32 %v2126_v47  ;;  %vm2154_vm14 = vcmp.eq.f32.partialorder %v2128_v48, 0.0  ;;  %v2155_v51 = vand.u32 2147483648, %v2128_v48  ;;  %vm2138_vm15 = vcmp.eq.f32.partialorder %v2126_v47, inf }
 0x3aa   : > { %v2141_v23 = vand.u32 2147483648, %v2126_v47  ;;  %vm2140_vm1 = vcmp.eq.f32.partialorder %v2126_v47, 0.0 }
 0x3b0   : > { %v4079_v3 = vpop.eup %4078 }
 0x3b1   : > { %v4081_v6 = vpop.eup %4080  ;;  %v2144_v38 = vmul.f32 %v4079_v3, %v2127_v32 }
 0x3b2   : > { %v2130_v12 = vmul.f32 %v4081_v6, %v2125_v35  ;;  %v4083_v26 = vpop.eup %4082 }
 0x3b3   : > { %v2146_v21 = vsel %vm2145_vm9, %v2127_v32, %v2144_v38  ;;  %v4085_v63 = vpop.eup %4084  ;;  %v2151_v0 = vmul.f32 %v4083_v26, %v2128_v48 }
 0x3b4   : > { %v2149_v30 = vsel %vm2147_vm10, %v2148_v8, %v2146_v21  ;;  %v2132_v31 = vsel %vm2131_vm11, %v2125_v35, %v2130_v12  ;;  %v2137_v58 = vmul.f32 %v4085_v63, %v2126_v47 }
 0x3b5   : > { %v3534_v42 = vmul.f32 -1.442695, %v2149_v30  ;;  %v2135_v57 = vsel %vm2133_vm12, %v2134_v1, %v2132_v31  ;;  %v2153_v11 = vsel %vm2152_vm13, %v2128_v48, %v2151_v0 }
 0x3b6   : > { %v3532_v49 = vmul.f32 -1.442695, %v2135_v57  ;;  %v2156_v36 = vsel %vm2154_vm14, %v2155_v51, %v2153_v11  ;;  %v2139_v28 = vsel %vm2138_vm15, %v2126_v47, %v2137_v58 }
 0x3b7   : > { %4086 = vpow2.f32 %v3534_v42  ;;  %v3535_v29 = vmul.f32 -1.442695, %v2156_v36  ;;  %v2142_v32 = vsel %vm2140_vm1, %v2141_v23, %v2139_v28  ;;  %v4013_v28 = vld [vmem:[%s5327_s13 + $0x18] sm:$0xff]  }
 0x3b8   : > { %4088 = vpow2.f32 %v3532_v49  ;;  %v3533_v41 = vmul.f32 -1.442695, %v2142_v32  ;;  %v4015_v32 = vld [vmem:[%s5327_s13 + $0x20] sm:$0xff]  }
 0x3b9   : > { %4090 = vpow2.f32 %v3535_v29  ;;  %v4014_v29 = vld [vmem:[%s5327_s13 + $0x60] sm:$0xff]  }
 0x3ba   : > { %4092 = vpow2.f32 %v3533_v41  ;;  %v4016_v41 = vld [vmem:[%s5327_s13 + $0x68] sm:$0xff]  }
 0x3c1   : > { %v4087_v35 = vpop.eup %4086 }
 0x3c2   : > { %v4089_v45 = vpop.eup %4088  ;;  %v2171_v3 = vadd.f32 1.0, %v4087_v35  ;;  %v4017_v35 = vld [vmem:[%s5327_s13 + $0x28] sm:$0xff]  }
 0x3c3   : > { %v2169_v6 = vadd.f32 1.0, %v4089_v45  ;;  %v4091_v38 = vpop.eup %4090  ;;  %v4018_v45 = vld [vmem:[%s5327_s13 + $0x70] sm:$0xff]  }
 0x3c4   : > { %4094 = vrcp.f32 %v2171_v3  ;;  %v4093_v8 = vpop.eup %4092  ;;  %v2172_v48 = vadd.f32 1.0, %v4091_v38  ;;  %v4019_v3 = vld [vmem:[%s5327_s13 + $0x30] sm:$0xff]   ;;  %v4022_v38 = vld [vmem:[%s5330_s16] sm:$0xff]  }
 0x3c5   : > { %4096 = vrcp.f32 %v2169_v6  ;;  %v2170_v12 = vadd.f32 1.0, %v4093_v8  ;;  %v4020_v6 = vld [vmem:[%s5327_s13 + $0x78] sm:$0xff]   ;;  %v4023_v8 = vld [vmem:[%s5330_s16 + $0x8] sm:$0xff]  }
 0x3c6   : > { %4098 = vrcp.f32 %v2172_v48  ;;  %v4024_v48 = vld [vmem:[%s5330_s16 + $0x10] sm:$0xff]  }
 0x3c7   : > { %4100 = vrcp.f32 %v2170_v12  ;;  %v4025_v12 = vld [vmem:[%s5330_s16 + $0x18] sm:$0xff]  }
 0x3ce   : > { %v4095_v21 = vpop.eup %4094 }
 0x3cf   : > { %v4097_v1 = vpop.eup %4096  ;;  %v2191_v47 = vmul.f32 %v4095_v21, %v4940_v52  ;;  %v2183_v26 = vmul.f32 %v4095_v21, %v4908_v10  ;;  %v2187_v30 = vmul.f32 %v4095_v21, %v4916_v39  ;;  %v4028_v21 = vld [vmem:[%s5330_s16 + $0x30] sm:$0xff]  }
 0x3d0   : > { %v2189_v31 = vmul.f32 %v4097_v1, %v4944_v15  ;;  %v2181_v63 = vmul.f32 %v4097_v1, %v4910_v44  ;;  %v2185_v42 = vmul.f32 %v4097_v1, %v4922_v22  ;;  %v4099_v57 = vpop.eup %4098  ;;  %v4007_v22 = vld [vmem:[%s5327_s13] sm:$0xff]  }
 0x3d1   : > { %v4101_v0 = vpop.eup %4100  ;;  %v2192_v49 = vmul.f32 %v4099_v57, %v4948_v20  ;;  %v2184_v51 = vmul.f32 %v4099_v57, %v4912_v2  ;;  %v2188_v58 = vmul.f32 %v4099_v57, %v4928_v27  ;;  %v4008_v2 = vld [vmem:[%s5327_s13 + $0x48] sm:$0xff]   ;;  %v4010_v27 = vld [vmem:[%s5327_s13 + $0x50] sm:$0xff]   ;;  %v4030_v1 = vld [vmem:[%s5328_s14] sm:$0xff]  }
 0x3d2   : > { %v2190_v52 = vmul.f32 %v4101_v0, %v4952_v62  ;;  %v2182_v10 = vmul.f32 %v4101_v0, %v4914_v59  ;;  %v2186_v39 = vmul.f32 %v4101_v0, %v4934_v37  ;;  %v4009_v59 = vld [vmem:[%s5327_s13 + $0x8] sm:$0xff]   ;;  %v4011_v37 = vld [vmem:[%s5327_s13 + $0x10] sm:$0xff]   ;;  %v4012_v62 = vld [vmem:[%s5327_s13 + $0x58] sm:$0xff]   ;;  %3796 = vmatprep.subr.bf16.mxu1 %v4030_v1 }
 0x3d3   : > { %v2311_v11 = vpack.c.bf16 %v2192_v49, %v2191_v47  ;;  %v2307_v15 = vpack.c.bf16 %v2184_v51, %v2183_v26  ;;  %v2309_v23 = vpack.c.bf16 %v2188_v58, %v2187_v30  ;;  %v4031_v47 = vld [vmem:[%s5328_s14 + $0x8] sm:$0xff]   ;;  %3797 = vmatpush3.bf16.msra.mxu1 %v4030_v1  ;;  %v4032_v26 = vld [vmem:[%s5328_s14 + $0x10] sm:$0xff]   ;;  %v4033_v30 = vld [vmem:[%s5328_s14 + $0x18] sm:$0xff]  }
 0x3d4   : > { %v2310_v44 = vpack.c.bf16 %v2190_v52, %v2189_v31  ;;  %v2306_v36 = vpack.c.bf16 %v2182_v10, %v2181_v63  ;;  %v2308_v20 = vpack.c.bf16 %v2186_v39, %v2185_v42  ;;  %3798 = vmatprep.subr.bf16.mxu1 %v4031_v47  ;;  %v4034_v31 = vld [vmem:[%s5328_s14 + $0x20] sm:$0xff]   ;;  %v4035_v63 = vld [vmem:[%s5328_s14 + $0x28] sm:$0xff]   ;;  %v4036_v42 = vld [vmem:[%s5328_s14 + $0x30] sm:$0xff]  }
 0x3d5   : > { %v4037_v57 = vld [vmem:[%s5328_s14 + $0x38] sm:$0xff]   ;;  %v4038_v0 = vld [vmem:[%s5327_s13 + $0xc0] sm:$0xff]  }
 0x3d6   : > { %3784 = vmatprep.mubr.bf16.mxu0 %v2306_v36 }
 0x3d7   : > { %3785 = vmatmul.mubr.bf16.vlgmr.msra.gmra.mrb[8].mxu0 %v2307_v15  ;;  %3799 = vmatpush3.bf16.msra.mxu1 %v4031_v47 }
 0x3d8   : > { %3651 = vmatpush3.bf16.msra.mxu0 %v4007_v22  ;;  %3788 = vmatprep.mubr.bf16.mxu0 %v2308_v20 }
 0x3d9   : > { %3652 = vmatprep.subr.bf16.mxu0 %v4008_v2  ;;  %3800 = vmatprep.subr.bf16.mxu1 %v4032_v26 }
 0x3db   : > { %3801 = vmatpush3.bf16.msra.mxu1 %v4032_v26 }
 0x3dc   : > { %3653 = vmatpush3.bf16.msra.mxu0 %v4009_v59  ;;  %3802 = vmatprep.subr.bf16.mxu1 %v4033_v30 }
 0x3dd   : > { %3654 = vmatprep.subr.bf16.mxu0 %v4010_v27 }
 0x3df   : > { %3789 = vmatmul.mubr.bf16.gmra.mrb[12].mxu0 %v2309_v23  ;;  %3803 = vmatpush3.bf16.msra.mxu1 %v4033_v30 }
 0x3e0   : > { %3655 = vmatpush3.bf16.msra.mxu0 %v4011_v37  ;;  %3792 = vmatprep.mubr.bf16.mxu0 %v2310_v44 }
 0x3e1   : > { %3656 = vmatprep.subr.bf16.mxu0 %v4012_v62  ;;  %3804 = vmatprep.subr.bf16.mxu1 %v4034_v31 }
 0x3e3   : > { %3805 = vmatpush3.bf16.msra.mxu1 %v4034_v31 }
 0x3e4   : > { %3657 = vmatpush3.bf16.msra.mxu0 %v4013_v28  ;;  %3806 = vmatprep.subr.bf16.mxu1 %v4035_v63 }
 0x3e5   : > { %3658 = vmatprep.subr.bf16.mxu0 %v4014_v29 }
 0x3e7   : > { %3793 = vmatmul.mubr.bf16.gmra.mrb[16].mxu0 %v2311_v11  ;;  %3807 = vmatpush3.bf16.msra.mxu1 %v4035_v63 }
 0x3e8   : > { %3659 = vmatpush3.bf16.msra.mxu0 %v4015_v32  ;;  %2824 = vmatprep.mubr.bf16.mxu0 %v4892_v33  ;;  %v4021_v33 = vld [vmem:[%s5327_s13 + $0x38] sm:$0xff]  }
 0x3e9   : > { %3660 = vmatprep.subr.bf16.mxu0 %v4016_v41  ;;  %3808 = vmatprep.subr.bf16.mxu1 %v4036_v42 }
 0x3eb   : > { %3809 = vmatpush3.bf16.msra.mxu1 %v4036_v42 }
 0x3ec   : > { %3661 = vmatpush3.bf16.msra.mxu0 %v4017_v35  ;;  %3810 = vmatprep.subr.bf16.mxu1 %v4037_v57 }
 0x3ed   : > { %3662 = vmatprep.subr.bf16.mxu0 %v4018_v45 }
 0x3ef   : > { %3811 = vmatpush3.bf16.msra.mxu1 %v4037_v57 }
 0x3f0   : > { %3663 = vmatpush3.bf16.msra.mxu0 %v4019_v3  ;;  %3678 = vmatprep.subr.bf16.mxu1 %v4038_v0 }
 0x3f1   : > { %3664 = vmatprep.subr.bf16.mxu0 %v4020_v6 }
 0x3f4   : > { %3665 = vmatpush3.bf16.msra.mxu0 %v4021_v33 }
 0x3f5   : > { %3816 = vmatprep.subr.bf16.mxu0 %v4022_v38 }
 0x3f7   : > { %2825 = vmatmul.mubr.bf16.vlgmr.msra.gmra.mrb[20].mxu0 %v4888_v24  ;;  %v4026_v24 = vld [vmem:[%s5330_s16 + $0x20] sm:$0xff]  }
 0x3f8   : > { %2832 = vmatprep.mubr.bf16.mxu0 %v4904_v43  ;;  %3817 = vmatpush3.bf16.msra.mxu0 %v4022_v38  ;;  %v4027_v43 = vld [vmem:[%s5330_s16 + $0x28] sm:$0xff]  }
 0x3f9   : > { %3818 = vmatprep.subr.bf16.mxu0 %v4023_v8 }
 0x3fc   : > { %3819 = vmatpush3.bf16.msra.mxu0 %v4023_v8 }
 0x3fd   : > { %3820 = vmatprep.subr.bf16.mxu0 %v4024_v48 }
 0x3ff   : > { %2833 = vmatmul.mubr.bf16.gmra.mrb[24].mxu0 %v4900_v9  ;;  %v4029_v9 = vld [vmem:[%s5330_s16 + $0x38] sm:$0xff]  }
 0x400   : > { %3821 = vmatpush3.bf16.msra.mxu0 %v4024_v48 }
 0x401   : > { %3822 = vmatprep.subr.bf16.mxu0 %v4025_v12 }
 0x404   : > { %3823 = vmatpush3.bf16.msra.mxu0 %v4025_v12 }
 0x405   : > { %3824 = vmatprep.subr.bf16.mxu0 %v4026_v24 }
 0x408   : > { %3825 = vmatpush3.bf16.msra.mxu0 %v4026_v24 }
 0x409   : > { %3826 = vmatprep.subr.bf16.mxu0 %v4027_v43 }
 0x40c   : > { %3827 = vmatpush3.bf16.msra.mxu0 %v4027_v43 }
 0x40d   : > { %3828 = vmatprep.subr.bf16.mxu0 %v4028_v21 }
 0x410   : > { %3829 = vmatpush3.bf16.msra.mxu0 %v4028_v21 }
 0x411   : > { %3830 = vmatprep.subr.bf16.mxu0 %v4029_v9 }
 0x414   : > { %3831 = vmatpush3.bf16.msra.mxu0 %v4029_v9 }
 0x4aa   : > { %v3786_v49 = vpop.f32.mrb[8].mxu0 }
 0x4ab   : > { %v2394_v51 = vpop.f32.mrb[9].mxu0  ;;  %v2451_v15 = vmul.f32 %v3786_v49, %v3786_v49 }
 0x4ac   : > { %v3787_v58 = vpop.f32.mrb[10].mxu0  ;;  %v2449_v36 = vmul.f32 %v2394_v51, %v2394_v51 }
 0x4ad   : > { %v2901_v52 = vpack.c.bf16 %v3787_v58, %v3786_v49  ;;  %v2397_v10 = vpop.f32.mrb[11].mxu0  ;;  %v2452_v2 = vmul.f32 %v3787_v58, %v3787_v58 }
 0x4ae   : > { %v2900_v39 = vpack.c.bf16 %v2397_v10, %v2394_v51  ;;  %v2450_v28 = vmul.f32 %v2397_v10, %v2397_v10 }
 0x4b0   : > { %3832 = vmatprep.mubr.bf16.mxu0 %v2900_v39 }
 0x4b1   : > { %3833 = vmatmul.mubr.bf16.vlgmr.msra.gmra.mrb[28].mxu0 %v2901_v52 }
 0x4b2   : > { %v3790_v11 = vpop.f32.mrb[12].mxu0 }
 0x4b3   : > { %v2455_v23 = vmul.f32 %v3790_v11, %v3790_v11  ;;  %v2410_v44 = vpop.f32.mrb[13].mxu0 }
 0x4b4   : > { %v2453_v22 = vmul.f32 %v2410_v44, %v2410_v44  ;;  %v3791_v20 = vpop.f32.mrb[14].mxu0 }
 0x4b5   : > { %v2465_v59 = vadd.f32 %v2455_v23, %v2451_v15  ;;  %v2456_v27 = vmul.f32 %v3791_v20, %v3791_v20  ;;  %v2903_v37 = vpack.c.bf16 %v3791_v20, %v3790_v11  ;;  %v2413_v62 = vpop.f32.mrb[15].mxu0 }
 0x4b6   : > { %v2461_v29 = vadd.f32 %v2453_v22, %v2449_v36  ;;  %v2454_v32 = vmul.f32 %v2413_v62, %v2413_v62  ;;  %v2902_v41 = vpack.c.bf16 %v2413_v62, %v2410_v44 }
 0x4b7   : > { %v2467_v35 = vadd.f32 %v2456_v27, %v2452_v2 }
 0x4b8   : > { %v2463_v45 = vadd.f32 %v2454_v32, %v2450_v28  ;;  %3836 = vmatprep.mubr.bf16.mxu0 %v2902_v41 }
 0x4b9   : > { %3837 = vmatmul.mubr.bf16.gmra.mrb[32].mxu0 %v2903_v37 }
 0x4ba   : > { %v3794_v3 = vpop.f32.mrb[16].mxu0 }
 0x4bb   : > { %v2459_v6 = vmul.f32 %v3794_v3, %v3794_v3  ;;  %v2426_v33 = vpop.f32.mrb[17].mxu0 }
 0x4bc   : > { %v2457_v38 = vmul.f32 %v2426_v33, %v2426_v33  ;;  %v3795_v8 = vpop.f32.mrb[18].mxu0 }
 0x4bd   : > { %v2466_v48 = vadd.f32 %v2465_v59, %v2459_v6  ;;  %v2460_v12 = vmul.f32 %v3795_v8, %v3795_v8  ;;  %v2905_v24 = vpack.c.bf16 %v3795_v8, %v3794_v3  ;;  %v2429_v43 = vpop.f32.mrb[19].mxu0  ;;  %v4039_v8 = vld [vmem:[%s5327_s13 + $0x80] sm:$0xff]  }
 0x4be   : > { %v2462_v21 = vadd.f32 %v2461_v29, %v2457_v38  ;;  %v2458_v9 = vmul.f32 %v2429_v43, %v2429_v43  ;;  %v2904_v1 = vpack.c.bf16 %v2429_v43, %v2426_v33 }
 0x4bf   : > { %v2471_v47 = vmax.f32 %v2466_v48, 1e-08  ;;  %v2468_v26 = vadd.f32 %v2467_v35, %v2460_v12 }
 0x4c0   : > { %v2469_v30 = vmax.f32 %v2462_v21, 1e-08  ;;  %v2464_v31 = vadd.f32 %v2463_v45, %v2458_v9  ;;  %3840 = vmatprep.mubr.bf16.mxu0 %v2904_v1  ;;  %v4041_v9 = vld [vmem:[%s5327_s13 + $0x88] sm:$0xff]   ;;  %v4042_v1 = vld [vmem:[%s5327_s13 + $0xd0] sm:$0xff]  }
 0x4c1   : > { %4102 = vrsqrt.f32 %v2471_v47  ;;  %v2472_v63 = vmax.f32 %v2468_v26, 1e-08  ;;  %3841 = vmatmul.mubr.bf16.gmra.mrb[36].mxu0 %v2905_v24  ;;  %vm2489_vm2 = vcmp.eq.f32.partialorder %v2471_v47, inf  ;;  %vm2491_vm3 = vcmp.eq.f32.partialorder %v2471_v47, 0.0  ;;  %v4040_v24 = vld [vmem:[%s5327_s13 + $0xc8] sm:$0xff]   ;;  %v4044_v26 = vld [vmem:[%s5327_s13 + $0xd8] sm:$0xff]  }
 0x4c2   : > { %4104 = vrsqrt.f32 %v2469_v30  ;;  %v2470_v42 = vmax.f32 %v2464_v31, 1e-08  ;;  %vm2475_vm4 = vcmp.eq.f32.partialorder %v2469_v30, inf  ;;  %vm2477_vm5 = vcmp.eq.f32.partialorder %v2469_v30, 0.0  ;;  %v4047_v31 = vld [vmem:[%s5327_s13 + $0xa0] sm:$0xff]  }
 0x4c3   : > { %4106 = vrsqrt.f32 %v2472_v63  ;;  %v2478_v23 = vand.u32 2147483648, %v2469_v30  ;;  %v2492_v20 = vand.u32 2147483648, %v2471_v47  ;;  %vm2496_vm6 = vcmp.eq.f32.partialorder %v2472_v63, inf }
 0x4c4   : > { %4108 = vrsqrt.f32 %v2470_v42  ;;  %v2499_v37 = vand.u32 2147483648, %v2472_v63  ;;  %vm2482_vm7 = vcmp.eq.f32.partialorder %v2470_v42, inf  ;;  %v2485_v62 = vand.u32 2147483648, %v2470_v42 }
 0x4c5   : > { %vm2498_vm8 = vcmp.eq.f32.partialorder %v2472_v63, 0.0  ;;  %vm2484_vm9 = vcmp.eq.f32.partialorder %v2470_v42, 0.0 }
 0x4ca   : > { %v3666_v57 = vpop.f32.mrb[20].mxu0 }
 0x4cb   : > { %v4103_v0 = vpop.eup %4102  ;;  %v3667_v49 = vpop.f32.mrb[21].mxu0 }
 0x4cc   : > { %v4105_v51 = vpop.eup %4104  ;;  %v5068_v58 = vadd.f32 %v3667_v49, %v3666_v57  ;;  %v3669_v52 = vpop.f32.mrb[22].mxu0  ;;  %v2488_v10 = vmul.f32 %v4103_v0, %v2471_v47  ;;  %v4050_v57 = vld [vmem:[%s5327_s13 + $0xf0] sm:$0xff]   ;;  %v4052_v49 = vld [vmem:[%s5327_s13 + $0xf8] sm:$0xff]  }
 0x4cd   : > { %v4107_v39 = vpop.eup %4106  ;;  %v3670_v11 = vpop.f32.mrb[23].mxu0  ;;  %v2474_v15 = vmul.f32 %v4105_v51, %v2469_v30  ;;  %v4051_v0 = vld [vmem:[%s5327_s13 + $0xb0] sm:$0xff]   ;;  %v4053_v51 = vld [vmem:[%s5327_s13 + $0xb8] sm:$0xff]  }
 0x4ce   : > { %v4109_v44 = vpop.eup %4108  ;;  %v5070_v36 = vadd.f32 %v3670_v11, %v3669_v52  ;;  %v2490_v22 = vsel %vm2489_vm2, %v2471_v47, %v2488_v10  ;;  %v2495_v2 = vmul.f32 %v4107_v39, %v2472_v63  ;;  %v4043_v47 = vld [vmem:[%s5327_s13 + $0x90] sm:$0xff]  }
 0x4cf   : > { %v2476_v59 = vsel %vm2475_vm4, %v2469_v30, %v2474_v15  ;;  %v2481_v27 = vmul.f32 %v4109_v44, %v2470_v42  ;;  %v2493_v32 = vsel %vm2491_vm3, %v2492_v20, %v2490_v22  ;;  %v4046_v30 = vld [vmem:[%s5327_s13 + $0xe0] sm:$0xff]  }
 0x4d0   : > { %v2497_v28 = vsel %vm2496_vm6, %v2472_v63, %v2495_v2  ;;  %v2479_v45 = vsel %vm2477_vm5, %v2478_v23, %v2476_v59  ;;  %v4048_v63 = vld [vmem:[%s5327_s13 + $0xe8] sm:$0xff]  }
 0x4d1   : > { %v2483_v29 = vsel %vm2482_vm7, %v2470_v42, %v2481_v27  ;;  %v2500_v41 = vsel %vm2498_vm8, %v2499_v37, %v2497_v28  ;;  %v4049_v42 = vld [vmem:[%s5327_s13 + $0xa8] sm:$0xff]  }
 0x4d2   : > { %v3672_v35 = vpop.f32.mrb[24].mxu0  ;;  %v2486_v3 = vsel %vm2484_vm9, %v2485_v62, %v2483_v29  ;;  %v2502_v6 = vpack.c.bf16 %v2500_v41, %v2493_v32 }
 0x4d3   : > { %v3673_v33 = vpop.f32.mrb[25].mxu0  ;;  %v2501_v38 = vpack.c.bf16 %v2486_v3, %v2479_v45 }
 0x4d4   : > { %v3674_v48 = vadd.f32 %v3673_v33, %v3672_v35  ;;  %v3675_v12 = vpop.f32.mrb[26].mxu0  ;;  %v3584_v33 = vld [vmem:[%s5329_s15] ss:$0 sm:$0xff] }
 0x4d5   : > { %v3676_v43 = vpop.f32.mrb[27].mxu0  ;;  %3812 = vmatprep.mubr.bf16.mxu1 %v2501_v38 }
 0x4d6   : > { %v3677_v21 = vadd.f32 %v3676_v43, %v3675_v12  ;;  %3813 = vmatmul.mubr.bf16.vlgmr.msra.gmra.mrb[32].mxu1 %v2502_v6 }
 0x4d7   : > { %3679 = vmatpush3.bf16.msra.mxu1 %v4039_v8  ;;  %2873 = vmatprep.mubr.bf16.mxu1 %v4894_v50  ;;  %v4045_v50 = vld [vmem:[%s5327_s13 + $0x98] sm:$0xff]  }
 0x4d8   : > { %3680 = vmatprep.subr.bf16.mxu1 %v4040_v24 }
 0x4db   : > { %3681 = vmatpush3.bf16.msra.mxu1 %v4041_v9 }
 0x4dc   : > { %3682 = vmatprep.subr.bf16.mxu1 %v4042_v1 }
 0x4df   : > { %3683 = vmatpush3.bf16.msra.mxu1 %v4043_v47 }
 0x4e0   : > { %3684 = vmatprep.subr.bf16.mxu1 %v4044_v26 }
 0x4e3   : > { %3685 = vmatpush3.bf16.msra.mxu1 %v4045_v50 }
 0x4e4   : > { %3686 = vmatprep.subr.bf16.mxu1 %v4046_v30 }
 0x4e7   : > { %3687 = vmatpush3.bf16.msra.mxu1 %v4047_v31 }
 0x4e8   : > { %3688 = vmatprep.subr.bf16.mxu1 %v4048_v63 }
 0x4eb   : > { %3689 = vmatpush3.bf16.msra.mxu1 %v4049_v42 }
 0x4ec   : > { %3690 = vmatprep.subr.bf16.mxu1 %v4050_v57 }
 0x4ef   : > { %3691 = vmatpush3.bf16.msra.mxu1 %v4051_v0 }
 0x4f0   : > { %3692 = vmatprep.subr.bf16.mxu1 %v4052_v49 }
 0x4f3   : > { %3693 = vmatpush3.bf16.msra.mxu1 %v4053_v51 }
 0x4f6   : > { %2874 = vmatmul.mubr.bf16.vlgmr.msra.gmra.mrb[36].mxu1 %v4890_v40 }
 0x4f7   : > { %2881 = vmatprep.mubr.bf16.mxu1 %v4906_v7 }
 0x4fe   : > { %2882 = vmatmul.mubr.bf16.gmra.mrb[40].mxu1 %v4902_v61 }
 0x584   : > { %v3834_v52 = vpop.f32.mrb[28].mxu0 }
 0x585   : > { %v2988_v10 = vpop.f32.mrb[29].mxu0 }
 0x586   : > { %v5123_v39 = vpop.f32.mrb[30].mxu0  ;;  %v5138_v0 = vadd.f32 %v2988_v10, %v4468_v55 }
 0x587   : > { %v2991_v11 = vpop.f32.mrb[31].mxu0 }
 0x588   : > { %v5147_v51 = vadd.f32 %v2991_v11, %v4471_v56 }
 0x58c   : > { %v3838_v15 = vpop.f32.mrb[32].mxu0 }
 0x58d   : > { %v3004_v23 = vpop.f32.mrb[33].mxu0 }
 0x58e   : > { %v3839_v44 = vpop.f32.mrb[34].mxu0 }
 0x58f   : > { %v3007_v22 = vpop.f32.mrb[35].mxu0  ;;  %v5163_v56 = vadd.f32 %v3839_v44, %v4499_v53  ;;  %v3118_v53 = vmul.f32 %v5147_v51, %v5147_v51 }
 0x594   : > { %v3842_v20 = vpop.f32.mrb[36].mxu0 }
 0x595   : > { %v3020_v2 = vpop.f32.mrb[37].mxu0  ;;  %v5168_v11 = vadd.f32 %v3842_v20, %v4520_v18 }
 0x596   : > { %v3843_v59 = vpop.f32.mrb[38].mxu0  ;;  %v5144_v49 = vadd.f32 %v3020_v2, %v4508_v60  ;;  %v3117_v60 = vmul.f32 %v5138_v0, %v5138_v0 }
 0x597   : > { %v3023_v27 = vpop.f32.mrb[39].mxu0  ;;  %v5184_v18 = vadd.f32 %v3843_v59, %v4517_v14  ;;  %v3127_v14 = vmul.f32 %v5168_v11, %v5168_v11 }
 0x5a9   : > { %v3814_v37 = vpop.f32.mrb[32].mxu1 }
 0x5aa   : > { %v2835_v62 = vadd.f32 %v3814_v37, %v3674_v48  ;;  %v2585_v40 = vpop.f32.mrb[33].mxu1  ;;  %v3124_v37 = vmul.f32 %v5163_v56, %v5163_v56 }
 0x5ab   : > { %v2827_v7 = vadd.f32 %v5068_v58, %v2585_v40  ;;  %v3815_v28 = vpop.f32.mrb[34].mxu1 }
 0x5ac   : > { %v2838_v61 = vadd.f32 %v3815_v28, %v3677_v21  ;;  %v2588_v29 = vpop.f32.mrb[35].mxu1  ;;  %v3134_v28 = vsel %vm1053_vm0, %v3118_v53, 0.0 }
 0x5ad   : > { %v2830_v32 = vadd.f32 %v5070_v36, %v2588_v29 }
 0x5c9   : > { %v3694_v41 = vpop.f32.mrb[36].mxu1 }
 0x5ca   : > { %v3695_v35 = vpop.f32.mrb[37].mxu1 }
 0x5cb   : > { %v3696_v45 = vadd.f32 %v3695_v35, %v3694_v41  ;;  %v3697_v3 = vpop.f32.mrb[38].mxu1  ;;  %v3128_v41 = vmul.f32 %v5184_v18, %v5184_v18 }
 0x5cc   : > { %v3698_v6 = vpop.f32.mrb[39].mxu1 }
 0x5cd   : > { %v2876_v38 = vadd.f32 %v3696_v45, %v2827_v7  ;;  %v3699_v8 = vadd.f32 %v3698_v6, %v3697_v3 }
 0x5cf   : > { %v2879_v48 = vadd.f32 %v3699_v8, %v2830_v32  ;;  %v2896_v12 = vadd.f32 %v3584_v33, %v2876_v38  ;;  %v3145_v8 = vsel %vm1053_vm0, %v3124_v37, 0.0 }
 0x5d1   : > { %v3700_v24 = vpop.f32.mrb[40].mxu1  ;;  %v3035_v58 = vadd.f32 %v2896_v12, %v4798_v25  ;;  %v2897_v43 = vadd.f32 %v3584_v33, %v2879_v48  ;;  %v5135_v25 = vadd.f32 %v3004_v23, %v4490_v5  ;;  %v5155_v23 = vadd.f32 %v3023_v27, %v4502_v13 }
 0x5d2   : > { %v3701_v21 = vpop.f32.mrb[41].mxu1  ;;  %v3125_v13 = vmul.f32 %v5144_v49, %v5144_v49  ;;  %v3129_v27 = vsel %vm1053_vm0, %v3117_v60, 0.0 }
 0x5d3   : > { %v3702_v9 = vadd.f32 %v3701_v21, %v3700_v24  ;;  %v3703_v36 = vpop.f32.mrb[42].mxu1  ;;  %3053 = vadd.xlane.f32.xlu1 %v3035_v58  ;;  %v3036_v1 = vadd.f32 %v2897_v43, %v4792_v19  ;;  %v5141_v19 = vadd.f32 %v3007_v22, %v4481_v54  ;;  %v5158_v54 = vadd.f32 %v3834_v52, %v4484_v16 }
 0x5d4   : > { %v3704_v47 = vpop.f32.mrb[43].mxu1  ;;  %v5176_v52 = vadd.f32 %v5123_v39, %v4487_v4  ;;  %v3126_v20 = vmul.f32 %v5155_v23, %v5155_v23  ;;  %v3132_v40 = vsel %vm1053_vm0, %v3125_v13, 0.0  ;;  %v3142_v24 = vsel %vm1053_vm0, %v3127_v14, 0.0 }
 0x5d5   : > { %v2884_v26 = vadd.f32 %v3702_v9, %v2835_v62  ;;  %v3705_v50 = vadd.f32 %v3704_v47, %v3703_v36  ;;  %3055 = vadd.xlane.f32.xlu0 %v3036_v1  ;;  %v3119_v39 = vmul.f32 %v5158_v54, %v5158_v54 }
 0x5d6   : > { %v3120_v7 = vmul.f32 %v5176_v52, %v5176_v52  ;;  %v3137_v45 = vsel %vm1053_vm0, %v3126_v20, 0.0 }
 0x5d7   : > { %v2887_v30 = vadd.f32 %v3705_v50, %v2838_v61  ;;  %v2898_v31 = vadd.f32 %v3584_v33, %v2884_v26  ;;  %v3139_v3 = vsel %vm1053_vm0, %v3119_v39, 0.0 }
 0x5d8   : > { %v3144_v21 = vsel %vm1053_vm0, %v3120_v7, 0.0  ;;  %v3593_v7 = vld [vmem:[%s5331_s17] ss:$0 sm:$0xff] }
 0x5d9   : > { %v3037_v63 = vadd.f32 %v2898_v31, %v4813_v34  ;;  %v2899_v42 = vadd.f32 %v3584_v33, %v2887_v30  ;;  %v5150_v34 = vadd.f32 %v3838_v15, %v4505_v17  ;;  %v3122_v17 = vmul.f32 %v5141_v19, %v5141_v19 }
 0x5da   : > { %v3146_v50 = vadd.f32 %v3145_v8, %v3144_v21 }
 0x5db   : > { %3057 = vadd.xlane.f32.xlu1 %v3037_v63  ;;  %v3038_v57 = vadd.f32 %v2899_v42, %v4808_v46  ;;  %v3121_v46 = vmul.f32 %v5135_v25, %v5135_v25  ;;  %v3123_v44 = vmul.f32 %v5150_v34, %v5150_v34  ;;  %v3135_v62 = vsel %vm1053_vm0, %v3122_v17, 0.0 }
 0x5dc   : > { %v3136_v38 = vadd.f32 %v3135_v62, %v3134_v28 }
 0x5dd   : > { %3059 = vadd.xlane.f32.xlu0 %v3038_v57  ;;  %v3130_v22 = vsel %vm1053_vm0, %v3121_v46, 0.0  ;;  %v3140_v32 = vsel %vm1053_vm0, %v3123_v44, 0.0 }
 0x5de   : > { %v3131_v29 = vadd.f32 %v3130_v22, %v3129_v27  ;;  %v3141_v43 = vadd.f32 %v3140_v32, %v3139_v3 }
 0x5e0   : > { %v3133_v33 = vadd.f32 %v3132_v40, %v3131_v29  ;;  %v3143_v26 = vadd.f32 %v3142_v24, %v3141_v43 }
 0x5e2   : > { %v3149_v47 = vmax.f32 %v3133_v33, 1e-08  ;;  %v3151_v46 = vmax.f32 %v3143_v26, 1e-08 }
 0x5e4   : > { %v3153_v42 = vsel %vm1053_vm0, %v3149_v47, 0.0 }
 0x660   : > { %v3054_v5 = vpop.xlane.xlu1 %3053 }
 0x661   : > { %v3061_v55 = vmul.f32 0.0078125, %v3054_v5 }
 0x662   : > { %v3056_v10 = vpop.xlane.xlu0 %3055 }
 0x663   : > { %v5172_v15 = vsub.f32 %v3035_v58, %v3061_v55  ;;  %v3062_v16 = vmul.f32 0.0078125, %v3056_v10  ;;  %v3138_v58 = vadd.f32 %v3137_v45, %v3136_v38  ;;  %v3159_v55 = vsel %vm1053_vm0, %v3151_v46, 0.0 }
 0x665   : > { %v5188_v2 = vsub.f32 %v3036_v1, %v3062_v16  ;;  %v3069_v4 = vmul.f32 %v5172_v15, %v5172_v15  ;;  %v3147_v1 = vsel %vm1053_vm0, %v3128_v41, 0.0  ;;  %v3150_v31 = vmax.f32 %v3138_v58, 1e-08  ;;  %v3594_v41 = vld [vmem:[%s5332_s18] ss:$0 sm:$0xff] }
 0x667   : > { %3073 = vadd.xlane.f32.xlu1 %v3069_v4  ;;  %v3070_v59 = vmul.f32 %v5188_v2, %v5188_v2 }
 0x668   : > { %v3058_v61 = vpop.xlane.xlu1 %3057 }
 0x669   : > { %v3063_v35 = vmul.f32 0.0078125, %v3058_v61  ;;  %3075 = vadd.xlane.f32.xlu0 %v3070_v59 }
 0x66a   : > { %v3060_v6 = vpop.xlane.xlu0 %3059 }
 0x66b   : > { %v5212_v48 = vsub.f32 %v3037_v63, %v3063_v35  ;;  %v3064_v12 = vmul.f32 0.0078125, %v3060_v6  ;;  %v3148_v63 = vadd.f32 %v3147_v1, %v3146_v50 }
 0x66d   : > { %v5216_v9 = vsub.f32 %v3038_v57, %v3064_v12  ;;  %v3071_v36 = vmul.f32 %v5212_v48, %v5212_v48  ;;  %v3156_v57 = vsel %vm1053_vm0, %v3150_v31, 0.0  ;;  %v3152_v5 = vmax.f32 %v3148_v63, 1e-08 }
 0x66f   : > { %3077 = vadd.xlane.f32.xlu1 %v3071_v36  ;;  %v3072_v30 = vmul.f32 %v5216_v9, %v5216_v9  ;;  %v3162_v60 = vsel %vm1053_vm0, %v3152_v5, 0.0 }
 0x671   : > { %3079 = vadd.xlane.f32.xlu0 %v3072_v30 }
 0x673   : > { %3154 = vadd.xlane.f32.xlu1 %v3153_v42 }
 0x675   : > { %3157 = vadd.xlane.f32.xlu0 %v3156_v57 }
 0x677   : > { %3160 = vadd.xlane.f32.xlu1 %v3159_v55 }
 0x679   : > { %3163 = vadd.xlane.f32.xlu0 %v3162_v60 }
 0x6f4   : > { %v3074_v17 = vpop.xlane.xlu1 %3073 }
 0x6f5   : > { %v3081_v10 = vmul.f32 0.0078125, %v3074_v17 }
 0x6f6   : > { %v3076_v13 = vpop.xlane.xlu0 %3075 }
 0x6f7   : > { %v3085_v16 = vadd.f32 1e-05, %v3081_v10  ;;  %v3082_v53 = vmul.f32 0.0078125, %v3076_v13 }
 0x6f9   : > { %4110 = vrsqrt.f32 %v3085_v16  ;;  %v3086_v44 = vadd.f32 1e-05, %v3082_v53 }
 0x6fb   : > { %4112 = vrsqrt.f32 %v3086_v44 }
 0x6fc   : > { %v3078_v22 = vpop.xlane.xlu1 %3077 }
 0x6fd   : > { %v3083_v20 = vmul.f32 0.0078125, %v3078_v22 }
 0x6fe   : > { %v3080_v4 = vpop.xlane.xlu0 %3079 }
 0x6ff   : > { %v3087_v39 = vadd.f32 1e-05, %v3083_v20  ;;  %v3084_v27 = vmul.f32 0.0078125, %v3080_v4 }
 0x700   : > { %v3155_v37 = vpop.xlane.xlu1 %3154 }
 0x701   : > { %4114 = vrsqrt.f32 %v3087_v39  ;;  %v3088_v62 = vadd.f32 1e-05, %v3084_v27  ;;  %v3165_v14 = vmul.f32 0.015625, %v3155_v37 }
 0x702   : > { %v3158_v59 = vpop.xlane.xlu0 %3157 }
 0x703   : > { %v4111_v40 = vpop.eup %4110  ;;  %4116 = vrsqrt.f32 %v3088_v62  ;;  %v3166_v28 = vmul.f32 0.015625, %v3158_v59 }
 0x704   : > { %v3093_v61 = vmul.f32 %v4111_v40, %v5172_v15  ;;  %4118 = vrsqrt.f32 %v3165_v14  ;;  %v3161_v29 = vpop.xlane.xlu1 %3160 }
 0x705   : > { %v4113_v32 = vpop.eup %4112  ;;  %4120 = vrsqrt.f32 %v3166_v28  ;;  %v3167_v35 = vmul.f32 0.015625, %v3161_v29 }
 0x706   : > { %v3103_v45 = vmul.f32 %v3593_v7, %v3093_v61  ;;  %v3094_v3 = vmul.f32 %v4113_v32, %v5188_v2  ;;  %v3164_v6 = vpop.xlane.xlu0 %3163 }
 0x707   : > { %4122 = vrsqrt.f32 %v3167_v35  ;;  %v3168_v15 = vmul.f32 0.015625, %v3164_v6 }
 0x708   : > { %v3113_v33 = vadd.f32 %v3594_v41, %v3103_v45  ;;  %v3104_v38 = vmul.f32 %v3593_v7, %v3094_v3 }
 0x709   : > { %4124 = vrsqrt.f32 %v3168_v15 }
 0x70a   : > { %3185 = vst [vmem:[%s5239_s29] sm:$0xff] %v3113_v33  ;;  %v3114_v8 = vadd.f32 %v3594_v41, %v3104_v38 }
 0x70b   : > { %v4115_v12 = vpop.eup %4114 }
 0x70c   : > { %3186 = vst [vmem:[%s5239_s29 + $0x8] sm:$0xff] %v3114_v8  ;;  %v3095_v2 = vmul.f32 %v4115_v12, %v5212_v48 }
 0x70d   : > { %v4117_v24 = vpop.eup %4116 }
 0x70e   : > { %v4119_v58 = vpop.eup %4118  ;;  %v3105_v43 = vmul.f32 %v3593_v7, %v3095_v2  ;;  %v3096_v21 = vmul.f32 %v4117_v24, %v5216_v9 }
 0x70f   : > { %v4121_v36 = vpop.eup %4120  ;;  %v3173_v1 = vmul.f32 %v4119_v58, %v5138_v0  ;;  %v3177_v47 = vmul.f32 %v4119_v58, %v5135_v25  ;;  %v3181_v26 = vmul.f32 %v4119_v58, %v5144_v49 }
 0x710   : > { %v3115_v50 = vadd.f32 %v3594_v41, %v3105_v43  ;;  %v3106_v30 = vmul.f32 %v3593_v7, %v3096_v21  ;;  %v3174_v31 = vmul.f32 %v4121_v36, %v5147_v51  ;;  %v3178_v63 = vmul.f32 %v4121_v36, %v5141_v19 }
 0x711   : > { %v4123_v48 = vpop.eup %4122  ;;  %3189 = vst.msk [vmem:[%s5251_s2] sm:$0xff] %vm1053_vm0, %v3173_v1  ;;  %3193 = vst.msk [vmem:[%s5251_s2 + $0x20] sm:$0xff] %vm1053_vm0, %v3177_v47  ;;  %v3182_v25 = vmul.f32 %v4121_v36, %v5155_v23  ;;  %3216 = sbr.rel (!%p4291_p5) target bundleno = 1825 (0x721), region = 180 }
 0x712   : > { %3197 = vst.msk [vmem:[%s5251_s2 + $0x40] sm:$0xff] %vm1053_vm0, %v3181_v26  ;;  %3187 = vst [vmem:[%s5239_s29 + $0x10] sm:$0xff] %v3115_v50  ;;  %v3116_v0 = vadd.f32 %v3594_v41, %v3106_v30  ;;  %v3175_v19 = vmul.f32 %v4123_v48, %v5158_v54  ;;  %v3179_v49 = vmul.f32 %v4123_v48, %v5150_v34 }
 0x713   : > { %3190 = vst.msk [vmem:[%s5251_s2 + $0x8] sm:$0xff] %vm1053_vm0, %v3174_v31  ;;  %3194 = vst.msk [vmem:[%s5251_s2 + $0x28] sm:$0xff] %vm1053_vm0, %v3178_v63  ;;  %v3183_v51 = vmul.f32 %v4123_v48, %v5168_v11  ;;  %v4125_v9 = vpop.eup %4124 }
 0x714   : > { %3198 = vst.msk [vmem:[%s5251_s2 + $0x48] sm:$0xff] %vm1053_vm0, %v3182_v25  ;;  %3188 = vst [vmem:[%s5239_s29 + $0x18] sm:$0xff] %v3116_v0  ;;  %v3176_v23 = vmul.f32 %v4125_v9, %v5176_v52  ;;  %v3180_v42 = vmul.f32 %v4125_v9, %v5163_v56  ;;  %v3184_v54 = vmul.f32 %v4125_v9, %v5184_v18 }
 0x715   : > { %3191 = vst.msk [vmem:[%s5251_s2 + $0x10] sm:$0xff] %vm1053_vm0, %v3175_v19  ;;  %3195 = vst.msk [vmem:[%s5251_s2 + $0x30] sm:$0xff] %vm1053_vm0, %v3179_v49 }
 0x716   : > { %3199 = vst.msk [vmem:[%s5251_s2 + $0x50] sm:$0xff] %vm1053_vm0, %v3183_v51  ;;  %3192 = vst.msk [vmem:[%s5251_s2 + $0x18] sm:$0xff] %vm1053_vm0, %v3176_v23 }
 0x717   : > { %3196 = vst.msk [vmem:[%s5251_s2 + $0x38] sm:$0xff] %vm1053_vm0, %v3180_v42  ;;  %3200 = vst.msk [vmem:[%s5251_s2 + $0x58] sm:$0xff] %vm1053_vm0, %v3184_v54 }
 0x718   : > { %v3269_v34 = vld [vmem:[%s5251_s2] sm:$0xff] }
 0x719   : > { %v3277_v18 = vld [vmem:[%s5251_s2 + $0x20] sm:$0xff]  ;;  %3270 = vst [vmem:[%s3219_s25] sm:$0xff] %v3269_v34 }
 0x71a   : > { %v3271_v56 = vld [vmem:[%s5251_s2 + $0x8] sm:$0xff]  ;;  %3278 = vst [vmem:[%s3219_s25 + $0x40] sm:$0xff] %v3277_v18  ;;  %v3285_v55 = vld [vmem:[%s5251_s2 + $0x40] sm:$0xff] }
 0x71b   : > { %v3279_v46 = vld [vmem:[%s5251_s2 + $0x28] sm:$0xff]  ;;  %3272 = vst [vmem:[%s3219_s25 + $0x8] sm:$0xff] %v3271_v56  ;;  %3286 = vst [vmem:[%s3219_s25 + $0x80] sm:$0xff] %v3285_v55 }
 0x71c   : > { %v3273_v11 = vld [vmem:[%s5251_s2 + $0x10] sm:$0xff]  ;;  %3280 = vst [vmem:[%s3219_s25 + $0x48] sm:$0xff] %v3279_v46  ;;  %v3287_v60 = vld [vmem:[%s5251_s2 + $0x48] sm:$0xff] }
 0x71d   : > { %v3275_v52 = vld [vmem:[%s5251_s2 + $0x18] sm:$0xff]  ;;  %3274 = vst [vmem:[%s3219_s25 + $0x10] sm:$0xff] %v3273_v11  ;;  %v3281_v57 = vld [vmem:[%s5251_s2 + $0x30] sm:$0xff]  ;;  %3288 = vst [vmem:[%s3219_s25 + $0x88] sm:$0xff] %v3287_v60 }
 0x71e   : > { %3276 = vst [vmem:[%s3219_s25 + $0x18] sm:$0xff] %v3275_v52  ;;  %v3283_v5 = vld [vmem:[%s5251_s2 + $0x38] sm:$0xff]  ;;  %3282 = vst [vmem:[%s3219_s25 + $0x50] sm:$0xff] %v3281_v57  ;;  %v3289_v17 = vld [vmem:[%s5251_s2 + $0x50] sm:$0xff] }
 0x71f   : > { %3284 = vst [vmem:[%s3219_s25 + $0x58] sm:$0xff] %v3283_v5  ;;  %v3291_v10 = vld [vmem:[%s5251_s2 + $0x58] sm:$0xff]  ;;  %3290 = vst [vmem:[%s3219_s25 + $0x90] sm:$0xff] %v3289_v17 }
 0x720   : > { %3292 = vst [vmem:[%s3219_s25 + $0x98] sm:$0xff] %v3291_v10 }
 0x721 PF: > { %s5351_s23 = sld [smem:[#allocation5_spill]]  ;;  %s5352_s24 = sld [smem:[#allocation6_spill]] }
 0x722   : > { %s5353_s1 = smov %s4144_s22 }
 0x727   : > { %p28_p11 = scmp.ge.s32.totalorder %s5351_s23, 4   ;;  %s5354_s22 = smov %s5352_s24 }
 0x729   :  { %30 = sbr.rel (!%p28_p11) target bundleno = 8 (0x8), region = 274 }

</bundles_post_ra>
